<compile_context>
chip_gen: v7x
topology: tpu7x:2x2x1
jax: 0.10.0
libtpu: 0.0.40
codegen_flags: <defaults>
</compile_context>

<pallas_src>
import jax
import jax.numpy as jnp
from jax.experimental import pallas as pl
from jax.experimental.pallas import tpu as pltpu


# --------------------------------------------------------------------------
# Fused forward kernel
# --------------------------------------------------------------------------

def _fused_cnn_kernel(x_ref,
                      w1_ref, b1_ref, w2_ref, b2_ref,
                      w3_ref, b3_ref, w4_ref, b4_ref,
                      wf1_ref, bf1_ref, wf2_ref, bf2_ref,
                      o_ref,
                      pad1, pad2, pad3, pad4):
    f32 = jnp.float32
    N, H, W, _ = x_ref.shape
    H2, W2 = H // 2, W // 2
    H4, W4 = H2 // 2, W2 // 2
    C4 = w4_ref.shape[2]

    def conv3x3(pad_ref, w_ref, b_ref):
        """3x3 / pad=1 / stride=1 conv: 9 accumulated MXU dots over shifted windows."""
        n, hp, wp, cin = pad_ref.shape
        h, w = hp - 2, wp - 2
        cout = w_ref.shape[2]
        m = n * h * w
        acc = jnp.zeros((m, cout), f32)
        for t in range(9):                      # static unroll: tap t = kh*3 + kw
            kh, kw = t // 3, t % 3
            win = pad_ref[:, kh:kh + h, kw:kw + w, :]          # (n, h, w, cin)
            acc = acc + jnp.dot(win.reshape(m, cin), w_ref[t],
                                preferred_element_type=f32)
        return acc + b_ref[...]                                 # bias (1, cout) broadcasts

    def pool_rows(acc, n, h, w, c):
        """Max over H row-pairs: (n*h*w, c) -> (n, h//2, w, c)."""
        a3 = acc.reshape(n * (h // 2), 2 * w, c)
        m = jnp.maximum(a3[:, :w, :], a3[:, w:, :])
        return m.reshape(n, h // 2, w, c)

    # Zero padded scratch buffers (borders stay zero; interiors are overwritten below).
    pad1[...] = jnp.zeros(pad1.shape, f32)
    pad2[...] = jnp.zeros(pad2.shape, f32)
    pad3[...] = jnp.zeros(pad3.shape, f32)
    pad4[...] = jnp.zeros(pad4.shape, f32)

    # Input -> padded conv1 scratch.
    pad1[:, 1:1 + H, 1:1 + W, :] = x_ref[...]

    # conv1 -> conv2
    a1 = conv3x3(pad1, w1_ref, b1_ref)                          # (N*H*W, C1)
    pad2[:, 1:1 + H, 1:1 + W, :] = a1.reshape(N, H, W, a1.shape[-1])
    a2 = conv3x3(pad2, w2_ref, b2_ref)                          # (N*H*W, C2)

    # max-pool 2x2/2 fused epilogue, written straight into conv3's padded scratch.
    vh = pool_rows(a2, N, H, W, a2.shape[-1])                   # (N, H2, W, C2)
    for j in range(W2):
        col = jnp.maximum(vh[:, :, 2 * j:2 * j + 1, :],
                          vh[:, :, 2 * j + 1:2 * j + 2, :])     # (N, H2, 1, C2)
        pad3[:, 1:1 + H2, 1 + j:2 + j, :] = col

    # conv3 -> conv4
    a3 = conv3x3(pad3, w3_ref, b3_ref)                          # (N*H2*W2, C3)
    pad4[:, 1:1 + H2, 1:1 + W2, :] = a3.reshape(N, H2, W2, a3.shape[-1])
    a4 = conv3x3(pad4, w4_ref, b4_ref)                          # (N*H2*W2, C4)

    # max-pool 2x2/2 + flatten in (h, w, c) order (fc1 weight is pre-permuted to match).
    vh4 = pool_rows(a4, N, H2, W2, C4)                          # (N, H4, W2, C4)
    cols = [jnp.maximum(vh4[:, :, 2 * j:2 * j + 1, :],
                        vh4[:, :, 2 * j + 1:2 * j + 2, :])      # (N, H4, 1, C4)
            for j in range(W4)]
    pwc = jnp.concatenate(cols, axis=-1)                        # (N, H4, 1, W4*C4), lanes = w*C4 + c
    rows = [pwc[:, i:i + 1, :, :] for i in range(H4)]           # (N, 1, 1, W4*C4)
    flat = jnp.concatenate(rows, axis=-1).reshape(N, H4 * W4 * C4)   # (N, feats), h*W4*C4 + w*C4 + c

    # fc1 + ReLU + fc2 fused epilogue; only this (N, 1) result goes to HBM.
    h1 = jnp.dot(flat, wf1_ref[...], preferred_element_type=f32) + bf1_ref[...]
    h1 = jnp.maximum(h1, 0.0)
    y = jnp.dot(h1, wf2_ref[...], preferred_element_type=f32) + bf2_ref[...]
    o_ref[...] = y.astype(o_ref.dtype)


# --------------------------------------------------------------------------
# Parameters (PyTorch layout) + one-time layout preparation + forward wrapper
# --------------------------------------------------------------------------

def init_params(key, anz_channals, input_size):
    """Deterministic random parameters in PyTorch layouts."""
    OUT = 8
    new_dim = int(int(input_size / 2) / 2)
    ks = jax.random.split(key, 12)

    def w(k, shape, scale=0.05):
        return jax.random.normal(k, shape, jnp.float32) * scale

    return {
        "conv1_w": w(ks[0], (OUT, anz_channals, 3, 3)),
        "conv1_b": w(ks[1], (OUT,)),
        "conv2_w": w(ks[2], (OUT * 2, OUT, 3, 3)),
        "conv2_b": w(ks[3], (OUT * 2,)),
        "conv3_w": w(ks[4], (OUT * 4, OUT * 2, 3, 3)),
        "conv3_b": w(ks[5], (OUT * 4,)),
        "conv4_w": w(ks[6], (OUT * 8, OUT * 4, 3, 3)),
        "conv4_b": w(ks[7], (OUT * 8,)),
        "fc1_w": w(ks[8], (128, OUT * 8 * new_dim * new_dim)),   # PyTorch (out, in)
        "fc1_b": w(ks[9], (128,)),
        "fc2_w": w(ks[10], (1, 128)),
        "fc2_b": w(ks[11], (1,)),
    }


def prepare_params(params, input_size):
    """One-time weight layout transforms (hoisted out of the per-call forward path)."""
    f32 = jnp.float32

    def conv_w(w):   # (Cout, Cin, 3, 3) -> (9, Cin, Cout), tap index t = kh*3 + kw
        cout, cin = w.shape[0], w.shape[1]
        return jnp.transpose(w, (2, 3, 1, 0)).reshape(9, cin, cout).astype(f32)

    nd = input_size // 4
    c4 = params["conv4_w"].shape[0]
    # PyTorch fc1 consumes an NCHW flatten (c, h, w); the kernel produces an NHWC flatten
    # (h, w, c), so permute the weight rows once here instead of transposing data in-kernel.
    wf1 = params["fc1_w"].reshape(128, c4, nd, nd)              # (j, c, h, w)
    wf1 = jnp.transpose(wf1, (2, 3, 1, 0)).reshape(nd * nd * c4, 128)

    return {
        "w1": conv_w(params["conv1_w"]), "b1": params["conv1_b"].reshape(1, -1).astype(f32),
        "w2": conv_w(params["conv2_w"]), "b2": params["conv2_b"].reshape(1, -1).astype(f32),
        "w3": conv_w(params["conv3_w"]), "b3": params["conv3_b"].reshape(1, -1).astype(f32),
        "w4": conv_w(params["conv4_w"]), "b4": params["conv4_b"].reshape(1, -1).astype(f32),
        "wf1": wf1.astype(f32), "bf1": params["fc1_b"].reshape(1, -1).astype(f32),
        "wf2": params["fc2_w"].T.astype(f32), "bf2": params["fc2_b"].reshape(1, -1).astype(f32),
    }


def cnn_forward(prep, x_nchw):
    """Fused forward. x_nchw: (N, C, H, W) like the PyTorch module; returns (N, 1)."""
    x = jnp.transpose(x_nchw, (0, 2, 3, 1)).astype(jnp.float32)     # NCHW -> NHWC
    N, H, W, Cin = x.shape
    assert H % 4 == 0 and W % 4 == 0, "spatial dims must be divisible by 4 (two 2x2/2 pools)"
    C1, C2, C3 = prep["w1"].shape[2], prep["w2"].shape[2], prep["w3"].shape[2]

    vmem = pl.BlockSpec(memory_space=pltpu.MemorySpace.VMEM)
    return pl.pallas_call(
        _fused_cnn_kernel,
        out_shape=jax.ShapeDtypeStruct((N, 1), jnp.float32),
        in_specs=[vmem] * 13,
        out_specs=vmem,
        scratch_shapes=[
            pltpu.VMEM((N, H + 2, W + 2, Cin), jnp.float32),            # padded conv1 input
            pltpu.VMEM((N, H + 2, W + 2, C1), jnp.float32),             # padded conv2 input
            pltpu.VMEM((N, H // 2 + 2, W // 2 + 2, C2), jnp.float32),   # padded conv3 input
            pltpu.VMEM((N, H // 2 + 2, W // 2 + 2, C3), jnp.float32),   # padded conv4 input
        ],
        compiler_params=pltpu.CompilerParams(vmem_limit_bytes=32 * 1024 * 1024),
        # TODO(synk): for production batch sizes add grid=(N,) with
        # dimension_semantics=("parallel",) so v7x's two TensorCores split the batch;
        # unnecessary (pure overhead) at N=2 / 16x16.
    )(x, prep["w1"], prep["b1"], prep["w2"], prep["b2"],
      prep["w3"], prep["b3"], prep["w4"], prep["b4"],
      prep["wf1"], prep["bf1"], prep["wf2"], prep["bf2"])


if __name__ == "__main__":
    key = jax.random.PRNGKey(0)
    kx, kp = jax.random.split(key)

    N, C, HW = 2, 4, 16                       # batch=2, channels=4, spatial=16
    x = jax.random.normal(kx, (N, C, HW, HW), jnp.float32)
    params = init_params(kp, anz_channals=C, input_size=HW)
    prep = prepare_params(params, HW)         # one-time weight layout prep (outside hot path)

    y = jax.jit(cnn_forward)(prep, x)
    jax.block_until_ready(y)
    assert y.shape == (N, 1) and y.dtype == jnp.float32
    print("KERNEL_OK")
</pallas_src>

<mosaic_0001>
module attributes {stable_mosaic.version = 11 : i64} {
  func.func @_fused_cnn_kernel(%arg0: memref<2x16x16x4xf32, #tpu.memory_space<vmem>>, %arg1: memref<9x4x8xf32, #tpu.memory_space<vmem>>, %arg2: memref<1x8xf32, #tpu.memory_space<vmem>>, %arg3: memref<9x8x16xf32, #tpu.memory_space<vmem>>, %arg4: memref<1x16xf32, #tpu.memory_space<vmem>>, %arg5: memref<9x16x32xf32, #tpu.memory_space<vmem>>, %arg6: memref<1x32xf32, #tpu.memory_space<vmem>>, %arg7: memref<9x32x64xf32, #tpu.memory_space<vmem>>, %arg8: memref<1x64xf32, #tpu.memory_space<vmem>>, %arg9: memref<1024x128xf32, #tpu.memory_space<vmem>>, %arg10: memref<1x128xf32, #tpu.memory_space<vmem>>, %arg11: memref<128x1xf32, #tpu.memory_space<vmem>>, %arg12: memref<1x1xf32, #tpu.memory_space<vmem>>, %arg13: memref<2x1xf32, #tpu.memory_space<vmem>>, %arg14: memref<2x18x18x4xf32, #tpu.memory_space<vmem>>, %arg15: memref<2x18x18x8xf32, #tpu.memory_space<vmem>>, %arg16: memref<2x10x10x16xf32, #tpu.memory_space<vmem>>, %arg17: memref<2x10x10x32xf32, #tpu.memory_space<vmem>>) attributes {dimension_semantics = [], scalar_prefetch = 0 : i64, scratch_operands = 4 : i64, tpu.core_type = #tpu.core_type<tc>} {
    %cst = arith.constant 0.000000e+00 : f32
    %0 = vector.broadcast %cst : f32 to vector<2x18x18x4xf32>
    %c0 = arith.constant 0 : index
    %c0_0 = arith.constant 0 : index
    %c0_1 = arith.constant 0 : index
    %c0_2 = arith.constant 0 : index
    %1 = vector.load %arg14[%c0, %c0_0, %c0_1, %c0_2] : memref<2x18x18x4xf32, #tpu.memory_space<vmem>>, vector<2x18x18x4xf32>
    tpu.vector_store %arg14[%c0, %c0_0, %c0_1, %c0_2], %0 {strides = array<i32>} : memref<2x18x18x4xf32, #tpu.memory_space<vmem>>, vector<2x18x18x4xf32>,
    %cst_3 = arith.constant 0.000000e+00 : f32
    %2 = vector.broadcast %cst_3 : f32 to vector<2x18x18x8xf32>
    %c0_4 = arith.constant 0 : index
    %c0_5 = arith.constant 0 : index
    %c0_6 = arith.constant 0 : index
    %c0_7 = arith.constant 0 : index
    %3 = vector.load %arg15[%c0_4, %c0_5, %c0_6, %c0_7] : memref<2x18x18x8xf32, #tpu.memory_space<vmem>>, vector<2x18x18x8xf32>
    tpu.vector_store %arg15[%c0_4, %c0_5, %c0_6, %c0_7], %2 {strides = array<i32>} : memref<2x18x18x8xf32, #tpu.memory_space<vmem>>, vector<2x18x18x8xf32>,
    %cst_8 = arith.constant 0.000000e+00 : f32
    %4 = vector.broadcast %cst_8 : f32 to vector<2x10x10x16xf32>
    %c0_9 = arith.constant 0 : index
    %c0_10 = arith.constant 0 : index
    %c0_11 = arith.constant 0 : index
    %c0_12 = arith.constant 0 : index
    %5 = vector.load %arg16[%c0_9, %c0_10, %c0_11, %c0_12] : memref<2x10x10x16xf32, #tpu.memory_space<vmem>>, vector<2x10x10x16xf32>
    tpu.vector_store %arg16[%c0_9, %c0_10, %c0_11, %c0_12], %4 {strides = array<i32>} : memref<2x10x10x16xf32, #tpu.memory_space<vmem>>, vector<2x10x10x16xf32>,
    %cst_13 = arith.constant 0.000000e+00 : f32
    %6 = vector.broadcast %cst_13 : f32 to vector<2x10x10x32xf32>
    %c0_14 = arith.constant 0 : index
    %c0_15 = arith.constant 0 : index
    %c0_16 = arith.constant 0 : index
    %c0_17 = arith.constant 0 : index
    %7 = vector.load %arg17[%c0_14, %c0_15, %c0_16, %c0_17] : memref<2x10x10x32xf32, #tpu.memory_space<vmem>>, vector<2x10x10x32xf32>
    tpu.vector_store %arg17[%c0_14, %c0_15, %c0_16, %c0_17], %6 {strides = array<i32>} : memref<2x10x10x32xf32, #tpu.memory_space<vmem>>, vector<2x10x10x32xf32>,
    %c0_18 = arith.constant 0 : index
    %c0_19 = arith.constant 0 : index
    %c0_20 = arith.constant 0 : index
    %c0_21 = arith.constant 0 : index
    %8 = vector.load %arg0[%c0_18, %c0_19, %c0_20, %c0_21] : memref<2x16x16x4xf32, #tpu.memory_space<vmem>>, vector<2x16x16x4xf32>
    %c0_22 = arith.constant 0 : index
    %c1 = arith.constant 1 : index
    %c1_23 = arith.constant 1 : index
    %c0_24 = arith.constant 0 : index
    %9 = vector.load %arg14[%c0_22, %c1, %c1_23, %c0_24] : memref<2x18x18x4xf32, #tpu.memory_space<vmem>>, vector<2x16x16x4xf32>
    tpu.vector_store %arg14[%c0_22, %c1, %c1_23, %c0_24], %8 {strides = array<i32>} : memref<2x18x18x4xf32, #tpu.memory_space<vmem>>, vector<2x16x16x4xf32>,
    %cst_25 = arith.constant 0.000000e+00 : f32
    %10 = vector.broadcast %cst_25 : f32 to vector<512x8xf32>
    %c0_26 = arith.constant 0 : index
    %c0_27 = arith.constant 0 : index
    %c0_28 = arith.constant 0 : index
    %c0_29 = arith.constant 0 : index
    %11 = vector.load %arg14[%c0_26, %c0_27, %c0_28, %c0_29] : memref<2x18x18x4xf32, #tpu.memory_space<vmem>>, vector<2x16x16x4xf32>
    %12 = vector.shape_cast %11 : vector<2x16x16x4xf32> to vector<512x4xf32>
    %c0_30 = arith.constant 0 : index
    %c0_31 = arith.constant 0 : index
    %c0_32 = arith.constant 0 : index
    %13 = vector.load %arg1[%c0_30, %c0_31, %c0_32] : memref<9x4x8xf32, #tpu.memory_space<vmem>>, vector<1x4x8xf32>
    %14 = vector.shape_cast %13 : vector<1x4x8xf32> to vector<4x8xf32>
    %cst_33 = arith.constant dense<0.000000e+00> : vector<512x8xf32>
    %15 = tpu.matmul %12, %14, %cst_33 {dimension_numbers = #tpu.dot_dimension_numbers<[1], [0], [0], [1], [0, 0, 1, 1], [], []>} : vector<512x4xf32>, vector<4x8xf32>, vector<512x8xf32> -> vector<512x8xf32>
    %16 = arith.addf %10, %15 : vector<512x8xf32>
    %c0_34 = arith.constant 0 : index
    %c0_35 = arith.constant 0 : index
    %c1_36 = arith.constant 1 : index
    %c0_37 = arith.constant 0 : index
    %17 = vector.load %arg14[%c0_34, %c0_35, %c1_36, %c0_37] : memref<2x18x18x4xf32, #tpu.memory_space<vmem>>, vector<2x16x16x4xf32>
    %18 = vector.shape_cast %17 : vector<2x16x16x4xf32> to vector<512x4xf32>
    %c1_38 = arith.constant 1 : index
    %c0_39 = arith.constant 0 : index
    %c0_40 = arith.constant 0 : index
    %19 = vector.load %arg1[%c1_38, %c0_39, %c0_40] : memref<9x4x8xf32, #tpu.memory_space<vmem>>, vector<1x4x8xf32>
    %20 = vector.shape_cast %19 : vector<1x4x8xf32> to vector<4x8xf32>
    %cst_41 = arith.constant dense<0.000000e+00> : vector<512x8xf32>
    %21 = tpu.matmul %18, %20, %cst_41 {dimension_numbers = #tpu.dot_dimension_numbers<[1], [0], [0], [1], [0, 0, 1, 1], [], []>} : vector<512x4xf32>, vector<4x8xf32>, vector<512x8xf32> -> vector<512x8xf32>
    %22 = arith.addf %16, %21 : vector<512x8xf32>
    %c0_42 = arith.constant 0 : index
    %c0_43 = arith.constant 0 : index
    %c2 = arith.constant 2 : index
    %c0_44 = arith.constant 0 : index
    %23 = vector.load %arg14[%c0_42, %c0_43, %c2, %c0_44] : memref<2x18x18x4xf32, #tpu.memory_space<vmem>>, vector<2x16x16x4xf32>
    %24 = vector.shape_cast %23 : vector<2x16x16x4xf32> to vector<512x4xf32>
    %c2_45 = arith.constant 2 : index
    %c0_46 = arith.constant 0 : index
    %c0_47 = arith.constant 0 : index
    %25 = vector.load %arg1[%c2_45, %c0_46, %c0_47] : memref<9x4x8xf32, #tpu.memory_space<vmem>>, vector<1x4x8xf32>
    %26 = vector.shape_cast %25 : vector<1x4x8xf32> to vector<4x8xf32>
    %cst_48 = arith.constant dense<0.000000e+00> : vector<512x8xf32>
    %27 = tpu.matmul %24, %26, %cst_48 {dimension_numbers = #tpu.dot_dimension_numbers<[1], [0], [0], [1], [0, 0, 1, 1], [], []>} : vector<512x4xf32>, vector<4x8xf32>, vector<512x8xf32> -> vector<512x8xf32>
    %28 = arith.addf %22, %27 : vector<512x8xf32>
    %c0_49 = arith.constant 0 : index
    %c1_50 = arith.constant 1 : index
    %c0_51 = arith.constant 0 : index
    %c0_52 = arith.constant 0 : index
    %29 = vector.load %arg14[%c0_49, %c1_50, %c0_51, %c0_52] : memref<2x18x18x4xf32, #tpu.memory_space<vmem>>, vector<2x16x16x4xf32>
    %30 = vector.shape_cast %29 : vector<2x16x16x4xf32> to vector<512x4xf32>
    %c3 = arith.constant 3 : index
    %c0_53 = arith.constant 0 : index
    %c0_54 = arith.constant 0 : index
    %31 = vector.load %arg1[%c3, %c0_53, %c0_54] : memref<9x4x8xf32, #tpu.memory_space<vmem>>, vector<1x4x8xf32>
    %32 = vector.shape_cast %31 : vector<1x4x8xf32> to vector<4x8xf32>
    %cst_55 = arith.constant dense<0.000000e+00> : vector<512x8xf32>
    %33 = tpu.matmul %30, %32, %cst_55 {dimension_numbers = #tpu.dot_dimension_numbers<[1], [0], [0], [1], [0, 0, 1, 1], [], []>} : vector<512x4xf32>, vector<4x8xf32>, vector<512x8xf32> -> vector<512x8xf32>
    %34 = arith.addf %28, %33 : vector<512x8xf32>
    %c0_56 = arith.constant 0 : index
    %c1_57 = arith.constant 1 : index
    %c1_58 = arith.constant 1 : index
    %c0_59 = arith.constant 0 : index
    %35 = vector.load %arg14[%c0_56, %c1_57, %c1_58, %c0_59] : memref<2x18x18x4xf32, #tpu.memory_space<vmem>>, vector<2x16x16x4xf32>
    %36 = vector.shape_cast %35 : vector<2x16x16x4xf32> to vector<512x4xf32>
    %c4 = arith.constant 4 : index
    %c0_60 = arith.constant 0 : index
    %c0_61 = arith.constant 0 : index
    %37 = vector.load %arg1[%c4, %c0_60, %c0_61] : memref<9x4x8xf32, #tpu.memory_space<vmem>>, vector<1x4x8xf32>
    %38 = vector.shape_cast %37 : vector<1x4x8xf32> to vector<4x8xf32>
    %cst_62 = arith.constant dense<0.000000e+00> : vector<512x8xf32>
    %39 = tpu.matmul %36, %38, %cst_62 {dimension_numbers = #tpu.dot_dimension_numbers<[1], [0], [0], [1], [0, 0, 1, 1], [], []>} : vector<512x4xf32>, vector<4x8xf32>, vector<512x8xf32> -> vector<512x8xf32>
    %40 = arith.addf %34, %39 : vector<512x8xf32>
    %c0_63 = arith.constant 0 : index
    %c1_64 = arith.constant 1 : index
    %c2_65 = arith.constant 2 : index
    %c0_66 = arith.constant 0 : index
    %41 = vector.load %arg14[%c0_63, %c1_64, %c2_65, %c0_66] : memref<2x18x18x4xf32, #tpu.memory_space<vmem>>, vector<2x16x16x4xf32>
    %42 = vector.shape_cast %41 : vector<2x16x16x4xf32> to vector<512x4xf32>
    %c5 = arith.constant 5 : index
    %c0_67 = arith.constant 0 : index
    %c0_68 = arith.constant 0 : index
    %43 = vector.load %arg1[%c5, %c0_67, %c0_68] : memref<9x4x8xf32, #tpu.memory_space<vmem>>, vector<1x4x8xf32>
    %44 = vector.shape_cast %43 : vector<1x4x8xf32> to vector<4x8xf32>
    %cst_69 = arith.constant dense<0.000000e+00> : vector<512x8xf32>
    %45 = tpu.matmul %42, %44, %cst_69 {dimension_numbers = #tpu.dot_dimension_numbers<[1], [0], [0], [1], [0, 0, 1, 1], [], []>} : vector<512x4xf32>, vector<4x8xf32>, vector<512x8xf32> -> vector<512x8xf32>
    %46 = arith.addf %40, %45 : vector<512x8xf32>
    %c0_70 = arith.constant 0 : index
    %c2_71 = arith.constant 2 : index
    %c0_72 = arith.constant 0 : index
    %c0_73 = arith.constant 0 : index
    %47 = vector.load %arg14[%c0_70, %c2_71, %c0_72, %c0_73] : memref<2x18x18x4xf32, #tpu.memory_space<vmem>>, vector<2x16x16x4xf32>
    %48 = vector.shape_cast %47 : vector<2x16x16x4xf32> to vector<512x4xf32>
    %c6 = arith.constant 6 : index
    %c0_74 = arith.constant 0 : index
    %c0_75 = arith.constant 0 : index
    %49 = vector.load %arg1[%c6, %c0_74, %c0_75] : memref<9x4x8xf32, #tpu.memory_space<vmem>>, vector<1x4x8xf32>
    %50 = vector.shape_cast %49 : vector<1x4x8xf32> to vector<4x8xf32>
    %cst_76 = arith.constant dense<0.000000e+00> : vector<512x8xf32>
    %51 = tpu.matmul %48, %50, %cst_76 {dimension_numbers = #tpu.dot_dimension_numbers<[1], [0], [0], [1], [0, 0, 1, 1], [], []>} : vector<512x4xf32>, vector<4x8xf32>, vector<512x8xf32> -> vector<512x8xf32>
    %52 = arith.addf %46, %51 : vector<512x8xf32>
    %c0_77 = arith.constant 0 : index
    %c2_78 = arith.constant 2 : index
    %c1_79 = arith.constant 1 : index
    %c0_80 = arith.constant 0 : index
    %53 = vector.load %arg14[%c0_77, %c2_78, %c1_79, %c0_80] : memref<2x18x18x4xf32, #tpu.memory_space<vmem>>, vector<2x16x16x4xf32>
    %54 = vector.shape_cast %53 : vector<2x16x16x4xf32> to vector<512x4xf32>
    %c7 = arith.constant 7 : index
    %c0_81 = arith.constant 0 : index
    %c0_82 = arith.constant 0 : index
    %55 = vector.load %arg1[%c7, %c0_81, %c0_82] : memref<9x4x8xf32, #tpu.memory_space<vmem>>, vector<1x4x8xf32>
    %56 = vector.shape_cast %55 : vector<1x4x8xf32> to vector<4x8xf32>
    %cst_83 = arith.constant dense<0.000000e+00> : vector<512x8xf32>
    %57 = tpu.matmul %54, %56, %cst_83 {dimension_numbers = #tpu.dot_dimension_numbers<[1], [0], [0], [1], [0, 0, 1, 1], [], []>} : vector<512x4xf32>, vector<4x8xf32>, vector<512x8xf32> -> vector<512x8xf32>
    %58 = arith.addf %52, %57 : vector<512x8xf32>
    %c0_84 = arith.constant 0 : index
    %c2_85 = arith.constant 2 : index
    %c2_86 = arith.constant 2 : index
    %c0_87 = arith.constant 0 : index
    %59 = vector.load %arg14[%c0_84, %c2_85, %c2_86, %c0_87] : memref<2x18x18x4xf32, #tpu.memory_space<vmem>>, vector<2x16x16x4xf32>
    %60 = vector.shape_cast %59 : vector<2x16x16x4xf32> to vector<512x4xf32>
    %c8 = arith.constant 8 : index
    %c0_88 = arith.constant 0 : index
    %c0_89 = arith.constant 0 : index
    %61 = vector.load %arg1[%c8, %c0_88, %c0_89] : memref<9x4x8xf32, #tpu.memory_space<vmem>>, vector<1x4x8xf32>
    %62 = vector.shape_cast %61 : vector<1x4x8xf32> to vector<4x8xf32>
    %cst_90 = arith.constant dense<0.000000e+00> : vector<512x8xf32>
    %63 = tpu.matmul %60, %62, %cst_90 {dimension_numbers = #tpu.dot_dimension_numbers<[1], [0], [0], [1], [0, 0, 1, 1], [], []>} : vector<512x4xf32>, vector<4x8xf32>, vector<512x8xf32> -> vector<512x8xf32>
    %64 = arith.addf %58, %63 : vector<512x8xf32>
    %c0_91 = arith.constant 0 : index
    %c0_92 = arith.constant 0 : index
    %65 = vector.load %arg2[%c0_91, %c0_92] : memref<1x8xf32, #tpu.memory_space<vmem>>, vector<1x8xf32>
    %66 = vector.broadcast %65 : vector<1x8xf32> to vector<512x8xf32>
    %67 = arith.addf %64, %66 : vector<512x8xf32>
    %68 = vector.shape_cast %67 : vector<512x8xf32> to vector<2x16x16x8xf32>
    %c0_93 = arith.constant 0 : index
    %c1_94 = arith.constant 1 : index
    %c1_95 = arith.constant 1 : index
    %c0_96 = arith.constant 0 : index
    %69 = vector.load %arg15[%c0_93, %c1_94, %c1_95, %c0_96] : memref<2x18x18x8xf32, #tpu.memory_space<vmem>>, vector<2x16x16x8xf32>
    tpu.vector_store %arg15[%c0_93, %c1_94, %c1_95, %c0_96], %68 {strides = array<i32>} : memref<2x18x18x8xf32, #tpu.memory_space<vmem>>, vector<2x16x16x8xf32>,
    %cst_97 = arith.constant 0.000000e+00 : f32
    %70 = vector.broadcast %cst_97 : f32 to vector<512x16xf32>
    %c0_98 = arith.constant 0 : index
    %c0_99 = arith.constant 0 : index
    %c0_100 = arith.constant 0 : index
    %c0_101 = arith.constant 0 : index
    %71 = vector.load %arg15[%c0_98, %c0_99, %c0_100, %c0_101] : memref<2x18x18x8xf32, #tpu.memory_space<vmem>>, vector<2x16x16x8xf32>
    %72 = vector.shape_cast %71 : vector<2x16x16x8xf32> to vector<512x8xf32>
    %c0_102 = arith.constant 0 : index
    %c0_103 = arith.constant 0 : index
    %c0_104 = arith.constant 0 : index
    %73 = vector.load %arg3[%c0_102, %c0_103, %c0_104] : memref<9x8x16xf32, #tpu.memory_space<vmem>>, vector<1x8x16xf32>
    %74 = vector.shape_cast %73 : vector<1x8x16xf32> to vector<8x16xf32>
    %cst_105 = arith.constant dense<0.000000e+00> : vector<512x16xf32>
    %75 = tpu.matmul %72, %74, %cst_105 {dimension_numbers = #tpu.dot_dimension_numbers<[1], [0], [0], [1], [0, 0, 1, 1], [], []>} : vector<512x8xf32>, vector<8x16xf32>, vector<512x16xf32> -> vector<512x16xf32>
    %76 = arith.addf %70, %75 : vector<512x16xf32>
    %c0_106 = arith.constant 0 : index
    %c0_107 = arith.constant 0 : index
    %c1_108 = arith.constant 1 : index
    %c0_109 = arith.constant 0 : index
    %77 = vector.load %arg15[%c0_106, %c0_107, %c1_108, %c0_109] : memref<2x18x18x8xf32, #tpu.memory_space<vmem>>, vector<2x16x16x8xf32>
    %78 = vector.shape_cast %77 : vector<2x16x16x8xf32> to vector<512x8xf32>
    %c1_110 = arith.constant 1 : index
    %c0_111 = arith.constant 0 : index
    %c0_112 = arith.constant 0 : index
    %79 = vector.load %arg3[%c1_110, %c0_111, %c0_112] : memref<9x8x16xf32, #tpu.memory_space<vmem>>, vector<1x8x16xf32>
    %80 = vector.shape_cast %79 : vector<1x8x16xf32> to vector<8x16xf32>
    %cst_113 = arith.constant dense<0.000000e+00> : vector<512x16xf32>
    %81 = tpu.matmul %78, %80, %cst_113 {dimension_numbers = #tpu.dot_dimension_numbers<[1], [0], [0], [1], [0, 0, 1, 1], [], []>} : vector<512x8xf32>, vector<8x16xf32>, vector<512x16xf32> -> vector<512x16xf32>
    %82 = arith.addf %76, %81 : vector<512x16xf32>
    %c0_114 = arith.constant 0 : index
    %c0_115 = arith.constant 0 : index
    %c2_116 = arith.constant 2 : index
    %c0_117 = arith.constant 0 : index
    %83 = vector.load %arg15[%c0_114, %c0_115, %c2_116, %c0_117] : memref<2x18x18x8xf32, #tpu.memory_space<vmem>>, vector<2x16x16x8xf32>
    %84 = vector.shape_cast %83 : vector<2x16x16x8xf32> to vector<512x8xf32>
    %c2_118 = arith.constant 2 : index
    %c0_119 = arith.constant 0 : index
    %c0_120 = arith.constant 0 : index
    %85 = vector.load %arg3[%c2_118, %c0_119, %c0_120] : memref<9x8x16xf32, #tpu.memory_space<vmem>>, vector<1x8x16xf32>
    %86 = vector.shape_cast %85 : vector<1x8x16xf32> to vector<8x16xf32>
    %cst_121 = arith.constant dense<0.000000e+00> : vector<512x16xf32>
    %87 = tpu.matmul %84, %86, %cst_121 {dimension_numbers = #tpu.dot_dimension_numbers<[1], [0], [0], [1], [0, 0, 1, 1], [], []>} : vector<512x8xf32>, vector<8x16xf32>, vector<512x16xf32> -> vector<512x16xf32>
    %88 = arith.addf %82, %87 : vector<512x16xf32>
    %c0_122 = arith.constant 0 : index
    %c1_123 = arith.constant 1 : index
    %c0_124 = arith.constant 0 : index
    %c0_125 = arith.constant 0 : index
    %89 = vector.load %arg15[%c0_122, %c1_123, %c0_124, %c0_125] : memref<2x18x18x8xf32, #tpu.memory_space<vmem>>, vector<2x16x16x8xf32>
    %90 = vector.shape_cast %89 : vector<2x16x16x8xf32> to vector<512x8xf32>
    %c3_126 = arith.constant 3 : index
    %c0_127 = arith.constant 0 : index
    %c0_128 = arith.constant 0 : index
    %91 = vector.load %arg3[%c3_126, %c0_127, %c0_128] : memref<9x8x16xf32, #tpu.memory_space<vmem>>, vector<1x8x16xf32>
    %92 = vector.shape_cast %91 : vector<1x8x16xf32> to vector<8x16xf32>
    %cst_129 = arith.constant dense<0.000000e+00> : vector<512x16xf32>
    %93 = tpu.matmul %90, %92, %cst_129 {dimension_numbers = #tpu.dot_dimension_numbers<[1], [0], [0], [1], [0, 0, 1, 1], [], []>} : vector<512x8xf32>, vector<8x16xf32>, vector<512x16xf32> -> vector<512x16xf32>
    %94 = arith.addf %88, %93 : vector<512x16xf32>
    %c0_130 = arith.constant 0 : index
    %c1_131 = arith.constant 1 : index
    %c1_132 = arith.constant 1 : index
    %c0_133 = arith.constant 0 : index
    %95 = vector.load %arg15[%c0_130, %c1_131, %c1_132, %c0_133] : memref<2x18x18x8xf32, #tpu.memory_space<vmem>>, vector<2x16x16x8xf32>
    %96 = vector.shape_cast %95 : vector<2x16x16x8xf32> to vector<512x8xf32>
    %c4_134 = arith.constant 4 : index
    %c0_135 = arith.constant 0 : index
    %c0_136 = arith.constant 0 : index
    %97 = vector.load %arg3[%c4_134, %c0_135, %c0_136] : memref<9x8x16xf32, #tpu.memory_space<vmem>>, vector<1x8x16xf32>
    %98 = vector.shape_cast %97 : vector<1x8x16xf32> to vector<8x16xf32>
    %cst_137 = arith.constant dense<0.000000e+00> : vector<512x16xf32>
    %99 = tpu.matmul %96, %98, %cst_137 {dimension_numbers = #tpu.dot_dimension_numbers<[1], [0], [0], [1], [0, 0, 1, 1], [], []>} : vector<512x8xf32>, vector<8x16xf32>, vector<512x16xf32> -> vector<512x16xf32>
    %100 = arith.addf %94, %99 : vector<512x16xf32>
    %c0_138 = arith.constant 0 : index
    %c1_139 = arith.constant 1 : index
    %c2_140 = arith.constant 2 : index
    %c0_141 = arith.constant 0 : index
    %101 = vector.load %arg15[%c0_138, %c1_139, %c2_140, %c0_141] : memref<2x18x18x8xf32, #tpu.memory_space<vmem>>, vector<2x16x16x8xf32>
    %102 = vector.shape_cast %101 : vector<2x16x16x8xf32> to vector<512x8xf32>
    %c5_142 = arith.constant 5 : index
    %c0_143 = arith.constant 0 : index
    %c0_144 = arith.constant 0 : index
    %103 = vector.load %arg3[%c5_142, %c0_143, %c0_144] : memref<9x8x16xf32, #tpu.memory_space<vmem>>, vector<1x8x16xf32>
    %104 = vector.shape_cast %103 : vector<1x8x16xf32> to vector<8x16xf32>
    %cst_145 = arith.constant dense<0.000000e+00> : vector<512x16xf32>
    %105 = tpu.matmul %102, %104, %cst_145 {dimension_numbers = #tpu.dot_dimension_numbers<[1], [0], [0], [1], [0, 0, 1, 1], [], []>} : vector<512x8xf32>, vector<8x16xf32>, vector<512x16xf32> -> vector<512x16xf32>
    %106 = arith.addf %100, %105 : vector<512x16xf32>
    %c0_146 = arith.constant 0 : index
    %c2_147 = arith.constant 2 : index
    %c0_148 = arith.constant 0 : index
    %c0_149 = arith.constant 0 : index
    %107 = vector.load %arg15[%c0_146, %c2_147, %c0_148, %c0_149] : memref<2x18x18x8xf32, #tpu.memory_space<vmem>>, vector<2x16x16x8xf32>
    %108 = vector.shape_cast %107 : vector<2x16x16x8xf32> to vector<512x8xf32>
    %c6_150 = arith.constant 6 : index
    %c0_151 = arith.constant 0 : index
    %c0_152 = arith.constant 0 : index
    %109 = vector.load %arg3[%c6_150, %c0_151, %c0_152] : memref<9x8x16xf32, #tpu.memory_space<vmem>>, vector<1x8x16xf32>
    %110 = vector.shape_cast %109 : vector<1x8x16xf32> to vector<8x16xf32>
    %cst_153 = arith.constant dense<0.000000e+00> : vector<512x16xf32>
    %111 = tpu.matmul %108, %110, %cst_153 {dimension_numbers = #tpu.dot_dimension_numbers<[1], [0], [0], [1], [0, 0, 1, 1], [], []>} : vector<512x8xf32>, vector<8x16xf32>, vector<512x16xf32> -> vector<512x16xf32>
    %112 = arith.addf %106, %111 : vector<512x16xf32>
    %c0_154 = arith.constant 0 : index
    %c2_155 = arith.constant 2 : index
    %c1_156 = arith.constant 1 : index
    %c0_157 = arith.constant 0 : index
    %113 = vector.load %arg15[%c0_154, %c2_155, %c1_156, %c0_157] : memref<2x18x18x8xf32, #tpu.memory_space<vmem>>, vector<2x16x16x8xf32>
    %114 = vector.shape_cast %113 : vector<2x16x16x8xf32> to vector<512x8xf32>
    %c7_158 = arith.constant 7 : index
    %c0_159 = arith.constant 0 : index
    %c0_160 = arith.constant 0 : index
    %115 = vector.load %arg3[%c7_158, %c0_159, %c0_160] : memref<9x8x16xf32, #tpu.memory_space<vmem>>, vector<1x8x16xf32>
    %116 = vector.shape_cast %115 : vector<1x8x16xf32> to vector<8x16xf32>
    %cst_161 = arith.constant dense<0.000000e+00> : vector<512x16xf32>
    %117 = tpu.matmul %114, %116, %cst_161 {dimension_numbers = #tpu.dot_dimension_numbers<[1], [0], [0], [1], [0, 0, 1, 1], [], []>} : vector<512x8xf32>, vector<8x16xf32>, vector<512x16xf32> -> vector<512x16xf32>
    %118 = arith.addf %112, %117 : vector<512x16xf32>
    %c0_162 = arith.constant 0 : index
    %c2_163 = arith.constant 2 : index
    %c2_164 = arith.constant 2 : index
    %c0_165 = arith.constant 0 : index
    %119 = vector.load %arg15[%c0_162, %c2_163, %c2_164, %c0_165] : memref<2x18x18x8xf32, #tpu.memory_space<vmem>>, vector<2x16x16x8xf32>
    %120 = vector.shape_cast %119 : vector<2x16x16x8xf32> to vector<512x8xf32>
    %c8_166 = arith.constant 8 : index
    %c0_167 = arith.constant 0 : index
    %c0_168 = arith.constant 0 : index
    %121 = vector.load %arg3[%c8_166, %c0_167, %c0_168] : memref<9x8x16xf32, #tpu.memory_space<vmem>>, vector<1x8x16xf32>
    %122 = vector.shape_cast %121 : vector<1x8x16xf32> to vector<8x16xf32>
    %cst_169 = arith.constant dense<0.000000e+00> : vector<512x16xf32>
    %123 = tpu.matmul %120, %122, %cst_169 {dimension_numbers = #tpu.dot_dimension_numbers<[1], [0], [0], [1], [0, 0, 1, 1], [], []>} : vector<512x8xf32>, vector<8x16xf32>, vector<512x16xf32> -> vector<512x16xf32>
    %124 = arith.addf %118, %123 : vector<512x16xf32>
    %c0_170 = arith.constant 0 : index
    %c0_171 = arith.constant 0 : index
    %125 = vector.load %arg4[%c0_170, %c0_171] : memref<1x16xf32, #tpu.memory_space<vmem>>, vector<1x16xf32>
    %126 = vector.broadcast %125 : vector<1x16xf32> to vector<512x16xf32>
    %127 = arith.addf %124, %126 : vector<512x16xf32>
    %128 = vector.shape_cast %127 : vector<512x16xf32> to vector<16x32x16xf32>
    %129 = vector.extract_strided_slice %128 {offsets = [0, 0, 0], sizes = [16, 16, 16], strides = [1, 1, 1]} : vector<16x32x16xf32> to vector<16x16x16xf32>
    %130 = vector.extract_strided_slice %128 {offsets = [0, 16, 0], sizes = [16, 16, 16], strides = [1, 1, 1]} : vector<16x32x16xf32> to vector<16x16x16xf32>
    %131 = arith.maximumf %129, %130 : vector<16x16x16xf32>
    %132 = vector.shape_cast %131 : vector<16x16x16xf32> to vector<2x8x16x16xf32>
    %133 = vector.extract_strided_slice %132 {offsets = [0, 0, 0, 0], sizes = [2, 8, 1, 16], strides = [1, 1, 1, 1]} : vector<2x8x16x16xf32> to vector<2x8x1x16xf32>
    %134 = vector.extract_strided_slice %132 {offsets = [0, 0, 1, 0], sizes = [2, 8, 1, 16], strides = [1, 1, 1, 1]} : vector<2x8x16x16xf32> to vector<2x8x1x16xf32>
    %135 = arith.maximumf %133, %134 : vector<2x8x1x16xf32>
    %c0_172 = arith.constant 0 : index
    %c1_173 = arith.constant 1 : index
    %c1_174 = arith.constant 1 : index
    %c0_175 = arith.constant 0 : index
    %136 = vector.load %arg16[%c0_172, %c1_173, %c1_174, %c0_175] : memref<2x10x10x16xf32, #tpu.memory_space<vmem>>, vector<2x8x1x16xf32>
    tpu.vector_store %arg16[%c0_172, %c1_173, %c1_174, %c0_175], %135 {strides = array<i32>} : memref<2x10x10x16xf32, #tpu.memory_space<vmem>>, vector<2x8x1x16xf32>,
    %137 = vector.extract_strided_slice %132 {offsets = [0, 0, 2, 0], sizes = [2, 8, 1, 16], strides = [1, 1, 1, 1]} : vector<2x8x16x16xf32> to vector<2x8x1x16xf32>
    %138 = vector.extract_strided_slice %132 {offsets = [0, 0, 3, 0], sizes = [2, 8, 1, 16], strides = [1, 1, 1, 1]} : vector<2x8x16x16xf32> to vector<2x8x1x16xf32>
    %139 = arith.maximumf %137, %138 : vector<2x8x1x16xf32>
    %c0_176 = arith.constant 0 : index
    %c1_177 = arith.constant 1 : index
    %c2_178 = arith.constant 2 : index
    %c0_179 = arith.constant 0 : index
    %140 = vector.load %arg16[%c0_176, %c1_177, %c2_178, %c0_179] : memref<2x10x10x16xf32, #tpu.memory_space<vmem>>, vector<2x8x1x16xf32>
    tpu.vector_store %arg16[%c0_176, %c1_177, %c2_178, %c0_179], %139 {strides = array<i32>} : memref<2x10x10x16xf32, #tpu.memory_space<vmem>>, vector<2x8x1x16xf32>,
    %141 = vector.extract_strided_slice %132 {offsets = [0, 0, 4, 0], sizes = [2, 8, 1, 16], strides = [1, 1, 1, 1]} : vector<2x8x16x16xf32> to vector<2x8x1x16xf32>
    %142 = vector.extract_strided_slice %132 {offsets = [0, 0, 5, 0], sizes = [2, 8, 1, 16], strides = [1, 1, 1, 1]} : vector<2x8x16x16xf32> to vector<2x8x1x16xf32>
    %143 = arith.maximumf %141, %142 : vector<2x8x1x16xf32>
    %c0_180 = arith.constant 0 : index
    %c1_181 = arith.constant 1 : index
    %c3_182 = arith.constant 3 : index
    %c0_183 = arith.constant 0 : index
    %144 = vector.load %arg16[%c0_180, %c1_181, %c3_182, %c0_183] : memref<2x10x10x16xf32, #tpu.memory_space<vmem>>, vector<2x8x1x16xf32>
    tpu.vector_store %arg16[%c0_180, %c1_181, %c3_182, %c0_183], %143 {strides = array<i32>} : memref<2x10x10x16xf32, #tpu.memory_space<vmem>>, vector<2x8x1x16xf32>,
    %145 = vector.extract_strided_slice %132 {offsets = [0, 0, 6, 0], sizes = [2, 8, 1, 16], strides = [1, 1, 1, 1]} : vector<2x8x16x16xf32> to vector<2x8x1x16xf32>
    %146 = vector.extract_strided_slice %132 {offsets = [0, 0, 7, 0], sizes = [2, 8, 1, 16], strides = [1, 1, 1, 1]} : vector<2x8x16x16xf32> to vector<2x8x1x16xf32>
    %147 = arith.maximumf %145, %146 : vector<2x8x1x16xf32>
    %c0_184 = arith.constant 0 : index
    %c1_185 = arith.constant 1 : index
    %c4_186 = arith.constant 4 : index
    %c0_187 = arith.constant 0 : index
    %148 = vector.load %arg16[%c0_184, %c1_185, %c4_186, %c0_187] : memref<2x10x10x16xf32, #tpu.memory_space<vmem>>, vector<2x8x1x16xf32>
    tpu.vector_store %arg16[%c0_184, %c1_185, %c4_186, %c0_187], %147 {strides = array<i32>} : memref<2x10x10x16xf32, #tpu.memory_space<vmem>>, vector<2x8x1x16xf32>,
    %149 = vector.extract_strided_slice %132 {offsets = [0, 0, 8, 0], sizes = [2, 8, 1, 16], strides = [1, 1, 1, 1]} : vector<2x8x16x16xf32> to vector<2x8x1x16xf32>
    %150 = vector.extract_strided_slice %132 {offsets = [0, 0, 9, 0], sizes = [2, 8, 1, 16], strides = [1, 1, 1, 1]} : vector<2x8x16x16xf32> to vector<2x8x1x16xf32>
    %151 = arith.maximumf %149, %150 : vector<2x8x1x16xf32>
    %c0_188 = arith.constant 0 : index
    %c1_189 = arith.constant 1 : index
    %c5_190 = arith.constant 5 : index
    %c0_191 = arith.constant 0 : index
    %152 = vector.load %arg16[%c0_188, %c1_189, %c5_190, %c0_191] : memref<2x10x10x16xf32, #tpu.memory_space<vmem>>, vector<2x8x1x16xf32>
    tpu.vector_store %arg16[%c0_188, %c1_189, %c5_190, %c0_191], %151 {strides = array<i32>} : memref<2x10x10x16xf32, #tpu.memory_space<vmem>>, vector<2x8x1x16xf32>,
    %153 = vector.extract_strided_slice %132 {offsets = [0, 0, 10, 0], sizes = [2, 8, 1, 16], strides = [1, 1, 1, 1]} : vector<2x8x16x16xf32> to vector<2x8x1x16xf32>
    %154 = vector.extract_strided_slice %132 {offsets = [0, 0, 11, 0], sizes = [2, 8, 1, 16], strides = [1, 1, 1, 1]} : vector<2x8x16x16xf32> to vector<2x8x1x16xf32>
    %155 = arith.maximumf %153, %154 : vector<2x8x1x16xf32>
    %c0_192 = arith.constant 0 : index
    %c1_193 = arith.constant 1 : index
    %c6_194 = arith.constant 6 : index
    %c0_195 = arith.constant 0 : index
    %156 = vector.load %arg16[%c0_192, %c1_193, %c6_194, %c0_195] : memref<2x10x10x16xf32, #tpu.memory_space<vmem>>, vector<2x8x1x16xf32>
    tpu.vector_store %arg16[%c0_192, %c1_193, %c6_194, %c0_195], %155 {strides = array<i32>} : memref<2x10x10x16xf32, #tpu.memory_space<vmem>>, vector<2x8x1x16xf32>,
    %157 = vector.extract_strided_slice %132 {offsets = [0, 0, 12, 0], sizes = [2, 8, 1, 16], strides = [1, 1, 1, 1]} : vector<2x8x16x16xf32> to vector<2x8x1x16xf32>
    %158 = vector.extract_strided_slice %132 {offsets = [0, 0, 13, 0], sizes = [2, 8, 1, 16], strides = [1, 1, 1, 1]} : vector<2x8x16x16xf32> to vector<2x8x1x16xf32>
    %159 = arith.maximumf %157, %158 : vector<2x8x1x16xf32>
    %c0_196 = arith.constant 0 : index
    %c1_197 = arith.constant 1 : index
    %c7_198 = arith.constant 7 : index
    %c0_199 = arith.constant 0 : index
    %160 = vector.load %arg16[%c0_196, %c1_197, %c7_198, %c0_199] : memref<2x10x10x16xf32, #tpu.memory_space<vmem>>, vector<2x8x1x16xf32>
    tpu.vector_store %arg16[%c0_196, %c1_197, %c7_198, %c0_199], %159 {strides = array<i32>} : memref<2x10x10x16xf32, #tpu.memory_space<vmem>>, vector<2x8x1x16xf32>,
    %161 = vector.extract_strided_slice %132 {offsets = [0, 0, 14, 0], sizes = [2, 8, 1, 16], strides = [1, 1, 1, 1]} : vector<2x8x16x16xf32> to vector<2x8x1x16xf32>
    %162 = vector.extract_strided_slice %132 {offsets = [0, 0, 15, 0], sizes = [2, 8, 1, 16], strides = [1, 1, 1, 1]} : vector<2x8x16x16xf32> to vector<2x8x1x16xf32>
    %163 = arith.maximumf %161, %162 : vector<2x8x1x16xf32>
    %c0_200 = arith.constant 0 : index
    %c1_201 = arith.constant 1 : index
    %c8_202 = arith.constant 8 : index
    %c0_203 = arith.constant 0 : index
    %164 = vector.load %arg16[%c0_200, %c1_201, %c8_202, %c0_203] : memref<2x10x10x16xf32, #tpu.memory_space<vmem>>, vector<2x8x1x16xf32>
    tpu.vector_store %arg16[%c0_200, %c1_201, %c8_202, %c0_203], %163 {strides = array<i32>} : memref<2x10x10x16xf32, #tpu.memory_space<vmem>>, vector<2x8x1x16xf32>,
    %cst_204 = arith.constant 0.000000e+00 : f32
    %165 = vector.broadcast %cst_204 : f32 to vector<128x32xf32>
    %c0_205 = arith.constant 0 : index
    %c0_206 = arith.constant 0 : index
    %c0_207 = arith.constant 0 : index
    %c0_208 = arith.constant 0 : index
    %166 = vector.load %arg16[%c0_205, %c0_206, %c0_207, %c0_208] : memref<2x10x10x16xf32, #tpu.memory_space<vmem>>, vector<2x8x8x16xf32>
    %167 = vector.shape_cast %166 : vector<2x8x8x16xf32> to vector<128x16xf32>
    %c0_209 = arith.constant 0 : index
    %c0_210 = arith.constant 0 : index
    %c0_211 = arith.constant 0 : index
    %168 = vector.load %arg5[%c0_209, %c0_210, %c0_211] : memref<9x16x32xf32, #tpu.memory_space<vmem>>, vector<1x16x32xf32>
    %169 = vector.shape_cast %168 : vector<1x16x32xf32> to vector<16x32xf32>
    %cst_212 = arith.constant dense<0.000000e+00> : vector<128x32xf32>
    %170 = tpu.matmul %167, %169, %cst_212 {dimension_numbers = #tpu.dot_dimension_numbers<[1], [0], [0], [1], [0, 0, 1, 1], [], []>} : vector<128x16xf32>, vector<16x32xf32>, vector<128x32xf32> -> vector<128x32xf32>
    %171 = arith.addf %165, %170 : vector<128x32xf32>
    %c0_213 = arith.constant 0 : index
    %c0_214 = arith.constant 0 : index
    %c1_215 = arith.constant 1 : index
    %c0_216 = arith.constant 0 : index
    %172 = vector.load %arg16[%c0_213, %c0_214, %c1_215, %c0_216] : memref<2x10x10x16xf32, #tpu.memory_space<vmem>>, vector<2x8x8x16xf32>
    %173 = vector.shape_cast %172 : vector<2x8x8x16xf32> to vector<128x16xf32>
    %c1_217 = arith.constant 1 : index
    %c0_218 = arith.constant 0 : index
    %c0_219 = arith.constant 0 : index
    %174 = vector.load %arg5[%c1_217, %c0_218, %c0_219] : memref<9x16x32xf32, #tpu.memory_space<vmem>>, vector<1x16x32xf32>
    %175 = vector.shape_cast %174 : vector<1x16x32xf32> to vector<16x32xf32>
    %cst_220 = arith.constant dense<0.000000e+00> : vector<128x32xf32>
    %176 = tpu.matmul %173, %175, %cst_220 {dimension_numbers = #tpu.dot_dimension_numbers<[1], [0], [0], [1], [0, 0, 1, 1], [], []>} : vector<128x16xf32>, vector<16x32xf32>, vector<128x32xf32> -> vector<128x32xf32>
    %177 = arith.addf %171, %176 : vector<128x32xf32>
    %c0_221 = arith.constant 0 : index
    %c0_222 = arith.constant 0 : index
    %c2_223 = arith.constant 2 : index
    %c0_224 = arith.constant 0 : index
    %178 = vector.load %arg16[%c0_221, %c0_222, %c2_223, %c0_224] : memref<2x10x10x16xf32, #tpu.memory_space<vmem>>, vector<2x8x8x16xf32>
    %179 = vector.shape_cast %178 : vector<2x8x8x16xf32> to vector<128x16xf32>
    %c2_225 = arith.constant 2 : index
    %c0_226 = arith.constant 0 : index
    %c0_227 = arith.constant 0 : index
    %180 = vector.load %arg5[%c2_225, %c0_226, %c0_227] : memref<9x16x32xf32, #tpu.memory_space<vmem>>, vector<1x16x32xf32>
    %181 = vector.shape_cast %180 : vector<1x16x32xf32> to vector<16x32xf32>
    %cst_228 = arith.constant dense<0.000000e+00> : vector<128x32xf32>
    %182 = tpu.matmul %179, %181, %cst_228 {dimension_numbers = #tpu.dot_dimension_numbers<[1], [0], [0], [1], [0, 0, 1, 1], [], []>} : vector<128x16xf32>, vector<16x32xf32>, vector<128x32xf32> -> vector<128x32xf32>
    %183 = arith.addf %177, %182 : vector<128x32xf32>
    %c0_229 = arith.constant 0 : index
    %c1_230 = arith.constant 1 : index
    %c0_231 = arith.constant 0 : index
    %c0_232 = arith.constant 0 : index
    %184 = vector.load %arg16[%c0_229, %c1_230, %c0_231, %c0_232] : memref<2x10x10x16xf32, #tpu.memory_space<vmem>>, vector<2x8x8x16xf32>
    %185 = vector.shape_cast %184 : vector<2x8x8x16xf32> to vector<128x16xf32>
    %c3_233 = arith.constant 3 : index
    %c0_234 = arith.constant 0 : index
    %c0_235 = arith.constant 0 : index
    %186 = vector.load %arg5[%c3_233, %c0_234, %c0_235] : memref<9x16x32xf32, #tpu.memory_space<vmem>>, vector<1x16x32xf32>
    %187 = vector.shape_cast %186 : vector<1x16x32xf32> to vector<16x32xf32>
    %cst_236 = arith.constant dense<0.000000e+00> : vector<128x32xf32>
    %188 = tpu.matmul %185, %187, %cst_236 {dimension_numbers = #tpu.dot_dimension_numbers<[1], [0], [0], [1], [0, 0, 1, 1], [], []>} : vector<128x16xf32>, vector<16x32xf32>, vector<128x32xf32> -> vector<128x32xf32>
    %189 = arith.addf %183, %188 : vector<128x32xf32>
    %c0_237 = arith.constant 0 : index
    %c1_238 = arith.constant 1 : index
    %c1_239 = arith.constant 1 : index
    %c0_240 = arith.constant 0 : index
    %190 = vector.load %arg16[%c0_237, %c1_238, %c1_239, %c0_240] : memref<2x10x10x16xf32, #tpu.memory_space<vmem>>, vector<2x8x8x16xf32>
    %191 = vector.shape_cast %190 : vector<2x8x8x16xf32> to vector<128x16xf32>
    %c4_241 = arith.constant 4 : index
    %c0_242 = arith.constant 0 : index
    %c0_243 = arith.constant 0 : index
    %192 = vector.load %arg5[%c4_241, %c0_242, %c0_243] : memref<9x16x32xf32, #tpu.memory_space<vmem>>, vector<1x16x32xf32>
    %193 = vector.shape_cast %192 : vector<1x16x32xf32> to vector<16x32xf32>
    %cst_244 = arith.constant dense<0.000000e+00> : vector<128x32xf32>
    %194 = tpu.matmul %191, %193, %cst_244 {dimension_numbers = #tpu.dot_dimension_numbers<[1], [0], [0], [1], [0, 0, 1, 1], [], []>} : vector<128x16xf32>, vector<16x32xf32>, vector<128x32xf32> -> vector<128x32xf32>
    %195 = arith.addf %189, %194 : vector<128x32xf32>
    %c0_245 = arith.constant 0 : index
    %c1_246 = arith.constant 1 : index
    %c2_247 = arith.constant 2 : index
    %c0_248 = arith.constant 0 : index
    %196 = vector.load %arg16[%c0_245, %c1_246, %c2_247, %c0_248] : memref<2x10x10x16xf32, #tpu.memory_space<vmem>>, vector<2x8x8x16xf32>
    %197 = vector.shape_cast %196 : vector<2x8x8x16xf32> to vector<128x16xf32>
    %c5_249 = arith.constant 5 : index
    %c0_250 = arith.constant 0 : index
    %c0_251 = arith.constant 0 : index
    %198 = vector.load %arg5[%c5_249, %c0_250, %c0_251] : memref<9x16x32xf32, #tpu.memory_space<vmem>>, vector<1x16x32xf32>
    %199 = vector.shape_cast %198 : vector<1x16x32xf32> to vector<16x32xf32>
    %cst_252 = arith.constant dense<0.000000e+00> : vector<128x32xf32>
    %200 = tpu.matmul %197, %199, %cst_252 {dimension_numbers = #tpu.dot_dimension_numbers<[1], [0], [0], [1], [0, 0, 1, 1], [], []>} : vector<128x16xf32>, vector<16x32xf32>, vector<128x32xf32> -> vector<128x32xf32>
    %201 = arith.addf %195, %200 : vector<128x32xf32>
    %c0_253 = arith.constant 0 : index
    %c2_254 = arith.constant 2 : index
    %c0_255 = arith.constant 0 : index
    %c0_256 = arith.constant 0 : index
    %202 = vector.load %arg16[%c0_253, %c2_254, %c0_255, %c0_256] : memref<2x10x10x16xf32, #tpu.memory_space<vmem>>, vector<2x8x8x16xf32>
    %203 = vector.shape_cast %202 : vector<2x8x8x16xf32> to vector<128x16xf32>
    %c6_257 = arith.constant 6 : index
    %c0_258 = arith.constant 0 : index
    %c0_259 = arith.constant 0 : index
    %204 = vector.load %arg5[%c6_257, %c0_258, %c0_259] : memref<9x16x32xf32, #tpu.memory_space<vmem>>, vector<1x16x32xf32>
    %205 = vector.shape_cast %204 : vector<1x16x32xf32> to vector<16x32xf32>
    %cst_260 = arith.constant dense<0.000000e+00> : vector<128x32xf32>
    %206 = tpu.matmul %203, %205, %cst_260 {dimension_numbers = #tpu.dot_dimension_numbers<[1], [0], [0], [1], [0, 0, 1, 1], [], []>} : vector<128x16xf32>, vector<16x32xf32>, vector<128x32xf32> -> vector<128x32xf32>
    %207 = arith.addf %201, %206 : vector<128x32xf32>
    %c0_261 = arith.constant 0 : index
    %c2_262 = arith.constant 2 : index
    %c1_263 = arith.constant 1 : index
    %c0_264 = arith.constant 0 : index
    %208 = vector.load %arg16[%c0_261, %c2_262, %c1_263, %c0_264] : memref<2x10x10x16xf32, #tpu.memory_space<vmem>>, vector<2x8x8x16xf32>
    %209 = vector.shape_cast %208 : vector<2x8x8x16xf32> to vector<128x16xf32>
    %c7_265 = arith.constant 7 : index
    %c0_266 = arith.constant 0 : index
    %c0_267 = arith.constant 0 : index
    %210 = vector.load %arg5[%c7_265, %c0_266, %c0_267] : memref<9x16x32xf32, #tpu.memory_space<vmem>>, vector<1x16x32xf32>
    %211 = vector.shape_cast %210 : vector<1x16x32xf32> to vector<16x32xf32>
    %cst_268 = arith.constant dense<0.000000e+00> : vector<128x32xf32>
    %212 = tpu.matmul %209, %211, %cst_268 {dimension_numbers = #tpu.dot_dimension_numbers<[1], [0], [0], [1], [0, 0, 1, 1], [], []>} : vector<128x16xf32>, vector<16x32xf32>, vector<128x32xf32> -> vector<128x32xf32>
    %213 = arith.addf %207, %212 : vector<128x32xf32>
    %c0_269 = arith.constant 0 : index
    %c2_270 = arith.constant 2 : index
    %c2_271 = arith.constant 2 : index
    %c0_272 = arith.constant 0 : index
    %214 = vector.load %arg16[%c0_269, %c2_270, %c2_271, %c0_272] : memref<2x10x10x16xf32, #tpu.memory_space<vmem>>, vector<2x8x8x16xf32>
    %215 = vector.shape_cast %214 : vector<2x8x8x16xf32> to vector<128x16xf32>
    %c8_273 = arith.constant 8 : index
    %c0_274 = arith.constant 0 : index
    %c0_275 = arith.constant 0 : index
    %216 = vector.load %arg5[%c8_273, %c0_274, %c0_275] : memref<9x16x32xf32, #tpu.memory_space<vmem>>, vector<1x16x32xf32>
    %217 = vector.shape_cast %216 : vector<1x16x32xf32> to vector<16x32xf32>
    %cst_276 = arith.constant dense<0.000000e+00> : vector<128x32xf32>
    %218 = tpu.matmul %215, %217, %cst_276 {dimension_numbers = #tpu.dot_dimension_numbers<[1], [0], [0], [1], [0, 0, 1, 1], [], []>} : vector<128x16xf32>, vector<16x32xf32>, vector<128x32xf32> -> vector<128x32xf32>
    %219 = arith.addf %213, %218 : vector<128x32xf32>
    %c0_277 = arith.constant 0 : index
    %c0_278 = arith.constant 0 : index
    %220 = vector.load %arg6[%c0_277, %c0_278] : memref<1x32xf32, #tpu.memory_space<vmem>>, vector<1x32xf32>
    %221 = vector.broadcast %220 : vector<1x32xf32> to vector<128x32xf32>
    %222 = arith.addf %219, %221 : vector<128x32xf32>
    %223 = vector.shape_cast %222 : vector<128x32xf32> to vector<2x8x8x32xf32>
    %c0_279 = arith.constant 0 : index
    %c1_280 = arith.constant 1 : index
    %c1_281 = arith.constant 1 : index
    %c0_282 = arith.constant 0 : index
    %224 = vector.load %arg17[%c0_279, %c1_280, %c1_281, %c0_282] : memref<2x10x10x32xf32, #tpu.memory_space<vmem>>, vector<2x8x8x32xf32>
    tpu.vector_store %arg17[%c0_279, %c1_280, %c1_281, %c0_282], %223 {strides = array<i32>} : memref<2x10x10x32xf32, #tpu.memory_space<vmem>>, vector<2x8x8x32xf32>,
    %cst_283 = arith.constant 0.000000e+00 : f32
    %225 = vector.broadcast %cst_283 : f32 to vector<128x64xf32>
    %c0_284 = arith.constant 0 : index
    %c0_285 = arith.constant 0 : index
    %c0_286 = arith.constant 0 : index
    %c0_287 = arith.constant 0 : index
    %226 = vector.load %arg17[%c0_284, %c0_285, %c0_286, %c0_287] : memref<2x10x10x32xf32, #tpu.memory_space<vmem>>, vector<2x8x8x32xf32>
    %227 = vector.shape_cast %226 : vector<2x8x8x32xf32> to vector<128x32xf32>
    %c0_288 = arith.constant 0 : index
    %c0_289 = arith.constant 0 : index
    %c0_290 = arith.constant 0 : index
    %228 = vector.load %arg7[%c0_288, %c0_289, %c0_290] : memref<9x32x64xf32, #tpu.memory_space<vmem>>, vector<1x32x64xf32>
    %229 = vector.shape_cast %228 : vector<1x32x64xf32> to vector<32x64xf32>
    %cst_291 = arith.constant dense<0.000000e+00> : vector<128x64xf32>
    %230 = tpu.matmul %227, %229, %cst_291 {dimension_numbers = #tpu.dot_dimension_numbers<[1], [0], [0], [1], [0, 0, 1, 1], [], []>} : vector<128x32xf32>, vector<32x64xf32>, vector<128x64xf32> -> vector<128x64xf32>
    %231 = arith.addf %225, %230 : vector<128x64xf32>
    %c0_292 = arith.constant 0 : index
    %c0_293 = arith.constant 0 : index
    %c1_294 = arith.constant 1 : index
    %c0_295 = arith.constant 0 : index
    %232 = vector.load %arg17[%c0_292, %c0_293, %c1_294, %c0_295] : memref<2x10x10x32xf32, #tpu.memory_space<vmem>>, vector<2x8x8x32xf32>
    %233 = vector.shape_cast %232 : vector<2x8x8x32xf32> to vector<128x32xf32>
    %c1_296 = arith.constant 1 : index
    %c0_297 = arith.constant 0 : index
    %c0_298 = arith.constant 0 : index
    %234 = vector.load %arg7[%c1_296, %c0_297, %c0_298] : memref<9x32x64xf32, #tpu.memory_space<vmem>>, vector<1x32x64xf32>
    %235 = vector.shape_cast %234 : vector<1x32x64xf32> to vector<32x64xf32>
    %cst_299 = arith.constant dense<0.000000e+00> : vector<128x64xf32>
    %236 = tpu.matmul %233, %235, %cst_299 {dimension_numbers = #tpu.dot_dimension_numbers<[1], [0], [0], [1], [0, 0, 1, 1], [], []>} : vector<128x32xf32>, vector<32x64xf32>, vector<128x64xf32> -> vector<128x64xf32>
    %237 = arith.addf %231, %236 : vector<128x64xf32>
    %c0_300 = arith.constant 0 : index
    %c0_301 = arith.constant 0 : index
    %c2_302 = arith.constant 2 : index
    %c0_303 = arith.constant 0 : index
    %238 = vector.load %arg17[%c0_300, %c0_301, %c2_302, %c0_303] : memref<2x10x10x32xf32, #tpu.memory_space<vmem>>, vector<2x8x8x32xf32>
    %239 = vector.shape_cast %238 : vector<2x8x8x32xf32> to vector<128x32xf32>
    %c2_304 = arith.constant 2 : index
    %c0_305 = arith.constant 0 : index
    %c0_306 = arith.constant 0 : index
    %240 = vector.load %arg7[%c2_304, %c0_305, %c0_306] : memref<9x32x64xf32, #tpu.memory_space<vmem>>, vector<1x32x64xf32>
    %241 = vector.shape_cast %240 : vector<1x32x64xf32> to vector<32x64xf32>
    %cst_307 = arith.constant dense<0.000000e+00> : vector<128x64xf32>
    %242 = tpu.matmul %239, %241, %cst_307 {dimension_numbers = #tpu.dot_dimension_numbers<[1], [0], [0], [1], [0, 0, 1, 1], [], []>} : vector<128x32xf32>, vector<32x64xf32>, vector<128x64xf32> -> vector<128x64xf32>
    %243 = arith.addf %237, %242 : vector<128x64xf32>
    %c0_308 = arith.constant 0 : index
    %c1_309 = arith.constant 1 : index
    %c0_310 = arith.constant 0 : index
    %c0_311 = arith.constant 0 : index
    %244 = vector.load %arg17[%c0_308, %c1_309, %c0_310, %c0_311] : memref<2x10x10x32xf32, #tpu.memory_space<vmem>>, vector<2x8x8x32xf32>
    %245 = vector.shape_cast %244 : vector<2x8x8x32xf32> to vector<128x32xf32>
    %c3_312 = arith.constant 3 : index
    %c0_313 = arith.constant 0 : index
    %c0_314 = arith.constant 0 : index
    %246 = vector.load %arg7[%c3_312, %c0_313, %c0_314] : memref<9x32x64xf32, #tpu.memory_space<vmem>>, vector<1x32x64xf32>
    %247 = vector.shape_cast %246 : vector<1x32x64xf32> to vector<32x64xf32>
    %cst_315 = arith.constant dense<0.000000e+00> : vector<128x64xf32>
    %248 = tpu.matmul %245, %247, %cst_315 {dimension_numbers = #tpu.dot_dimension_numbers<[1], [0], [0], [1], [0, 0, 1, 1], [], []>} : vector<128x32xf32>, vector<32x64xf32>, vector<128x64xf32> -> vector<128x64xf32>
    %249 = arith.addf %243, %248 : vector<128x64xf32>
    %c0_316 = arith.constant 0 : index
    %c1_317 = arith.constant 1 : index
    %c1_318 = arith.constant 1 : index
    %c0_319 = arith.constant 0 : index
    %250 = vector.load %arg17[%c0_316, %c1_317, %c1_318, %c0_319] : memref<2x10x10x32xf32, #tpu.memory_space<vmem>>, vector<2x8x8x32xf32>
    %251 = vector.shape_cast %250 : vector<2x8x8x32xf32> to vector<128x32xf32>
    %c4_320 = arith.constant 4 : index
    %c0_321 = arith.constant 0 : index
    %c0_322 = arith.constant 0 : index
    %252 = vector.load %arg7[%c4_320, %c0_321, %c0_322] : memref<9x32x64xf32, #tpu.memory_space<vmem>>, vector<1x32x64xf32>
    %253 = vector.shape_cast %252 : vector<1x32x64xf32> to vector<32x64xf32>
    %cst_323 = arith.constant dense<0.000000e+00> : vector<128x64xf32>
    %254 = tpu.matmul %251, %253, %cst_323 {dimension_numbers = #tpu.dot_dimension_numbers<[1], [0], [0], [1], [0, 0, 1, 1], [], []>} : vector<128x32xf32>, vector<32x64xf32>, vector<128x64xf32> -> vector<128x64xf32>
    %255 = arith.addf %249, %254 : vector<128x64xf32>
    %c0_324 = arith.constant 0 : index
    %c1_325 = arith.constant 1 : index
    %c2_326 = arith.constant 2 : index
    %c0_327 = arith.constant 0 : index
    %256 = vector.load %arg17[%c0_324, %c1_325, %c2_326, %c0_327] : memref<2x10x10x32xf32, #tpu.memory_space<vmem>>, vector<2x8x8x32xf32>
    %257 = vector.shape_cast %256 : vector<2x8x8x32xf32> to vector<128x32xf32>
    %c5_328 = arith.constant 5 : index
    %c0_329 = arith.constant 0 : index
    %c0_330 = arith.constant 0 : index
    %258 = vector.load %arg7[%c5_328, %c0_329, %c0_330] : memref<9x32x64xf32, #tpu.memory_space<vmem>>, vector<1x32x64xf32>
    %259 = vector.shape_cast %258 : vector<1x32x64xf32> to vector<32x64xf32>
    %cst_331 = arith.constant dense<0.000000e+00> : vector<128x64xf32>
    %260 = tpu.matmul %257, %259, %cst_331 {dimension_numbers = #tpu.dot_dimension_numbers<[1], [0], [0], [1], [0, 0, 1, 1], [], []>} : vector<128x32xf32>, vector<32x64xf32>, vector<128x64xf32> -> vector<128x64xf32>
    %261 = arith.addf %255, %260 : vector<128x64xf32>
    %c0_332 = arith.constant 0 : index
    %c2_333 = arith.constant 2 : index
    %c0_334 = arith.constant 0 : index
    %c0_335 = arith.constant 0 : index
    %262 = vector.load %arg17[%c0_332, %c2_333, %c0_334, %c0_335] : memref<2x10x10x32xf32, #tpu.memory_space<vmem>>, vector<2x8x8x32xf32>
    %263 = vector.shape_cast %262 : vector<2x8x8x32xf32> to vector<128x32xf32>
    %c6_336 = arith.constant 6 : index
    %c0_337 = arith.constant 0 : index
    %c0_338 = arith.constant 0 : index
    %264 = vector.load %arg7[%c6_336, %c0_337, %c0_338] : memref<9x32x64xf32, #tpu.memory_space<vmem>>, vector<1x32x64xf32>
    %265 = vector.shape_cast %264 : vector<1x32x64xf32> to vector<32x64xf32>
    %cst_339 = arith.constant dense<0.000000e+00> : vector<128x64xf32>
    %266 = tpu.matmul %263, %265, %cst_339 {dimension_numbers = #tpu.dot_dimension_numbers<[1], [0], [0], [1], [0, 0, 1, 1], [], []>} : vector<128x32xf32>, vector<32x64xf32>, vector<128x64xf32> -> vector<128x64xf32>
    %267 = arith.addf %261, %266 : vector<128x64xf32>
    %c0_340 = arith.constant 0 : index
    %c2_341 = arith.constant 2 : index
    %c1_342 = arith.constant 1 : index
    %c0_343 = arith.constant 0 : index
    %268 = vector.load %arg17[%c0_340, %c2_341, %c1_342, %c0_343] : memref<2x10x10x32xf32, #tpu.memory_space<vmem>>, vector<2x8x8x32xf32>
    %269 = vector.shape_cast %268 : vector<2x8x8x32xf32> to vector<128x32xf32>
    %c7_344 = arith.constant 7 : index
    %c0_345 = arith.constant 0 : index
    %c0_346 = arith.constant 0 : index
    %270 = vector.load %arg7[%c7_344, %c0_345, %c0_346] : memref<9x32x64xf32, #tpu.memory_space<vmem>>, vector<1x32x64xf32>
    %271 = vector.shape_cast %270 : vector<1x32x64xf32> to vector<32x64xf32>
    %cst_347 = arith.constant dense<0.000000e+00> : vector<128x64xf32>
    %272 = tpu.matmul %269, %271, %cst_347 {dimension_numbers = #tpu.dot_dimension_numbers<[1], [0], [0], [1], [0, 0, 1, 1], [], []>} : vector<128x32xf32>, vector<32x64xf32>, vector<128x64xf32> -> vector<128x64xf32>
    %273 = arith.addf %267, %272 : vector<128x64xf32>
    %c0_348 = arith.constant 0 : index
    %c2_349 = arith.constant 2 : index
    %c2_350 = arith.constant 2 : index
    %c0_351 = arith.constant 0 : index
    %274 = vector.load %arg17[%c0_348, %c2_349, %c2_350, %c0_351] : memref<2x10x10x32xf32, #tpu.memory_space<vmem>>, vector<2x8x8x32xf32>
    %275 = vector.shape_cast %274 : vector<2x8x8x32xf32> to vector<128x32xf32>
    %c8_352 = arith.constant 8 : index
    %c0_353 = arith.constant 0 : index
    %c0_354 = arith.constant 0 : index
    %276 = vector.load %arg7[%c8_352, %c0_353, %c0_354] : memref<9x32x64xf32, #tpu.memory_space<vmem>>, vector<1x32x64xf32>
    %277 = vector.shape_cast %276 : vector<1x32x64xf32> to vector<32x64xf32>
    %cst_355 = arith.constant dense<0.000000e+00> : vector<128x64xf32>
    %278 = tpu.matmul %275, %277, %cst_355 {dimension_numbers = #tpu.dot_dimension_numbers<[1], [0], [0], [1], [0, 0, 1, 1], [], []>} : vector<128x32xf32>, vector<32x64xf32>, vector<128x64xf32> -> vector<128x64xf32>
    %279 = arith.addf %273, %278 : vector<128x64xf32>
    %c0_356 = arith.constant 0 : index
    %c0_357 = arith.constant 0 : index
    %280 = vector.load %arg8[%c0_356, %c0_357] : memref<1x64xf32, #tpu.memory_space<vmem>>, vector<1x64xf32>
    %281 = vector.broadcast %280 : vector<1x64xf32> to vector<128x64xf32>
    %282 = arith.addf %279, %281 : vector<128x64xf32>
    %283 = vector.shape_cast %282 : vector<128x64xf32> to vector<8x16x64xf32>
    %284 = vector.extract_strided_slice %283 {offsets = [0, 0, 0], sizes = [8, 8, 64], strides = [1, 1, 1]} : vector<8x16x64xf32> to vector<8x8x64xf32>
    %285 = vector.extract_strided_slice %283 {offsets = [0, 8, 0], sizes = [8, 8, 64], strides = [1, 1, 1]} : vector<8x16x64xf32> to vector<8x8x64xf32>
    %286 = arith.maximumf %284, %285 : vector<8x8x64xf32>
    %287 = vector.shape_cast %286 : vector<8x8x64xf32> to vector<2x4x8x64xf32>
    %288 = vector.extract_strided_slice %287 {offsets = [0, 0, 0, 0], sizes = [2, 4, 1, 64], strides = [1, 1, 1, 1]} : vector<2x4x8x64xf32> to vector<2x4x1x64xf32>
    %289 = vector.extract_strided_slice %287 {offsets = [0, 0, 1, 0], sizes = [2, 4, 1, 64], strides = [1, 1, 1, 1]} : vector<2x4x8x64xf32> to vector<2x4x1x64xf32>
    %290 = arith.maximumf %288, %289 : vector<2x4x1x64xf32>
    %291 = vector.extract_strided_slice %287 {offsets = [0, 0, 2, 0], sizes = [2, 4, 1, 64], strides = [1, 1, 1, 1]} : vector<2x4x8x64xf32> to vector<2x4x1x64xf32>
    %292 = vector.extract_strided_slice %287 {offsets = [0, 0, 3, 0], sizes = [2, 4, 1, 64], strides = [1, 1, 1, 1]} : vector<2x4x8x64xf32> to vector<2x4x1x64xf32>
    %293 = arith.maximumf %291, %292 : vector<2x4x1x64xf32>
    %294 = vector.extract_strided_slice %287 {offsets = [0, 0, 4, 0], sizes = [2, 4, 1, 64], strides = [1, 1, 1, 1]} : vector<2x4x8x64xf32> to vector<2x4x1x64xf32>
    %295 = vector.extract_strided_slice %287 {offsets = [0, 0, 5, 0], sizes = [2, 4, 1, 64], strides = [1, 1, 1, 1]} : vector<2x4x8x64xf32> to vector<2x4x1x64xf32>
    %296 = arith.maximumf %294, %295 : vector<2x4x1x64xf32>
    %297 = vector.extract_strided_slice %287 {offsets = [0, 0, 6, 0], sizes = [2, 4, 1, 64], strides = [1, 1, 1, 1]} : vector<2x4x8x64xf32> to vector<2x4x1x64xf32>
    %298 = vector.extract_strided_slice %287 {offsets = [0, 0, 7, 0], sizes = [2, 4, 1, 64], strides = [1, 1, 1, 1]} : vector<2x4x8x64xf32> to vector<2x4x1x64xf32>
    %299 = arith.maximumf %297, %298 : vector<2x4x1x64xf32>
    %300 = tpu.concatenate %290, %293, %296, %299 in 3 : vector<2x4x1x64xf32>, vector<2x4x1x64xf32>, vector<2x4x1x64xf32>, vector<2x4x1x64xf32> -> vector<2x4x1x256xf32>
    %301 = vector.extract_strided_slice %300 {offsets = [0, 0, 0, 0], sizes = [2, 1, 1, 256], strides = [1, 1, 1, 1]} : vector<2x4x1x256xf32> to vector<2x1x1x256xf32>
    %302 = vector.extract_strided_slice %300 {offsets = [0, 1, 0, 0], sizes = [2, 1, 1, 256], strides = [1, 1, 1, 1]} : vector<2x4x1x256xf32> to vector<2x1x1x256xf32>
    %303 = vector.extract_strided_slice %300 {offsets = [0, 2, 0, 0], sizes = [2, 1, 1, 256], strides = [1, 1, 1, 1]} : vector<2x4x1x256xf32> to vector<2x1x1x256xf32>
    %304 = vector.extract_strided_slice %300 {offsets = [0, 3, 0, 0], sizes = [2, 1, 1, 256], strides = [1, 1, 1, 1]} : vector<2x4x1x256xf32> to vector<2x1x1x256xf32>
    %305 = tpu.concatenate %301, %302, %303, %304 in 3 : vector<2x1x1x256xf32>, vector<2x1x1x256xf32>, vector<2x1x1x256xf32>, vector<2x1x1x256xf32> -> vector<2x1x1x1024xf32>
    %306 = vector.shape_cast %305 : vector<2x1x1x1024xf32> to vector<2x1024xf32>
    %c0_358 = arith.constant 0 : index
    %c0_359 = arith.constant 0 : index
    %307 = vector.load %arg9[%c0_358, %c0_359] : memref<1024x128xf32, #tpu.memory_space<vmem>>, vector<1024x128xf32>
    %cst_360 = arith.constant dense<0.000000e+00> : vector<2x128xf32>
    %308 = tpu.matmul %306, %307, %cst_360 {dimension_numbers = #tpu.dot_dimension_numbers<[1], [0], [0], [1], [0, 0, 1, 1], [], []>} : vector<2x1024xf32>, vector<1024x128xf32>, vector<2x128xf32> -> vector<2x128xf32>
    %c0_361 = arith.constant 0 : index
    %c0_362 = arith.constant 0 : index
    %309 = vector.load %arg10[%c0_361, %c0_362] : memref<1x128xf32, #tpu.memory_space<vmem>>, vector<1x128xf32>
    %310 = vector.broadcast %309 : vector<1x128xf32> to vector<2x128xf32>
    %311 = arith.addf %308, %310 : vector<2x128xf32>
    %cst_363 = arith.constant 0.000000e+00 : f32
    %312 = vector.broadcast %cst_363 : f32 to vector<2x128xf32>
    %313 = arith.maximumf %311, %312 : vector<2x128xf32>
    %c0_364 = arith.constant 0 : index
    %c0_365 = arith.constant 0 : index
    %314 = vector.load %arg11[%c0_364, %c0_365] : memref<128x1xf32, #tpu.memory_space<vmem>>, vector<128x1xf32>
    %cst_366 = arith.constant dense<0.000000e+00> : vector<2x1xf32>
    %315 = tpu.matmul %313, %314, %cst_366 {dimension_numbers = #tpu.dot_dimension_numbers<[1], [0], [0], [1], [0, 0, 1, 1], [], []>} : vector<2x128xf32>, vector<128x1xf32>, vector<2x1xf32> -> vector<2x1xf32>
    %c0_367 = arith.constant 0 : index
    %c0_368 = arith.constant 0 : index
    %316 = vector.load %arg12[%c0_367, %c0_368] : memref<1x1xf32, #tpu.memory_space<vmem>>, vector<1x1xf32>
    %317 = vector.broadcast %316 : vector<1x1xf32> to vector<2x1xf32>
    %318 = arith.addf %315, %317 : vector<2x1xf32>
    %c0_369 = arith.constant 0 : index
    %c0_370 = arith.constant 0 : index
    %319 = vector.load %arg13[%c0_369, %c0_370] : memref<2x1xf32, #tpu.memory_space<vmem>>, vector<2x1xf32>
    tpu.vector_store %arg13[%c0_369, %c0_370], %318 {strides = array<i32>} : memref<2x1xf32, #tpu.memory_space<vmem>>, vector<2x1xf32>,
    return
  }
}

</mosaic_0001>

<bundles_post_ra>
// kernel: cnn_forward.1
= control target key start
LH: loop header
LB: loop body
LE: loop exit
PB: predicated region body
PF: predicated region fallthrough
CT: control target
= control target key end

     0   :  { %s30663_s0 = inlined_call_operand.vmem [shape: f32[2,16,16,4], index: 0, kind: input, shape index: {}]   ;;  %s30664_s1 = inlined_call_operand.vmem [shape: f32[9,4,8], index: 1, kind: input, shape index: {}]   ;;  %s30665_s2 = inlined_call_operand.vmem [shape: f32[1,8], index: 2, kind: input, shape index: {}]   ;;  %s30666_s3 = inlined_call_operand.vmem [shape: f32[9,8,16], index: 3, kind: input, shape index: {}]   ;;  %s30667_s4 = inlined_call_operand.vmem [shape: f32[1,16], index: 4, kind: input, shape index: {}]   ;;  %s30668_s5 = inlined_call_operand.vmem [shape: f32[9,16,32], index: 5, kind: input, shape index: {}]   ;;  %s30669_s6 = inlined_call_operand.vmem [shape: f32[1,32], index: 6, kind: input, shape index: {}]   ;;  %s30670_s7 = inlined_call_operand.vmem [shape: f32[9,32,64], index: 7, kind: input, shape index: {}]   ;;  %s30671_s8 = inlined_call_operand.vmem [shape: f32[1,64], index: 8, kind: input, shape index: {}]   ;;  %s30672_s9 = inlined_call_operand.hbm [shape: f32[1024,128], index: 9, kind: input, shape index: {}]   ;;  %s30673_s10 = inlined_call_operand.vmem [shape: f32[1,128], index: 10, kind: input, shape index: {}]   ;;  %s30674_s11 = inlined_call_operand.vmem [shape: f32[128,1], index: 11, kind: input, shape index: {}]   ;;  %s30675_s12 = inlined_call_operand.<no memory space> [shape: f32[1,1], index: 12, kind: input, shape index: {}]   ;;  %s30676_s13 = inlined_call_operand.vmem [shape: f32[2,1], index: 13, kind: output, shape index: {}]  }
   0x1   :  { %v18_v0 = vstv %s30675_s12 }
   0x2   :  { %19 = vst [vmem:[#allocation6] sm:$0x1] %v18_v0 }
   0x3   :  { %20 = vsyncpa [#allocation8], 0  ;;  %s25454_s27 = smov [#allocation7]   ;;  %s25430_s14 = scalar_lea.hbm %s30672_s9, 16384 }
   0x4   :  { %s44_s28 = sshll.u32 %s25454_s27, 4  ;;  %p25431_p0 = scmp.ne.s32.totalorder %s30672_s9, %s25430_s14  ;;  %s45_s28 = int_to_ptr.vmem [resolvable:$true] %s44_s28 }
   0x5   :  { %p25434_p1 = scmp.lt.u32.totalorder %s25430_s14, %s30672_s9 }
   0x7   :  { %p25436_p2 = pnand %p25434_p1, %p25431_p0 }
   0x9   :  { %25439 = shalt.err (!%p25436_p2)
}
   0xa   :  { %s25440_s12 = scalar_lea.vmem %s45_s28, 16384  ;;  %p25445_p4 = scmp.lt.s32.totalorder %s45_s28, %s45_s28 }
   0xb   :  { %p25441_p3 = scmp.ne.s32.totalorder %s45_s28, %s25440_s12  ;;  %p25446_p5 = scmp.lt.s32.totalorder %s25440_s12, %s25440_s12 }
   0xd   :  { %p25447_p6 = por %p25446_p5, %p25445_p4 }
   0xf   :  { %p25448_p7 = pnand %p25447_p6, %p25441_p3 }
  0x11   :  { %25451 = shalt.err (!%p25448_p7)
}
  0x12   :  { %s25455_s19 = smov 128   ;;  %s25456_s20 = smov 8  }
  0x13   :  { %50 = dma.hbm_to_vmem [thread:$0]  %s30672_s9, 16384, %s45_s28, [#allocation8], %s25455_s19, %s25455_s19, %s25456_s20  }
  0x14   :  { %25452 = dma.done.wait [#allocation8], 16384  }
  0x15   :  { %25453 = vsyncadd [#allocation8], 4294950912  ;;  %vm60_vm0 = vcmask 31744   ;;  %vm63_vm1 = vcmask 25600   ;;  %v30677_v1 = vmov 0.0   ;;  %vm816_vm2 = vcmask 1043456  }
  0x16   :  { %61 = vst.msk [vmem:[#allocation2] sm:$0xff] %vm60_vm0, %v30677_v1  ;;  %62 = vst.msk [vmem:[#allocation2 + $0x8] sm:$0xff] %vm60_vm0, %v30677_v1  ;;  %v18314_v2 = vld [vmem:[%s30664_s1 + $0x4] sm:$0xf]  ;;  %v557_v3 = vld [vmem:[%s30664_s1] sm:$0xf] }
  0x17   :  { %65 = vst.msk [vmem:[#allocation2 + $0x18] sm:$0xff] %vm60_vm0, %v30677_v1  ;;  %66 = vst.msk [vmem:[#allocation2 + $0x20] sm:$0xff] %vm60_vm0, %v30677_v1  ;;  %v364_v4 = vld [vmem:[%s30663_s0] sm:$0xff]  ;;  %21502 = vmatprep.subr.msk.mxu0 %vm816_vm2, %v18314_v2  ;;  %v365_v7 = vld [vmem:[%s30663_s0 + $0x8] sm:$0xff]  ;;  %24101 = vmatprep.subr.msk.mxu1 %vm816_vm2, %v18314_v2  ;;  %vm170_vm3 = vcmask 64512   ;;  %vm173_vm4 = vcmask 58368  }
  0x18   :  { %68 = vst.msk [vmem:[#allocation2 + $0x30] sm:$0xff] %vm60_vm0, %v30677_v1  ;;  %69 = vst.msk [vmem:[#allocation2 + $0x38] sm:$0xff] %vm60_vm0, %v30677_v1  ;;  %21503 = vmatpush3.msk.msra.mxu0 %vm816_vm2, %v18314_v2  ;;  %v366_v8 = vld [vmem:[%s30663_s0 + $0x10] sm:$0xff]  ;;  %v367_v9 = vld [vmem:[%s30663_s0 + $0x18] sm:$0xff]  ;;  %24102 = vmatpush3.msk.msra.mxu1 %vm816_vm2, %v18314_v2  ;;  %vm280_vm5 = vcmask 130048   ;;  %vm282_vm6 = vcmask 123904  }
  0x19   :  { %71 = vst.msk [vmem:[#allocation2 + $0x48] sm:$0xff] %vm60_vm0, %v30677_v1  ;;  %72 = vst.msk [vmem:[#allocation2 + $0x50] sm:$0xff] %vm60_vm0, %v30677_v1  ;;  %v368_v10 = vld [vmem:[%s30663_s0 + $0x20] sm:$0xff]  ;;  %21600 = vmatprep.subr.msk.mxu0 %vm816_vm2, %v557_v3  ;;  %v369_v11 = vld [vmem:[%s30663_s0 + $0x28] sm:$0xff]  ;;  %vm13295_vm7 = vcmask 122880   ;;  %vm13312_vm8 = vcmask 124930  }
  0x1a   :  { %74 = vst.msk [vmem:[#allocation2 + $0x60] sm:$0xff] %vm60_vm0, %v30677_v1  ;;  %75 = vst.msk [vmem:[#allocation2 + $0x68] sm:$0xff] %vm60_vm0, %v30677_v1  ;;  %v370_v12 = vld [vmem:[%s30663_s0 + $0x30] sm:$0xff]  ;;  %v371_v13 = vld [vmem:[%s30663_s0 + $0x38] sm:$0xff]  ;;  %vm13329_vm9 = vcmask 126980   ;;  %vm13346_vm10 = vcmask 129030  }
  0x1b   :  { %77 = vst.msk [vmem:[#allocation2 + $0x78] sm:$0xff] %vm60_vm0, %v30677_v1  ;;  %78 = vst.msk [vmem:[#allocation2 + $0x80] sm:$0xff] %vm60_vm0, %v30677_v1  ;;  %v372_v14 = vld [vmem:[%s30663_s0 + $0x40] sm:$0xff]  ;;  %v373_v15 = vld [vmem:[%s30663_s0 + $0x48] sm:$0xff]  ;;  %vm322_vm11 = vcmask 261120   ;;  %vm324_vm12 = vcmask 254976  }
  0x1c   :  { %80 = vst.msk [vmem:[#allocation2 + $0x90] sm:$0xff] %vm60_vm0, %v30677_v1  ;;  %81 = vst.msk [vmem:[#allocation2 + $0x98] sm:$0xff] %vm60_vm0, %v30677_v1  ;;  %v374_v16 = vld [vmem:[%s30663_s0 + $0x50] sm:$0xff]  ;;  %v375_v17 = vld [vmem:[%s30663_s0 + $0x58] sm:$0xff]  ;;  %vm17740_vm13 = vcmask 523264   ;;  %vm17909_vm14 = vcmask 1041409  }
  0x1d   :  { %83 = vst.msk [vmem:[#allocation2 + $0xa8] sm:$0xff] %vm60_vm0, %v30677_v1  ;;  %84 = vst.msk [vmem:[#allocation2 + $0xb0] sm:$0xff] %vm60_vm0, %v30677_v1  ;;  %v558_v5 = vld [vmem:[#allocation2 + $0x1] sm:$0xff]  ;;  %v378_v20 = vld [vmem:[%s30663_s0 + $0x70] sm:$0xff]  ;;  %vm25460_vm15 = vmmov 0  }
  0x1e   :  { %86 = vst.msk [vmem:[#allocation2 + $0xc0] sm:$0xff] %vm60_vm0, %v30677_v1  ;;  %87 = vst.msk [vmem:[#allocation2 + $0xc8] sm:$0xff] %vm60_vm0, %v30677_v1  ;;  %21504 = vmatprep.mubr.msk.f32.mxu0 %vm60_vm0, %v558_v5  ;;  %v376_v18 = vld [vmem:[%s30663_s0 + $0x60] sm:$0xff]  ;;  %v377_v19 = vld [vmem:[%s30663_s0 + $0x68] sm:$0xff] }
  0x1f   :  { %89 = vst.msk [vmem:[#allocation2 + $0xd8] sm:$0xff] %vm60_vm0, %v30677_v1  ;;  %90 = vst.msk [vmem:[#allocation2 + $0xe0] sm:$0xff] %vm60_vm0, %v30677_v1  ;;  %v379_v21 = vld [vmem:[%s30663_s0 + $0x78] sm:$0xff]  ;;  %v380_v22 = vld [vmem:[%s30663_s0 + $0x80] sm:$0xff] }
  0x20   :  { %92 = vst.msk [vmem:[#allocation2 + $0xf0] sm:$0xff] %vm60_vm0, %v30677_v1  ;;  %93 = vst.msk [vmem:[#allocation2 + $0xf8] sm:$0xff] %vm60_vm0, %v30677_v1  ;;  %v381_v23 = vld [vmem:[%s30663_s0 + $0x88] sm:$0xff]  ;;  %v382_v24 = vld [vmem:[%s30663_s0 + $0x90] sm:$0xff] }
  0x21   :  { %95 = vst.msk [vmem:[#allocation2 + $0x108] sm:$0xff] %vm60_vm0, %v30677_v1  ;;  %96 = vst.msk [vmem:[#allocation2 + $0x110] sm:$0xff] %vm60_vm0, %v30677_v1  ;;  %v383_v25 = vld [vmem:[%s30663_s0 + $0x98] sm:$0xff]  ;;  %v384_v27 = vld [vmem:[%s30663_s0 + $0xa0] sm:$0xff] }
  0x22   :  { %98 = vst.msk [vmem:[#allocation2 + $0x120] sm:$0xff] %vm60_vm0, %v30677_v1  ;;  %99 = vst.msk [vmem:[#allocation2 + $0x128] sm:$0xff] %vm60_vm0, %v30677_v1  ;;  %v385_v28 = vld [vmem:[%s30663_s0 + $0xa8] sm:$0xff]  ;;  %v386_v30 = vld [vmem:[%s30663_s0 + $0xb0] sm:$0xff] }
  0x23   :  { %101 = vst.msk [vmem:[#allocation2 + $0x138] sm:$0xff] %vm60_vm0, %v30677_v1  ;;  %102 = vst.msk [vmem:[#allocation2 + $0x140] sm:$0xff] %vm60_vm0, %v30677_v1  ;;  %v387_v31 = vld [vmem:[%s30663_s0 + $0xb8] sm:$0xff]  ;;  %v388_v37 = vld [vmem:[%s30663_s0 + $0xc0] sm:$0xff] }
  0x24   :  { %104 = vst.msk [vmem:[#allocation2 + $0x150] sm:$0xff] %vm60_vm0, %v30677_v1  ;;  %105 = vst.msk [vmem:[#allocation2 + $0x158] sm:$0xff] %vm60_vm0, %v30677_v1  ;;  %v389_v38 = vld [vmem:[%s30663_s0 + $0xc8] sm:$0xff]  ;;  %v390_v39 = vld [vmem:[%s30663_s0 + $0xd0] sm:$0xff] }
  0x25   :  { %107 = vst.msk [vmem:[#allocation2 + $0x168] sm:$0xff] %vm60_vm0, %v30677_v1  ;;  %108 = vst.msk [vmem:[#allocation2 + $0x170] sm:$0xff] %vm60_vm0, %v30677_v1  ;;  %v391_v40 = vld [vmem:[%s30663_s0 + $0xd8] sm:$0xff]  ;;  %v392_v41 = vld [vmem:[%s30663_s0 + $0xe0] sm:$0xff] }
  0x26   :  { %110 = vst.msk [vmem:[#allocation2 + $0x180] sm:$0xff] %vm60_vm0, %v30677_v1  ;;  %111 = vst.msk [vmem:[#allocation2 + $0x188] sm:$0xff] %vm60_vm0, %v30677_v1  ;;  %v393_v44 = vld [vmem:[%s30663_s0 + $0xe8] sm:$0xff]  ;;  %v396_v45 = vld [vmem:[%s30663_s0 + $0x100] sm:$0xff] }
  0x27   :  { %113 = vst.msk [vmem:[#allocation2 + $0x198] sm:$0xff] %vm60_vm0, %v30677_v1  ;;  %114 = vst.msk [vmem:[#allocation2 + $0x1a0] sm:$0xff] %vm60_vm0, %v30677_v1  ;;  %v397_v46 = vld [vmem:[%s30663_s0 + $0x108] sm:$0xff]  ;;  %v398_v47 = vld [vmem:[%s30663_s0 + $0x110] sm:$0xff] }
  0x28   :  { %116 = vst.msk [vmem:[#allocation2 + $0x1b0] sm:$0xff] %vm60_vm0, %v30677_v1  ;;  %117 = vst.msk [vmem:[#allocation2 + $0x1b8] sm:$0xff] %vm60_vm0, %v30677_v1  ;;  %v399_v49 = vld [vmem:[%s30663_s0 + $0x118] sm:$0xff]  ;;  %v400_v50 = vld [vmem:[%s30663_s0 + $0x120] sm:$0xff] }
  0x29   :  { %119 = vst.msk [vmem:[#allocation2 + $0x1c8] sm:$0xff] %vm60_vm0, %v30677_v1  ;;  %120 = vst.msk [vmem:[#allocation2 + $0x1d0] sm:$0xff] %vm60_vm0, %v30677_v1  ;;  %v401_v51 = vld [vmem:[%s30663_s0 + $0x128] sm:$0xff]  ;;  %v402_v52 = vld [vmem:[%s30663_s0 + $0x130] sm:$0xff] }
  0x2a   :  { %122 = vst.msk [vmem:[#allocation2 + $0x1e0] sm:$0xff] %vm60_vm0, %v30677_v1  ;;  %123 = vst.msk [vmem:[#allocation2 + $0x1e8] sm:$0xff] %vm60_vm0, %v30677_v1  ;;  %v403_v53 = vld [vmem:[%s30663_s0 + $0x138] sm:$0xff]  ;;  %v404_v54 = vld [vmem:[%s30663_s0 + $0x140] sm:$0xff] }
  0x2b   :  { %125 = vst.msk [vmem:[#allocation2 + $0x1f8] sm:$0xff] %vm60_vm0, %v30677_v1  ;;  %126 = vst.msk [vmem:[#allocation2 + $0x200] sm:$0xff] %vm60_vm0, %v30677_v1  ;;  %v405_v55 = vld [vmem:[%s30663_s0 + $0x148] sm:$0xff]  ;;  %v406_v56 = vld [vmem:[%s30663_s0 + $0x150] sm:$0xff] }
  0x2c   :  { %128 = vst.msk [vmem:[#allocation2 + $0x210] sm:$0xff] %vm60_vm0, %v30677_v1  ;;  %129 = vst.msk [vmem:[#allocation2 + $0x218] sm:$0xff] %vm60_vm0, %v30677_v1  ;;  %v407_v57 = vld [vmem:[%s30663_s0 + $0x158] sm:$0xff]  ;;  %v408_v59 = vld [vmem:[%s30663_s0 + $0x160] sm:$0xff] }
  0x2d   :  { %131 = vst.msk [vmem:[#allocation2 + $0x228] sm:$0xff] %vm60_vm0, %v30677_v1  ;;  %132 = vst.msk [vmem:[#allocation2 + $0x230] sm:$0xff] %vm60_vm0, %v30677_v1  ;;  %v409_v60 = vld [vmem:[%s30663_s0 + $0x168] sm:$0xff]  ;;  %v410_v61 = vld [vmem:[%s30663_s0 + $0x170] sm:$0xff] }
  0x2e   :  { %134 = vst.msk [vmem:[#allocation2 + $0x240] sm:$0xff] %vm60_vm0, %v30677_v1  ;;  %135 = vst.msk [vmem:[#allocation2 + $0x248] sm:$0xff] %vm60_vm0, %v30677_v1  ;;  %v411_v62 = vld [vmem:[%s30663_s0 + $0x178] sm:$0xff]  ;;  %v412_v0 = vld [vmem:[%s30663_s0 + $0x180] sm:$0xff] }
  0x2f   :  { %137 = vst.msk [vmem:[#allocation2 + $0x258] sm:$0xff] %vm60_vm0, %v30677_v1  ;;  %138 = vst.msk [vmem:[#allocation2 + $0x260] sm:$0xff] %vm60_vm0, %v30677_v1  ;;  %v413_v2 = vld [vmem:[%s30663_s0 + $0x188] sm:$0xff] }
  0x30   :  { %140 = vst.msk [vmem:[#allocation2 + $0x270] sm:$0xff] %vm60_vm0, %v30677_v1  ;;  %141 = vst.msk [vmem:[#allocation2 + $0x278] sm:$0xff] %vm60_vm0, %v30677_v1 }
  0x31   :  { %143 = vst.msk [vmem:[#allocation2 + $0x288] sm:$0xff] %vm60_vm0, %v30677_v1  ;;  %144 = vst.msk [vmem:[#allocation2 + $0x290] sm:$0xff] %vm60_vm0, %v30677_v1 }
  0x32   :  { %146 = vst.msk [vmem:[#allocation2 + $0x2a0] sm:$0xff] %vm60_vm0, %v30677_v1  ;;  %147 = vst.msk [vmem:[#allocation2 + $0x2a8] sm:$0xff] %vm60_vm0, %v30677_v1 }
  0x33   :  { %149 = vst.msk [vmem:[#allocation2 + $0x2b8] sm:$0xff] %vm60_vm0, %v30677_v1  ;;  %150 = vst.msk [vmem:[#allocation2 + $0x2c0] sm:$0xff] %vm60_vm0, %v30677_v1 }
  0x34   :  { %152 = vst.msk [vmem:[#allocation2 + $0x2d0] sm:$0xff] %vm60_vm0, %v30677_v1  ;;  %153 = vst.msk [vmem:[#allocation2 + $0x2d8] sm:$0xff] %vm60_vm0, %v30677_v1 }
  0x35   :  { %155 = vst.msk [vmem:[#allocation2 + $0x2e8] sm:$0xff] %vm60_vm0, %v30677_v1  ;;  %156 = vst.msk [vmem:[#allocation2 + $0x2f0] sm:$0xff] %vm60_vm0, %v30677_v1 }
  0x36   :  { %158 = vst.msk [vmem:[#allocation2 + $0x300] sm:$0xff] %vm60_vm0, %v30677_v1  ;;  %159 = vst.msk [vmem:[#allocation2 + $0x308] sm:$0xff] %vm60_vm0, %v30677_v1 }
  0x37   :  { %161 = vst.msk [vmem:[#allocation2 + $0x318] sm:$0xff] %vm60_vm0, %v30677_v1  ;;  %162 = vst.msk [vmem:[#allocation2 + $0x320] sm:$0xff] %vm60_vm0, %v30677_v1 }
  0x38   :  { %164 = vst.msk [vmem:[#allocation2 + $0x330] sm:$0xff] %vm60_vm0, %v30677_v1  ;;  %165 = vst.msk [vmem:[#allocation2 + $0x338] sm:$0xff] %vm60_vm0, %v30677_v1 }
  0x39   :  { %167 = vst.msk [vmem:[#allocation2 + $0x348] sm:$0xff] %vm60_vm0, %v30677_v1  ;;  %168 = vst.msk [vmem:[#allocation2 + $0x350] sm:$0xff] %vm60_vm0, %v30677_v1 }
  0x3a   :  { %64 = vst.msk [vmem:[#allocation2 + $0x10] sm:$0x3] %vm63_vm1, %v30677_v1  ;;  %67 = vst.msk [vmem:[#allocation2 + $0x28] sm:$0x3] %vm63_vm1, %v30677_v1 }
  0x3b   :  { %70 = vst.msk [vmem:[#allocation2 + $0x40] sm:$0x3] %vm63_vm1, %v30677_v1  ;;  %73 = vst.msk [vmem:[#allocation2 + $0x58] sm:$0x3] %vm63_vm1, %v30677_v1 }
  0x3c   :  { %76 = vst.msk [vmem:[#allocation2 + $0x70] sm:$0x3] %vm63_vm1, %v30677_v1  ;;  %79 = vst.msk [vmem:[#allocation2 + $0x88] sm:$0x3] %vm63_vm1, %v30677_v1 }
  0x3d   :  { %82 = vst.msk [vmem:[#allocation2 + $0xa0] sm:$0x3] %vm63_vm1, %v30677_v1  ;;  %85 = vst.msk [vmem:[#allocation2 + $0xb8] sm:$0x3] %vm63_vm1, %v30677_v1 }
  0x3e   :  { %88 = vst.msk [vmem:[#allocation2 + $0xd0] sm:$0x3] %vm63_vm1, %v30677_v1  ;;  %91 = vst.msk [vmem:[#allocation2 + $0xe8] sm:$0x3] %vm63_vm1, %v30677_v1 }
  0x3f   :  { %94 = vst.msk [vmem:[#allocation2 + $0x100] sm:$0x3] %vm63_vm1, %v30677_v1  ;;  %97 = vst.msk [vmem:[#allocation2 + $0x118] sm:$0x3] %vm63_vm1, %v30677_v1 }
  0x40   :  { %100 = vst.msk [vmem:[#allocation2 + $0x130] sm:$0x3] %vm63_vm1, %v30677_v1  ;;  %103 = vst.msk [vmem:[#allocation2 + $0x148] sm:$0x3] %vm63_vm1, %v30677_v1 }
  0x41   :  { %106 = vst.msk [vmem:[#allocation2 + $0x160] sm:$0x3] %vm63_vm1, %v30677_v1  ;;  %109 = vst.msk [vmem:[#allocation2 + $0x178] sm:$0x3] %vm63_vm1, %v30677_v1  ;;  %v559_v6 = vld [vmem:[#allocation2 + $0x9] sm:$0xff] }
  0x42   :  { %112 = vst.msk [vmem:[#allocation2 + $0x190] sm:$0x3] %vm63_vm1, %v30677_v1  ;;  %115 = vst.msk [vmem:[#allocation2 + $0x1a8] sm:$0x3] %vm63_vm1, %v30677_v1  ;;  %21505 = vmatmul.mubr.msk.f32.vlgmr.msra.gmra.mrb[0].mxu0 %vm60_vm0, %v559_v6  ;;  %v414_v6 = vld [vmem:[%s30663_s0 + $0x190] sm:$0xff] }
  0x43   :  { %118 = vst.msk [vmem:[#allocation2 + $0x1c0] sm:$0x3] %vm63_vm1, %v30677_v1  ;;  %121 = vst.msk [vmem:[#allocation2 + $0x1d8] sm:$0x3] %vm63_vm1, %v30677_v1  ;;  %21601 = vmatpush3.msk.msra.mxu0 %vm816_vm2, %v557_v3 }
  0x44   :  { %124 = vst.msk [vmem:[#allocation2 + $0x1f0] sm:$0x3] %vm63_vm1, %v30677_v1  ;;  %127 = vst.msk [vmem:[#allocation2 + $0x208] sm:$0x3] %vm63_vm1, %v30677_v1 }
  0x45   :  { %130 = vst.msk [vmem:[#allocation2 + $0x220] sm:$0x3] %vm63_vm1, %v30677_v1  ;;  %133 = vst.msk [vmem:[#allocation2 + $0x238] sm:$0x3] %vm63_vm1, %v30677_v1 }
  0x46   :  { %136 = vst.msk [vmem:[#allocation2 + $0x250] sm:$0x3] %vm63_vm1, %v30677_v1  ;;  %139 = vst.msk [vmem:[#allocation2 + $0x268] sm:$0x3] %vm63_vm1, %v30677_v1 }
  0x47   :  { %142 = vst.msk [vmem:[#allocation2 + $0x280] sm:$0x3] %vm63_vm1, %v30677_v1  ;;  %145 = vst.msk [vmem:[#allocation2 + $0x298] sm:$0x3] %vm63_vm1, %v30677_v1 }
  0x48   :  { %148 = vst.msk [vmem:[#allocation2 + $0x2b0] sm:$0x3] %vm63_vm1, %v30677_v1  ;;  %151 = vst.msk [vmem:[#allocation2 + $0x2c8] sm:$0x3] %vm63_vm1, %v30677_v1 }
  0x49   :  { %154 = vst.msk [vmem:[#allocation2 + $0x2e0] sm:$0x3] %vm63_vm1, %v30677_v1  ;;  %157 = vst.msk [vmem:[#allocation2 + $0x2f8] sm:$0x3] %vm63_vm1, %v30677_v1 }
  0x4a   :  { %160 = vst.msk [vmem:[#allocation2 + $0x310] sm:$0x3] %vm63_vm1, %v30677_v1  ;;  %163 = vst.msk [vmem:[#allocation2 + $0x328] sm:$0x3] %vm63_vm1, %v30677_v1 }
  0x4b   :  { %166 = vst.msk [vmem:[#allocation2 + $0x340] sm:$0x3] %vm63_vm1, %v30677_v1  ;;  %169 = vst.msk [vmem:[#allocation2 + $0x358] sm:$0x3] %vm63_vm1, %v30677_v1 }
  0x4c   :  { %429 = vst.msk [vmem:[#allocation2 + $0x19] sm:$0xff] %vm60_vm0, %v364_v4  ;;  %430 = vst.msk [vmem:[#allocation2 + $0x21] sm:$0xff] %vm60_vm0, %v365_v7  ;;  %v415_v7 = vld [vmem:[%s30663_s0 + $0x198] sm:$0xff] }
  0x4d   :  { %431 = vst.msk [vmem:[#allocation2 + $0x31] sm:$0xff] %vm60_vm0, %v366_v8  ;;  %432 = vst.msk [vmem:[#allocation2 + $0x39] sm:$0xff] %vm60_vm0, %v367_v9  ;;  %v416_v8 = vld [vmem:[%s30663_s0 + $0x1a0] sm:$0xff]  ;;  %v417_v9 = vld [vmem:[%s30663_s0 + $0x1a8] sm:$0xff] }
  0x4e   :  { %433 = vst.msk [vmem:[#allocation2 + $0x49] sm:$0xff] %vm60_vm0, %v368_v10  ;;  %434 = vst.msk [vmem:[#allocation2 + $0x51] sm:$0xff] %vm60_vm0, %v369_v11  ;;  %v26002_v11 = vld [vmem:[%s30664_s1 + $0x8] sm:$0xf] }
  0x4f   :  { %435 = vst.msk [vmem:[#allocation2 + $0x61] sm:$0xff] %vm60_vm0, %v370_v12  ;;  %436 = vst.msk [vmem:[#allocation2 + $0x69] sm:$0xff] %vm60_vm0, %v371_v13  ;;  %21698 = vmatprep.subr.msk.mxu0 %vm816_vm2, %v26002_v11 }
  0x50   :  { %437 = vst.msk [vmem:[#allocation2 + $0x79] sm:$0xff] %vm60_vm0, %v372_v14  ;;  %438 = vst.msk [vmem:[#allocation2 + $0x81] sm:$0xff] %vm60_vm0, %v373_v15 }
  0x51   :  { %439 = vst.msk [vmem:[#allocation2 + $0x91] sm:$0xff] %vm60_vm0, %v374_v16  ;;  %440 = vst.msk [vmem:[#allocation2 + $0x99] sm:$0xff] %vm60_vm0, %v375_v17 }
  0x52   :  { %441 = vst.msk [vmem:[#allocation2 + $0xa9] sm:$0xff] %vm60_vm0, %v376_v18  ;;  %442 = vst.msk [vmem:[#allocation2 + $0xb1] sm:$0xff] %vm60_vm0, %v377_v19 }
  0x53   :  { %443 = vst.msk [vmem:[#allocation2 + $0xc1] sm:$0xff] %vm60_vm0, %v378_v20  ;;  %444 = vst.msk [vmem:[#allocation2 + $0xc9] sm:$0xff] %vm60_vm0, %v379_v21  ;;  %v560_v26 = vld [vmem:[#allocation2 + $0x19] sm:$0xff]  ;;  %v561_v29 = vld [vmem:[#allocation2 + $0x21] sm:$0xff] }
  0x54   :  { %445 = vst.msk [vmem:[#allocation2 + $0xd9] sm:$0xff] %vm60_vm0, %v380_v22  ;;  %446 = vst.msk [vmem:[#allocation2 + $0xe1] sm:$0xff] %vm60_vm0, %v381_v23  ;;  %21507 = vmatprep.mubr.msk.f32.mxu0 %vm60_vm0, %v560_v26  ;;  %v562_v32 = vld [vmem:[#allocation2 + $0x31] sm:$0xff]  ;;  %v563_v33 = vld [vmem:[#allocation2 + $0x39] sm:$0xff] }
  0x55   :  { %447 = vst.msk [vmem:[#allocation2 + $0xf1] sm:$0xff] %vm60_vm0, %v382_v24  ;;  %448 = vst.msk [vmem:[#allocation2 + $0xf9] sm:$0xff] %vm60_vm0, %v383_v25  ;;  %21508 = vmatmul.mubr.msk.f32.gmra.mrb[2].mxu0 %vm60_vm0, %v561_v29  ;;  %v564_v34 = vld [vmem:[#allocation2 + $0x49] sm:$0xff]  ;;  %v565_v35 = vld [vmem:[#allocation2 + $0x51] sm:$0xff] }
  0x56   :  { %449 = vst.msk [vmem:[#allocation2 + $0x109] sm:$0xff] %vm60_vm0, %v384_v27  ;;  %450 = vst.msk [vmem:[#allocation2 + $0x111] sm:$0xff] %vm60_vm0, %v385_v28  ;;  %21510 = vmatprep.mubr.msk.f32.mxu0 %vm60_vm0, %v562_v32  ;;  %v566_v36 = vld [vmem:[#allocation2 + $0x61] sm:$0xff]  ;;  %v567_v42 = vld [vmem:[#allocation2 + $0x69] sm:$0xff] }
  0x57   :  { %451 = vst.msk [vmem:[#allocation2 + $0x121] sm:$0xff] %vm60_vm0, %v386_v30  ;;  %452 = vst.msk [vmem:[#allocation2 + $0x129] sm:$0xff] %vm60_vm0, %v387_v31  ;;  %v568_v43 = vld [vmem:[#allocation2 + $0x79] sm:$0xff]  ;;  %v569_v48 = vld [vmem:[#allocation2 + $0x81] sm:$0xff] }
  0x58   :  { %453 = vst.msk [vmem:[#allocation2 + $0x139] sm:$0xff] %vm60_vm0, %v388_v37  ;;  %454 = vst.msk [vmem:[#allocation2 + $0x141] sm:$0xff] %vm60_vm0, %v389_v38  ;;  %v570_v58 = vld [vmem:[#allocation2 + $0x91] sm:$0xff]  ;;  %v571_v63 = vld [vmem:[#allocation2 + $0x99] sm:$0xff] }
  0x59   :  { %21511 = vmatmul.mubr.msk.f32.gmra.mrb[4].mxu0 %vm60_vm0, %v563_v33  ;;  %455 = vst.msk [vmem:[#allocation2 + $0x151] sm:$0xff] %vm60_vm0, %v390_v39  ;;  %456 = vst.msk [vmem:[#allocation2 + $0x159] sm:$0xff] %vm60_vm0, %v391_v40  ;;  %v572_v3 = vld [vmem:[#allocation2 + $0xa9] sm:$0xff]  ;;  %v573_v4 = vld [vmem:[#allocation2 + $0xb1] sm:$0xff] }
  0x5a   :  { %21513 = vmatprep.mubr.msk.f32.mxu0 %vm60_vm0, %v564_v34  ;;  %457 = vst.msk [vmem:[#allocation2 + $0x169] sm:$0xff] %vm60_vm0, %v392_v41  ;;  %458 = vst.msk [vmem:[#allocation2 + $0x171] sm:$0xff] %vm60_vm0, %v393_v44  ;;  %v574_v5 = vld [vmem:[#allocation2 + $0xc1] sm:$0xff]  ;;  %v575_v10 = vld [vmem:[#allocation2 + $0xc9] sm:$0xff] }
  0x5b   :  { %461 = vst.msk [vmem:[#allocation2 + $0x1c9] sm:$0xff] %vm60_vm0, %v396_v45  ;;  %462 = vst.msk [vmem:[#allocation2 + $0x1d1] sm:$0xff] %vm60_vm0, %v397_v46  ;;  %v576_v12 = vld [vmem:[#allocation2 + $0xd9] sm:$0xff]  ;;  %v577_v13 = vld [vmem:[#allocation2 + $0xe1] sm:$0xff] }
  0x5c   :  { %463 = vst.msk [vmem:[#allocation2 + $0x1e1] sm:$0xff] %vm60_vm0, %v398_v47  ;;  %464 = vst.msk [vmem:[#allocation2 + $0x1e9] sm:$0xff] %vm60_vm0, %v399_v49  ;;  %v578_v14 = vld [vmem:[#allocation2 + $0xf1] sm:$0xff]  ;;  %v579_v15 = vld [vmem:[#allocation2 + $0xf9] sm:$0xff] }
  0x5d   :  { %21514 = vmatmul.mubr.msk.f32.gmra.mrb[6].mxu0 %vm60_vm0, %v565_v35  ;;  %465 = vst.msk [vmem:[#allocation2 + $0x1f9] sm:$0xff] %vm60_vm0, %v400_v50  ;;  %466 = vst.msk [vmem:[#allocation2 + $0x201] sm:$0xff] %vm60_vm0, %v401_v51  ;;  %v580_v16 = vld [vmem:[#allocation2 + $0x109] sm:$0xff]  ;;  %v581_v17 = vld [vmem:[#allocation2 + $0x111] sm:$0xff] }
  0x5e   :  { %21516 = vmatprep.mubr.msk.f32.mxu0 %vm60_vm0, %v566_v36  ;;  %467 = vst.msk [vmem:[#allocation2 + $0x211] sm:$0xff] %vm60_vm0, %v402_v52  ;;  %468 = vst.msk [vmem:[#allocation2 + $0x219] sm:$0xff] %vm60_vm0, %v403_v53  ;;  %v582_v18 = vld [vmem:[#allocation2 + $0x121] sm:$0xff]  ;;  %v583_v19 = vld [vmem:[#allocation2 + $0x129] sm:$0xff] }
  0x5f   :  { %469 = vst.msk [vmem:[#allocation2 + $0x229] sm:$0xff] %vm60_vm0, %v404_v54  ;;  %470 = vst.msk [vmem:[#allocation2 + $0x231] sm:$0xff] %vm60_vm0, %v405_v55  ;;  %v584_v20 = vld [vmem:[#allocation2 + $0x139] sm:$0xff]  ;;  %v585_v21 = vld [vmem:[#allocation2 + $0x141] sm:$0xff] }
  0x60   :  { %471 = vst.msk [vmem:[#allocation2 + $0x241] sm:$0xff] %vm60_vm0, %v406_v56  ;;  %472 = vst.msk [vmem:[#allocation2 + $0x249] sm:$0xff] %vm60_vm0, %v407_v57  ;;  %v586_v22 = vld [vmem:[#allocation2 + $0x151] sm:$0xff]  ;;  %v587_v23 = vld [vmem:[#allocation2 + $0x159] sm:$0xff] }
  0x61   :  { %21517 = vmatmul.mubr.msk.f32.gmra.mrb[8].mxu0 %vm60_vm0, %v567_v42  ;;  %473 = vst.msk [vmem:[#allocation2 + $0x259] sm:$0xff] %vm60_vm0, %v408_v59  ;;  %474 = vst.msk [vmem:[#allocation2 + $0x261] sm:$0xff] %vm60_vm0, %v409_v60  ;;  %v588_v24 = vld [vmem:[#allocation2 + $0x169] sm:$0xff]  ;;  %v589_v25 = vld [vmem:[#allocation2 + $0x171] sm:$0xff] }
  0x62   :  { %21519 = vmatprep.mubr.msk.f32.mxu0 %vm60_vm0, %v568_v43  ;;  %475 = vst.msk [vmem:[#allocation2 + $0x271] sm:$0xff] %vm60_vm0, %v410_v61  ;;  %476 = vst.msk [vmem:[#allocation2 + $0x279] sm:$0xff] %vm60_vm0, %v411_v62  ;;  %v590_v26 = vld [vmem:[#allocation2 + $0x1b1] sm:$0xff]  ;;  %v591_v27 = vld [vmem:[#allocation2 + $0x1b9] sm:$0xff] }
  0x63   :  { %477 = vst.msk [vmem:[#allocation2 + $0x289] sm:$0xff] %vm60_vm0, %v412_v0  ;;  %478 = vst.msk [vmem:[#allocation2 + $0x291] sm:$0xff] %vm60_vm0, %v413_v2  ;;  %v592_v28 = vld [vmem:[#allocation2 + $0x1c9] sm:$0xff]  ;;  %v593_v29 = vld [vmem:[#allocation2 + $0x1d1] sm:$0xff] }
  0x64   :  { %479 = vst.msk [vmem:[#allocation2 + $0x2a1] sm:$0xff] %vm60_vm0, %v414_v6  ;;  %480 = vst.msk [vmem:[#allocation2 + $0x2a9] sm:$0xff] %vm60_vm0, %v415_v7  ;;  %v594_v30 = vld [vmem:[#allocation2 + $0x1e1] sm:$0xff]  ;;  %v595_v31 = vld [vmem:[#allocation2 + $0x1e9] sm:$0xff] }
  0x65   :  { %21520 = vmatmul.mubr.msk.f32.gmra.mrb[10].mxu0 %vm60_vm0, %v569_v48  ;;  %481 = vst.msk [vmem:[#allocation2 + $0x2b9] sm:$0xff] %vm60_vm0, %v416_v8  ;;  %482 = vst.msk [vmem:[#allocation2 + $0x2c1] sm:$0xff] %vm60_vm0, %v417_v9  ;;  %v596_v32 = vld [vmem:[#allocation2 + $0x1f9] sm:$0xff]  ;;  %v597_v33 = vld [vmem:[#allocation2 + $0x201] sm:$0xff] }
  0x66   :  { %21522 = vmatprep.mubr.msk.f32.mxu0 %vm60_vm0, %v570_v58  ;;  %v598_v34 = vld [vmem:[#allocation2 + $0x211] sm:$0xff]  ;;  %v599_v35 = vld [vmem:[#allocation2 + $0x219] sm:$0xff]  ;;  %v600_v36 = vld [vmem:[#allocation2 + $0x229] sm:$0xff] }
  0x67   :  { %v601_v37 = vld [vmem:[#allocation2 + $0x231] sm:$0xff]  ;;  %v602_v38 = vld [vmem:[#allocation2 + $0x241] sm:$0xff]  ;;  %v603_v39 = vld [vmem:[#allocation2 + $0x249] sm:$0xff] }
  0x68   :  { %v604_v40 = vld [vmem:[#allocation2 + $0x259] sm:$0xff]  ;;  %v418_v41 = vld [vmem:[%s30663_s0 + $0x1b0] sm:$0xff]  ;;  %v605_v43 = vld [vmem:[#allocation2 + $0x261] sm:$0xff] }
  0x69   :  { %21523 = vmatmul.mubr.msk.f32.gmra.mrb[12].mxu0 %vm60_vm0, %v571_v63  ;;  %483 = vst.msk [vmem:[#allocation2 + $0x2d1] sm:$0xff] %vm60_vm0, %v418_v41  ;;  %v419_v42 = vld [vmem:[%s30663_s0 + $0x1b8] sm:$0xff]  ;;  %v420_v45 = vld [vmem:[%s30663_s0 + $0x1c0] sm:$0xff]  ;;  %v421_v46 = vld [vmem:[%s30663_s0 + $0x1c8] sm:$0xff] }
  0x6a   :  { %21525 = vmatprep.mubr.msk.f32.mxu0 %vm60_vm0, %v572_v3  ;;  %484 = vst.msk [vmem:[#allocation2 + $0x2d9] sm:$0xff] %vm60_vm0, %v419_v42  ;;  %v606_v44 = vld [vmem:[#allocation2 + $0x271] sm:$0xff]  ;;  %485 = vst.msk [vmem:[#allocation2 + $0x2e9] sm:$0xff] %vm60_vm0, %v420_v45  ;;  %v607_v47 = vld [vmem:[#allocation2 + $0x279] sm:$0xff] }
  0x6b   :  { %486 = vst.msk [vmem:[#allocation2 + $0x2f1] sm:$0xff] %vm60_vm0, %v421_v46  ;;  %v608_v48 = vld [vmem:[#allocation2 + $0x289] sm:$0xff]  ;;  %v423_v50 = vld [vmem:[%s30663_s0 + $0x1d8] sm:$0xff]  ;;  %v610_v52 = vld [vmem:[#allocation2 + $0x2a1] sm:$0xff] }
  0x6c   :  { %v422_v49 = vld [vmem:[%s30663_s0 + $0x1d0] sm:$0xff]  ;;  %488 = vst.msk [vmem:[#allocation2 + $0x309] sm:$0xff] %vm60_vm0, %v423_v50  ;;  %v424_v53 = vld [vmem:[%s30663_s0 + $0x1e0] sm:$0xff]  ;;  %v425_v54 = vld [vmem:[%s30663_s0 + $0x1e8] sm:$0xff] }
  0x6d   :  { %21526 = vmatmul.mubr.msk.f32.gmra.mrb[14].mxu0 %vm60_vm0, %v573_v4  ;;  %487 = vst.msk [vmem:[#allocation2 + $0x301] sm:$0xff] %vm60_vm0, %v422_v49  ;;  %v609_v51 = vld [vmem:[#allocation2 + $0x291] sm:$0xff]  ;;  %489 = vst.msk [vmem:[#allocation2 + $0x319] sm:$0xff] %vm60_vm0, %v424_v53  ;;  %v611_v55 = vld [vmem:[#allocation2 + $0x2a9] sm:$0xff] }
  0x6e   :  { %21528 = vmatprep.mubr.msk.f32.mxu0 %vm60_vm0, %v574_v5  ;;  %490 = vst.msk [vmem:[#allocation2 + $0x321] sm:$0xff] %vm60_vm0, %v425_v54  ;;  %v612_v56 = vld [vmem:[#allocation2 + $0x2b9] sm:$0xff]  ;;  %v613_v57 = vld [vmem:[#allocation2 + $0x2c1] sm:$0xff]  ;;  %v26083_v61 = vld [vmem:[%s30664_s1 + $0xc] sm:$0xf] }
  0x6f   :  { %v493_v58 = vld [vmem:[#allocation2] sm:$0xff]  ;;  %v494_v59 = vld [vmem:[#allocation2 + $0x8] sm:$0xff]  ;;  %v26078_v60 = vld [vmem:[#allocation2 + $0x18] sm:$0xff] }
  0x70   :  { %v26090_v62 = vld [vmem:[#allocation2 + $0x20] sm:$0xff]  ;;  %v26092_v63 = vld [vmem:[#allocation2 + $0x30] sm:$0xff]  ;;  %v26100_v0 = vld [vmem:[#allocation2 + $0x38] sm:$0xff] }
  0x71   :  { %21529 = vmatmul.mubr.msk.f32.gmra.mrb[16].mxu0 %vm60_vm0, %v575_v10  ;;  %v26102_v2 = vld [vmem:[#allocation2 + $0x48] sm:$0xff]  ;;  %v26108_v3 = vld [vmem:[#allocation2 + $0x50] sm:$0xff]  ;;  %v26110_v4 = vld [vmem:[#allocation2 + $0x60] sm:$0xff] }
  0x72   :  { %21531 = vmatprep.mubr.msk.f32.mxu0 %vm60_vm0, %v576_v12  ;;  %v26116_v5 = vld [vmem:[#allocation2 + $0x68] sm:$0xff]  ;;  %v26118_v6 = vld [vmem:[#allocation2 + $0x78] sm:$0xff]  ;;  %v26124_v7 = vld [vmem:[#allocation2 + $0x80] sm:$0xff] }
  0x73   :  { %v26126_v8 = vld [vmem:[#allocation2 + $0x90] sm:$0xff]  ;;  %v26132_v9 = vld [vmem:[#allocation2 + $0x98] sm:$0xff]  ;;  %v26134_v10 = vld [vmem:[#allocation2 + $0xa8] sm:$0xff] }
  0x74   :  { %v26142_v12 = vld [vmem:[#allocation2 + $0xc0] sm:$0xff]  ;;  %v26254_v41 = vld [vmem:[#allocation2 + $0x248] sm:$0xff]  ;;  %v26256_v42 = vld [vmem:[#allocation2 + $0x258] sm:$0xff] }
  0x75   :  { %21532 = vmatmul.mubr.msk.f32.gmra.mrb[18].mxu0 %vm60_vm0, %v577_v13  ;;  %v26148_v13 = vld [vmem:[#allocation2 + $0xc8] sm:$0xff]  ;;  %v26270_v45 = vld [vmem:[#allocation2 + $0x278] sm:$0xff] }
  0x76   :  { %21534 = vmatprep.mubr.msk.f32.mxu0 %vm60_vm0, %v578_v14  ;;  %v26150_v14 = vld [vmem:[#allocation2 + $0xd8] sm:$0xff]  ;;  %v26272_v46 = vld [vmem:[#allocation2 + $0x288] sm:$0xff] }
  0x77   :  { %v26286_v49 = vld [vmem:[#allocation2 + $0x2a8] sm:$0xff]  ;;  %v26288_v50 = vld [vmem:[#allocation2 + $0x2b8] sm:$0xff] }
  0x78   :  { %v26302_v53 = vld [vmem:[#allocation2 + $0x2d8] sm:$0xff]  ;;  %v26304_v54 = vld [vmem:[#allocation2 + $0x2e8] sm:$0xff] }
  0x79   :  { %21535 = vmatmul.mubr.msk.f32.gmra.mrb[20].mxu0 %vm60_vm0, %v579_v15  ;;  %v26156_v15 = vld [vmem:[#allocation2 + $0xe0] sm:$0xff] }
  0x7a   :  { %21537 = vmatprep.mubr.msk.f32.mxu0 %vm60_vm0, %v580_v16  ;;  %v26158_v16 = vld [vmem:[#allocation2 + $0xf0] sm:$0xff]  ;;  %v26331_v1 = vld [vmem:[#allocation2 + $0x1a] sm:$0xff] }
  0x7b   :  { %30831 = vst [vmem:[#allocation14_spill] sm:$0xff] %v26331_v1 }
  0x7d   :  { %21538 = vmatmul.mubr.msk.f32.gmra.mrb[22].mxu0 %vm60_vm0, %v581_v17  ;;  %v26164_v17 = vld [vmem:[#allocation2 + $0xf8] sm:$0xff] }
  0x7e   :  { %21540 = vmatprep.mubr.msk.f32.mxu0 %vm60_vm0, %v582_v18  ;;  %v26166_v18 = vld [vmem:[#allocation2 + $0x108] sm:$0xff] }
  0x81   :  { %21541 = vmatmul.mubr.msk.f32.gmra.mrb[24].mxu0 %vm60_vm0, %v583_v19  ;;  %v26172_v19 = vld [vmem:[#allocation2 + $0x110] sm:$0xff] }
  0x82   :  { %21543 = vmatprep.mubr.msk.f32.mxu0 %vm60_vm0, %v584_v20  ;;  %v26174_v20 = vld [vmem:[#allocation2 + $0x120] sm:$0xff] }
  0x85   :  { %21544 = vmatmul.mubr.msk.f32.gmra.mrb[26].mxu0 %vm60_vm0, %v585_v21  ;;  %v26180_v21 = vld [vmem:[#allocation2 + $0x128] sm:$0xff] }
  0x86   :  { %21546 = vmatprep.mubr.msk.f32.mxu0 %vm60_vm0, %v586_v22  ;;  %v26182_v22 = vld [vmem:[#allocation2 + $0x138] sm:$0xff] }
  0x89   :  { %21547 = vmatmul.mubr.msk.f32.gmra.mrb[28].mxu0 %vm60_vm0, %v587_v23  ;;  %v26188_v23 = vld [vmem:[#allocation2 + $0x140] sm:$0xff] }
  0x8a   :  { %21549 = vmatprep.mubr.msk.f32.mxu0 %vm60_vm0, %v588_v24  ;;  %v26190_v24 = vld [vmem:[#allocation2 + $0x150] sm:$0xff] }
  0x8d   :  { %21550 = vmatmul.mubr.msk.f32.gmra.mrb[30].mxu0 %vm60_vm0, %v589_v25  ;;  %v26196_v25 = vld [vmem:[#allocation2 + $0x158] sm:$0xff] }
  0x8e   :  { %21552 = vmatprep.mubr.msk.f32.mxu0 %vm60_vm0, %v590_v26  ;;  %v26198_v26 = vld [vmem:[#allocation2 + $0x168] sm:$0xff] }
  0x91   :  { %21553 = vmatmul.mubr.msk.f32.gmra.mrb[32].mxu0 %vm60_vm0, %v591_v27  ;;  %v26204_v27 = vld [vmem:[#allocation2 + $0x170] sm:$0xff] }
  0x92   :  { %21555 = vmatprep.mubr.msk.f32.mxu0 %vm60_vm0, %v592_v28  ;;  %v525_v28 = vld [vmem:[#allocation2 + $0x1b0] sm:$0xff] }
  0x95   :  { %21556 = vmatmul.mubr.msk.f32.gmra.mrb[34].mxu0 %vm60_vm0, %v593_v29  ;;  %v526_v29 = vld [vmem:[#allocation2 + $0x1b8] sm:$0xff] }
  0x96   :  { %21558 = vmatprep.mubr.msk.f32.mxu0 %vm60_vm0, %v594_v30  ;;  %v26209_v30 = vld [vmem:[#allocation2 + $0x1c8] sm:$0xff] }
  0x99   :  { %21559 = vmatmul.mubr.msk.f32.gmra.mrb[36].mxu0 %vm60_vm0, %v595_v31  ;;  %v26214_v31 = vld [vmem:[#allocation2 + $0x1d0] sm:$0xff] }
  0x9a   :  { %21561 = vmatprep.mubr.msk.f32.mxu0 %vm60_vm0, %v596_v32  ;;  %v26216_v32 = vld [vmem:[#allocation2 + $0x1e0] sm:$0xff] }
  0x9d   :  { %21562 = vmatmul.mubr.msk.f32.gmra.mrb[38].mxu0 %vm60_vm0, %v597_v33  ;;  %v26222_v33 = vld [vmem:[#allocation2 + $0x1e8] sm:$0xff] }
  0x9e   :  { %21564 = vmatprep.mubr.msk.f32.mxu0 %vm60_vm0, %v598_v34  ;;  %v26224_v34 = vld [vmem:[#allocation2 + $0x1f8] sm:$0xff] }
  0xa1   :  { %21565 = vmatmul.mubr.msk.f32.gmra.mrb[40].mxu0 %vm60_vm0, %v599_v35  ;;  %v26230_v35 = vld [vmem:[#allocation2 + $0x200] sm:$0xff] }
  0xa2   :  { %21567 = vmatprep.mubr.msk.f32.mxu0 %vm60_vm0, %v600_v36  ;;  %v26232_v36 = vld [vmem:[#allocation2 + $0x210] sm:$0xff] }
  0xa5   :  { %21568 = vmatmul.mubr.msk.f32.gmra.mrb[42].mxu0 %vm60_vm0, %v601_v37  ;;  %v26238_v37 = vld [vmem:[#allocation2 + $0x218] sm:$0xff] }
  0xa6   :  { %21570 = vmatprep.mubr.msk.f32.mxu0 %vm60_vm0, %v602_v38  ;;  %v26240_v38 = vld [vmem:[#allocation2 + $0x228] sm:$0xff] }
  0xa9   :  { %21571 = vmatmul.mubr.msk.f32.gmra.mrb[44].mxu0 %vm60_vm0, %v603_v39  ;;  %v26246_v39 = vld [vmem:[#allocation2 + $0x230] sm:$0xff] }
  0xaa   :  { %21573 = vmatprep.mubr.msk.f32.mxu0 %vm60_vm0, %v604_v40  ;;  %v26248_v40 = vld [vmem:[#allocation2 + $0x240] sm:$0xff] }
  0xad   :  { %21574 = vmatmul.mubr.msk.f32.gmra.mrb[46].mxu0 %vm60_vm0, %v605_v43  ;;  %v26262_v43 = vld [vmem:[#allocation2 + $0x260] sm:$0xff] }
  0xae   :  { %21576 = vmatprep.mubr.msk.f32.mxu0 %vm60_vm0, %v606_v44  ;;  %v26264_v44 = vld [vmem:[#allocation2 + $0x270] sm:$0xff] }
  0xb1   :  { %21577 = vmatmul.mubr.msk.f32.gmra.mrb[48].mxu0 %vm60_vm0, %v607_v47  ;;  %v26278_v47 = vld [vmem:[#allocation2 + $0x290] sm:$0xff] }
  0xb2   :  { %21579 = vmatprep.mubr.msk.f32.mxu0 %vm60_vm0, %v608_v48  ;;  %v26280_v48 = vld [vmem:[#allocation2 + $0x2a0] sm:$0xff] }
  0xb5   :  { %21580 = vmatmul.mubr.msk.f32.gmra.mrb[50].mxu0 %vm60_vm0, %v609_v51  ;;  %v26294_v51 = vld [vmem:[#allocation2 + $0x2c0] sm:$0xff] }
  0xb6   :  { %21582 = vmatprep.mubr.msk.f32.mxu0 %vm60_vm0, %v610_v52  ;;  %v26296_v52 = vld [vmem:[#allocation2 + $0x2d0] sm:$0xff] }
  0xb9   :  { %21583 = vmatmul.mubr.msk.f32.gmra.mrb[52].mxu0 %vm60_vm0, %v611_v55  ;;  %v26310_v55 = vld [vmem:[#allocation2 + $0x2f0] sm:$0xff] }
  0xba   :  { %21585 = vmatprep.mubr.msk.f32.mxu0 %vm60_vm0, %v612_v56  ;;  %v26312_v56 = vld [vmem:[#allocation2 + $0x300] sm:$0xff] }
  0xbb   :  { %30827 = vst [vmem:[#allocation10_spill] sm:$0xff] %v26312_v56 }
  0xbd   :  { %21586 = vmatmul.mubr.msk.f32.gmra.mrb[54].mxu0 %vm60_vm0, %v613_v57  ;;  %v26318_v57 = vld [vmem:[#allocation2 + $0x308] sm:$0xff] }
  0xbe   :  { %21602 = vmatprep.mubr.msk.f32.mxu0 %vm60_vm0, %v493_v58  ;;  %30828 = vst [vmem:[#allocation11_spill] sm:$0xff] %v26318_v57  ;;  %v26320_v58 = vld [vmem:[#allocation2 + $0x318] sm:$0xff] }
  0xbf   :  { %30829 = vst [vmem:[#allocation12_spill] sm:$0xff] %v26320_v58 }
  0xc1   :  { %21603 = vmatmul.mubr.msk.f32.vlgmr.msra.gmra.mrb[0].mxu0 %vm60_vm0, %v494_v59  ;;  %v26326_v59 = vld [vmem:[#allocation2 + $0x320] sm:$0xff] }
  0xc2   :  { %21699 = vmatpush3.msk.msra.mxu0 %vm816_vm2, %v26002_v11  ;;  %21605 = vmatprep.mubr.msk.f32.mxu0 %vm60_vm0, %v26078_v60  ;;  %v26140_v11 = vld [vmem:[#allocation2 + $0xb0] sm:$0xff]  ;;  %30830 = vst [vmem:[#allocation13_spill] sm:$0xff] %v26326_v59 }
  0xc3   :  { %21796 = vmatprep.subr.msk.mxu0 %vm816_vm2, %v26083_v61 }
  0xc5   :  { %21606 = vmatmul.mubr.msk.f32.gmra.mrb[2].mxu0 %vm60_vm0, %v26090_v62 }
  0xc6   :  { %21608 = vmatprep.mubr.msk.f32.mxu0 %vm60_vm0, %v26092_v63 }
  0xc9   :  { %21609 = vmatmul.mubr.msk.f32.gmra.mrb[4].mxu0 %vm60_vm0, %v26100_v0 }
  0xca   :  { %21611 = vmatprep.mubr.msk.f32.mxu0 %vm60_vm0, %v26102_v2 }
  0xcd   :  { %21612 = vmatmul.mubr.msk.f32.gmra.mrb[6].mxu0 %vm60_vm0, %v26108_v3 }
  0xce   :  { %21614 = vmatprep.mubr.msk.f32.mxu0 %vm60_vm0, %v26110_v4 }
  0xd1   :  { %21615 = vmatmul.mubr.msk.f32.gmra.mrb[8].mxu0 %vm60_vm0, %v26116_v5 }
  0xd2   :  { %21617 = vmatprep.mubr.msk.f32.mxu0 %vm60_vm0, %v26118_v6 }
  0xd5   :  { %21618 = vmatmul.mubr.msk.f32.gmra.mrb[10].mxu0 %vm60_vm0, %v26124_v7 }
  0xd6   :  { %21620 = vmatprep.mubr.msk.f32.mxu0 %vm60_vm0, %v26126_v8 }
  0xd9   :  { %21621 = vmatmul.mubr.msk.f32.gmra.mrb[12].mxu0 %vm60_vm0, %v26132_v9 }
  0xda   :  { %21623 = vmatprep.mubr.msk.f32.mxu0 %vm60_vm0, %v26134_v10 }
  0xdd   :  { %21624 = vmatmul.mubr.msk.f32.gmra.mrb[14].mxu0 %vm60_vm0, %v26140_v11 }
  0xde   :  { %21626 = vmatprep.mubr.msk.f32.mxu0 %vm60_vm0, %v26142_v12 }
  0xe1   :  { %21627 = vmatmul.mubr.msk.f32.gmra.mrb[16].mxu0 %vm60_vm0, %v26148_v13 }
  0xe2   :  { %21629 = vmatprep.mubr.msk.f32.mxu0 %vm60_vm0, %v26150_v14 }
  0xe5   :  { %21630 = vmatmul.mubr.msk.f32.gmra.mrb[18].mxu0 %vm60_vm0, %v26156_v15 }
  0xe6   :  { %21632 = vmatprep.mubr.msk.f32.mxu0 %vm60_vm0, %v26158_v16 }
  0xe9   :  { %21633 = vmatmul.mubr.msk.f32.gmra.mrb[20].mxu0 %vm60_vm0, %v26164_v17 }
  0xea   :  { %21635 = vmatprep.mubr.msk.f32.mxu0 %vm60_vm0, %v26166_v18 }
  0xed   :  { %21636 = vmatmul.mubr.msk.f32.gmra.mrb[22].mxu0 %vm60_vm0, %v26172_v19 }
  0xee   :  { %21638 = vmatprep.mubr.msk.f32.mxu0 %vm60_vm0, %v26174_v20 }
  0xf1   :  { %21639 = vmatmul.mubr.msk.f32.gmra.mrb[24].mxu0 %vm60_vm0, %v26180_v21 }
  0xf2   :  { %21641 = vmatprep.mubr.msk.f32.mxu0 %vm60_vm0, %v26182_v22 }
  0xf5   :  { %21642 = vmatmul.mubr.msk.f32.gmra.mrb[26].mxu0 %vm60_vm0, %v26188_v23 }
  0xf6   :  { %21644 = vmatprep.mubr.msk.f32.mxu0 %vm60_vm0, %v26190_v24 }
  0xf9   :  { %21645 = vmatmul.mubr.msk.f32.gmra.mrb[28].mxu0 %vm60_vm0, %v26196_v25 }
  0xfa   :  { %21647 = vmatprep.mubr.msk.f32.mxu0 %vm60_vm0, %v26198_v26 }
  0xfd   :  { %21648 = vmatmul.mubr.msk.f32.gmra.mrb[30].mxu0 %vm60_vm0, %v26204_v27 }
  0xfe   :  { %21650 = vmatprep.mubr.msk.f32.mxu0 %vm60_vm0, %v525_v28  ;;  %v1785_v28 = vld [vmem:[#allocation2 + $0x2] sm:$0xff] }
 0x101   :  { %21651 = vmatmul.mubr.msk.f32.gmra.mrb[32].mxu0 %vm60_vm0, %v526_v29  ;;  %v1786_v29 = vld [vmem:[#allocation2 + $0xa] sm:$0xff] }
 0x102   :  { %21653 = vmatprep.mubr.msk.f32.mxu0 %vm60_vm0, %v26209_v30 }
 0x105   :  { %21654 = vmatmul.mubr.msk.f32.gmra.mrb[34].mxu0 %vm60_vm0, %v26214_v31 }
 0x106   :  { %21656 = vmatprep.mubr.msk.f32.mxu0 %vm60_vm0, %v26216_v32 }
 0x109   :  { %21657 = vmatmul.mubr.msk.f32.gmra.mrb[36].mxu0 %vm60_vm0, %v26222_v33 }
 0x10a   :  { %21659 = vmatprep.mubr.msk.f32.mxu0 %vm60_vm0, %v26224_v34 }
 0x10d   :  { %21660 = vmatmul.mubr.msk.f32.gmra.mrb[38].mxu0 %vm60_vm0, %v26230_v35 }
 0x10e   :  { %21662 = vmatprep.mubr.msk.f32.mxu0 %vm60_vm0, %v26232_v36 }
 0x111   :  { %21663 = vmatmul.mubr.msk.f32.gmra.mrb[40].mxu0 %vm60_vm0, %v26238_v37 }
 0x112   :  { %21665 = vmatprep.mubr.msk.f32.mxu0 %vm60_vm0, %v26240_v38 }
 0x115   :  { %21666 = vmatmul.mubr.msk.f32.gmra.mrb[42].mxu0 %vm60_vm0, %v26246_v39 }
 0x116   :  { %21668 = vmatprep.mubr.msk.f32.mxu0 %vm60_vm0, %v26248_v40 }
 0x119   :  { %21669 = vmatmul.mubr.msk.f32.gmra.mrb[44].mxu0 %vm60_vm0, %v26254_v41 }
 0x11a   :  { %21671 = vmatprep.mubr.msk.f32.mxu0 %vm60_vm0, %v26256_v42 }
 0x11d   :  { %21672 = vmatmul.mubr.msk.f32.gmra.mrb[46].mxu0 %vm60_vm0, %v26262_v43 }
 0x11e   :  { %21674 = vmatprep.mubr.msk.f32.mxu0 %vm60_vm0, %v26264_v44 }
 0x121   :  { %21675 = vmatmul.mubr.msk.f32.gmra.mrb[48].mxu0 %vm60_vm0, %v26270_v45 }
 0x122   :  { %21677 = vmatprep.mubr.msk.f32.mxu0 %vm60_vm0, %v26272_v46 }
 0x125   :  { %21678 = vmatmul.mubr.msk.f32.gmra.mrb[50].mxu0 %vm60_vm0, %v26278_v47 }
 0x126   :  { %21680 = vmatprep.mubr.msk.f32.mxu0 %vm60_vm0, %v26280_v48 }
 0x129   :  { %21681 = vmatmul.mubr.msk.f32.gmra.mrb[52].mxu0 %vm60_vm0, %v26286_v49 }
 0x12a   :  { %21683 = vmatprep.mubr.msk.f32.mxu0 %vm60_vm0, %v26288_v50 }
 0x12d   :  { %21684 = vmatmul.mubr.msk.f32.gmra.mrb[54].mxu0 %vm60_vm0, %v26294_v51 }
 0x12e   :  { %21686 = vmatprep.mubr.msk.f32.mxu0 %vm60_vm0, %v26296_v52 }
 0x131   :  { %21687 = vmatmul.mubr.msk.f32.gmra.mrb[56].mxu0 %vm60_vm0, %v26302_v53 }
 0x132   :  { %21689 = vmatprep.mubr.msk.f32.mxu0 %vm60_vm0, %v26304_v54 }
 0x135   :  { %21690 = vmatmul.mubr.msk.f32.gmra.mrb[58].mxu0 %vm60_vm0, %v26310_v55 }
 0x136   :  { %21692 = vmatprep.mubr.msk.f32.mxu0 %vm60_vm0, %v26312_v56  ;;  %v26336_v56 = vld [vmem:[%s30664_s1 + $0x10] sm:$0xf] }
 0x139   :  { %21693 = vmatmul.mubr.msk.f32.gmra.mrb[60].mxu0 %vm60_vm0, %v26318_v57  ;;  %v1817_v57 = vld [vmem:[#allocation2 + $0x1b2] sm:$0xff] }
 0x13a   :  { %21695 = vmatprep.mubr.msk.f32.mxu0 %vm60_vm0, %v26320_v58  ;;  %v26343_v58 = vld [vmem:[#allocation2 + $0x22] sm:$0xff] }
 0x13b   :  { %30832 = vst [vmem:[#allocation15_spill] sm:$0xff] %v26343_v58 }
 0x13d   :  { %21696 = vmatmul.mubr.msk.f32.gmra.mrb[62].mxu0 %vm60_vm0, %v26326_v59  ;;  %v26345_v59 = vld [vmem:[#allocation2 + $0x32] sm:$0xff] }
 0x13e   :  { %21700 = vmatprep.mubr.msk.f32.mxu0 %vm60_vm0, %v1785_v28  ;;  %30833 = vst [vmem:[#allocation16_spill] sm:$0xff] %v26345_v59  ;;  %v26353_v28 = vld [vmem:[#allocation2 + $0x3a] sm:$0xff] }
 0x13f   :  { %30834 = vst [vmem:[#allocation17_spill] sm:$0xff] %v26353_v28 }
 0x141   :  { %21701 = vmatmul.mubr.msk.f32.vlgmr.msra.gmra.mrb[0].mxu0 %vm60_vm0, %v1786_v29  ;;  %v26355_v29 = vld [vmem:[#allocation2 + $0x4a] sm:$0xff] }
 0x142   :  { %21797 = vmatpush3.msk.msra.mxu0 %vm816_vm2, %v26083_v61  ;;  %21703 = vmatprep.mubr.msk.f32.mxu0 %vm60_vm0, %v26331_v1  ;;  %30835 = vst [vmem:[#allocation18_spill] sm:$0xff] %v26355_v29  ;;  %v26361_v61 = vld [vmem:[#allocation2 + $0x52] sm:$0xff]  ;;  %v26363_v1 = vld [vmem:[#allocation2 + $0x62] sm:$0xff] }
 0x143   :  { %21894 = vmatprep.subr.msk.mxu0 %vm816_vm2, %v26336_v56  ;;  %30836 = vst [vmem:[#allocation19_spill] sm:$0xff] %v26361_v61  ;;  %30837 = vst [vmem:[#allocation20_spill] sm:$0xff] %v26363_v1 }
 0x145   :  { %21704 = vmatmul.mubr.msk.f32.gmra.mrb[2].mxu0 %vm60_vm0, %v26343_v58  ;;  %v26371_v58 = vld [vmem:[#allocation2 + $0x7a] sm:$0xff] }
 0x146   :  { %21706 = vmatprep.mubr.msk.f32.mxu0 %vm60_vm0, %v26345_v59  ;;  %v26369_v59 = vld [vmem:[#allocation2 + $0x6a] sm:$0xff]  ;;  %30839 = vst [vmem:[#allocation22_spill] sm:$0xff] %v26371_v58 }
 0x147   :  { %30838 = vst [vmem:[#allocation21_spill] sm:$0xff] %v26369_v59 }
 0x149   :  { %21707 = vmatmul.mubr.msk.f32.gmra.mrb[4].mxu0 %vm60_vm0, %v26353_v28  ;;  %v26379_v28 = vld [vmem:[#allocation2 + $0x92] sm:$0xff] }
 0x14a   :  { %21709 = vmatprep.mubr.msk.f32.mxu0 %vm60_vm0, %v26355_v29  ;;  %v26377_v29 = vld [vmem:[#allocation2 + $0x82] sm:$0xff]  ;;  %30841 = vst [vmem:[#allocation24_spill] sm:$0xff] %v26379_v28 }
 0x14b   :  { %30840 = vst [vmem:[#allocation23_spill] sm:$0xff] %v26377_v29 }
 0x14d   :  { %21710 = vmatmul.mubr.msk.f32.gmra.mrb[6].mxu0 %vm60_vm0, %v26361_v61  ;;  %v26387_v61 = vld [vmem:[#allocation2 + $0xaa] sm:$0xff] }
 0x14e   :  { %21712 = vmatprep.mubr.msk.f32.mxu0 %vm60_vm0, %v26363_v1  ;;  %v26385_v1 = vld [vmem:[#allocation2 + $0x9a] sm:$0xff]  ;;  %30843 = vst [vmem:[#allocation26_spill] sm:$0xff] %v26387_v61 }
 0x14f   :  { %30842 = vst [vmem:[#allocation25_spill] sm:$0xff] %v26385_v1 }
 0x151   :  { %21713 = vmatmul.mubr.msk.f32.gmra.mrb[8].mxu0 %vm60_vm0, %v26369_v59  ;;  %v26395_v59 = vld [vmem:[#allocation2 + $0xc2] sm:$0xff] }
 0x152   :  { %21715 = vmatprep.mubr.msk.f32.mxu0 %vm60_vm0, %v26371_v58  ;;  %v26393_v58 = vld [vmem:[#allocation2 + $0xb2] sm:$0xff]  ;;  %30845 = vst [vmem:[#allocation28_spill] sm:$0xff] %v26395_v59 }
 0x153   :  { %30844 = vst [vmem:[#allocation27_spill] sm:$0xff] %v26393_v58 }
 0x155   :  { %21716 = vmatmul.mubr.msk.f32.gmra.mrb[10].mxu0 %vm60_vm0, %v26377_v29  ;;  %v26403_v29 = vld [vmem:[#allocation2 + $0xda] sm:$0xff] }
 0x156   :  { %21718 = vmatprep.mubr.msk.f32.mxu0 %vm60_vm0, %v26379_v28  ;;  %v26401_v28 = vld [vmem:[#allocation2 + $0xca] sm:$0xff]  ;;  %30847 = vst [vmem:[#allocation30_spill] sm:$0xff] %v26403_v29 }
 0x157   :  { %30846 = vst [vmem:[#allocation29_spill] sm:$0xff] %v26401_v28 }
 0x159   :  { %21719 = vmatmul.mubr.msk.f32.gmra.mrb[12].mxu0 %vm60_vm0, %v26385_v1  ;;  %v26411_v1 = vld [vmem:[#allocation2 + $0xf2] sm:$0xff] }
 0x15a   :  { %21721 = vmatprep.mubr.msk.f32.mxu0 %vm60_vm0, %v26387_v61  ;;  %v26409_v61 = vld [vmem:[#allocation2 + $0xe2] sm:$0xff]  ;;  %30849 = vst [vmem:[#allocation32_spill] sm:$0xff] %v26411_v1 }
 0x15b   :  { %30848 = vst [vmem:[#allocation31_spill] sm:$0xff] %v26409_v61 }
 0x15d   :  { %21722 = vmatmul.mubr.msk.f32.gmra.mrb[14].mxu0 %vm60_vm0, %v26393_v58  ;;  %v26419_v58 = vld [vmem:[#allocation2 + $0x10a] sm:$0xff] }
 0x15e   :  { %21724 = vmatprep.mubr.msk.f32.mxu0 %vm60_vm0, %v26395_v59  ;;  %v26417_v59 = vld [vmem:[#allocation2 + $0xfa] sm:$0xff]  ;;  %30851 = vst [vmem:[#allocation34_spill] sm:$0xff] %v26419_v58 }
 0x15f   :  { %30850 = vst [vmem:[#allocation33_spill] sm:$0xff] %v26417_v59 }
 0x161   :  { %21725 = vmatmul.mubr.msk.f32.gmra.mrb[16].mxu0 %vm60_vm0, %v26401_v28  ;;  %v26427_v28 = vld [vmem:[#allocation2 + $0x122] sm:$0xff] }
 0x162   :  { %21727 = vmatprep.mubr.msk.f32.mxu0 %vm60_vm0, %v26403_v29  ;;  %v26425_v29 = vld [vmem:[#allocation2 + $0x112] sm:$0xff]  ;;  %30853 = vst [vmem:[#allocation36_spill] sm:$0xff] %v26427_v28 }
 0x163   :  { %30852 = vst [vmem:[#allocation35_spill] sm:$0xff] %v26425_v29 }
 0x165   :  { %21728 = vmatmul.mubr.msk.f32.gmra.mrb[18].mxu0 %vm60_vm0, %v26409_v61  ;;  %v26435_v61 = vld [vmem:[#allocation2 + $0x13a] sm:$0xff] }
 0x166   :  { %21730 = vmatprep.mubr.msk.f32.mxu0 %vm60_vm0, %v26411_v1  ;;  %v26433_v1 = vld [vmem:[#allocation2 + $0x12a] sm:$0xff]  ;;  %30855 = vst [vmem:[#allocation38_spill] sm:$0xff] %v26435_v61 }
 0x167   :  { %30854 = vst [vmem:[#allocation37_spill] sm:$0xff] %v26433_v1 }
 0x169   :  { %21731 = vmatmul.mubr.msk.f32.gmra.mrb[20].mxu0 %vm60_vm0, %v26417_v59  ;;  %v26443_v59 = vld [vmem:[#allocation2 + $0x152] sm:$0xff] }
 0x16a   :  { %21733 = vmatprep.mubr.msk.f32.mxu0 %vm60_vm0, %v26419_v58  ;;  %v26441_v58 = vld [vmem:[#allocation2 + $0x142] sm:$0xff]  ;;  %30857 = vst [vmem:[#allocation40_spill] sm:$0xff] %v26443_v59 }
 0x16b   :  { %30856 = vst [vmem:[#allocation39_spill] sm:$0xff] %v26441_v58 }
 0x16d   :  { %21734 = vmatmul.mubr.msk.f32.gmra.mrb[22].mxu0 %vm60_vm0, %v26425_v29  ;;  %v394_v29 = vld [vmem:[%s30663_s0 + $0xf0] sm:$0xff] }
 0x16e   :  { %21736 = vmatprep.mubr.msk.f32.mxu0 %vm60_vm0, %v26427_v28  ;;  %459 = vst.msk [vmem:[#allocation2 + $0x181] sm:$0xff] %vm60_vm0, %v394_v29  ;;  %v395_v28 = vld [vmem:[%s30663_s0 + $0xf8] sm:$0xff] }
 0x16f   :  { %460 = vst.msk [vmem:[#allocation2 + $0x189] sm:$0xff] %vm60_vm0, %v395_v28  ;;  %v26465_v29 = vld [vmem:[#allocation2 + $0x172] sm:$0xff]  ;;  %v1818_v28 = vld [vmem:[#allocation2 + $0x1ba] sm:$0xff] }
 0x170   :  { %30859 = vst [vmem:[#allocation42_spill] sm:$0xff] %v26465_v29 }
 0x171   :  { %21737 = vmatmul.mubr.msk.f32.gmra.mrb[24].mxu0 %vm60_vm0, %v26433_v1  ;;  %v26459_v1 = vld [vmem:[#allocation2 + $0x16a] sm:$0xff] }
 0x172   :  { %21739 = vmatprep.mubr.msk.f32.mxu0 %vm60_vm0, %v26435_v61  ;;  %v26457_v61 = vld [vmem:[#allocation2 + $0x15a] sm:$0xff] }
 0x173   :  { %30858 = vst [vmem:[#allocation41_spill] sm:$0xff] %v26457_v61 }
 0x175   :  { %21740 = vmatmul.mubr.msk.f32.gmra.mrb[26].mxu0 %vm60_vm0, %v26441_v58  ;;  %v26477_v58 = vld [vmem:[#allocation2 + $0x1e2] sm:$0xff] }
 0x176   :  { %21742 = vmatprep.mubr.msk.f32.mxu0 %vm60_vm0, %v26443_v59  ;;  %v26470_v59 = vld [vmem:[#allocation2 + $0x1ca] sm:$0xff]  ;;  %30862 = vst [vmem:[#allocation45_spill] sm:$0xff] %v26477_v58 }
 0x177   :  { %30860 = vst [vmem:[#allocation43_spill] sm:$0xff] %v26470_v59 }
 0x179   :  { %21743 = vmatmul.mubr.msk.f32.gmra.mrb[28].mxu0 %vm60_vm0, %v26457_v61  ;;  %v26475_v61 = vld [vmem:[#allocation2 + $0x1d2] sm:$0xff] }
 0x17a   :  { %21745 = vmatprep.mubr.msk.f32.mxu0 %vm60_vm0, %v26459_v1  ;;  %30861 = vst [vmem:[#allocation44_spill] sm:$0xff] %v26475_v61 }
 0x17d   :  { %21746 = vmatmul.mubr.msk.f32.gmra.mrb[30].mxu0 %vm60_vm0, %v26465_v29  ;;  %v26483_v29 = vld [vmem:[#allocation2 + $0x1ea] sm:$0xff] }
 0x17e   :  { %21748 = vmatprep.mubr.msk.f32.mxu0 %vm60_vm0, %v1817_v57  ;;  %30863 = vst [vmem:[#allocation46_spill] sm:$0xff] %v26483_v29  ;;  %v26485_v57 = vld [vmem:[#allocation2 + $0x1fa] sm:$0xff] }
 0x17f   :  { %30864 = vst [vmem:[#allocation47_spill] sm:$0xff] %v26485_v57 }
 0x181   :  { %21749 = vmatmul.mubr.msk.f32.gmra.mrb[32].mxu0 %vm60_vm0, %v1818_v28  ;;  %v26491_v28 = vld [vmem:[#allocation2 + $0x202] sm:$0xff] }
 0x182   :  { %21751 = vmatprep.mubr.msk.f32.mxu0 %vm60_vm0, %v26470_v59  ;;  %30865 = vst [vmem:[#allocation48_spill] sm:$0xff] %v26491_v28  ;;  %v26493_v59 = vld [vmem:[#allocation2 + $0x212] sm:$0xff] }
 0x183   :  { %30866 = vst [vmem:[#allocation49_spill] sm:$0xff] %v26493_v59 }
 0x185   :  { %21752 = vmatmul.mubr.msk.f32.gmra.mrb[34].mxu0 %vm60_vm0, %v26475_v61  ;;  %v26501_v61 = vld [vmem:[#allocation2 + $0x22a] sm:$0xff] }
 0x186   :  { %21754 = vmatprep.mubr.msk.f32.mxu0 %vm60_vm0, %v26477_v58  ;;  %v26499_v58 = vld [vmem:[#allocation2 + $0x21a] sm:$0xff]  ;;  %30868 = vst [vmem:[#allocation51_spill] sm:$0xff] %v26501_v61 }
 0x187   :  { %30867 = vst [vmem:[#allocation50_spill] sm:$0xff] %v26499_v58 }
 0x189   :  { %21755 = vmatmul.mubr.msk.f32.gmra.mrb[36].mxu0 %vm60_vm0, %v26483_v29  ;;  %v26509_v29 = vld [vmem:[#allocation2 + $0x242] sm:$0xff] }
 0x18a   :  { %21757 = vmatprep.mubr.msk.f32.mxu0 %vm60_vm0, %v26485_v57  ;;  %v26507_v57 = vld [vmem:[#allocation2 + $0x232] sm:$0xff]  ;;  %30870 = vst [vmem:[#allocation53_spill] sm:$0xff] %v26509_v29 }
 0x18b   :  { %30869 = vst [vmem:[#allocation52_spill] sm:$0xff] %v26507_v57 }
 0x18d   :  { %21758 = vmatmul.mubr.msk.f32.gmra.mrb[38].mxu0 %vm60_vm0, %v26491_v28  ;;  %v26517_v28 = vld [vmem:[#allocation2 + $0x25a] sm:$0xff] }
 0x18e   :  { %21760 = vmatprep.mubr.msk.f32.mxu0 %vm60_vm0, %v26493_v59  ;;  %v26515_v59 = vld [vmem:[#allocation2 + $0x24a] sm:$0xff]  ;;  %30872 = vst [vmem:[#allocation55_spill] sm:$0xff] %v26517_v28 }
 0x18f   :  { %30871 = vst [vmem:[#allocation54_spill] sm:$0xff] %v26515_v59 }
 0x191   :  { %21761 = vmatmul.mubr.msk.f32.gmra.mrb[40].mxu0 %vm60_vm0, %v26499_v58  ;;  %v26525_v58 = vld [vmem:[#allocation2 + $0x272] sm:$0xff] }
 0x192   :  { %21763 = vmatprep.mubr.msk.f32.mxu0 %vm60_vm0, %v26501_v61  ;;  %v26523_v61 = vld [vmem:[#allocation2 + $0x262] sm:$0xff]  ;;  %30874 = vst [vmem:[#allocation57_spill] sm:$0xff] %v26525_v58 }
 0x193   :  { %30873 = vst [vmem:[#allocation56_spill] sm:$0xff] %v26523_v61 }
 0x195   :  { %21764 = vmatmul.mubr.msk.f32.gmra.mrb[42].mxu0 %vm60_vm0, %v26507_v57  ;;  %v26533_v57 = vld [vmem:[#allocation2 + $0x28a] sm:$0xff] }
 0x196   :  { %21766 = vmatprep.mubr.msk.f32.mxu0 %vm60_vm0, %v26509_v29  ;;  %v26531_v29 = vld [vmem:[#allocation2 + $0x27a] sm:$0xff]  ;;  %30876 = vst [vmem:[#allocation59_spill] sm:$0xff] %v26533_v57 }
 0x197   :  { %30875 = vst [vmem:[#allocation58_spill] sm:$0xff] %v26531_v29 }
 0x199   :  { %21767 = vmatmul.mubr.msk.f32.gmra.mrb[44].mxu0 %vm60_vm0, %v26515_v59  ;;  %v26541_v59 = vld [vmem:[#allocation2 + $0x2a2] sm:$0xff] }
 0x19a   :  { %21769 = vmatprep.mubr.msk.f32.mxu0 %vm60_vm0, %v26517_v28  ;;  %v26539_v28 = vld [vmem:[#allocation2 + $0x292] sm:$0xff]  ;;  %30878 = vst [vmem:[#allocation61_spill] sm:$0xff] %v26541_v59 }
 0x19b   :  { %30877 = vst [vmem:[#allocation60_spill] sm:$0xff] %v26539_v28 }
 0x19d   :  { %21770 = vmatmul.mubr.msk.f32.gmra.mrb[46].mxu0 %vm60_vm0, %v26523_v61  ;;  %v26549_v61 = vld [vmem:[#allocation2 + $0x2ba] sm:$0xff] }
 0x19e   :  { %21772 = vmatprep.mubr.msk.f32.mxu0 %vm60_vm0, %v26525_v58  ;;  %v26547_v58 = vld [vmem:[#allocation2 + $0x2aa] sm:$0xff]  ;;  %30880 = vst [vmem:[#allocation63_spill] sm:$0xff] %v26549_v61 }
 0x19f   :  { %30879 = vst [vmem:[#allocation62_spill] sm:$0xff] %v26547_v58 }
 0x1a1   :  { %21773 = vmatmul.mubr.msk.f32.gmra.mrb[48].mxu0 %vm60_vm0, %v26531_v29  ;;  %v26557_v29 = vld [vmem:[#allocation2 + $0x2d2] sm:$0xff] }
 0x1a2   :  { %21775 = vmatprep.mubr.msk.f32.mxu0 %vm60_vm0, %v26533_v57  ;;  %v26555_v57 = vld [vmem:[#allocation2 + $0x2c2] sm:$0xff]  ;;  %30882 = vst [vmem:[#allocation65_spill] sm:$0xff] %v26557_v29 }
 0x1a3   :  { %30881 = vst [vmem:[#allocation64_spill] sm:$0xff] %v26555_v57 }
 0x1a5   :  { %21776 = vmatmul.mubr.msk.f32.gmra.mrb[50].mxu0 %vm60_vm0, %v26539_v28  ;;  %v26565_v28 = vld [vmem:[#allocation2 + $0x2ea] sm:$0xff] }
 0x1a6   :  { %21778 = vmatprep.mubr.msk.f32.mxu0 %vm60_vm0, %v26541_v59  ;;  %v26563_v59 = vld [vmem:[#allocation2 + $0x2da] sm:$0xff]  ;;  %30884 = vst [vmem:[#allocation67_spill] sm:$0xff] %v26565_v28 }
 0x1a7   :  { %30883 = vst [vmem:[#allocation66_spill] sm:$0xff] %v26563_v59 }
 0x1a9   :  { %21779 = vmatmul.mubr.msk.f32.gmra.mrb[52].mxu0 %vm60_vm0, %v26547_v58  ;;  %v26573_v58 = vld [vmem:[#allocation2 + $0x302] sm:$0xff] }
 0x1aa   :  { %21781 = vmatprep.mubr.msk.f32.mxu0 %vm60_vm0, %v26549_v61  ;;  %v26571_v61 = vld [vmem:[#allocation2 + $0x2f2] sm:$0xff] }
 0x1ad   :  { %21782 = vmatmul.mubr.msk.f32.gmra.mrb[54].mxu0 %vm60_vm0, %v26555_v57  ;;  %v426_v57 = vld [vmem:[%s30663_s0 + $0x1f0] sm:$0xff] }
 0x1ae   :  { %21784 = vmatprep.mubr.msk.f32.mxu0 %vm60_vm0, %v26557_v29  ;;  %491 = vst.msk [vmem:[#allocation2 + $0x331] sm:$0xff] %vm60_vm0, %v426_v57  ;;  %v427_v29 = vld [vmem:[%s30663_s0 + $0x1f8] sm:$0xff]  ;;  %v26595_v57 = vld [vmem:[#allocation2 + $0x322] sm:$0xff] }
 0x1af   :  { %492 = vst.msk [vmem:[#allocation2 + $0x339] sm:$0xff] %vm60_vm0, %v427_v29  ;;  %v26604_v29 = vld [vmem:[%s30664_s1 + $0x14] sm:$0xf] }
 0x1b1   :  { %21785 = vmatmul.mubr.msk.f32.gmra.mrb[56].mxu0 %vm60_vm0, %v26563_v59  ;;  %v26589_v59 = vld [vmem:[#allocation2 + $0x31a] sm:$0xff] }
 0x1b2   :  { %21787 = vmatprep.mubr.msk.f32.mxu0 %vm60_vm0, %v26565_v28  ;;  %v26587_v28 = vld [vmem:[#allocation2 + $0x30a] sm:$0xff] }
 0x1b5   :  { %21788 = vmatmul.mubr.msk.f32.gmra.mrb[58].mxu0 %vm60_vm0, %v26571_v61 }
 0x1b6   :  { %21790 = vmatprep.mubr.msk.f32.mxu0 %vm60_vm0, %v26573_v58 }
 0x1b9   :  { %21791 = vmatmul.mubr.msk.f32.gmra.mrb[60].mxu0 %vm60_vm0, %v26587_v28 }
 0x1ba   :  { %21793 = vmatprep.mubr.msk.f32.mxu0 %vm60_vm0, %v26589_v59 }
 0x1bd   :  { %21794 = vmatmul.mubr.msk.f32.gmra.mrb[62].mxu0 %vm60_vm0, %v26595_v57 }
 0x1be   :  { %21798 = vmatprep.mubr.msk.f32.mxu0 %vm60_vm0, %v26078_v60  ;;  %v26666_v60 = vld [vmem:[#allocation2 + $0x180] sm:$0xff] }
 0x1c1   :  { %21799 = vmatmul.mubr.msk.f32.vlgmr.msra.gmra.mrb[0].mxu0 %vm60_vm0, %v26090_v62  ;;  %v26672_v62 = vld [vmem:[#allocation2 + $0x188] sm:$0xff] }
 0x1c2   :  { %21895 = vmatpush3.msk.msra.mxu0 %vm816_vm2, %v26336_v56  ;;  %21801 = vmatprep.mubr.msk.f32.mxu0 %vm60_vm0, %v26092_v63  ;;  %v30885_v63 = vld [vmem:[#allocation10_spill] sm:$0xff]  ;;  %v26929_v56 = vld [vmem:[#allocation2 + $0x279] sm:$0xff] }
 0x1c3   :  { %21992 = vmatprep.subr.msk.mxu0 %vm816_vm2, %v26604_v29 }
 0x1c5   :  { %21802 = vmatmul.mubr.msk.f32.gmra.mrb[2].mxu0 %vm60_vm0, %v26100_v0  ;;  %v30886_v0 = vld [vmem:[#allocation11_spill] sm:$0xff] }
 0x1c6   :  { %21804 = vmatprep.mubr.msk.f32.mxu0 %vm60_vm0, %v26102_v2  ;;  %v30887_v2 = vld [vmem:[#allocation12_spill] sm:$0xff] }
 0x1c9   :  { %21805 = vmatmul.mubr.msk.f32.gmra.mrb[4].mxu0 %vm60_vm0, %v26108_v3  ;;  %v26734_v3 = vld [vmem:[#allocation2 + $0x330] sm:$0xff] }
 0x1ca   :  { %21807 = vmatprep.mubr.msk.f32.mxu0 %vm60_vm0, %v26110_v4  ;;  %v30888_v4 = vld [vmem:[#allocation13_spill] sm:$0xff] }
 0x1cd   :  { %21808 = vmatmul.mubr.msk.f32.gmra.mrb[6].mxu0 %vm60_vm0, %v26116_v5  ;;  %v26740_v5 = vld [vmem:[#allocation2 + $0x338] sm:$0xff] }
 0x1ce   :  { %21810 = vmatprep.mubr.msk.f32.mxu0 %vm60_vm0, %v26118_v6  ;;  %v3205_v6 = vld [vmem:[#allocation2 + $0x19] sm:$0xff] }
 0x1d1   :  { %21811 = vmatmul.mubr.msk.f32.gmra.mrb[8].mxu0 %vm60_vm0, %v26124_v7  ;;  %v3206_v7 = vld [vmem:[#allocation2 + $0x21] sm:$0xff] }
 0x1d2   :  { %21813 = vmatprep.mubr.msk.f32.mxu0 %vm60_vm0, %v26126_v8  ;;  %v26745_v8 = vld [vmem:[#allocation2 + $0x31] sm:$0xff] }
 0x1d5   :  { %21814 = vmatmul.mubr.msk.f32.gmra.mrb[10].mxu0 %vm60_vm0, %v26132_v9  ;;  %v26750_v9 = vld [vmem:[%s30664_s1 + $0x18] sm:$0xf] }
 0x1d6   :  { %21816 = vmatprep.mubr.msk.f32.mxu0 %vm60_vm0, %v26134_v10  ;;  %v26757_v10 = vld [vmem:[#allocation2 + $0x39] sm:$0xff] }
 0x1d9   :  { %21817 = vmatmul.mubr.msk.f32.gmra.mrb[12].mxu0 %vm60_vm0, %v26140_v11  ;;  %v26759_v11 = vld [vmem:[#allocation2 + $0x49] sm:$0xff] }
 0x1da   :  { %21819 = vmatprep.mubr.msk.f32.mxu0 %vm60_vm0, %v26142_v12  ;;  %v26767_v12 = vld [vmem:[#allocation2 + $0x51] sm:$0xff] }
 0x1dd   :  { %21820 = vmatmul.mubr.msk.f32.gmra.mrb[14].mxu0 %vm60_vm0, %v26148_v13  ;;  %v26769_v13 = vld [vmem:[#allocation2 + $0x61] sm:$0xff] }
 0x1de   :  { %21822 = vmatprep.mubr.msk.f32.mxu0 %vm60_vm0, %v26150_v14  ;;  %v26775_v14 = vld [vmem:[#allocation2 + $0x69] sm:$0xff] }
 0x1e1   :  { %21823 = vmatmul.mubr.msk.f32.gmra.mrb[16].mxu0 %vm60_vm0, %v26156_v15  ;;  %v26777_v15 = vld [vmem:[#allocation2 + $0x79] sm:$0xff] }
 0x1e2   :  { %21825 = vmatprep.mubr.msk.f32.mxu0 %vm60_vm0, %v26158_v16  ;;  %v26783_v16 = vld [vmem:[#allocation2 + $0x81] sm:$0xff] }
 0x1e5   :  { %21826 = vmatmul.mubr.msk.f32.gmra.mrb[18].mxu0 %vm60_vm0, %v26164_v17  ;;  %v26785_v17 = vld [vmem:[#allocation2 + $0x91] sm:$0xff] }
 0x1e6   :  { %21828 = vmatprep.mubr.msk.f32.mxu0 %vm60_vm0, %v26166_v18  ;;  %v26791_v18 = vld [vmem:[#allocation2 + $0x99] sm:$0xff] }
 0x1e9   :  { %21829 = vmatmul.mubr.msk.f32.gmra.mrb[20].mxu0 %vm60_vm0, %v26172_v19  ;;  %v26793_v19 = vld [vmem:[#allocation2 + $0xa9] sm:$0xff] }
 0x1ea   :  { %21831 = vmatprep.mubr.msk.f32.mxu0 %vm60_vm0, %v26174_v20  ;;  %v26799_v20 = vld [vmem:[#allocation2 + $0xb1] sm:$0xff] }
 0x1ed   :  { %21832 = vmatmul.mubr.msk.f32.gmra.mrb[22].mxu0 %vm60_vm0, %v26180_v21  ;;  %v26801_v21 = vld [vmem:[#allocation2 + $0xc1] sm:$0xff] }
 0x1ee   :  { %21834 = vmatprep.mubr.msk.f32.mxu0 %vm60_vm0, %v26182_v22  ;;  %v26807_v22 = vld [vmem:[#allocation2 + $0xc9] sm:$0xff] }
 0x1f1   :  { %21835 = vmatmul.mubr.msk.f32.gmra.mrb[24].mxu0 %vm60_vm0, %v26188_v23  ;;  %v26809_v23 = vld [vmem:[#allocation2 + $0xd9] sm:$0xff] }
 0x1f2   :  { %21837 = vmatprep.mubr.msk.f32.mxu0 %vm60_vm0, %v26190_v24  ;;  %v26815_v24 = vld [vmem:[#allocation2 + $0xe1] sm:$0xff] }
 0x1f5   :  { %21838 = vmatmul.mubr.msk.f32.gmra.mrb[26].mxu0 %vm60_vm0, %v26196_v25  ;;  %v26817_v25 = vld [vmem:[#allocation2 + $0xf1] sm:$0xff] }
 0x1f6   :  { %21840 = vmatprep.mubr.msk.f32.mxu0 %vm60_vm0, %v26198_v26  ;;  %v26823_v26 = vld [vmem:[#allocation2 + $0xf9] sm:$0xff] }
 0x1f9   :  { %21841 = vmatmul.mubr.msk.f32.gmra.mrb[28].mxu0 %vm60_vm0, %v26204_v27  ;;  %v26825_v27 = vld [vmem:[#allocation2 + $0x109] sm:$0xff] }
 0x1fa   :  { %21843 = vmatprep.mubr.msk.f32.mxu0 %vm60_vm0, %v26666_v60 }
 0x1fd   :  { %21844 = vmatmul.mubr.msk.f32.gmra.mrb[30].mxu0 %vm60_vm0, %v26672_v62 }
 0x1fe   :  { %21846 = vmatprep.mubr.msk.f32.mxu0 %vm60_vm0, %v26209_v30  ;;  %v26831_v30 = vld [vmem:[#allocation2 + $0x111] sm:$0xff] }
 0x201   :  { %21847 = vmatmul.mubr.msk.f32.gmra.mrb[32].mxu0 %vm60_vm0, %v26214_v31  ;;  %v26833_v31 = vld [vmem:[#allocation2 + $0x121] sm:$0xff] }
 0x202   :  { %21849 = vmatprep.mubr.msk.f32.mxu0 %vm60_vm0, %v26216_v32  ;;  %v26839_v32 = vld [vmem:[#allocation2 + $0x129] sm:$0xff] }
 0x205   :  { %21850 = vmatmul.mubr.msk.f32.gmra.mrb[34].mxu0 %vm60_vm0, %v26222_v33  ;;  %v26841_v33 = vld [vmem:[#allocation2 + $0x139] sm:$0xff] }
 0x206   :  { %21852 = vmatprep.mubr.msk.f32.mxu0 %vm60_vm0, %v26224_v34  ;;  %v26847_v34 = vld [vmem:[#allocation2 + $0x141] sm:$0xff] }
 0x209   :  { %21853 = vmatmul.mubr.msk.f32.gmra.mrb[36].mxu0 %vm60_vm0, %v26230_v35  ;;  %v26849_v35 = vld [vmem:[#allocation2 + $0x151] sm:$0xff] }
 0x20a   :  { %21855 = vmatprep.mubr.msk.f32.mxu0 %vm60_vm0, %v26232_v36  ;;  %v26855_v36 = vld [vmem:[#allocation2 + $0x159] sm:$0xff] }
 0x20d   :  { %21856 = vmatmul.mubr.msk.f32.gmra.mrb[38].mxu0 %vm60_vm0, %v26238_v37  ;;  %v26857_v37 = vld [vmem:[#allocation2 + $0x169] sm:$0xff] }
 0x20e   :  { %21858 = vmatprep.mubr.msk.f32.mxu0 %vm60_vm0, %v26240_v38  ;;  %v26863_v38 = vld [vmem:[#allocation2 + $0x171] sm:$0xff] }
 0x211   :  { %21859 = vmatmul.mubr.msk.f32.gmra.mrb[40].mxu0 %vm60_vm0, %v26246_v39  ;;  %v26865_v39 = vld [vmem:[#allocation2 + $0x181] sm:$0xff] }
 0x212   :  { %21861 = vmatprep.mubr.msk.f32.mxu0 %vm60_vm0, %v26248_v40  ;;  %v26871_v40 = vld [vmem:[#allocation2 + $0x189] sm:$0xff] }
 0x215   :  { %21862 = vmatmul.mubr.msk.f32.gmra.mrb[42].mxu0 %vm60_vm0, %v26254_v41  ;;  %v3237_v41 = vld [vmem:[#allocation2 + $0x1c9] sm:$0xff] }
 0x216   :  { %21864 = vmatprep.mubr.msk.f32.mxu0 %vm60_vm0, %v26256_v42  ;;  %v3238_v42 = vld [vmem:[#allocation2 + $0x1d1] sm:$0xff] }
 0x219   :  { %21865 = vmatmul.mubr.msk.f32.gmra.mrb[44].mxu0 %vm60_vm0, %v26262_v43  ;;  %v26876_v43 = vld [vmem:[#allocation2 + $0x1e1] sm:$0xff] }
 0x21a   :  { %21867 = vmatprep.mubr.msk.f32.mxu0 %vm60_vm0, %v26264_v44  ;;  %v26881_v44 = vld [vmem:[#allocation2 + $0x1e9] sm:$0xff] }
 0x21d   :  { %21868 = vmatmul.mubr.msk.f32.gmra.mrb[46].mxu0 %vm60_vm0, %v26270_v45  ;;  %v26883_v45 = vld [vmem:[#allocation2 + $0x1f9] sm:$0xff] }
 0x21e   :  { %21870 = vmatprep.mubr.msk.f32.mxu0 %vm60_vm0, %v26272_v46  ;;  %v26889_v46 = vld [vmem:[#allocation2 + $0x201] sm:$0xff] }
 0x221   :  { %21871 = vmatmul.mubr.msk.f32.gmra.mrb[48].mxu0 %vm60_vm0, %v26278_v47  ;;  %v26891_v47 = vld [vmem:[#allocation2 + $0x211] sm:$0xff] }
 0x222   :  { %21873 = vmatprep.mubr.msk.f32.mxu0 %vm60_vm0, %v26280_v48  ;;  %v26897_v48 = vld [vmem:[#allocation2 + $0x219] sm:$0xff] }
 0x225   :  { %21874 = vmatmul.mubr.msk.f32.gmra.mrb[50].mxu0 %vm60_vm0, %v26286_v49  ;;  %v26899_v49 = vld [vmem:[#allocation2 + $0x229] sm:$0xff] }
 0x226   :  { %21876 = vmatprep.mubr.msk.f32.mxu0 %vm60_vm0, %v26288_v50  ;;  %v26905_v50 = vld [vmem:[#allocation2 + $0x231] sm:$0xff] }
 0x229   :  { %21877 = vmatmul.mubr.msk.f32.gmra.mrb[52].mxu0 %vm60_vm0, %v26294_v51  ;;  %v26907_v51 = vld [vmem:[#allocation2 + $0x241] sm:$0xff] }
 0x22a   :  { %21879 = vmatprep.mubr.msk.f32.mxu0 %vm60_vm0, %v26296_v52  ;;  %v26913_v52 = vld [vmem:[#allocation2 + $0x249] sm:$0xff] }
 0x22d   :  { %21880 = vmatmul.mubr.msk.f32.gmra.mrb[54].mxu0 %vm60_vm0, %v26302_v53  ;;  %v26915_v53 = vld [vmem:[#allocation2 + $0x259] sm:$0xff] }
 0x22e   :  { %21882 = vmatprep.mubr.msk.f32.mxu0 %vm60_vm0, %v26304_v54  ;;  %v26921_v54 = vld [vmem:[#allocation2 + $0x261] sm:$0xff] }
 0x231   :  { %21883 = vmatmul.mubr.msk.f32.gmra.mrb[56].mxu0 %vm60_vm0, %v26310_v55  ;;  %v26923_v55 = vld [vmem:[#allocation2 + $0x271] sm:$0xff] }
 0x232   :  { %21885 = vmatprep.mubr.msk.f32.mxu0 %vm60_vm0, %v30885_v63  ;;  %v26937_v63 = vld [vmem:[#allocation2 + $0x291] sm:$0xff] }
 0x233   :  { %30889 = vst [vmem:[#allocation10_spill] sm:$0xff] %v26937_v63 }
 0x235   :  { %21886 = vmatmul.mubr.msk.f32.gmra.mrb[58].mxu0 %vm60_vm0, %v30886_v0  ;;  %v26939_v0 = vld [vmem:[#allocation2 + $0x2a1] sm:$0xff] }
 0x236   :  { %21888 = vmatprep.mubr.msk.f32.mxu0 %vm60_vm0, %v30887_v2  ;;  %30890 = vst [vmem:[#allocation11_spill] sm:$0xff] %v26939_v0  ;;  %v26945_v2 = vld [vmem:[#allocation2 + $0x2a9] sm:$0xff] }
 0x237   :  { %30891 = vst [vmem:[#allocation12_spill] sm:$0xff] %v26945_v2 }
 0x239   :  { %21889 = vmatmul.mubr.msk.f32.gmra.mrb[60].mxu0 %vm60_vm0, %v30888_v4  ;;  %v26947_v4 = vld [vmem:[#allocation2 + $0x2b9] sm:$0xff] }
 0x23a   :  { %21891 = vmatprep.mubr.msk.f32.mxu0 %vm60_vm0, %v26734_v3  ;;  %30892 = vst [vmem:[#allocation13_spill] sm:$0xff] %v26947_v4 }
 0x23d   :  { %21892 = vmatmul.mubr.msk.f32.gmra.mrb[62].mxu0 %vm60_vm0, %v26740_v5 }
 0x23e   :  { %21896 = vmatprep.mubr.msk.f32.mxu0 %vm60_vm0, %v3205_v6  ;;  %v26953_v6 = vld [vmem:[#allocation2 + $0x2c1] sm:$0xff] }
 0x23f   :  { %30893 = vst [vmem:[#allocation68_spill] sm:$0xff] %v26953_v6 }
 0x241   :  { %21897 = vmatmul.mubr.msk.f32.vlgmr.msra.gmra.mrb[0].mxu0 %vm60_vm0, %v3206_v7  ;;  %v26955_v7 = vld [vmem:[#allocation2 + $0x2d1] sm:$0xff] }
 0x242   :  { %21993 = vmatpush3.msk.msra.mxu0 %vm816_vm2, %v26604_v29  ;;  %21899 = vmatprep.mubr.msk.f32.mxu0 %vm60_vm0, %v26745_v8  ;;  %v26931_v29 = vld [vmem:[#allocation2 + $0x289] sm:$0xff]  ;;  %30894 = vst [vmem:[#allocation69_spill] sm:$0xff] %v26955_v7 }
 0x243   :  { %22090 = vmatprep.subr.msk.mxu0 %vm816_vm2, %v26750_v9 }
 0x245   :  { %21900 = vmatmul.mubr.msk.f32.gmra.mrb[2].mxu0 %vm60_vm0, %v26757_v10 }
 0x246   :  { %21902 = vmatprep.mubr.msk.f32.mxu0 %vm60_vm0, %v26759_v11 }
 0x249   :  { %21903 = vmatmul.mubr.msk.f32.gmra.mrb[4].mxu0 %vm60_vm0, %v26767_v12 }
 0x24a   :  { %21905 = vmatprep.mubr.msk.f32.mxu0 %vm60_vm0, %v26769_v13 }
 0x24d   :  { %21906 = vmatmul.mubr.msk.f32.gmra.mrb[6].mxu0 %vm60_vm0, %v26775_v14 }
 0x24e   :  { %21908 = vmatprep.mubr.msk.f32.mxu0 %vm60_vm0, %v26777_v15 }
 0x251   :  { %21909 = vmatmul.mubr.msk.f32.gmra.mrb[8].mxu0 %vm60_vm0, %v26783_v16 }
 0x252   :  { %21911 = vmatprep.mubr.msk.f32.mxu0 %vm60_vm0, %v26785_v17 }
 0x255   :  { %21912 = vmatmul.mubr.msk.f32.gmra.mrb[10].mxu0 %vm60_vm0, %v26791_v18 }
 0x256   :  { %21914 = vmatprep.mubr.msk.f32.mxu0 %vm60_vm0, %v26793_v19 }
 0x259   :  { %21915 = vmatmul.mubr.msk.f32.gmra.mrb[12].mxu0 %vm60_vm0, %v26799_v20 }
 0x25a   :  { %21917 = vmatprep.mubr.msk.f32.mxu0 %vm60_vm0, %v26801_v21 }
 0x25d   :  { %21918 = vmatmul.mubr.msk.f32.gmra.mrb[14].mxu0 %vm60_vm0, %v26807_v22 }
 0x25e   :  { %21920 = vmatprep.mubr.msk.f32.mxu0 %vm60_vm0, %v26809_v23 }
 0x261   :  { %21921 = vmatmul.mubr.msk.f32.gmra.mrb[16].mxu0 %vm60_vm0, %v26815_v24 }
 0x262   :  { %21923 = vmatprep.mubr.msk.f32.mxu0 %vm60_vm0, %v26817_v25 }
 0x265   :  { %21924 = vmatmul.mubr.msk.f32.gmra.mrb[18].mxu0 %vm60_vm0, %v26823_v26 }
 0x266   :  { %21926 = vmatprep.mubr.msk.f32.mxu0 %vm60_vm0, %v26825_v27 }
 0x269   :  { %21927 = vmatmul.mubr.msk.f32.gmra.mrb[20].mxu0 %vm60_vm0, %v26831_v30 }
 0x26a   :  { %21929 = vmatprep.mubr.msk.f32.mxu0 %vm60_vm0, %v26833_v31 }
 0x26d   :  { %21930 = vmatmul.mubr.msk.f32.gmra.mrb[22].mxu0 %vm60_vm0, %v26839_v32 }
 0x26e   :  { %21932 = vmatprep.mubr.msk.f32.mxu0 %vm60_vm0, %v26841_v33 }
 0x271   :  { %21933 = vmatmul.mubr.msk.f32.gmra.mrb[24].mxu0 %vm60_vm0, %v26847_v34 }
 0x272   :  { %21935 = vmatprep.mubr.msk.f32.mxu0 %vm60_vm0, %v26849_v35 }
 0x275   :  { %21936 = vmatmul.mubr.msk.f32.gmra.mrb[26].mxu0 %vm60_vm0, %v26855_v36 }
 0x276   :  { %21938 = vmatprep.mubr.msk.f32.mxu0 %vm60_vm0, %v26857_v37 }
 0x279   :  { %21939 = vmatmul.mubr.msk.f32.gmra.mrb[28].mxu0 %vm60_vm0, %v26863_v38 }
 0x27a   :  { %21941 = vmatprep.mubr.msk.f32.mxu0 %vm60_vm0, %v26865_v39 }
 0x27d   :  { %21942 = vmatmul.mubr.msk.f32.gmra.mrb[30].mxu0 %vm60_vm0, %v26871_v40 }
 0x27e   :  { %21944 = vmatprep.mubr.msk.f32.mxu0 %vm60_vm0, %v3237_v41  ;;  %v26961_v41 = vld [vmem:[#allocation2 + $0x2d9] sm:$0xff] }
 0x27f   :  { %30895 = vst [vmem:[#allocation70_spill] sm:$0xff] %v26961_v41 }
 0x281   :  { %21945 = vmatmul.mubr.msk.f32.gmra.mrb[32].mxu0 %vm60_vm0, %v3238_v42  ;;  %v26963_v42 = vld [vmem:[#allocation2 + $0x2e9] sm:$0xff] }
 0x282   :  { %21947 = vmatprep.mubr.msk.f32.mxu0 %vm60_vm0, %v26876_v43  ;;  %30896 = vst [vmem:[#allocation71_spill] sm:$0xff] %v26963_v42 }
 0x285   :  { %21948 = vmatmul.mubr.msk.f32.gmra.mrb[34].mxu0 %vm60_vm0, %v26881_v44 }
 0x286   :  { %21950 = vmatprep.mubr.msk.f32.mxu0 %vm60_vm0, %v26883_v45 }
 0x289   :  { %21951 = vmatmul.mubr.msk.f32.gmra.mrb[36].mxu0 %vm60_vm0, %v26889_v46 }
 0x28a   :  { %21953 = vmatprep.mubr.msk.f32.mxu0 %vm60_vm0, %v26891_v47 }
 0x28d   :  { %21954 = vmatmul.mubr.msk.f32.gmra.mrb[38].mxu0 %vm60_vm0, %v26897_v48 }
 0x28e   :  { %21956 = vmatprep.mubr.msk.f32.mxu0 %vm60_vm0, %v26899_v49 }
 0x291   :  { %21957 = vmatmul.mubr.msk.f32.gmra.mrb[40].mxu0 %vm60_vm0, %v26905_v50 }
 0x292   :  { %21959 = vmatprep.mubr.msk.f32.mxu0 %vm60_vm0, %v26907_v51 }
 0x295   :  { %21960 = vmatmul.mubr.msk.f32.gmra.mrb[42].mxu0 %vm60_vm0, %v26913_v52 }
 0x296   :  { %21962 = vmatprep.mubr.msk.f32.mxu0 %vm60_vm0, %v26915_v53 }
 0x299   :  { %21963 = vmatmul.mubr.msk.f32.gmra.mrb[44].mxu0 %vm60_vm0, %v26921_v54 }
 0x29a   :  { %21965 = vmatprep.mubr.msk.f32.mxu0 %vm60_vm0, %v26923_v55 }
 0x29d   :  { %21966 = vmatmul.mubr.msk.f32.gmra.mrb[46].mxu0 %vm60_vm0, %v26929_v56 }
 0x29e   :  { %21968 = vmatprep.mubr.msk.f32.mxu0 %vm60_vm0, %v26931_v29 }
 0x2a1   :  { %21969 = vmatmul.mubr.msk.f32.gmra.mrb[48].mxu0 %vm60_vm0, %v26937_v63  ;;  %v30914_v63 = vld [vmem:[#allocation24_spill] sm:$0xff] }
 0x2a2   :  { %21971 = vmatprep.mubr.msk.f32.mxu0 %vm60_vm0, %v26939_v0  ;;  %v30910_v0 = vld [vmem:[#allocation20_spill] sm:$0xff] }
 0x2a5   :  { %21972 = vmatmul.mubr.msk.f32.gmra.mrb[50].mxu0 %vm60_vm0, %v26945_v2  ;;  %v26971_v2 = vld [vmem:[#allocation2 + $0x301] sm:$0xff] }
 0x2a6   :  { %21974 = vmatprep.mubr.msk.f32.mxu0 %vm60_vm0, %v26947_v4  ;;  %v26969_v4 = vld [vmem:[#allocation2 + $0x2f1] sm:$0xff]  ;;  %30898 = vst [vmem:[#allocation73_spill] sm:$0xff] %v26971_v2 }
 0x2a7   :  { %30897 = vst [vmem:[#allocation72_spill] sm:$0xff] %v26969_v4 }
 0x2a9   :  { %21975 = vmatmul.mubr.msk.f32.gmra.mrb[52].mxu0 %vm60_vm0, %v26953_v6  ;;  %v26979_v6 = vld [vmem:[#allocation2 + $0x319] sm:$0xff] }
 0x2aa   :  { %21977 = vmatprep.mubr.msk.f32.mxu0 %vm60_vm0, %v26955_v7  ;;  %v26977_v7 = vld [vmem:[#allocation2 + $0x309] sm:$0xff]  ;;  %30900 = vst [vmem:[#allocation75_spill] sm:$0xff] %v26979_v6 }
 0x2ab   :  { %30899 = vst [vmem:[#allocation74_spill] sm:$0xff] %v26977_v7 }
 0x2ad   :  { %21978 = vmatmul.mubr.msk.f32.gmra.mrb[54].mxu0 %vm60_vm0, %v26961_v41  ;;  %v26987_v41 = vld [vmem:[#allocation2 + $0x331] sm:$0xff] }
 0x2ae   :  { %21980 = vmatprep.mubr.msk.f32.mxu0 %vm60_vm0, %v26963_v42  ;;  %v26985_v42 = vld [vmem:[#allocation2 + $0x321] sm:$0xff]  ;;  %30902 = vst [vmem:[#allocation77_spill] sm:$0xff] %v26987_v41 }
 0x2af   :  { %30901 = vst [vmem:[#allocation76_spill] sm:$0xff] %v26985_v42 }
 0x2b1   :  { %21981 = vmatmul.mubr.msk.f32.gmra.mrb[56].mxu0 %vm60_vm0, %v26969_v4  ;;  %v30904_v4 = vld [vmem:[#allocation14_spill] sm:$0xff] }
 0x2b2   :  { %21983 = vmatprep.mubr.msk.f32.mxu0 %vm60_vm0, %v26971_v2  ;;  %v26993_v2 = vld [vmem:[#allocation2 + $0x339] sm:$0xff] }
 0x2b3   :  { %30903 = vst [vmem:[#allocation78_spill] sm:$0xff] %v26993_v2 }
 0x2b5   :  { %21984 = vmatmul.mubr.msk.f32.gmra.mrb[58].mxu0 %vm60_vm0, %v26977_v7  ;;  %v30905_v7 = vld [vmem:[#allocation15_spill] sm:$0xff] }
 0x2b6   :  { %21986 = vmatprep.mubr.msk.f32.mxu0 %vm60_vm0, %v26979_v6  ;;  %v27002_v6 = vld [vmem:[%s30664_s1 + $0x1c] sm:$0xf] }
 0x2b9   :  { %21987 = vmatmul.mubr.msk.f32.gmra.mrb[60].mxu0 %vm60_vm0, %v26985_v42  ;;  %v30909_v42 = vld [vmem:[#allocation19_spill] sm:$0xff] }
 0x2ba   :  { %21989 = vmatprep.mubr.msk.f32.mxu0 %vm60_vm0, %v26987_v41  ;;  %v30906_v41 = vld [vmem:[#allocation16_spill] sm:$0xff] }
 0x2bd   :  { %21990 = vmatmul.mubr.msk.f32.gmra.mrb[62].mxu0 %vm60_vm0, %v26993_v2  ;;  %v30907_v2 = vld [vmem:[#allocation17_spill] sm:$0xff] }
 0x2be   :  { %21994 = vmatprep.mubr.msk.f32.mxu0 %vm60_vm0, %v30904_v4  ;;  %v30908_v4 = vld [vmem:[#allocation18_spill] sm:$0xff] }
 0x2c1   :  { %21995 = vmatmul.mubr.msk.f32.vlgmr.msra.gmra.mrb[0].mxu0 %vm60_vm0, %v30905_v7  ;;  %v30911_v7 = vld [vmem:[#allocation21_spill] sm:$0xff] }
 0x2c2   :  { %22091 = vmatpush3.msk.msra.mxu0 %vm816_vm2, %v26750_v9  ;;  %21997 = vmatprep.mubr.msk.f32.mxu0 %vm60_vm0, %v30906_v41  ;;  %v30912_v9 = vld [vmem:[#allocation22_spill] sm:$0xff]  ;;  %v30913_v41 = vld [vmem:[#allocation23_spill] sm:$0xff] }
 0x2c3   :  { %22188 = vmatprep.subr.msk.mxu0 %vm816_vm2, %v27002_v6 }
 0x2c5   :  { %21998 = vmatmul.mubr.msk.f32.gmra.mrb[2].mxu0 %vm60_vm0, %v30907_v2  ;;  %v30915_v2 = vld [vmem:[#allocation25_spill] sm:$0xff] }
 0x2c6   :  { %22000 = vmatprep.mubr.msk.f32.mxu0 %vm60_vm0, %v30908_v4  ;;  %v30916_v4 = vld [vmem:[#allocation26_spill] sm:$0xff] }
 0x2c9   :  { %22001 = vmatmul.mubr.msk.f32.gmra.mrb[4].mxu0 %vm60_vm0, %v30909_v42  ;;  %v30917_v42 = vld [vmem:[#allocation27_spill] sm:$0xff] }
 0x2ca   :  { %22003 = vmatprep.mubr.msk.f32.mxu0 %vm60_vm0, %v30910_v0  ;;  %v30918_v0 = vld [vmem:[#allocation28_spill] sm:$0xff] }
 0x2cd   :  { %22004 = vmatmul.mubr.msk.f32.gmra.mrb[6].mxu0 %vm60_vm0, %v30911_v7  ;;  %v30919_v7 = vld [vmem:[#allocation29_spill] sm:$0xff] }
 0x2ce   :  { %22006 = vmatprep.mubr.msk.f32.mxu0 %vm60_vm0, %v30912_v9  ;;  %v30920_v9 = vld [vmem:[#allocation30_spill] sm:$0xff] }
 0x2d1   :  { %22007 = vmatmul.mubr.msk.f32.gmra.mrb[8].mxu0 %vm60_vm0, %v30913_v41  ;;  %v30921_v41 = vld [vmem:[#allocation31_spill] sm:$0xff] }
 0x2d2   :  { %22009 = vmatprep.mubr.msk.f32.mxu0 %vm60_vm0, %v30914_v63  ;;  %v30922_v63 = vld [vmem:[#allocation32_spill] sm:$0xff] }
 0x2d5   :  { %22010 = vmatmul.mubr.msk.f32.gmra.mrb[10].mxu0 %vm60_vm0, %v30915_v2  ;;  %v30923_v2 = vld [vmem:[#allocation33_spill] sm:$0xff] }
 0x2d6   :  { %22012 = vmatprep.mubr.msk.f32.mxu0 %vm60_vm0, %v30916_v4  ;;  %v30924_v4 = vld [vmem:[#allocation34_spill] sm:$0xff] }
 0x2d9   :  { %22013 = vmatmul.mubr.msk.f32.gmra.mrb[12].mxu0 %vm60_vm0, %v30917_v42  ;;  %v30925_v42 = vld [vmem:[#allocation35_spill] sm:$0xff] }
 0x2da   :  { %22015 = vmatprep.mubr.msk.f32.mxu0 %vm60_vm0, %v30918_v0  ;;  %v30926_v0 = vld [vmem:[#allocation36_spill] sm:$0xff] }
 0x2dd   :  { %22016 = vmatmul.mubr.msk.f32.gmra.mrb[14].mxu0 %vm60_vm0, %v30919_v7  ;;  %v30927_v7 = vld [vmem:[#allocation37_spill] sm:$0xff] }
 0x2de   :  { %22018 = vmatprep.mubr.msk.f32.mxu0 %vm60_vm0, %v30920_v9  ;;  %v30928_v9 = vld [vmem:[#allocation38_spill] sm:$0xff] }
 0x2e1   :  { %22019 = vmatmul.mubr.msk.f32.gmra.mrb[16].mxu0 %vm60_vm0, %v30921_v41  ;;  %v30929_v41 = vld [vmem:[#allocation39_spill] sm:$0xff] }
 0x2e2   :  { %22021 = vmatprep.mubr.msk.f32.mxu0 %vm60_vm0, %v30922_v63  ;;  %v30930_v63 = vld [vmem:[#allocation40_spill] sm:$0xff] }
 0x2e5   :  { %22022 = vmatmul.mubr.msk.f32.gmra.mrb[18].mxu0 %vm60_vm0, %v30923_v2  ;;  %v30931_v2 = vld [vmem:[#allocation41_spill] sm:$0xff] }
 0x2e6   :  { %22024 = vmatprep.mubr.msk.f32.mxu0 %vm60_vm0, %v30924_v4  ;;  %v27064_v4 = vld [vmem:[#allocation2 + $0x182] sm:$0xff] }
 0x2e9   :  { %22025 = vmatmul.mubr.msk.f32.gmra.mrb[20].mxu0 %vm60_vm0, %v30925_v42  ;;  %v30932_v42 = vld [vmem:[#allocation42_spill] sm:$0xff] }
 0x2ea   :  { %22027 = vmatprep.mubr.msk.f32.mxu0 %vm60_vm0, %v30926_v0  ;;  %v27070_v0 = vld [vmem:[#allocation2 + $0x18a] sm:$0xff] }
 0x2eb   :  { %30933 = vst [vmem:[#allocation14_spill] sm:$0xff] %v27070_v0 }
 0x2ed   :  { %22028 = vmatmul.mubr.msk.f32.gmra.mrb[22].mxu0 %vm60_vm0, %v30927_v7  ;;  %v30934_v7 = vld [vmem:[#allocation43_spill] sm:$0xff] }
 0x2ee   :  { %22030 = vmatprep.mubr.msk.f32.mxu0 %vm60_vm0, %v30928_v9  ;;  %v30935_v9 = vld [vmem:[#allocation44_spill] sm:$0xff] }
 0x2f1   :  { %22031 = vmatmul.mubr.msk.f32.gmra.mrb[24].mxu0 %vm60_vm0, %v30929_v41  ;;  %v30937_v41 = vld [vmem:[#allocation46_spill] sm:$0xff] }
 0x2f2   :  { %22033 = vmatprep.mubr.msk.f32.mxu0 %vm60_vm0, %v30930_v63  ;;  %v30938_v63 = vld [vmem:[#allocation47_spill] sm:$0xff] }
 0x2f5   :  { %22034 = vmatmul.mubr.msk.f32.gmra.mrb[26].mxu0 %vm60_vm0, %v30931_v2  ;;  %v30939_v2 = vld [vmem:[#allocation48_spill] sm:$0xff] }
 0x2f6   :  { %22036 = vmatprep.mubr.msk.f32.mxu0 %vm60_vm0, %v26459_v1  ;;  %v30936_v1 = vld [vmem:[#allocation45_spill] sm:$0xff] }
 0x2f9   :  { %22037 = vmatmul.mubr.msk.f32.gmra.mrb[28].mxu0 %vm60_vm0, %v30932_v42  ;;  %v30940_v42 = vld [vmem:[#allocation49_spill] sm:$0xff] }
 0x2fa   :  { %22039 = vmatprep.mubr.msk.f32.mxu0 %vm60_vm0, %v27064_v4 }
 0x2fd   :  { %22040 = vmatmul.mubr.msk.f32.gmra.mrb[30].mxu0 %vm60_vm0, %v27070_v0  ;;  %v30941_v0 = vld [vmem:[#allocation50_spill] sm:$0xff] }
 0x2fe   :  { %22042 = vmatprep.mubr.msk.f32.mxu0 %vm60_vm0, %v30934_v7  ;;  %v30942_v7 = vld [vmem:[#allocation51_spill] sm:$0xff] }
 0x301   :  { %22043 = vmatmul.mubr.msk.f32.gmra.mrb[32].mxu0 %vm60_vm0, %v30935_v9  ;;  %v30943_v9 = vld [vmem:[#allocation52_spill] sm:$0xff] }
 0x302   :  { %22045 = vmatprep.mubr.msk.f32.mxu0 %vm60_vm0, %v30936_v1  ;;  %v30944_v1 = vld [vmem:[#allocation53_spill] sm:$0xff] }
 0x305   :  { %22046 = vmatmul.mubr.msk.f32.gmra.mrb[34].mxu0 %vm60_vm0, %v30937_v41  ;;  %v30945_v41 = vld [vmem:[#allocation54_spill] sm:$0xff] }
 0x306   :  { %22048 = vmatprep.mubr.msk.f32.mxu0 %vm60_vm0, %v30938_v63  ;;  %v30946_v63 = vld [vmem:[#allocation55_spill] sm:$0xff] }
 0x309   :  { %22049 = vmatmul.mubr.msk.f32.gmra.mrb[36].mxu0 %vm60_vm0, %v30939_v2  ;;  %v30947_v2 = vld [vmem:[#allocation56_spill] sm:$0xff] }
 0x30a   :  { %22051 = vmatprep.mubr.msk.f32.mxu0 %vm60_vm0, %v30940_v42  ;;  %v30948_v42 = vld [vmem:[#allocation57_spill] sm:$0xff] }
 0x30d   :  { %22052 = vmatmul.mubr.msk.f32.gmra.mrb[38].mxu0 %vm60_vm0, %v30941_v0  ;;  %v30949_v0 = vld [vmem:[#allocation58_spill] sm:$0xff] }
 0x30e   :  { %22054 = vmatprep.mubr.msk.f32.mxu0 %vm60_vm0, %v30942_v7  ;;  %v30950_v7 = vld [vmem:[#allocation59_spill] sm:$0xff] }
 0x311   :  { %22055 = vmatmul.mubr.msk.f32.gmra.mrb[40].mxu0 %vm60_vm0, %v30943_v9  ;;  %v30951_v9 = vld [vmem:[#allocation60_spill] sm:$0xff] }
 0x312   :  { %22057 = vmatprep.mubr.msk.f32.mxu0 %vm60_vm0, %v30944_v1  ;;  %v30952_v1 = vld [vmem:[#allocation61_spill] sm:$0xff] }
 0x315   :  { %22058 = vmatmul.mubr.msk.f32.gmra.mrb[42].mxu0 %vm60_vm0, %v30945_v41  ;;  %v30953_v41 = vld [vmem:[#allocation62_spill] sm:$0xff] }
 0x316   :  { %22060 = vmatprep.mubr.msk.f32.mxu0 %vm60_vm0, %v30946_v63  ;;  %v30954_v63 = vld [vmem:[#allocation63_spill] sm:$0xff] }
 0x319   :  { %22061 = vmatmul.mubr.msk.f32.gmra.mrb[44].mxu0 %vm60_vm0, %v30947_v2  ;;  %v30955_v2 = vld [vmem:[#allocation64_spill] sm:$0xff] }
 0x31a   :  { %22063 = vmatprep.mubr.msk.f32.mxu0 %vm60_vm0, %v30948_v42  ;;  %v30956_v42 = vld [vmem:[#allocation65_spill] sm:$0xff] }
 0x31d   :  { %22064 = vmatmul.mubr.msk.f32.gmra.mrb[46].mxu0 %vm60_vm0, %v30949_v0  ;;  %v30957_v0 = vld [vmem:[#allocation66_spill] sm:$0xff] }
 0x31e   :  { %22066 = vmatprep.mubr.msk.f32.mxu0 %vm60_vm0, %v30950_v7  ;;  %v30958_v7 = vld [vmem:[#allocation67_spill] sm:$0xff] }
 0x321   :  { %22067 = vmatmul.mubr.msk.f32.gmra.mrb[48].mxu0 %vm60_vm0, %v30951_v9  ;;  %v27132_v9 = vld [vmem:[#allocation2 + $0x332] sm:$0xff] }
 0x322   :  { %22069 = vmatprep.mubr.msk.f32.mxu0 %vm60_vm0, %v30952_v1  ;;  %v27138_v1 = vld [vmem:[#allocation2 + $0x33a] sm:$0xff] }
 0x325   :  { %22070 = vmatmul.mubr.msk.f32.gmra.mrb[50].mxu0 %vm60_vm0, %v30953_v41  ;;  %v4630_v41 = vld [vmem:[#allocation2 + $0x60] sm:$0xff] }
 0x326   :  { %22072 = vmatprep.mubr.msk.f32.mxu0 %vm60_vm0, %v30954_v63  ;;  %v4631_v63 = vld [vmem:[#allocation2 + $0x68] sm:$0xff] }
 0x329   :  { %22073 = vmatmul.mubr.msk.f32.gmra.mrb[52].mxu0 %vm60_vm0, %v30955_v2  ;;  %v4632_v2 = vld [vmem:[#allocation2 + $0x78] sm:$0xff] }
 0x32a   :  { %22075 = vmatprep.mubr.msk.f32.mxu0 %vm60_vm0, %v30956_v42  ;;  %v4633_v42 = vld [vmem:[#allocation2 + $0x80] sm:$0xff] }
 0x32d   :  { %22076 = vmatmul.mubr.msk.f32.gmra.mrb[54].mxu0 %vm60_vm0, %v30957_v0  ;;  %v4634_v0 = vld [vmem:[#allocation2 + $0x90] sm:$0xff] }
 0x32e   :  { %22078 = vmatprep.mubr.msk.f32.mxu0 %vm60_vm0, %v30958_v7  ;;  %v4636_v7 = vld [vmem:[#allocation2 + $0xa8] sm:$0xff] }
 0x331   :  { %22079 = vmatmul.mubr.msk.f32.gmra.mrb[56].mxu0 %vm60_vm0, %v26571_v61  ;;  %v4626_v61 = vld [vmem:[#allocation2 + $0x30] sm:$0xff] }
 0x332   :  { %22081 = vmatprep.mubr.msk.f32.mxu0 %vm60_vm0, %v26573_v58  ;;  %v4627_v58 = vld [vmem:[#allocation2 + $0x38] sm:$0xff] }
 0x335   :  { %22082 = vmatmul.mubr.msk.f32.gmra.mrb[58].mxu0 %vm60_vm0, %v26587_v28  ;;  %v4628_v28 = vld [vmem:[#allocation2 + $0x48] sm:$0xff] }
 0x336   :  { %22084 = vmatprep.mubr.msk.f32.mxu0 %vm60_vm0, %v26589_v59  ;;  %v27146_v59 = vld [vmem:[%s30664_s1 + $0x20] sm:$0xf] }
 0x339   :  { %22085 = vmatmul.mubr.msk.f32.gmra.mrb[60].mxu0 %vm60_vm0, %v26595_v57  ;;  %v4629_v57 = vld [vmem:[#allocation2 + $0x50] sm:$0xff] }
 0x33a   :  { %22087 = vmatprep.mubr.msk.f32.mxu0 %vm60_vm0, %v27132_v9 }
 0x33d   :  { %22088 = vmatmul.mubr.msk.f32.gmra.mrb[62].mxu0 %vm60_vm0, %v27138_v1 }
 0x33e   :  { %22092 = vmatprep.mubr.msk.f32.mxu0 %vm60_vm0, %v4626_v61  ;;  %v4637_v61 = vld [vmem:[#allocation2 + $0xb0] sm:$0xff] }
 0x341   :  { %22093 = vmatmul.mubr.msk.f32.vlgmr.msra.gmra.mrb[0].mxu0 %vm60_vm0, %v4627_v58  ;;  %v4638_v58 = vld [vmem:[#allocation2 + $0xc0] sm:$0xff] }
 0x342   :  { %22189 = vmatpush3.msk.msra.mxu0 %vm816_vm2, %v27002_v6  ;;  %22095 = vmatprep.mubr.msk.f32.mxu0 %vm60_vm0, %v4628_v28  ;;  %v4635_v6 = vld [vmem:[#allocation2 + $0x98] sm:$0xff]  ;;  %v4639_v28 = vld [vmem:[#allocation2 + $0xc8] sm:$0xff] }
 0x343   :  { %22286 = vmatprep.subr.msk.mxu0 %vm816_vm2, %v27146_v59 }
 0x345   :  { %22096 = vmatmul.mubr.msk.f32.gmra.mrb[2].mxu0 %vm60_vm0, %v4629_v57  ;;  %v4640_v57 = vld [vmem:[#allocation2 + $0xd8] sm:$0xff] }
 0x346   :  { %22098 = vmatprep.mubr.msk.f32.mxu0 %vm60_vm0, %v4630_v41  ;;  %v4641_v41 = vld [vmem:[#allocation2 + $0xe0] sm:$0xff] }
 0x349   :  { %22099 = vmatmul.mubr.msk.f32.gmra.mrb[4].mxu0 %vm60_vm0, %v4631_v63  ;;  %v4642_v63 = vld [vmem:[#allocation2 + $0xf0] sm:$0xff] }
 0x34a   :  { %22101 = vmatprep.mubr.msk.f32.mxu0 %vm60_vm0, %v4632_v2  ;;  %v4643_v2 = vld [vmem:[#allocation2 + $0xf8] sm:$0xff] }
 0x34d   :  { %22102 = vmatmul.mubr.msk.f32.gmra.mrb[6].mxu0 %vm60_vm0, %v4633_v42  ;;  %v4644_v42 = vld [vmem:[#allocation2 + $0x108] sm:$0xff] }
 0x34e   :  { %22104 = vmatprep.mubr.msk.f32.mxu0 %vm60_vm0, %v4634_v0  ;;  %v4645_v0 = vld [vmem:[#allocation2 + $0x110] sm:$0xff] }
 0x351   :  { %22105 = vmatmul.mubr.msk.f32.gmra.mrb[8].mxu0 %vm60_vm0, %v4635_v6  ;;  %v4646_v6 = vld [vmem:[#allocation2 + $0x120] sm:$0xff] }
 0x352   :  { %22107 = vmatprep.mubr.msk.f32.mxu0 %vm60_vm0, %v4636_v7  ;;  %v4647_v7 = vld [vmem:[#allocation2 + $0x128] sm:$0xff] }
 0x355   :  { %22108 = vmatmul.mubr.msk.f32.gmra.mrb[10].mxu0 %vm60_vm0, %v4637_v61  ;;  %v4648_v61 = vld [vmem:[#allocation2 + $0x138] sm:$0xff] }
 0x356   :  { %22110 = vmatprep.mubr.msk.f32.mxu0 %vm60_vm0, %v4638_v58  ;;  %v4649_v58 = vld [vmem:[#allocation2 + $0x140] sm:$0xff] }
 0x359   :  { %22111 = vmatmul.mubr.msk.f32.gmra.mrb[12].mxu0 %vm60_vm0, %v4639_v28  ;;  %v4650_v28 = vld [vmem:[#allocation2 + $0x150] sm:$0xff] }
 0x35a   :  { %22113 = vmatprep.mubr.msk.f32.mxu0 %vm60_vm0, %v4640_v57  ;;  %v4651_v57 = vld [vmem:[#allocation2 + $0x158] sm:$0xff] }
 0x35d   :  { %22114 = vmatmul.mubr.msk.f32.gmra.mrb[14].mxu0 %vm60_vm0, %v4641_v41  ;;  %v4652_v41 = vld [vmem:[#allocation2 + $0x168] sm:$0xff] }
 0x35e   :  { %22116 = vmatprep.mubr.msk.f32.mxu0 %vm60_vm0, %v4642_v63  ;;  %v4653_v63 = vld [vmem:[#allocation2 + $0x170] sm:$0xff] }
 0x361   :  { %22117 = vmatmul.mubr.msk.f32.gmra.mrb[16].mxu0 %vm60_vm0, %v4643_v2  ;;  %v4656_v2 = vld [vmem:[#allocation2 + $0x198] sm:$0xff] }
 0x362   :  { %22119 = vmatprep.mubr.msk.f32.mxu0 %vm60_vm0, %v4644_v42  ;;  %v4657_v42 = vld [vmem:[#allocation2 + $0x1a0] sm:$0xff] }
 0x365   :  { %22120 = vmatmul.mubr.msk.f32.gmra.mrb[18].mxu0 %vm60_vm0, %v4645_v0  ;;  %v4658_v0 = vld [vmem:[#allocation2 + $0x1e0] sm:$0xff] }
 0x366   :  { %22122 = vmatprep.mubr.msk.f32.mxu0 %vm60_vm0, %v4646_v6  ;;  %v4659_v6 = vld [vmem:[#allocation2 + $0x1e8] sm:$0xff] }
 0x369   :  { %22123 = vmatmul.mubr.msk.f32.gmra.mrb[20].mxu0 %vm60_vm0, %v4647_v7  ;;  %v4660_v7 = vld [vmem:[#allocation2 + $0x1f8] sm:$0xff] }
 0x36a   :  { %22125 = vmatprep.mubr.msk.f32.mxu0 %vm60_vm0, %v4648_v61  ;;  %v4661_v61 = vld [vmem:[#allocation2 + $0x200] sm:$0xff] }
 0x36d   :  { %22126 = vmatmul.mubr.msk.f32.gmra.mrb[22].mxu0 %vm60_vm0, %v4649_v58  ;;  %v4664_v58 = vld [vmem:[#allocation2 + $0x228] sm:$0xff] }
 0x36e   :  { %22128 = vmatprep.mubr.msk.f32.mxu0 %vm60_vm0, %v4650_v28  ;;  %v4665_v28 = vld [vmem:[#allocation2 + $0x230] sm:$0xff] }
 0x371   :  { %22129 = vmatmul.mubr.msk.f32.gmra.mrb[24].mxu0 %vm60_vm0, %v4651_v57  ;;  %v4666_v57 = vld [vmem:[#allocation2 + $0x240] sm:$0xff] }
 0x372   :  { %22131 = vmatprep.mubr.msk.f32.mxu0 %vm60_vm0, %v4652_v41  ;;  %v4667_v41 = vld [vmem:[#allocation2 + $0x248] sm:$0xff] }
 0x375   :  { %22132 = vmatmul.mubr.msk.f32.gmra.mrb[26].mxu0 %vm60_vm0, %v4653_v63  ;;  %v4668_v63 = vld [vmem:[#allocation2 + $0x258] sm:$0xff] }
 0x376   :  { %22134 = vmatprep.mubr.msk.f32.mxu0 %vm60_vm0, %v26666_v60  ;;  %v4662_v60 = vld [vmem:[#allocation2 + $0x210] sm:$0xff] }
 0x379   :  { %22135 = vmatmul.mubr.msk.f32.gmra.mrb[28].mxu0 %vm60_vm0, %v26672_v62  ;;  %v4663_v62 = vld [vmem:[#allocation2 + $0x218] sm:$0xff] }
 0x37a   :  { %22137 = vmatprep.mubr.msk.f32.mxu0 %vm60_vm0, %v4656_v2  ;;  %v4669_v2 = vld [vmem:[#allocation2 + $0x260] sm:$0xff] }
 0x37d   :  { %22138 = vmatmul.mubr.msk.f32.gmra.mrb[30].mxu0 %vm60_vm0, %v4657_v42  ;;  %v4670_v42 = vld [vmem:[#allocation2 + $0x270] sm:$0xff] }
 0x37e   :  { %22140 = vmatprep.mubr.msk.f32.mxu0 %vm60_vm0, %v4658_v0  ;;  %v4671_v0 = vld [vmem:[#allocation2 + $0x278] sm:$0xff] }
 0x381   :  { %22141 = vmatmul.mubr.msk.f32.gmra.mrb[32].mxu0 %vm60_vm0, %v4659_v6  ;;  %v4672_v6 = vld [vmem:[#allocation2 + $0x288] sm:$0xff] }
 0x382   :  { %22143 = vmatprep.mubr.msk.f32.mxu0 %vm60_vm0, %v4660_v7  ;;  %v4673_v7 = vld [vmem:[#allocation2 + $0x290] sm:$0xff] }
 0x385   :  { %22144 = vmatmul.mubr.msk.f32.gmra.mrb[34].mxu0 %vm60_vm0, %v4661_v61  ;;  %v4674_v61 = vld [vmem:[#allocation2 + $0x2a0] sm:$0xff] }
 0x386   :  { %22146 = vmatprep.mubr.msk.f32.mxu0 %vm60_vm0, %v4662_v60  ;;  %v4675_v60 = vld [vmem:[#allocation2 + $0x2a8] sm:$0xff] }
 0x389   :  { %22147 = vmatmul.mubr.msk.f32.gmra.mrb[36].mxu0 %vm60_vm0, %v4663_v62  ;;  %v4676_v62 = vld [vmem:[#allocation2 + $0x2b8] sm:$0xff] }
 0x38a   :  { %22149 = vmatprep.mubr.msk.f32.mxu0 %vm60_vm0, %v4664_v58  ;;  %v4677_v58 = vld [vmem:[#allocation2 + $0x2c0] sm:$0xff] }
 0x38d   :  { %22150 = vmatmul.mubr.msk.f32.gmra.mrb[38].mxu0 %vm60_vm0, %v4665_v28  ;;  %v4678_v28 = vld [vmem:[#allocation2 + $0x2d0] sm:$0xff] }
 0x38e   :  { %22152 = vmatprep.mubr.msk.f32.mxu0 %vm60_vm0, %v4666_v57  ;;  %v4679_v57 = vld [vmem:[#allocation2 + $0x2d8] sm:$0xff] }
 0x391   :  { %22153 = vmatmul.mubr.msk.f32.gmra.mrb[40].mxu0 %vm60_vm0, %v4667_v41  ;;  %v4680_v41 = vld [vmem:[#allocation2 + $0x2e8] sm:$0xff] }
 0x392   :  { %22155 = vmatprep.mubr.msk.f32.mxu0 %vm60_vm0, %v4668_v63  ;;  %v4681_v63 = vld [vmem:[#allocation2 + $0x2f0] sm:$0xff] }
 0x395   :  { %22156 = vmatmul.mubr.msk.f32.gmra.mrb[42].mxu0 %vm60_vm0, %v4669_v2  ;;  %v4682_v2 = vld [vmem:[#allocation2 + $0x300] sm:$0xff] }
 0x396   :  { %22158 = vmatprep.mubr.msk.f32.mxu0 %vm60_vm0, %v4670_v42  ;;  %v4683_v42 = vld [vmem:[#allocation2 + $0x308] sm:$0xff] }
 0x399   :  { %22159 = vmatmul.mubr.msk.f32.gmra.mrb[44].mxu0 %vm60_vm0, %v4671_v0  ;;  %v4684_v0 = vld [vmem:[#allocation2 + $0x318] sm:$0xff] }
 0x39a   :  { %22161 = vmatprep.mubr.msk.f32.mxu0 %vm60_vm0, %v4672_v6  ;;  %v4685_v6 = vld [vmem:[#allocation2 + $0x320] sm:$0xff] }
 0x39d   :  { %22162 = vmatmul.mubr.msk.f32.gmra.mrb[46].mxu0 %vm60_vm0, %v4673_v7  ;;  %v4688_v7 = vld [vmem:[#allocation2 + $0x348] sm:$0xff] }
 0x39e   :  { %22164 = vmatprep.mubr.msk.f32.mxu0 %vm60_vm0, %v4674_v61  ;;  %v4689_v61 = vld [vmem:[#allocation2 + $0x350] sm:$0xff] }
 0x3a1   :  { %22165 = vmatmul.mubr.msk.f32.gmra.mrb[48].mxu0 %vm60_vm0, %v4675_v60  ;;  %v6065_v60 = vld [vmem:[#allocation2 + $0x112] sm:$0xff] }
 0x3a2   :  { %22167 = vmatprep.mubr.msk.f32.mxu0 %vm60_vm0, %v4676_v62  ;;  %v6066_v62 = vld [vmem:[#allocation2 + $0x122] sm:$0xff] }
 0x3a5   :  { %22168 = vmatmul.mubr.msk.f32.gmra.mrb[50].mxu0 %vm60_vm0, %v4677_v58  ;;  %v6067_v58 = vld [vmem:[#allocation2 + $0x12a] sm:$0xff] }
 0x3a6   :  { %22170 = vmatprep.mubr.msk.f32.mxu0 %vm60_vm0, %v4678_v28  ;;  %v6068_v28 = vld [vmem:[#allocation2 + $0x13a] sm:$0xff] }
 0x3a9   :  { %22171 = vmatmul.mubr.msk.f32.gmra.mrb[52].mxu0 %vm60_vm0, %v4679_v57  ;;  %v6069_v57 = vld [vmem:[#allocation2 + $0x142] sm:$0xff] }
 0x3aa   :  { %22173 = vmatprep.mubr.msk.f32.mxu0 %vm60_vm0, %v4680_v41  ;;  %v6070_v41 = vld [vmem:[#allocation2 + $0x152] sm:$0xff] }
 0x3ad   :  { %22174 = vmatmul.mubr.msk.f32.gmra.mrb[54].mxu0 %vm60_vm0, %v4681_v63  ;;  %v6071_v63 = vld [vmem:[#allocation2 + $0x15a] sm:$0xff] }
 0x3ae   :  { %22176 = vmatprep.mubr.msk.f32.mxu0 %vm60_vm0, %v4682_v2  ;;  %v6072_v2 = vld [vmem:[#allocation2 + $0x16a] sm:$0xff] }
 0x3b1   :  { %22177 = vmatmul.mubr.msk.f32.gmra.mrb[56].mxu0 %vm60_vm0, %v4683_v42  ;;  %v6073_v42 = vld [vmem:[#allocation2 + $0x172] sm:$0xff] }
 0x3b2   :  { %22179 = vmatprep.mubr.msk.f32.mxu0 %vm60_vm0, %v4684_v0  ;;  %v6076_v0 = vld [vmem:[#allocation2 + $0x19a] sm:$0xff] }
 0x3b5   :  { %22180 = vmatmul.mubr.msk.f32.gmra.mrb[58].mxu0 %vm60_vm0, %v4685_v6  ;;  %v30975_v6 = vld [vmem:[#allocation14_spill] sm:$0xff] }
 0x3b6   :  { %22182 = vmatprep.mubr.msk.f32.mxu0 %vm60_vm0, %v26734_v3  ;;  %v5366_v3 = vld [vmem:[#allocation2 + $0x199] sm:$0xff] }
 0x3b9   :  { %22183 = vmatmul.mubr.msk.f32.gmra.mrb[60].mxu0 %vm60_vm0, %v26740_v5  ;;  %v5367_v5 = vld [vmem:[#allocation2 + $0x1a1] sm:$0xff] }
 0x3ba   :  { %22185 = vmatprep.mubr.msk.f32.mxu0 %vm60_vm0, %v4688_v7  ;;  %v6077_v7 = vld [vmem:[#allocation2 + $0x1a2] sm:$0xff] }
 0x3bd   :  { %22186 = vmatmul.mubr.msk.f32.gmra.mrb[62].mxu0 %vm60_vm0, %v4689_v61  ;;  %v6078_v61 = vld [vmem:[#allocation2 + $0x1e2] sm:$0xff] }
 0x3be   :  { %22190 = vmatprep.mubr.msk.f32.mxu0 %vm60_vm0, %v26745_v8  ;;  %v30959_v8 = vld [vmem:[#allocation10_spill] sm:$0xff] }
 0x3c1   :  { %22191 = vmatmul.mubr.msk.f32.vlgmr.msra.gmra.mrb[0].mxu0 %vm60_vm0, %v26757_v10  ;;  %v30960_v10 = vld [vmem:[#allocation11_spill] sm:$0xff] }
 0x3c2   :  { %22287 = vmatpush3.msk.msra.mxu0 %vm816_vm2, %v27146_v59  ;;  %22193 = vmatprep.mubr.msk.f32.mxu0 %vm60_vm0, %v26759_v11  ;;  %v30961_v11 = vld [vmem:[#allocation12_spill] sm:$0xff] }
 0x3c3   :  { %v6064_v59 = vld [vmem:[#allocation2 + $0x10a] sm:$0xff] }
 0x3c5   :  { %22194 = vmatmul.mubr.msk.f32.gmra.mrb[2].mxu0 %vm60_vm0, %v26767_v12  ;;  %v30962_v12 = vld [vmem:[#allocation13_spill] sm:$0xff] }
 0x3c6   :  { %22196 = vmatprep.mubr.msk.f32.mxu0 %vm60_vm0, %v26769_v13  ;;  %v30963_v13 = vld [vmem:[#allocation68_spill] sm:$0xff] }
 0x3c9   :  { %22197 = vmatmul.mubr.msk.f32.gmra.mrb[4].mxu0 %vm60_vm0, %v26775_v14  ;;  %v30964_v14 = vld [vmem:[#allocation69_spill] sm:$0xff] }
 0x3ca   :  { %22199 = vmatprep.mubr.msk.f32.mxu0 %vm60_vm0, %v26777_v15  ;;  %v30965_v15 = vld [vmem:[#allocation70_spill] sm:$0xff] }
 0x3cd   :  { %22200 = vmatmul.mubr.msk.f32.gmra.mrb[6].mxu0 %vm60_vm0, %v26783_v16  ;;  %v30966_v16 = vld [vmem:[#allocation71_spill] sm:$0xff] }
 0x3ce   :  { %22202 = vmatprep.mubr.msk.f32.mxu0 %vm60_vm0, %v26785_v17  ;;  %v30967_v17 = vld [vmem:[#allocation72_spill] sm:$0xff] }
 0x3d1   :  { %22203 = vmatmul.mubr.msk.f32.gmra.mrb[8].mxu0 %vm60_vm0, %v26791_v18  ;;  %v614_v18 = vld [vmem:[#allocation2 + $0x2d1] sm:$0xff] }
 0x3d2   :  { %22205 = vmatprep.mubr.msk.f32.mxu0 %vm60_vm0, %v26793_v19  ;;  %v615_v19 = vld [vmem:[#allocation2 + $0x2d9] sm:$0xff]  ;;  %21588 = vmatprep.mubr.msk.f32.mxu1 %vm60_vm0, %v614_v18 }
 0x3d3   :  { %21589 = vmatmul.mubr.msk.f32.vlgmr.msra.gmra.mrb[0].mxu1 %vm60_vm0, %v615_v19  ;;  %v6091_v18 = vld [vmem:[#allocation2 + $0x27a] sm:$0xff]  ;;  %v6092_v19 = vld [vmem:[#allocation2 + $0x28a] sm:$0xff] }
 0x3d5   :  { %22206 = vmatmul.mubr.msk.f32.gmra.mrb[10].mxu0 %vm60_vm0, %v26799_v20  ;;  %v30968_v20 = vld [vmem:[#allocation73_spill] sm:$0xff] }
 0x3d6   :  { %22208 = vmatprep.mubr.msk.f32.mxu0 %vm60_vm0, %v26801_v21  ;;  %v30969_v21 = vld [vmem:[#allocation74_spill] sm:$0xff] }
 0x3d9   :  { %22209 = vmatmul.mubr.msk.f32.gmra.mrb[12].mxu0 %vm60_vm0, %v26807_v22  ;;  %v616_v22 = vld [vmem:[#allocation2 + $0x2e9] sm:$0xff] }
 0x3da   :  { %22211 = vmatprep.mubr.msk.f32.mxu0 %vm60_vm0, %v26809_v23  ;;  %v617_v23 = vld [vmem:[#allocation2 + $0x2f1] sm:$0xff]  ;;  %21591 = vmatprep.mubr.msk.f32.mxu1 %vm60_vm0, %v616_v22 }
 0x3db   :  { %21592 = vmatmul.mubr.msk.f32.gmra.mrb[2].mxu1 %vm60_vm0, %v617_v23 }
 0x3dd   :  { %22212 = vmatmul.mubr.msk.f32.gmra.mrb[14].mxu0 %vm60_vm0, %v26815_v24  ;;  %v30970_v24 = vld [vmem:[#allocation75_spill] sm:$0xff] }
 0x3de   :  { %22214 = vmatprep.mubr.msk.f32.mxu0 %vm60_vm0, %v26817_v25  ;;  %v30971_v25 = vld [vmem:[#allocation76_spill] sm:$0xff] }
 0x3e1   :  { %22215 = vmatmul.mubr.msk.f32.gmra.mrb[16].mxu0 %vm60_vm0, %v26823_v26  ;;  %v618_v26 = vld [vmem:[#allocation2 + $0x301] sm:$0xff] }
 0x3e2   :  { %22217 = vmatprep.mubr.msk.f32.mxu0 %vm60_vm0, %v26825_v27  ;;  %v619_v27 = vld [vmem:[#allocation2 + $0x309] sm:$0xff]  ;;  %21594 = vmatprep.mubr.msk.f32.mxu1 %vm60_vm0, %v618_v26  ;;  %v6956_v26 = vld [vmem:[%s30666_s3] sm:$0xff] }
 0x3e3   :  { %21595 = vmatmul.mubr.msk.f32.gmra.mrb[4].mxu1 %vm60_vm0, %v619_v27  ;;  %v6097_v27 = vld [vmem:[#allocation2 + $0x2c2] sm:$0xff] }
 0x3e5   :  { %22218 = vmatmul.mubr.msk.f32.gmra.mrb[18].mxu0 %vm60_vm0, %v26831_v30  ;;  %v30972_v30 = vld [vmem:[#allocation77_spill] sm:$0xff] }
 0x3e6   :  { %22220 = vmatprep.mubr.msk.f32.mxu0 %vm60_vm0, %v26833_v31  ;;  %v5398_v31 = vld [vmem:[#allocation2 + $0x349] sm:$0xff] }
 0x3e9   :  { %22221 = vmatmul.mubr.msk.f32.gmra.mrb[20].mxu0 %vm60_vm0, %v26839_v32  ;;  %v30973_v32 = vld [vmem:[#allocation78_spill] sm:$0xff] }
 0x3ea   :  { %22223 = vmatprep.mubr.msk.f32.mxu0 %vm60_vm0, %v26841_v33  ;;  %v620_v33 = vld [vmem:[#allocation2 + $0x319] sm:$0xff] }
 0x3eb   :  { %21597 = vmatprep.mubr.msk.f32.mxu1 %vm60_vm0, %v620_v33  ;;  %v6101_v33 = vld [vmem:[#allocation2 + $0x2f2] sm:$0xff] }
 0x3ed   :  { %22224 = vmatmul.mubr.msk.f32.gmra.mrb[22].mxu0 %vm60_vm0, %v26847_v34  ;;  %v5399_v34 = vld [vmem:[#allocation2 + $0x351] sm:$0xff] }
 0x3ee   :  { %22226 = vmatprep.mubr.msk.f32.mxu0 %vm60_vm0, %v26849_v35  ;;  %v621_v35 = vld [vmem:[#allocation2 + $0x321] sm:$0xff] }
 0x3ef   :  { %21598 = vmatmul.mubr.msk.f32.gmra.mrb[6].mxu1 %vm60_vm0, %v621_v35  ;;  %v6103_v35 = vld [vmem:[#allocation2 + $0x30a] sm:$0xff] }
 0x3f1   :  { %22227 = vmatmul.mubr.msk.f32.gmra.mrb[24].mxu0 %vm60_vm0, %v26855_v36  ;;  %v6046_v36 = vld [vmem:[#allocation2 + $0x32] sm:$0xff] }
 0x3f2   :  { %22229 = vmatprep.mubr.msk.f32.mxu0 %vm60_vm0, %v26857_v37  ;;  %v27356_v37 = vld [vmem:[%s30666_s3 + $0x8] sm:$0xff] }
 0x3f3   :  { %22384 = vmatprep.subr.mxu1 %v27356_v37 }
 0x3f4   :  { %22385 = vmatpush3.msra.mxu1 %v27356_v37  ;;  %v6105_v37 = vld [vmem:[#allocation2 + $0x322] sm:$0xff] }
 0x3f5   :  { %22230 = vmatmul.mubr.msk.f32.gmra.mrb[26].mxu0 %vm60_vm0, %v26863_v38  ;;  %v27359_v38 = vld [vmem:[#allocation2 + $0x3a] sm:$0xff]  ;;  %22482 = vmatprep.subr.mxu1 %v6956_v26 }
 0x3f6   :  { %22232 = vmatprep.mubr.msk.f32.mxu0 %vm60_vm0, %v26865_v39  ;;  %v30974_v39 = vmov 0.0  }
 0x3f7   :  { %176 = vst.msk [vmem:[#allocation3 + $0x20] sm:$0xff] %vm170_vm3, %v30974_v39  ;;  %171 = vst.msk [vmem:[#allocation3] sm:$0xff] %vm170_vm3, %v30974_v39 }
 0x3f8   :  { %177 = vst.msk [vmem:[#allocation3 + $0x28] sm:$0x3] %vm173_vm4, %v30974_v39  ;;  %174 = vst.msk [vmem:[#allocation3 + $0x10] sm:$0x3] %vm173_vm4, %v30974_v39 }
 0x3f9   :  { %22233 = vmatmul.mubr.msk.f32.gmra.mrb[28].mxu0 %vm60_vm0, %v26871_v40  ;;  %172 = vst.msk [vmem:[#allocation3 + $0x8] sm:$0xff] %vm170_vm3, %v30974_v39  ;;  %175 = vst.msk [vmem:[#allocation3 + $0x18] sm:$0xff] %vm170_vm3, %v30974_v39  ;;  %v6048_v40 = vld [vmem:[#allocation2 + $0x4a] sm:$0xff] }
 0x3fa   :  { %22235 = vmatprep.mubr.msk.f32.mxu0 %vm60_vm0, %v5366_v3  ;;  %178 = vst.msk [vmem:[#allocation3 + $0x30] sm:$0xff] %vm170_vm3, %v30974_v39  ;;  %179 = vst.msk [vmem:[#allocation3 + $0x38] sm:$0xff] %vm170_vm3, %v30974_v39  ;;  %v6079_v3 = vld [vmem:[#allocation2 + $0x1ea] sm:$0xff] }
 0x3fb   :  { %180 = vst.msk [vmem:[#allocation3 + $0x40] sm:$0x3] %vm173_vm4, %v30974_v39  ;;  %183 = vst.msk [vmem:[#allocation3 + $0x58] sm:$0x3] %vm173_vm4, %v30974_v39 }
 0x3fc   :  { %181 = vst.msk [vmem:[#allocation3 + $0x48] sm:$0xff] %vm170_vm3, %v30974_v39  ;;  %182 = vst.msk [vmem:[#allocation3 + $0x50] sm:$0xff] %vm170_vm3, %v30974_v39 }
 0x3fd   :  { %22236 = vmatmul.mubr.msk.f32.gmra.mrb[30].mxu0 %vm60_vm0, %v5367_v5  ;;  %184 = vst.msk [vmem:[#allocation3 + $0x60] sm:$0xff] %vm170_vm3, %v30974_v39  ;;  %185 = vst.msk [vmem:[#allocation3 + $0x68] sm:$0xff] %vm170_vm3, %v30974_v39  ;;  %v6080_v5 = vld [vmem:[#allocation2 + $0x1fa] sm:$0xff] }
 0x3fe   :  { %22238 = vmatprep.mubr.msk.f32.mxu0 %vm60_vm0, %v26876_v43  ;;  %186 = vst.msk [vmem:[#allocation3 + $0x70] sm:$0x3] %vm173_vm4, %v30974_v39  ;;  %189 = vst.msk [vmem:[#allocation3 + $0x88] sm:$0x3] %vm173_vm4, %v30974_v39  ;;  %v6049_v43 = vld [vmem:[#allocation2 + $0x52] sm:$0xff] }
 0x3ff   :  { %187 = vst.msk [vmem:[#allocation3 + $0x78] sm:$0xff] %vm170_vm3, %v30974_v39  ;;  %188 = vst.msk [vmem:[#allocation3 + $0x80] sm:$0xff] %vm170_vm3, %v30974_v39 }
 0x400   :  { %190 = vst.msk [vmem:[#allocation3 + $0x90] sm:$0xff] %vm170_vm3, %v30974_v39  ;;  %191 = vst.msk [vmem:[#allocation3 + $0x98] sm:$0xff] %vm170_vm3, %v30974_v39  ;;  %v6957_v22 = vld [vmem:[#allocation3 + $0x1] sm:$0xff]  ;;  %v6958_v23 = vld [vmem:[#allocation3 + $0x9] sm:$0xff] }
 0x401   :  { %22239 = vmatmul.mubr.msk.f32.gmra.mrb[32].mxu0 %vm60_vm0, %v26881_v44  ;;  %192 = vst.msk [vmem:[#allocation3 + $0xa0] sm:$0x3] %vm173_vm4, %v30974_v39  ;;  %195 = vst.msk [vmem:[#allocation3 + $0xb8] sm:$0x3] %vm173_vm4, %v30974_v39  ;;  %v6050_v44 = vld [vmem:[#allocation2 + $0x62] sm:$0xff]  ;;  %22386 = vmatprep.mubr.msk.f32.mxu1 %vm170_vm3, %v6957_v22 }
 0x402   :  { %22241 = vmatprep.mubr.msk.f32.mxu0 %vm60_vm0, %v26883_v45  ;;  %193 = vst.msk [vmem:[#allocation3 + $0xa8] sm:$0xff] %vm170_vm3, %v30974_v39  ;;  %194 = vst.msk [vmem:[#allocation3 + $0xb0] sm:$0xff] %vm170_vm3, %v30974_v39  ;;  %v6051_v45 = vld [vmem:[#allocation2 + $0x6a] sm:$0xff]  ;;  %22387 = vmatmul.mubr.msk.f32.vlgmr.msra.gmra.mrb[8].mxu1 %vm170_vm3, %v6958_v23 }
 0x403   :  { %196 = vst.msk [vmem:[#allocation3 + $0xc0] sm:$0xff] %vm170_vm3, %v30974_v39  ;;  %197 = vst.msk [vmem:[#allocation3 + $0xc8] sm:$0xff] %vm170_vm3, %v30974_v39  ;;  %22483 = vmatpush3.msra.mxu1 %v6956_v26 }
 0x404   :  { %198 = vst.msk [vmem:[#allocation3 + $0xd0] sm:$0x3] %vm173_vm4, %v30974_v39  ;;  %201 = vst.msk [vmem:[#allocation3 + $0xe8] sm:$0x3] %vm173_vm4, %v30974_v39 }
 0x405   :  { %22242 = vmatmul.mubr.msk.f32.gmra.mrb[34].mxu0 %vm60_vm0, %v26889_v46  ;;  %199 = vst.msk [vmem:[#allocation3 + $0xd8] sm:$0xff] %vm170_vm3, %v30974_v39  ;;  %200 = vst.msk [vmem:[#allocation3 + $0xe0] sm:$0xff] %vm170_vm3, %v30974_v39  ;;  %v6052_v46 = vld [vmem:[#allocation2 + $0x7a] sm:$0xff] }
 0x406   :  { %22244 = vmatprep.mubr.msk.f32.mxu0 %vm60_vm0, %v26891_v47  ;;  %202 = vst.msk [vmem:[#allocation3 + $0xf0] sm:$0xff] %vm170_vm3, %v30974_v39  ;;  %203 = vst.msk [vmem:[#allocation3 + $0xf8] sm:$0xff] %vm170_vm3, %v30974_v39  ;;  %v6053_v47 = vld [vmem:[#allocation2 + $0x82] sm:$0xff] }
 0x407   :  { %204 = vst.msk [vmem:[#allocation3 + $0x100] sm:$0x3] %vm173_vm4, %v30974_v39  ;;  %207 = vst.msk [vmem:[#allocation3 + $0x118] sm:$0x3] %vm173_vm4, %v30974_v39 }
 0x408   :  { %205 = vst.msk [vmem:[#allocation3 + $0x108] sm:$0xff] %vm170_vm3, %v30974_v39  ;;  %206 = vst.msk [vmem:[#allocation3 + $0x110] sm:$0xff] %vm170_vm3, %v30974_v39 }
 0x409   :  { %22245 = vmatmul.mubr.msk.f32.gmra.mrb[36].mxu0 %vm60_vm0, %v26897_v48  ;;  %208 = vst.msk [vmem:[#allocation3 + $0x120] sm:$0xff] %vm170_vm3, %v30974_v39  ;;  %209 = vst.msk [vmem:[#allocation3 + $0x128] sm:$0xff] %vm170_vm3, %v30974_v39  ;;  %v6054_v48 = vld [vmem:[#allocation2 + $0x92] sm:$0xff] }
 0x40a   :  { %22247 = vmatprep.mubr.msk.f32.mxu0 %vm60_vm0, %v26899_v49  ;;  %210 = vst.msk [vmem:[#allocation3 + $0x130] sm:$0x3] %vm173_vm4, %v30974_v39  ;;  %213 = vst.msk [vmem:[#allocation3 + $0x148] sm:$0x3] %vm173_vm4, %v30974_v39  ;;  %v6055_v49 = vld [vmem:[#allocation2 + $0x9a] sm:$0xff] }
 0x40b   :  { %211 = vst.msk [vmem:[#allocation3 + $0x138] sm:$0xff] %vm170_vm3, %v30974_v39  ;;  %212 = vst.msk [vmem:[#allocation3 + $0x140] sm:$0xff] %vm170_vm3, %v30974_v39 }
 0x40c   :  { %214 = vst.msk [vmem:[#allocation3 + $0x150] sm:$0xff] %vm170_vm3, %v30974_v39  ;;  %215 = vst.msk [vmem:[#allocation3 + $0x158] sm:$0xff] %vm170_vm3, %v30974_v39 }
 0x40d   :  { %22248 = vmatmul.mubr.msk.f32.gmra.mrb[38].mxu0 %vm60_vm0, %v26905_v50  ;;  %216 = vst.msk [vmem:[#allocation3 + $0x160] sm:$0x3] %vm173_vm4, %v30974_v39  ;;  %219 = vst.msk [vmem:[#allocation3 + $0x178] sm:$0x3] %vm173_vm4, %v30974_v39  ;;  %v6056_v50 = vld [vmem:[#allocation2 + $0xaa] sm:$0xff] }
 0x40e   :  { %22250 = vmatprep.mubr.msk.f32.mxu0 %vm60_vm0, %v26907_v51  ;;  %217 = vst.msk [vmem:[#allocation3 + $0x168] sm:$0xff] %vm170_vm3, %v30974_v39  ;;  %218 = vst.msk [vmem:[#allocation3 + $0x170] sm:$0xff] %vm170_vm3, %v30974_v39  ;;  %v6057_v51 = vld [vmem:[#allocation2 + $0xb2] sm:$0xff] }
 0x40f   :  { %220 = vst.msk [vmem:[#allocation3 + $0x180] sm:$0xff] %vm170_vm3, %v30974_v39  ;;  %221 = vst.msk [vmem:[#allocation3 + $0x188] sm:$0xff] %vm170_vm3, %v30974_v39 }
 0x410   :  { %222 = vst.msk [vmem:[#allocation3 + $0x190] sm:$0x3] %vm173_vm4, %v30974_v39  ;;  %225 = vst.msk [vmem:[#allocation3 + $0x1a8] sm:$0x3] %vm173_vm4, %v30974_v39 }
 0x411   :  { %22251 = vmatmul.mubr.msk.f32.gmra.mrb[40].mxu0 %vm60_vm0, %v26913_v52  ;;  %223 = vst.msk [vmem:[#allocation3 + $0x198] sm:$0xff] %vm170_vm3, %v30974_v39  ;;  %224 = vst.msk [vmem:[#allocation3 + $0x1a0] sm:$0xff] %vm170_vm3, %v30974_v39  ;;  %v6058_v52 = vld [vmem:[#allocation2 + $0xc2] sm:$0xff] }
 0x412   :  { %22253 = vmatprep.mubr.msk.f32.mxu0 %vm60_vm0, %v26915_v53  ;;  %226 = vst.msk [vmem:[#allocation3 + $0x1b0] sm:$0xff] %vm170_vm3, %v30974_v39  ;;  %227 = vst.msk [vmem:[#allocation3 + $0x1b8] sm:$0xff] %vm170_vm3, %v30974_v39  ;;  %v6059_v53 = vld [vmem:[#allocation2 + $0xca] sm:$0xff] }
 0x413   :  { %228 = vst.msk [vmem:[#allocation3 + $0x1c0] sm:$0x3] %vm173_vm4, %v30974_v39  ;;  %231 = vst.msk [vmem:[#allocation3 + $0x1d8] sm:$0x3] %vm173_vm4, %v30974_v39 }
 0x414   :  { %229 = vst.msk [vmem:[#allocation3 + $0x1c8] sm:$0xff] %vm170_vm3, %v30974_v39  ;;  %230 = vst.msk [vmem:[#allocation3 + $0x1d0] sm:$0xff] %vm170_vm3, %v30974_v39 }
 0x415   :  { %22254 = vmatmul.mubr.msk.f32.gmra.mrb[42].mxu0 %vm60_vm0, %v26921_v54  ;;  %232 = vst.msk [vmem:[#allocation3 + $0x1e0] sm:$0xff] %vm170_vm3, %v30974_v39  ;;  %233 = vst.msk [vmem:[#allocation3 + $0x1e8] sm:$0xff] %vm170_vm3, %v30974_v39  ;;  %v6060_v54 = vld [vmem:[#allocation2 + $0xda] sm:$0xff] }
 0x416   :  { %22256 = vmatprep.mubr.msk.f32.mxu0 %vm60_vm0, %v26923_v55  ;;  %234 = vst.msk [vmem:[#allocation3 + $0x1f0] sm:$0x3] %vm173_vm4, %v30974_v39  ;;  %237 = vst.msk [vmem:[#allocation3 + $0x208] sm:$0x3] %vm173_vm4, %v30974_v39  ;;  %v6061_v55 = vld [vmem:[#allocation2 + $0xe2] sm:$0xff] }
 0x417   :  { %235 = vst.msk [vmem:[#allocation3 + $0x1f8] sm:$0xff] %vm170_vm3, %v30974_v39  ;;  %236 = vst.msk [vmem:[#allocation3 + $0x200] sm:$0xff] %vm170_vm3, %v30974_v39 }
 0x418   :  { %238 = vst.msk [vmem:[#allocation3 + $0x210] sm:$0xff] %vm170_vm3, %v30974_v39  ;;  %239 = vst.msk [vmem:[#allocation3 + $0x218] sm:$0xff] %vm170_vm3, %v30974_v39 }
 0x419   :  { %22257 = vmatmul.mubr.msk.f32.gmra.mrb[44].mxu0 %vm60_vm0, %v26929_v56  ;;  %240 = vst.msk [vmem:[#allocation3 + $0x220] sm:$0x3] %vm173_vm4, %v30974_v39  ;;  %243 = vst.msk [vmem:[#allocation3 + $0x238] sm:$0x3] %vm173_vm4, %v30974_v39  ;;  %v6062_v56 = vld [vmem:[#allocation2 + $0xf2] sm:$0xff] }
 0x41a   :  { %22259 = vmatprep.mubr.msk.f32.mxu0 %vm60_vm0, %v26931_v29  ;;  %241 = vst.msk [vmem:[#allocation3 + $0x228] sm:$0xff] %vm170_vm3, %v30974_v39  ;;  %242 = vst.msk [vmem:[#allocation3 + $0x230] sm:$0xff] %vm170_vm3, %v30974_v39  ;;  %v6063_v29 = vld [vmem:[#allocation2 + $0xfa] sm:$0xff] }
 0x41b   :  { %244 = vst.msk [vmem:[#allocation3 + $0x240] sm:$0xff] %vm170_vm3, %v30974_v39  ;;  %245 = vst.msk [vmem:[#allocation3 + $0x248] sm:$0xff] %vm170_vm3, %v30974_v39 }
 0x41c   :  { %246 = vst.msk [vmem:[#allocation3 + $0x250] sm:$0x3] %vm173_vm4, %v30974_v39  ;;  %249 = vst.msk [vmem:[#allocation3 + $0x268] sm:$0x3] %vm173_vm4, %v30974_v39 }
 0x41d   :  { %22260 = vmatmul.mubr.msk.f32.gmra.mrb[46].mxu0 %vm60_vm0, %v30959_v8  ;;  %247 = vst.msk [vmem:[#allocation3 + $0x258] sm:$0xff] %vm170_vm3, %v30974_v39  ;;  %248 = vst.msk [vmem:[#allocation3 + $0x260] sm:$0xff] %vm170_vm3, %v30974_v39  ;;  %v6081_v8 = vld [vmem:[#allocation2 + $0x202] sm:$0xff] }
 0x41e   :  { %22262 = vmatprep.mubr.msk.f32.mxu0 %vm60_vm0, %v30960_v10  ;;  %250 = vst.msk [vmem:[#allocation3 + $0x270] sm:$0xff] %vm170_vm3, %v30974_v39  ;;  %251 = vst.msk [vmem:[#allocation3 + $0x278] sm:$0xff] %vm170_vm3, %v30974_v39  ;;  %v6083_v10 = vld [vmem:[#allocation2 + $0x21a] sm:$0xff] }
 0x41f   :  { %252 = vst.msk [vmem:[#allocation3 + $0x280] sm:$0x3] %vm173_vm4, %v30974_v39  ;;  %255 = vst.msk [vmem:[#allocation3 + $0x298] sm:$0x3] %vm173_vm4, %v30974_v39 }
 0x420   :  { %253 = vst.msk [vmem:[#allocation3 + $0x288] sm:$0xff] %vm170_vm3, %v30974_v39  ;;  %254 = vst.msk [vmem:[#allocation3 + $0x290] sm:$0xff] %vm170_vm3, %v30974_v39 }
 0x421   :  { %22263 = vmatmul.mubr.msk.f32.gmra.mrb[48].mxu0 %vm60_vm0, %v30961_v11  ;;  %256 = vst.msk [vmem:[#allocation3 + $0x2a0] sm:$0xff] %vm170_vm3, %v30974_v39  ;;  %257 = vst.msk [vmem:[#allocation3 + $0x2a8] sm:$0xff] %vm170_vm3, %v30974_v39  ;;  %v6084_v11 = vld [vmem:[#allocation2 + $0x22a] sm:$0xff] }
 0x422   :  { %22265 = vmatprep.mubr.msk.f32.mxu0 %vm60_vm0, %v30962_v12  ;;  %258 = vst.msk [vmem:[#allocation3 + $0x2b0] sm:$0x3] %vm173_vm4, %v30974_v39  ;;  %261 = vst.msk [vmem:[#allocation3 + $0x2c8] sm:$0x3] %vm173_vm4, %v30974_v39  ;;  %v6085_v12 = vld [vmem:[#allocation2 + $0x232] sm:$0xff] }
 0x423   :  { %259 = vst.msk [vmem:[#allocation3 + $0x2b8] sm:$0xff] %vm170_vm3, %v30974_v39  ;;  %260 = vst.msk [vmem:[#allocation3 + $0x2c0] sm:$0xff] %vm170_vm3, %v30974_v39 }
 0x424   :  { %262 = vst.msk [vmem:[#allocation3 + $0x2d0] sm:$0xff] %vm170_vm3, %v30974_v39  ;;  %263 = vst.msk [vmem:[#allocation3 + $0x2d8] sm:$0xff] %vm170_vm3, %v30974_v39 }
 0x425   :  { %22266 = vmatmul.mubr.msk.f32.gmra.mrb[50].mxu0 %vm60_vm0, %v30963_v13  ;;  %264 = vst.msk [vmem:[#allocation3 + $0x2e0] sm:$0x3] %vm173_vm4, %v30974_v39  ;;  %267 = vst.msk [vmem:[#allocation3 + $0x2f8] sm:$0x3] %vm173_vm4, %v30974_v39  ;;  %v6086_v13 = vld [vmem:[#allocation2 + $0x242] sm:$0xff] }
 0x426   :  { %22268 = vmatprep.mubr.msk.f32.mxu0 %vm60_vm0, %v30964_v14  ;;  %265 = vst.msk [vmem:[#allocation3 + $0x2e8] sm:$0xff] %vm170_vm3, %v30974_v39  ;;  %266 = vst.msk [vmem:[#allocation3 + $0x2f0] sm:$0xff] %vm170_vm3, %v30974_v39  ;;  %v6087_v14 = vld [vmem:[#allocation2 + $0x24a] sm:$0xff] }
 0x427   :  { %268 = vst.msk [vmem:[#allocation3 + $0x300] sm:$0xff] %vm170_vm3, %v30974_v39  ;;  %269 = vst.msk [vmem:[#allocation3 + $0x308] sm:$0xff] %vm170_vm3, %v30974_v39 }
 0x428   :  { %270 = vst.msk [vmem:[#allocation3 + $0x310] sm:$0x3] %vm173_vm4, %v30974_v39  ;;  %273 = vst.msk [vmem:[#allocation3 + $0x328] sm:$0x3] %vm173_vm4, %v30974_v39 }
 0x429   :  { %22269 = vmatmul.mubr.msk.f32.gmra.mrb[52].mxu0 %vm60_vm0, %v30965_v15  ;;  %271 = vst.msk [vmem:[#allocation3 + $0x318] sm:$0xff] %vm170_vm3, %v30974_v39  ;;  %272 = vst.msk [vmem:[#allocation3 + $0x320] sm:$0xff] %vm170_vm3, %v30974_v39  ;;  %v6088_v15 = vld [vmem:[#allocation2 + $0x25a] sm:$0xff] }
 0x42a   :  { %22271 = vmatprep.mubr.msk.f32.mxu0 %vm60_vm0, %v30966_v16  ;;  %274 = vst.msk [vmem:[#allocation3 + $0x330] sm:$0xff] %vm170_vm3, %v30974_v39  ;;  %275 = vst.msk [vmem:[#allocation3 + $0x338] sm:$0xff] %vm170_vm3, %v30974_v39  ;;  %v6089_v16 = vld [vmem:[#allocation2 + $0x262] sm:$0xff] }
 0x42b   :  { %276 = vst.msk [vmem:[#allocation3 + $0x340] sm:$0x3] %vm173_vm4, %v30974_v39  ;;  %279 = vst.msk [vmem:[#allocation3 + $0x358] sm:$0x3] %vm173_vm4, %v30974_v39 }
 0x42c   :  { %277 = vst.msk [vmem:[#allocation3 + $0x348] sm:$0xff] %vm170_vm3, %v30974_v39  ;;  %278 = vst.msk [vmem:[#allocation3 + $0x350] sm:$0xff] %vm170_vm3, %v30974_v39  ;;  %v28132_v39 = vld [vmem:[%s30666_s3 + $0x20] sm:$0xff] }
 0x42d   :  { %22272 = vmatmul.mubr.msk.f32.gmra.mrb[54].mxu0 %vm60_vm0, %v30967_v17  ;;  %v6090_v17 = vld [vmem:[#allocation2 + $0x272] sm:$0xff] }
 0x42e   :  { %22274 = vmatprep.mubr.msk.f32.mxu0 %vm60_vm0, %v30968_v20  ;;  %v6093_v20 = vld [vmem:[#allocation2 + $0x292] sm:$0xff] }
 0x431   :  { %22275 = vmatmul.mubr.msk.f32.gmra.mrb[56].mxu0 %vm60_vm0, %v30969_v21  ;;  %v6094_v21 = vld [vmem:[#allocation2 + $0x2a2] sm:$0xff] }
 0x432   :  { %22277 = vmatprep.mubr.msk.f32.mxu0 %vm60_vm0, %v30970_v24  ;;  %v6095_v24 = vld [vmem:[#allocation2 + $0x2aa] sm:$0xff] }
 0x435   :  { %22278 = vmatmul.mubr.msk.f32.gmra.mrb[58].mxu0 %vm60_vm0, %v30971_v25  ;;  %v6096_v25 = vld [vmem:[#allocation2 + $0x2ba] sm:$0xff] }
 0x436   :  { %22280 = vmatprep.mubr.msk.f32.mxu0 %vm60_vm0, %v30972_v30  ;;  %v6098_v30 = vld [vmem:[#allocation2 + $0x2d2] sm:$0xff] }
 0x439   :  { %22281 = vmatmul.mubr.msk.f32.gmra.mrb[60].mxu0 %vm60_vm0, %v30973_v32  ;;  %v6100_v32 = vld [vmem:[#allocation2 + $0x2ea] sm:$0xff] }
 0x43a   :  { %22283 = vmatprep.mubr.msk.f32.mxu0 %vm60_vm0, %v5398_v31  ;;  %v6099_v31 = vld [vmem:[#allocation2 + $0x2da] sm:$0xff] }
 0x43d   :  { %22284 = vmatmul.mubr.msk.f32.gmra.mrb[62].mxu0 %vm60_vm0, %v5399_v34  ;;  %v6102_v34 = vld [vmem:[#allocation2 + $0x302] sm:$0xff] }
 0x43e   :  { %22288 = vmatprep.mubr.msk.f32.mxu0 %vm60_vm0, %v6046_v36  ;;  %v6104_v36 = vld [vmem:[#allocation2 + $0x31a] sm:$0xff] }
 0x441   :  { %22289 = vmatmul.mubr.msk.f32.vlgmr.msra.gmra.mrb[0].mxu0 %vm60_vm0, %v27359_v38  ;;  %v6108_v38 = vld [vmem:[#allocation2 + $0x34a] sm:$0xff] }
 0x442   :  { %22291 = vmatprep.mubr.msk.f32.mxu0 %vm60_vm0, %v6048_v40  ;;  %v6109_v40 = vld [vmem:[#allocation2 + $0x352] sm:$0xff] }
 0x445   :  { %22292 = vmatmul.mubr.msk.f32.gmra.mrb[2].mxu0 %vm60_vm0, %v6049_v43 }
 0x446   :  { %22294 = vmatprep.mubr.msk.f32.mxu0 %vm60_vm0, %v6050_v44 }
 0x449   :  { %22295 = vmatmul.mubr.msk.f32.gmra.mrb[4].mxu0 %vm60_vm0, %v6051_v45 }
 0x44a   :  { %22297 = vmatprep.mubr.msk.f32.mxu0 %vm60_vm0, %v6052_v46 }
 0x44d   :  { %22298 = vmatmul.mubr.msk.f32.gmra.mrb[6].mxu0 %vm60_vm0, %v6053_v47 }
 0x44e   :  { %22300 = vmatprep.mubr.msk.f32.mxu0 %vm60_vm0, %v6054_v48 }
 0x451   :  { %22301 = vmatmul.mubr.msk.f32.gmra.mrb[8].mxu0 %vm60_vm0, %v6055_v49  ;;  %v27671_v49 = vld [vmem:[%s30665_s2] ss:$0 sm:$0xff] }
 0x452   :  { %22303 = vmatprep.mubr.msk.f32.mxu0 %vm60_vm0, %v6056_v50 }
 0x455   :  { %22304 = vmatmul.mubr.msk.f32.gmra.mrb[10].mxu0 %vm60_vm0, %v6057_v51 }
 0x456   :  { %22306 = vmatprep.mubr.msk.f32.mxu0 %vm60_vm0, %v6058_v52 }
 0x459   :  { %22307 = vmatmul.mubr.msk.f32.gmra.mrb[12].mxu0 %vm60_vm0, %v6059_v53 }
 0x45a   :  { %22309 = vmatprep.mubr.msk.f32.mxu0 %vm60_vm0, %v6060_v54 }
 0x45d   :  { %22310 = vmatmul.mubr.msk.f32.gmra.mrb[14].mxu0 %vm60_vm0, %v6061_v55 }
 0x45e   :  { %22312 = vmatprep.mubr.msk.f32.mxu0 %vm60_vm0, %v6062_v56 }
 0x461   :  { %22313 = vmatmul.mubr.msk.f32.gmra.mrb[16].mxu0 %vm60_vm0, %v6063_v29 }
 0x462   :  { %22315 = vmatprep.mubr.msk.f32.mxu0 %vm60_vm0, %v6064_v59 }
 0x465   :  { %22316 = vmatmul.mubr.msk.f32.gmra.mrb[18].mxu0 %vm60_vm0, %v6065_v60  ;;  %v27684_v60 = vld [vmem:[%s30666_s3 + $0x10] sm:$0xff] }
 0x466   :  { %22318 = vmatprep.mubr.msk.f32.mxu0 %vm60_vm0, %v6066_v62  ;;  %22580 = vmatprep.subr.mxu1 %v27684_v60 }
 0x469   :  { %22319 = vmatmul.mubr.msk.f32.gmra.mrb[20].mxu0 %vm60_vm0, %v6067_v58 }
 0x46a   :  { %22321 = vmatprep.mubr.msk.f32.mxu0 %vm60_vm0, %v6068_v28 }
 0x46d   :  { %22322 = vmatmul.mubr.msk.f32.gmra.mrb[22].mxu0 %vm60_vm0, %v6069_v57 }
 0x46e   :  { %22324 = vmatprep.mubr.msk.f32.mxu0 %vm60_vm0, %v6070_v41 }
 0x471   :  { %22325 = vmatmul.mubr.msk.f32.gmra.mrb[24].mxu0 %vm60_vm0, %v6071_v63 }
 0x472   :  { %22327 = vmatprep.mubr.msk.f32.mxu0 %vm60_vm0, %v6072_v2 }
 0x475   :  { %22328 = vmatmul.mubr.msk.f32.gmra.mrb[26].mxu0 %vm60_vm0, %v6073_v42 }
 0x476   :  { %22330 = vmatprep.mubr.msk.f32.mxu0 %vm60_vm0, %v27064_v4  ;;  %v6082_v4 = vld [vmem:[#allocation2 + $0x212] sm:$0xff] }
 0x479   :  { %22331 = vmatmul.mubr.msk.f32.gmra.mrb[28].mxu0 %vm60_vm0, %v30975_v6 }
 0x47a   :  { %22333 = vmatprep.mubr.msk.f32.mxu0 %vm60_vm0, %v6076_v0 }
 0x47d   :  { %22334 = vmatmul.mubr.msk.f32.gmra.mrb[30].mxu0 %vm60_vm0, %v6077_v7 }
 0x47e   :  { %22336 = vmatprep.mubr.msk.f32.mxu0 %vm60_vm0, %v6078_v61 }
 0x481   :  { %22337 = vmatmul.mubr.msk.f32.gmra.mrb[32].mxu0 %vm60_vm0, %v6079_v3 }
 0x482   :  { %22339 = vmatprep.mubr.msk.f32.mxu0 %vm60_vm0, %v6080_v5 }
 0x485   :  { %22340 = vmatmul.mubr.msk.f32.gmra.mrb[34].mxu0 %vm60_vm0, %v6081_v8 }
 0x486   :  { %22342 = vmatprep.mubr.msk.f32.mxu0 %vm60_vm0, %v6082_v4 }
 0x489   :  { %22343 = vmatmul.mubr.msk.f32.gmra.mrb[36].mxu0 %vm60_vm0, %v6083_v10 }
 0x48a   :  { %22345 = vmatprep.mubr.msk.f32.mxu0 %vm60_vm0, %v6084_v11 }
 0x48d   :  { %22346 = vmatmul.mubr.msk.f32.gmra.mrb[38].mxu0 %vm60_vm0, %v6085_v12 }
 0x48e   :  { %22348 = vmatprep.mubr.msk.f32.mxu0 %vm60_vm0, %v6086_v13 }
 0x491   :  { %22349 = vmatmul.mubr.msk.f32.gmra.mrb[40].mxu0 %vm60_vm0, %v6087_v14 }
 0x492   :  { %22351 = vmatprep.mubr.msk.f32.mxu0 %vm60_vm0, %v6088_v15 }
 0x495   :  { %22352 = vmatmul.mubr.msk.f32.gmra.mrb[42].mxu0 %vm60_vm0, %v6089_v16 }
 0x496   :  { %22354 = vmatprep.mubr.msk.f32.mxu0 %vm60_vm0, %v6090_v17 }
 0x499   :  { %22355 = vmatmul.mubr.msk.f32.gmra.mrb[44].mxu0 %vm60_vm0, %v6091_v18 }
 0x49a   :  { %22357 = vmatprep.mubr.msk.f32.mxu0 %vm60_vm0, %v6092_v19 }
 0x49d   :  { %22358 = vmatmul.mubr.msk.f32.gmra.mrb[46].mxu0 %vm60_vm0, %v6093_v20 }
 0x49e   :  { %22360 = vmatprep.mubr.msk.f32.mxu0 %vm60_vm0, %v6094_v21 }
 0x4a1   :  { %22361 = vmatmul.mubr.msk.f32.gmra.mrb[48].mxu0 %vm60_vm0, %v6095_v24 }
 0x4a2   :  { %22363 = vmatprep.mubr.msk.f32.mxu0 %vm60_vm0, %v6096_v25 }
 0x4a5   :  { %22364 = vmatmul.mubr.msk.f32.gmra.mrb[50].mxu0 %vm60_vm0, %v6097_v27 }
 0x4a6   :  { %22366 = vmatprep.mubr.msk.f32.mxu0 %vm60_vm0, %v6098_v30  ;;  %v27652_v43 = vpop.f32.mrb[0].mxu1 }
 0x4a7   :  { %v27654_v44 = vpop.f32.mrb[1].mxu1 }
 0x4a9   :  { %22367 = vmatmul.mubr.msk.f32.gmra.mrb[52].mxu0 %vm60_vm0, %v6099_v31 }
 0x4aa   :  { %22369 = vmatprep.mubr.msk.f32.mxu0 %vm60_vm0, %v6100_v32 }
 0x4ad   :  { %22370 = vmatmul.mubr.msk.f32.gmra.mrb[54].mxu0 %vm60_vm0, %v6101_v33 }
 0x4ae   :  { %22372 = vmatprep.mubr.msk.f32.mxu0 %vm60_vm0, %v6102_v34  ;;  %v27656_v45 = vpop.f32.mrb[2].mxu1 }
 0x4af   :  { %v27658_v46 = vpop.f32.mrb[3].mxu1 }
 0x4b1   :  { %22373 = vmatmul.mubr.msk.f32.gmra.mrb[56].mxu0 %vm60_vm0, %v6103_v35 }
 0x4b2   :  { %22375 = vmatprep.mubr.msk.f32.mxu0 %vm60_vm0, %v6104_v36 }
 0x4b5   :  { %22376 = vmatmul.mubr.msk.f32.gmra.mrb[58].mxu0 %vm60_vm0, %v6105_v37 }
 0x4b6   :  { %22378 = vmatprep.mubr.msk.f32.mxu0 %vm60_vm0, %v27132_v9  ;;  %v27660_v47 = vpop.f32.mrb[4].mxu1 }
 0x4b7   :  { %v27662_v9 = vpop.f32.mrb[5].mxu1 }
 0x4b9   :  { %22379 = vmatmul.mubr.msk.f32.gmra.mrb[60].mxu0 %vm60_vm0, %v27138_v1 }
 0x4ba   :  { %22381 = vmatprep.mubr.msk.f32.mxu0 %vm60_vm0, %v6108_v38 }
 0x4bd   :  { %22382 = vmatmul.mubr.msk.f32.gmra.mrb[62].mxu0 %vm60_vm0, %v6109_v40  ;;  %vm18307_vm0 = vcmask 1024  }
 0x4c2   :  { %v27664_v48 = vpop.f32.mrb[6].mxu1 }
 0x4c3   :  { %v27666_v1 = vpop.f32.mrb[7].mxu1 }
 0x514   :  { %v22290_v50 = vpop.f32.mrb[0].mxu0 }
 0x515   :  { %v6764_v51 = vadd.f32 %v22290_v50, %v27671_v49  ;;  %v6373_v52 = vpop.f32.mrb[1].mxu0 }
 0x516   :  { %v6763_v53 = vadd.f32 %v27671_v49, %v6373_v52 }
 0x517   :  { %6829 = vst.msk [vmem:[#allocation3 + $0x21] sm:$0xff] %vm170_vm3, %v6764_v51 }
 0x518   :  { %6828 = vst.msk [vmem:[#allocation3 + $0x19] sm:$0xff] %vm170_vm3, %v6763_v53  ;;  %v22293_v54 = vpop.f32.mrb[2].mxu0 }
 0x519   :  { %v6766_v55 = vadd.f32 %v22293_v54, %v27671_v49  ;;  %v6383_v56 = vpop.f32.mrb[3].mxu0 }
 0x51a   :  { %v6765_v29 = vadd.f32 %v27671_v49, %v6383_v56 }
 0x51b   :  { %6831 = vst.msk [vmem:[#allocation3 + $0x39] sm:$0xff] %vm170_vm3, %v6766_v55 }
 0x51c   :  { %6830 = vst.msk [vmem:[#allocation3 + $0x31] sm:$0xff] %vm170_vm3, %v6765_v29  ;;  %v22296_v59 = vpop.f32.mrb[4].mxu0 }
 0x51d   :  { %v6768_v62 = vadd.f32 %v22296_v59, %v27671_v49  ;;  %v6393_v58 = vpop.f32.mrb[5].mxu0 }
 0x51e   :  { %v6767_v28 = vadd.f32 %v27671_v49, %v6393_v58  ;;  %v6960_v63 = vld [vmem:[#allocation3 + $0x21] sm:$0xff] }
 0x51f   :  { %6833 = vst.msk [vmem:[#allocation3 + $0x51] sm:$0xff] %vm170_vm3, %v6768_v62  ;;  %v6959_v57 = vld [vmem:[#allocation3 + $0x19] sm:$0xff] }
 0x520   :  { %6832 = vst.msk [vmem:[#allocation3 + $0x49] sm:$0xff] %vm170_vm3, %v6767_v28  ;;  %v22299_v41 = vpop.f32.mrb[6].mxu0  ;;  %22389 = vmatprep.mubr.msk.f32.mxu1 %vm170_vm3, %v6959_v57 }
 0x521   :  { %v6770_v2 = vadd.f32 %v22299_v41, %v27671_v49  ;;  %v6403_v42 = vpop.f32.mrb[7].mxu0  ;;  %22390 = vmatmul.mubr.msk.f32.gmra.mrb[10].mxu1 %vm170_vm3, %v6960_v63 }
 0x522   :  { %v6769_v0 = vadd.f32 %v27671_v49, %v6403_v42  ;;  %v6962_v61 = vld [vmem:[#allocation3 + $0x39] sm:$0xff] }
 0x523   :  { %6835 = vst.msk [vmem:[#allocation3 + $0x69] sm:$0xff] %vm170_vm3, %v6770_v2  ;;  %v6961_v6 = vld [vmem:[#allocation3 + $0x31] sm:$0xff] }
 0x524   :  { %6834 = vst.msk [vmem:[#allocation3 + $0x61] sm:$0xff] %vm170_vm3, %v6769_v0  ;;  %v22302_v7 = vpop.f32.mrb[8].mxu0  ;;  %22392 = vmatprep.mubr.msk.f32.mxu1 %vm170_vm3, %v6961_v6 }
 0x525   :  { %v6772_v3 = vadd.f32 %v22302_v7, %v27671_v49  ;;  %v6413_v5 = vpop.f32.mrb[9].mxu0  ;;  %22393 = vmatmul.mubr.msk.f32.gmra.mrb[12].mxu1 %vm170_vm3, %v6962_v61 }
 0x526   :  { %v6771_v8 = vadd.f32 %v27671_v49, %v6413_v5  ;;  %v6964_v11 = vld [vmem:[#allocation3 + $0x51] sm:$0xff] }
 0x527   :  { %6837 = vst.msk [vmem:[#allocation3 + $0x81] sm:$0xff] %vm170_vm3, %v6772_v3  ;;  %v6963_v4 = vld [vmem:[#allocation3 + $0x49] sm:$0xff] }
 0x528   :  { %6836 = vst.msk [vmem:[#allocation3 + $0x79] sm:$0xff] %vm170_vm3, %v6771_v8  ;;  %v22305_v10 = vpop.f32.mrb[10].mxu0  ;;  %22395 = vmatprep.mubr.msk.f32.mxu1 %vm170_vm3, %v6963_v4 }
 0x529   :  { %v6774_v12 = vadd.f32 %v22305_v10, %v27671_v49  ;;  %v6423_v13 = vpop.f32.mrb[11].mxu0  ;;  %22396 = vmatmul.mubr.msk.f32.gmra.mrb[14].mxu1 %vm170_vm3, %v6964_v11 }
 0x52a   :  { %v6773_v14 = vadd.f32 %v27671_v49, %v6423_v13  ;;  %v6966_v17 = vld [vmem:[#allocation3 + $0x69] sm:$0xff] }
 0x52b   :  { %6839 = vst.msk [vmem:[#allocation3 + $0x99] sm:$0xff] %vm170_vm3, %v6774_v12  ;;  %v6965_v15 = vld [vmem:[#allocation3 + $0x61] sm:$0xff] }
 0x52c   :  { %6838 = vst.msk [vmem:[#allocation3 + $0x91] sm:$0xff] %vm170_vm3, %v6773_v14  ;;  %v22308_v16 = vpop.f32.mrb[12].mxu0  ;;  %22398 = vmatprep.mubr.msk.f32.mxu1 %vm170_vm3, %v6965_v15 }
 0x52d   :  { %v6776_v18 = vadd.f32 %v22308_v16, %v27671_v49  ;;  %v6433_v19 = vpop.f32.mrb[13].mxu0  ;;  %22399 = vmatmul.mubr.msk.f32.gmra.mrb[16].mxu1 %vm170_vm3, %v6966_v17 }
 0x52e   :  { %v6775_v20 = vadd.f32 %v27671_v49, %v6433_v19  ;;  %v6968_v23 = vld [vmem:[#allocation3 + $0x81] sm:$0xff] }
 0x52f   :  { %6841 = vst.msk [vmem:[#allocation3 + $0xb1] sm:$0xff] %vm170_vm3, %v6776_v18  ;;  %v6967_v21 = vld [vmem:[#allocation3 + $0x79] sm:$0xff] }
 0x530   :  { %6840 = vst.msk [vmem:[#allocation3 + $0xa9] sm:$0xff] %vm170_vm3, %v6775_v20  ;;  %v22311_v22 = vpop.f32.mrb[14].mxu0  ;;  %22401 = vmatprep.mubr.msk.f32.mxu1 %vm170_vm3, %v6967_v21 }
 0x531   :  { %v6778_v24 = vadd.f32 %v22311_v22, %v27671_v49  ;;  %v6443_v25 = vpop.f32.mrb[15].mxu0  ;;  %22402 = vmatmul.mubr.msk.f32.gmra.mrb[18].mxu1 %vm170_vm3, %v6968_v23 }
 0x532   :  { %v6777_v26 = vadd.f32 %v27671_v49, %v6443_v25  ;;  %v6970_v31 = vld [vmem:[#allocation3 + $0x99] sm:$0xff] }
 0x533   :  { %6843 = vst.msk [vmem:[#allocation3 + $0xc9] sm:$0xff] %vm170_vm3, %v6778_v24  ;;  %v6969_v27 = vld [vmem:[#allocation3 + $0x91] sm:$0xff] }
 0x534   :  { %6842 = vst.msk [vmem:[#allocation3 + $0xc1] sm:$0xff] %vm170_vm3, %v6777_v26  ;;  %v22314_v30 = vpop.f32.mrb[16].mxu0  ;;  %22404 = vmatprep.mubr.msk.f32.mxu1 %vm170_vm3, %v6969_v27 }
 0x535   :  { %v6780_v32 = vadd.f32 %v22314_v30, %v27671_v49  ;;  %v6453_v33 = vpop.f32.mrb[17].mxu0  ;;  %22405 = vmatmul.mubr.msk.f32.gmra.mrb[20].mxu1 %vm170_vm3, %v6970_v31  ;;  %v6989_v31 = vld [vmem:[#allocation3 + $0x1b1] sm:$0xff] }
 0x536   :  { %v6779_v34 = vadd.f32 %v27671_v49, %v6453_v33  ;;  %v6972_v37 = vld [vmem:[#allocation3 + $0xb1] sm:$0xff] }
 0x537   :  { %6845 = vst.msk [vmem:[#allocation3 + $0xe1] sm:$0xff] %vm170_vm3, %v6780_v32  ;;  %v6971_v35 = vld [vmem:[#allocation3 + $0xa9] sm:$0xff] }
 0x538   :  { %6844 = vst.msk [vmem:[#allocation3 + $0xd9] sm:$0xff] %vm170_vm3, %v6779_v34  ;;  %v22317_v36 = vpop.f32.mrb[18].mxu0  ;;  %22407 = vmatprep.mubr.msk.f32.mxu1 %vm170_vm3, %v6971_v35 }
 0x539   :  { %v6782_v38 = vadd.f32 %v22317_v36, %v27671_v49  ;;  %v6463_v40 = vpop.f32.mrb[19].mxu0  ;;  %22408 = vmatmul.mubr.msk.f32.gmra.mrb[22].mxu1 %vm170_vm3, %v6972_v37  ;;  %v6990_v37 = vld [vmem:[#allocation3 + $0x1b9] sm:$0xff] }
 0x53a   :  { %v6781_v50 = vadd.f32 %v27671_v49, %v6463_v40  ;;  %v6974_v53 = vld [vmem:[#allocation3 + $0xc9] sm:$0xff] }
 0x53b   :  { %6847 = vst.msk [vmem:[#allocation3 + $0xf9] sm:$0xff] %vm170_vm3, %v6782_v38  ;;  %v6973_v51 = vld [vmem:[#allocation3 + $0xc1] sm:$0xff] }
 0x53c   :  { %6846 = vst.msk [vmem:[#allocation3 + $0xf1] sm:$0xff] %vm170_vm3, %v6781_v50  ;;  %v22320_v52 = vpop.f32.mrb[20].mxu0  ;;  %22410 = vmatprep.mubr.msk.f32.mxu1 %vm170_vm3, %v6973_v51 }
 0x53d   :  { %v6784_v54 = vadd.f32 %v22320_v52, %v27671_v49  ;;  %v6473_v55 = vpop.f32.mrb[21].mxu0  ;;  %22411 = vmatmul.mubr.msk.f32.gmra.mrb[24].mxu1 %vm170_vm3, %v6974_v53 }
 0x53e   :  { %v6783_v56 = vadd.f32 %v27671_v49, %v6473_v55  ;;  %v6976_v62 = vld [vmem:[#allocation3 + $0xe1] sm:$0xff] }
 0x53f   :  { %6849 = vst.msk [vmem:[#allocation3 + $0x111] sm:$0xff] %vm170_vm3, %v6784_v54  ;;  %v6975_v29 = vld [vmem:[#allocation3 + $0xd9] sm:$0xff] }
 0x540   :  { %6848 = vst.msk [vmem:[#allocation3 + $0x109] sm:$0xff] %vm170_vm3, %v6783_v56  ;;  %v22323_v59 = vpop.f32.mrb[22].mxu0  ;;  %22413 = vmatprep.mubr.msk.f32.mxu1 %vm170_vm3, %v6975_v29 }
 0x541   :  { %v6786_v58 = vadd.f32 %v22323_v59, %v27671_v49  ;;  %v6483_v28 = vpop.f32.mrb[23].mxu0  ;;  %22414 = vmatmul.mubr.msk.f32.gmra.mrb[26].mxu1 %vm170_vm3, %v6976_v62 }
 0x542   :  { %v6785_v57 = vadd.f32 %v27671_v49, %v6483_v28  ;;  %v6978_v2 = vld [vmem:[#allocation3 + $0xf9] sm:$0xff] }
 0x543   :  { %6851 = vst.msk [vmem:[#allocation3 + $0x129] sm:$0xff] %vm170_vm3, %v6786_v58  ;;  %v6977_v41 = vld [vmem:[#allocation3 + $0xf1] sm:$0xff] }
 0x544   :  { %6850 = vst.msk [vmem:[#allocation3 + $0x121] sm:$0xff] %vm170_vm3, %v6785_v57  ;;  %v22326_v63 = vpop.f32.mrb[24].mxu0  ;;  %22416 = vmatprep.mubr.msk.f32.mxu1 %vm170_vm3, %v6977_v41 }
 0x545   :  { %v6788_v42 = vadd.f32 %v22326_v63, %v27671_v49  ;;  %v6493_v0 = vpop.f32.mrb[25].mxu0  ;;  %22417 = vmatmul.mubr.msk.f32.gmra.mrb[28].mxu1 %vm170_vm3, %v6978_v2 }
 0x546   :  { %v6787_v6 = vadd.f32 %v27671_v49, %v6493_v0  ;;  %v6980_v3 = vld [vmem:[#allocation3 + $0x111] sm:$0xff] }
 0x547   :  { %6853 = vst.msk [vmem:[#allocation3 + $0x141] sm:$0xff] %vm170_vm3, %v6788_v42  ;;  %v6979_v7 = vld [vmem:[#allocation3 + $0x109] sm:$0xff] }
 0x548   :  { %6852 = vst.msk [vmem:[#allocation3 + $0x139] sm:$0xff] %vm170_vm3, %v6787_v6  ;;  %v22329_v61 = vpop.f32.mrb[26].mxu0  ;;  %22419 = vmatprep.mubr.msk.f32.mxu1 %vm170_vm3, %v6979_v7 }
 0x549   :  { %v6790_v5 = vadd.f32 %v22329_v61, %v27671_v49  ;;  %v6503_v8 = vpop.f32.mrb[27].mxu0  ;;  %22420 = vmatmul.mubr.msk.f32.gmra.mrb[30].mxu1 %vm170_vm3, %v6980_v3 }
 0x54a   :  { %v6789_v4 = vadd.f32 %v27671_v49, %v6503_v8  ;;  %v6982_v12 = vld [vmem:[#allocation3 + $0x129] sm:$0xff] }
 0x54b   :  { %6855 = vst.msk [vmem:[#allocation3 + $0x159] sm:$0xff] %vm170_vm3, %v6790_v5  ;;  %v6981_v10 = vld [vmem:[#allocation3 + $0x121] sm:$0xff] }
 0x54c   :  { %6854 = vst.msk [vmem:[#allocation3 + $0x151] sm:$0xff] %vm170_vm3, %v6789_v4  ;;  %v22332_v11 = vpop.f32.mrb[28].mxu0  ;;  %22422 = vmatprep.mubr.msk.f32.mxu1 %vm170_vm3, %v6981_v10 }
 0x54d   :  { %v6792_v13 = vadd.f32 %v22332_v11, %v27671_v49  ;;  %v6513_v14 = vpop.f32.mrb[29].mxu0  ;;  %22423 = vmatmul.mubr.msk.f32.gmra.mrb[32].mxu1 %vm170_vm3, %v6982_v12 }
 0x54e   :  { %v6791_v15 = vadd.f32 %v27671_v49, %v6513_v14  ;;  %v6984_v18 = vld [vmem:[#allocation3 + $0x141] sm:$0xff] }
 0x54f   :  { %6857 = vst.msk [vmem:[#allocation3 + $0x171] sm:$0xff] %vm170_vm3, %v6792_v13  ;;  %v6983_v16 = vld [vmem:[#allocation3 + $0x139] sm:$0xff] }
 0x550   :  { %6856 = vst.msk [vmem:[#allocation3 + $0x169] sm:$0xff] %vm170_vm3, %v6791_v15  ;;  %v22335_v17 = vpop.f32.mrb[30].mxu0  ;;  %22425 = vmatprep.mubr.msk.f32.mxu1 %vm170_vm3, %v6983_v16 }
 0x551   :  { %v6794_v19 = vadd.f32 %v22335_v17, %v27671_v49  ;;  %v6523_v20 = vpop.f32.mrb[31].mxu0  ;;  %22426 = vmatmul.mubr.msk.f32.gmra.mrb[34].mxu1 %vm170_vm3, %v6984_v18 }
 0x552   :  { %v6793_v21 = vadd.f32 %v27671_v49, %v6523_v20  ;;  %v6986_v24 = vld [vmem:[#allocation3 + $0x159] sm:$0xff] }
 0x553   :  { %6859 = vst.msk [vmem:[#allocation3 + $0x189] sm:$0xff] %vm170_vm3, %v6794_v19  ;;  %v6985_v22 = vld [vmem:[#allocation3 + $0x151] sm:$0xff] }
 0x554   :  { %6858 = vst.msk [vmem:[#allocation3 + $0x181] sm:$0xff] %vm170_vm3, %v6793_v21  ;;  %v22338_v23 = vpop.f32.mrb[32].mxu0  ;;  %22428 = vmatprep.mubr.msk.f32.mxu1 %vm170_vm3, %v6985_v22 }
 0x555   :  { %v6796_v25 = vadd.f32 %v22338_v23, %v27671_v49  ;;  %v6533_v26 = vpop.f32.mrb[33].mxu0  ;;  %22429 = vmatmul.mubr.msk.f32.gmra.mrb[36].mxu1 %vm170_vm3, %v6986_v24 }
 0x556   :  { %v6795_v27 = vadd.f32 %v27671_v49, %v6533_v26  ;;  %v6988_v33 = vld [vmem:[#allocation3 + $0x171] sm:$0xff] }
 0x557   :  { %6861 = vst.msk [vmem:[#allocation3 + $0x1d1] sm:$0xff] %vm170_vm3, %v6796_v25  ;;  %v6987_v30 = vld [vmem:[#allocation3 + $0x169] sm:$0xff] }
 0x558   :  { %6860 = vst.msk [vmem:[#allocation3 + $0x1c9] sm:$0xff] %vm170_vm3, %v6795_v27  ;;  %v22341_v32 = vpop.f32.mrb[34].mxu0  ;;  %22431 = vmatprep.mubr.msk.f32.mxu1 %vm170_vm3, %v6987_v30 }
 0x559   :  { %v6798_v34 = vadd.f32 %v22341_v32, %v27671_v49  ;;  %v6543_v35 = vpop.f32.mrb[35].mxu0  ;;  %22432 = vmatmul.mubr.msk.f32.gmra.mrb[38].mxu1 %vm170_vm3, %v6988_v33 }
 0x55a   :  { %v6797_v36 = vadd.f32 %v27671_v49, %v6543_v35  ;;  %22434 = vmatprep.mubr.msk.f32.mxu1 %vm170_vm3, %v6989_v31 }
 0x55b   :  { %6863 = vst.msk [vmem:[#allocation3 + $0x1e9] sm:$0xff] %vm170_vm3, %v6798_v34 }
 0x55c   :  { %6862 = vst.msk [vmem:[#allocation3 + $0x1e1] sm:$0xff] %vm170_vm3, %v6797_v36  ;;  %v22344_v38 = vpop.f32.mrb[36].mxu0 }
 0x55d   :  { %v6800_v40 = vadd.f32 %v22344_v38, %v27671_v49  ;;  %v6553_v50 = vpop.f32.mrb[37].mxu0  ;;  %22435 = vmatmul.mubr.msk.f32.gmra.mrb[40].mxu1 %vm170_vm3, %v6990_v37 }
 0x55e   :  { %v6799_v51 = vadd.f32 %v27671_v49, %v6553_v50  ;;  %v6992_v54 = vld [vmem:[#allocation3 + $0x1d1] sm:$0xff] }
 0x55f   :  { %6865 = vst.msk [vmem:[#allocation3 + $0x201] sm:$0xff] %vm170_vm3, %v6800_v40  ;;  %v6991_v52 = vld [vmem:[#allocation3 + $0x1c9] sm:$0xff] }
 0x560   :  { %6864 = vst.msk [vmem:[#allocation3 + $0x1f9] sm:$0xff] %vm170_vm3, %v6799_v51  ;;  %v22347_v53 = vpop.f32.mrb[38].mxu0  ;;  %22437 = vmatprep.mubr.msk.f32.mxu1 %vm170_vm3, %v6991_v52 }
 0x561   :  { %v6802_v55 = vadd.f32 %v22347_v53, %v27671_v49  ;;  %v6563_v56 = vpop.f32.mrb[39].mxu0  ;;  %22438 = vmatmul.mubr.msk.f32.gmra.mrb[42].mxu1 %vm170_vm3, %v6992_v54 }
 0x562   :  { %v6801_v29 = vadd.f32 %v27671_v49, %v6563_v56  ;;  %v6994_v58 = vld [vmem:[#allocation3 + $0x1e9] sm:$0xff] }
 0x563   :  { %6867 = vst.msk [vmem:[#allocation3 + $0x219] sm:$0xff] %vm170_vm3, %v6802_v55  ;;  %v6993_v59 = vld [vmem:[#allocation3 + $0x1e1] sm:$0xff] }
 0x564   :  { %6866 = vst.msk [vmem:[#allocation3 + $0x211] sm:$0xff] %vm170_vm3, %v6801_v29  ;;  %v22350_v62 = vpop.f32.mrb[40].mxu0  ;;  %22440 = vmatprep.mubr.msk.f32.mxu1 %vm170_vm3, %v6993_v59 }
 0x565   :  { %v6804_v28 = vadd.f32 %v22350_v62, %v27671_v49  ;;  %v6573_v57 = vpop.f32.mrb[41].mxu0  ;;  %22441 = vmatmul.mubr.msk.f32.gmra.mrb[44].mxu1 %vm170_vm3, %v6994_v58 }
 0x566   :  { %v6803_v41 = vadd.f32 %v27671_v49, %v6573_v57  ;;  %v6996_v42 = vld [vmem:[#allocation3 + $0x201] sm:$0xff] }
 0x567   :  { %6869 = vst.msk [vmem:[#allocation3 + $0x231] sm:$0xff] %vm170_vm3, %v6804_v28  ;;  %v6995_v63 = vld [vmem:[#allocation3 + $0x1f9] sm:$0xff] }
 0x568   :  { %6868 = vst.msk [vmem:[#allocation3 + $0x229] sm:$0xff] %vm170_vm3, %v6803_v41  ;;  %v22353_v2 = vpop.f32.mrb[42].mxu0  ;;  %22443 = vmatprep.mubr.msk.f32.mxu1 %vm170_vm3, %v6995_v63 }
 0x569   :  { %v6806_v0 = vadd.f32 %v22353_v2, %v27671_v49  ;;  %v6583_v6 = vpop.f32.mrb[43].mxu0  ;;  %22444 = vmatmul.mubr.msk.f32.gmra.mrb[46].mxu1 %vm170_vm3, %v6996_v42 }
 0x56a   :  { %v6805_v7 = vadd.f32 %v27671_v49, %v6583_v6  ;;  %v6998_v5 = vld [vmem:[#allocation3 + $0x219] sm:$0xff] }
 0x56b   :  { %6871 = vst.msk [vmem:[#allocation3 + $0x249] sm:$0xff] %vm170_vm3, %v6806_v0  ;;  %v6997_v61 = vld [vmem:[#allocation3 + $0x211] sm:$0xff] }
 0x56c   :  { %6870 = vst.msk [vmem:[#allocation3 + $0x241] sm:$0xff] %vm170_vm3, %v6805_v7  ;;  %v22356_v3 = vpop.f32.mrb[44].mxu0  ;;  %22446 = vmatprep.mubr.msk.f32.mxu1 %vm170_vm3, %v6997_v61 }
 0x56d   :  { %v6808_v8 = vadd.f32 %v22356_v3, %v27671_v49  ;;  %v6593_v4 = vpop.f32.mrb[45].mxu0  ;;  %22447 = vmatmul.mubr.msk.f32.gmra.mrb[48].mxu1 %vm170_vm3, %v6998_v5 }
 0x56e   :  { %v6807_v10 = vadd.f32 %v27671_v49, %v6593_v4  ;;  %v7000_v13 = vld [vmem:[#allocation3 + $0x231] sm:$0xff] }
 0x56f   :  { %6873 = vst.msk [vmem:[#allocation3 + $0x261] sm:$0xff] %vm170_vm3, %v6808_v8  ;;  %v6999_v11 = vld [vmem:[#allocation3 + $0x229] sm:$0xff] }
 0x570   :  { %6872 = vst.msk [vmem:[#allocation3 + $0x259] sm:$0xff] %vm170_vm3, %v6807_v10  ;;  %v22359_v12 = vpop.f32.mrb[46].mxu0  ;;  %22449 = vmatprep.mubr.msk.f32.mxu1 %vm170_vm3, %v6999_v11 }
 0x571   :  { %v6810_v14 = vadd.f32 %v22359_v12, %v27671_v49  ;;  %v6603_v15 = vpop.f32.mrb[47].mxu0  ;;  %22450 = vmatmul.mubr.msk.f32.gmra.mrb[50].mxu1 %vm170_vm3, %v7000_v13 }
 0x572   :  { %v6809_v16 = vadd.f32 %v27671_v49, %v6603_v15  ;;  %v7002_v19 = vld [vmem:[#allocation3 + $0x249] sm:$0xff]  ;;  %v6892_v15 = vld [vmem:[#allocation3] sm:$0xff] }
 0x573   :  { %6875 = vst.msk [vmem:[#allocation3 + $0x279] sm:$0xff] %vm170_vm3, %v6810_v14  ;;  %v7001_v17 = vld [vmem:[#allocation3 + $0x241] sm:$0xff] }
 0x574   :  { %6874 = vst.msk [vmem:[#allocation3 + $0x271] sm:$0xff] %vm170_vm3, %v6809_v16  ;;  %v22362_v18 = vpop.f32.mrb[48].mxu0  ;;  %22452 = vmatprep.mubr.msk.f32.mxu1 %vm170_vm3, %v7001_v17  ;;  %v27881_v17 = vld [vmem:[%s30666_s3 + $0x18] sm:$0xff] }
 0x575   :  { %v6812_v20 = vadd.f32 %v22362_v18, %v27671_v49  ;;  %v6613_v21 = vpop.f32.mrb[49].mxu0  ;;  %22453 = vmatmul.mubr.msk.f32.gmra.mrb[52].mxu1 %vm170_vm3, %v7002_v19  ;;  %v27884_v18 = vld [vmem:[#allocation3 + $0x18] sm:$0xff]  ;;  %v27890_v19 = vld [vmem:[#allocation3 + $0x20] sm:$0xff] }
 0x576   :  { %v6811_v22 = vadd.f32 %v27671_v49, %v6613_v21  ;;  %v7004_v25 = vld [vmem:[#allocation3 + $0x261] sm:$0xff]  ;;  %v27898_v21 = vld [vmem:[#allocation3 + $0x38] sm:$0xff] }
 0x577   :  { %6877 = vst.msk [vmem:[#allocation3 + $0x291] sm:$0xff] %vm170_vm3, %v6812_v20  ;;  %v7003_v23 = vld [vmem:[#allocation3 + $0x259] sm:$0xff]  ;;  %v27894_v20 = vld [vmem:[#allocation3 + $0x30] sm:$0xff] }
 0x578   :  { %6876 = vst.msk [vmem:[#allocation3 + $0x289] sm:$0xff] %vm170_vm3, %v6811_v22  ;;  %v22365_v24 = vpop.f32.mrb[50].mxu0  ;;  %22455 = vmatprep.mubr.msk.f32.mxu1 %vm170_vm3, %v7003_v23  ;;  %v27906_v22 = vld [vmem:[#allocation3 + $0x50] sm:$0xff]  ;;  %v27910_v23 = vld [vmem:[#allocation3 + $0x60] sm:$0xff] }
 0x579   :  { %v6814_v26 = vadd.f32 %v22365_v24, %v27671_v49  ;;  %v6623_v27 = vpop.f32.mrb[51].mxu0  ;;  %22456 = vmatmul.mubr.msk.f32.gmra.mrb[54].mxu1 %vm170_vm3, %v7004_v25  ;;  %v27914_v24 = vld [vmem:[#allocation3 + $0x68] sm:$0xff]  ;;  %v27918_v25 = vld [vmem:[#allocation3 + $0x78] sm:$0xff] }
 0x57a   :  { %v6813_v30 = vadd.f32 %v27671_v49, %v6623_v27  ;;  %v7006_v33 = vld [vmem:[#allocation3 + $0x279] sm:$0xff]  ;;  %v27926_v27 = vld [vmem:[#allocation3 + $0x90] sm:$0xff] }
 0x57b   :  { %6879 = vst.msk [vmem:[#allocation3 + $0x2a9] sm:$0xff] %vm170_vm3, %v6814_v26  ;;  %v7005_v31 = vld [vmem:[#allocation3 + $0x271] sm:$0xff]  ;;  %v27922_v26 = vld [vmem:[#allocation3 + $0x80] sm:$0xff] }
 0x57c   :  { %6878 = vst.msk [vmem:[#allocation3 + $0x2a1] sm:$0xff] %vm170_vm3, %v6813_v30  ;;  %v22368_v32 = vpop.f32.mrb[52].mxu0  ;;  %22458 = vmatprep.mubr.msk.f32.mxu1 %vm170_vm3, %v7005_v31  ;;  %v27930_v30 = vld [vmem:[#allocation3 + $0x98] sm:$0xff]  ;;  %v27934_v31 = vld [vmem:[#allocation3 + $0xa8] sm:$0xff] }
 0x57d   :  { %v6816_v34 = vadd.f32 %v22368_v32, %v27671_v49  ;;  %v6633_v35 = vpop.f32.mrb[53].mxu0  ;;  %22459 = vmatmul.mubr.msk.f32.gmra.mrb[56].mxu1 %vm170_vm3, %v7006_v33  ;;  %v27938_v32 = vld [vmem:[#allocation3 + $0xb0] sm:$0xff]  ;;  %v27942_v33 = vld [vmem:[#allocation3 + $0xc0] sm:$0xff] }
 0x57e   :  { %v6815_v36 = vadd.f32 %v27671_v49, %v6633_v35  ;;  %v7008_v40 = vld [vmem:[#allocation3 + $0x291] sm:$0xff] }
 0x57f   :  { %6881 = vst.msk [vmem:[#allocation3 + $0x2c1] sm:$0xff] %vm170_vm3, %v6816_v34  ;;  %v7007_v37 = vld [vmem:[#allocation3 + $0x289] sm:$0xff]  ;;  %v27950_v35 = vld [vmem:[#allocation3 + $0xd8] sm:$0xff] }
 0x580   :  { %6880 = vst.msk [vmem:[#allocation3 + $0x2b9] sm:$0xff] %vm170_vm3, %v6815_v36  ;;  %v22371_v38 = vpop.f32.mrb[54].mxu0  ;;  %22461 = vmatprep.mubr.msk.f32.mxu1 %vm170_vm3, %v7007_v37  ;;  %v27946_v34 = vld [vmem:[#allocation3 + $0xc8] sm:$0xff]  ;;  %v27954_v36 = vld [vmem:[#allocation3 + $0xe0] sm:$0xff]  ;;  %v27958_v37 = vld [vmem:[#allocation3 + $0xf0] sm:$0xff] }
 0x581   :  { %v6818_v50 = vadd.f32 %v22371_v38, %v27671_v49  ;;  %v6643_v51 = vpop.f32.mrb[55].mxu0  ;;  %22462 = vmatmul.mubr.msk.f32.gmra.mrb[58].mxu1 %vm170_vm3, %v7008_v40  ;;  %v27962_v38 = vld [vmem:[#allocation3 + $0xf8] sm:$0xff]  ;;  %v27966_v40 = vld [vmem:[#allocation3 + $0x108] sm:$0xff] }
 0x582   :  { %v6817_v52 = vadd.f32 %v27671_v49, %v6643_v51  ;;  %v7010_v55 = vld [vmem:[#allocation3 + $0x2a9] sm:$0xff]  ;;  %v27974_v51 = vld [vmem:[#allocation3 + $0x120] sm:$0xff] }
 0x583   :  { %6883 = vst.msk [vmem:[#allocation3 + $0x2d9] sm:$0xff] %vm170_vm3, %v6818_v50  ;;  %v7009_v53 = vld [vmem:[#allocation3 + $0x2a1] sm:$0xff]  ;;  %v27970_v50 = vld [vmem:[#allocation3 + $0x110] sm:$0xff] }
 0x584   :  { %6882 = vst.msk [vmem:[#allocation3 + $0x2d1] sm:$0xff] %vm170_vm3, %v6817_v52  ;;  %v22374_v54 = vpop.f32.mrb[56].mxu0  ;;  %22464 = vmatprep.mubr.msk.f32.mxu1 %vm170_vm3, %v7009_v53  ;;  %v27978_v52 = vld [vmem:[#allocation3 + $0x128] sm:$0xff]  ;;  %v27982_v53 = vld [vmem:[#allocation3 + $0x138] sm:$0xff] }
 0x585   :  { %v24103_v56 = vadd.f32 %v22374_v54, %v27652_v43  ;;  %v6653_v29 = vpop.f32.mrb[57].mxu0  ;;  %22465 = vmatmul.mubr.msk.f32.gmra.mrb[60].mxu1 %vm170_vm3, %v7010_v55  ;;  %v27986_v54 = vld [vmem:[#allocation3 + $0x140] sm:$0xff]  ;;  %v27990_v55 = vld [vmem:[#allocation3 + $0x150] sm:$0xff] }
 0x586   :  { %v24104_v59 = vadd.f32 %v6653_v29, %v27654_v44  ;;  %v7012_v41 = vld [vmem:[#allocation3 + $0x2c1] sm:$0xff] }
 0x587   :  { %v6820_v62 = vadd.f32 %v24103_v56, %v27671_v49  ;;  %v7011_v58 = vld [vmem:[#allocation3 + $0x2b9] sm:$0xff]  ;;  %v27998_v29 = vld [vmem:[#allocation3 + $0x168] sm:$0xff] }
 0x588   :  { %v6819_v28 = vadd.f32 %v24104_v59, %v27671_v49  ;;  %v22377_v57 = vpop.f32.mrb[58].mxu0  ;;  %22467 = vmatprep.mubr.msk.f32.mxu1 %vm170_vm3, %v7011_v58  ;;  %v27994_v56 = vld [vmem:[#allocation3 + $0x158] sm:$0xff]  ;;  %v6924_v59 = vld [vmem:[#allocation3 + $0x1b0] sm:$0xff] }
 0x589   :  { %6885 = vst.msk [vmem:[#allocation3 + $0x2f1] sm:$0xff] %vm170_vm3, %v6820_v62  ;;  %v24105_v63 = vadd.f32 %v22377_v57, %v27656_v45  ;;  %v6663_v2 = vpop.f32.mrb[59].mxu0  ;;  %22468 = vmatmul.mubr.msk.f32.gmra.mrb[62].mxu1 %vm170_vm3, %v7012_v41  ;;  %v28002_v62 = vld [vmem:[#allocation3 + $0x170] sm:$0xff]  ;;  %v6925_v58 = vld [vmem:[#allocation3 + $0x1b8] sm:$0xff]  ;;  %v28016_v41 = vld [vmem:[#allocation3 + $0x1e0] sm:$0xff] }
 0x58a   :  { %6884 = vst.msk [vmem:[#allocation3 + $0x2e9] sm:$0xff] %vm170_vm3, %v6819_v28  ;;  %v24106_v43 = vadd.f32 %v6663_v2, %v27658_v46  ;;  %v7014_v7 = vld [vmem:[#allocation3 + $0x2d9] sm:$0xff]  ;;  %v28008_v28 = vld [vmem:[#allocation3 + $0x1c8] sm:$0xff]  ;;  %v28012_v57 = vld [vmem:[#allocation3 + $0x1d0] sm:$0xff] }
 0x58b   :  { %v6822_v44 = vadd.f32 %v24105_v63, %v27671_v49  ;;  %v7013_v42 = vld [vmem:[#allocation3 + $0x2d1] sm:$0xff]  ;;  %v28020_v63 = vld [vmem:[#allocation3 + $0x1e8] sm:$0xff] }
 0x58c   :  { %v6821_v0 = vadd.f32 %v24106_v43, %v27671_v49  ;;  %v22380_v6 = vpop.f32.mrb[60].mxu0  ;;  %22470 = vmatprep.mubr.msk.f32.mxu1 %vm170_vm3, %v7013_v42  ;;  %v28024_v2 = vld [vmem:[#allocation3 + $0x1f8] sm:$0xff]  ;;  %v28028_v43 = vld [vmem:[#allocation3 + $0x200] sm:$0xff] }
 0x58d   :  { %6887 = vst.msk [vmem:[#allocation3 + $0x309] sm:$0xff] %vm170_vm3, %v6822_v44  ;;  %v24107_v45 = vadd.f32 %v22380_v6, %v27660_v47  ;;  %v6673_v61 = vpop.f32.mrb[61].mxu0  ;;  %22471 = vmatmul.mubr.msk.f32.gmra.mrb[64].mxu1 %vm170_vm3, %v7014_v7  ;;  %v28032_v44 = vld [vmem:[#allocation3 + $0x210] sm:$0xff]  ;;  %v28036_v42 = vld [vmem:[#allocation3 + $0x218] sm:$0xff]  ;;  %v28048_v7 = vld [vmem:[#allocation3 + $0x240] sm:$0xff] }
 0x58e   :  { %6886 = vst.msk [vmem:[#allocation3 + $0x301] sm:$0xff] %vm170_vm3, %v6821_v0  ;;  %v24108_v46 = vadd.f32 %v6673_v61, %v27662_v9  ;;  %v28040_v0 = vld [vmem:[#allocation3 + $0x228] sm:$0xff]  ;;  %v28044_v6 = vld [vmem:[#allocation3 + $0x230] sm:$0xff]  ;;  %v28056_v61 = vld [vmem:[#allocation3 + $0x258] sm:$0xff] }
 0x58f   :  { %v6824_v3 = vadd.f32 %v24107_v45, %v27671_v49  ;;  %v28052_v45 = vld [vmem:[#allocation3 + $0x248] sm:$0xff] }
 0x590   :  { %v6823_v5 = vadd.f32 %v24108_v46, %v27671_v49  ;;  %v22383_v8 = vpop.f32.mrb[62].mxu0  ;;  %v7016_v12 = vld [vmem:[#allocation3 + $0x2f1] sm:$0xff]  ;;  %v28060_v46 = vld [vmem:[#allocation3 + $0x260] sm:$0xff] }
 0x591   :  { %6889 = vst.msk [vmem:[#allocation3 + $0x321] sm:$0xff] %vm170_vm3, %v6824_v3  ;;  %v24109_v4 = vadd.f32 %v22383_v8, %v27664_v48  ;;  %v6683_v10 = vpop.f32.mrb[63].mxu0  ;;  %v7015_v11 = vld [vmem:[#allocation3 + $0x2e9] sm:$0xff] }
 0x592   :  { %6888 = vst.msk [vmem:[#allocation3 + $0x319] sm:$0xff] %vm170_vm3, %v6823_v5  ;;  %v24110_v47 = vadd.f32 %v6683_v10, %v27666_v1  ;;  %22473 = vmatprep.mubr.msk.f32.mxu1 %vm170_vm3, %v7015_v11  ;;  %v28064_v3 = vld [vmem:[#allocation3 + $0x270] sm:$0xff]  ;;  %v28068_v5 = vld [vmem:[#allocation3 + $0x278] sm:$0xff]  ;;  %v28072_v8 = vld [vmem:[#allocation3 + $0x288] sm:$0xff] }
 0x593   :  { %v6826_v9 = vadd.f32 %v24109_v4, %v27671_v49  ;;  %22474 = vmatmul.mubr.msk.f32.gmra.mrb[66].mxu1 %vm170_vm3, %v7016_v12  ;;  %v28076_v4 = vld [vmem:[#allocation3 + $0x290] sm:$0xff]  ;;  %v28080_v10 = vld [vmem:[#allocation3 + $0x2a0] sm:$0xff]  ;;  %v28084_v11 = vld [vmem:[#allocation3 + $0x2a8] sm:$0xff] }
 0x594   :  { %v6825_v13 = vadd.f32 %v24110_v47, %v27671_v49  ;;  %v7018_v48 = vld [vmem:[#allocation3 + $0x309] sm:$0xff]  ;;  %v28088_v47 = vld [vmem:[#allocation3 + $0x2b8] sm:$0xff]  ;;  %v28092_v12 = vld [vmem:[#allocation3 + $0x2c0] sm:$0xff] }
 0x595   :  { %6891 = vst.msk [vmem:[#allocation3 + $0x339] sm:$0xff] %vm170_vm3, %v6826_v9  ;;  %v7017_v14 = vld [vmem:[#allocation3 + $0x301] sm:$0xff]  ;;  %v28096_v9 = vld [vmem:[#allocation3 + $0x2d0] sm:$0xff] }
 0x596   :  { %6890 = vst.msk [vmem:[#allocation3 + $0x331] sm:$0xff] %vm170_vm3, %v6825_v13  ;;  %22476 = vmatprep.mubr.msk.f32.mxu1 %vm170_vm3, %v7017_v14  ;;  %v6893_v49 = vld [vmem:[#allocation3 + $0x8] sm:$0xff]  ;;  %v28100_v13 = vld [vmem:[#allocation3 + $0x2d8] sm:$0xff] }
 0x597   :  { %22477 = vmatmul.mubr.msk.f32.gmra.mrb[68].mxu1 %vm170_vm3, %v7018_v48  ;;  %v28104_v14 = vld [vmem:[#allocation3 + $0x2e8] sm:$0xff]  ;;  %v28108_v48 = vld [vmem:[#allocation3 + $0x2f0] sm:$0xff] }
 0x598   :  { %v7020_v16 = vld [vmem:[#allocation3 + $0x321] sm:$0xff] }
 0x599   :  { %v7019_v1 = vld [vmem:[#allocation3 + $0x319] sm:$0xff] }
 0x59a   :  { %22479 = vmatprep.mubr.msk.f32.mxu1 %vm170_vm3, %v7019_v1  ;;  %v28112_v1 = vld [vmem:[#allocation3 + $0x300] sm:$0xff] }
 0x59b   :  { %22480 = vmatmul.mubr.msk.f32.gmra.mrb[70].mxu1 %vm170_vm3, %v7020_v16  ;;  %v28120_v16 = vld [vmem:[#allocation3 + $0x318] sm:$0xff] }
 0x59c   :  { %22484 = vmatprep.mubr.msk.f32.mxu1 %vm170_vm3, %v6892_v15  ;;  %v28116_v15 = vld [vmem:[#allocation3 + $0x308] sm:$0xff]  ;;  %30977 = vst [vmem:[#allocation16_spill] sm:$0xff] %v28120_v16 }
 0x59d   :  { %30976 = vst [vmem:[#allocation15_spill] sm:$0xff] %v28116_v15 }
 0x59f   :  { %22485 = vmatmul.mubr.msk.f32.vlgmr.msra.gmra.mrb[8].mxu1 %vm170_vm3, %v6893_v49  ;;  %v8177_v49 = vld [vmem:[#allocation3 + $0x2] sm:$0xff] }
 0x5a0   :  { %22581 = vmatpush3.msra.mxu1 %v27684_v60  ;;  %22487 = vmatprep.mubr.msk.f32.mxu1 %vm170_vm3, %v27884_v18  ;;  %v27902_v60 = vld [vmem:[#allocation3 + $0x48] sm:$0xff] }
 0x5a1   :  { %22678 = vmatprep.subr.mxu1 %v27881_v17 }
 0x5a3   :  { %22488 = vmatmul.mubr.msk.f32.gmra.mrb[10].mxu1 %vm170_vm3, %v27890_v19 }
 0x5a4   :  { %22490 = vmatprep.mubr.msk.f32.mxu1 %vm170_vm3, %v27894_v20 }
 0x5a7   :  { %22491 = vmatmul.mubr.msk.f32.gmra.mrb[12].mxu1 %vm170_vm3, %v27898_v21 }
 0x5a8   :  { %22493 = vmatprep.mubr.msk.f32.mxu1 %vm170_vm3, %v27902_v60 }
 0x5ab   :  { %22494 = vmatmul.mubr.msk.f32.gmra.mrb[14].mxu1 %vm170_vm3, %v27906_v22 }
 0x5ac   :  { %22496 = vmatprep.mubr.msk.f32.mxu1 %vm170_vm3, %v27910_v23 }
 0x5af   :  { %22497 = vmatmul.mubr.msk.f32.gmra.mrb[16].mxu1 %vm170_vm3, %v27914_v24 }
 0x5b0   :  { %22499 = vmatprep.mubr.msk.f32.mxu1 %vm170_vm3, %v27918_v25 }
 0x5b3   :  { %22500 = vmatmul.mubr.msk.f32.gmra.mrb[18].mxu1 %vm170_vm3, %v27922_v26 }
 0x5b4   :  { %22502 = vmatprep.mubr.msk.f32.mxu1 %vm170_vm3, %v27926_v27 }
 0x5b7   :  { %22503 = vmatmul.mubr.msk.f32.gmra.mrb[20].mxu1 %vm170_vm3, %v27930_v30 }
 0x5b8   :  { %22505 = vmatprep.mubr.msk.f32.mxu1 %vm170_vm3, %v27934_v31 }
 0x5bb   :  { %22506 = vmatmul.mubr.msk.f32.gmra.mrb[22].mxu1 %vm170_vm3, %v27938_v32 }
 0x5bc   :  { %22508 = vmatprep.mubr.msk.f32.mxu1 %vm170_vm3, %v27942_v33 }
 0x5bf   :  { %22509 = vmatmul.mubr.msk.f32.gmra.mrb[24].mxu1 %vm170_vm3, %v27946_v34 }
 0x5c0   :  { %22511 = vmatprep.mubr.msk.f32.mxu1 %vm170_vm3, %v27950_v35 }
 0x5c3   :  { %22512 = vmatmul.mubr.msk.f32.gmra.mrb[26].mxu1 %vm170_vm3, %v27954_v36 }
 0x5c4   :  { %22514 = vmatprep.mubr.msk.f32.mxu1 %vm170_vm3, %v27958_v37 }
 0x5c7   :  { %22515 = vmatmul.mubr.msk.f32.gmra.mrb[28].mxu1 %vm170_vm3, %v27962_v38 }
 0x5c8   :  { %22517 = vmatprep.mubr.msk.f32.mxu1 %vm170_vm3, %v27966_v40 }
 0x5cb   :  { %22518 = vmatmul.mubr.msk.f32.gmra.mrb[30].mxu1 %vm170_vm3, %v27970_v50 }
 0x5cc   :  { %22520 = vmatprep.mubr.msk.f32.mxu1 %vm170_vm3, %v27974_v51 }
 0x5cf   :  { %22521 = vmatmul.mubr.msk.f32.gmra.mrb[32].mxu1 %vm170_vm3, %v27978_v52 }
 0x5d0   :  { %22523 = vmatprep.mubr.msk.f32.mxu1 %vm170_vm3, %v27982_v53 }
 0x5d3   :  { %22524 = vmatmul.mubr.msk.f32.gmra.mrb[34].mxu1 %vm170_vm3, %v27986_v54 }
 0x5d4   :  { %22526 = vmatprep.mubr.msk.f32.mxu1 %vm170_vm3, %v27990_v55 }
 0x5d7   :  { %22527 = vmatmul.mubr.msk.f32.gmra.mrb[36].mxu1 %vm170_vm3, %v27994_v56 }
 0x5d8   :  { %22529 = vmatprep.mubr.msk.f32.mxu1 %vm170_vm3, %v27998_v29 }
 0x5db   :  { %22530 = vmatmul.mubr.msk.f32.gmra.mrb[38].mxu1 %vm170_vm3, %v28002_v62 }
 0x5dc   :  { %22532 = vmatprep.mubr.msk.f32.mxu1 %vm170_vm3, %v6924_v59  ;;  %v28124_v59 = vld [vmem:[#allocation3 + $0x320] sm:$0xff] }
 0x5dd   :  { %30978 = vst [vmem:[#allocation17_spill] sm:$0xff] %v28124_v59 }
 0x5df   :  { %22533 = vmatmul.mubr.msk.f32.gmra.mrb[40].mxu1 %vm170_vm3, %v6925_v58  ;;  %v8178_v58 = vld [vmem:[#allocation3 + $0xa] sm:$0xff] }
 0x5e0   :  { %22535 = vmatprep.mubr.msk.f32.mxu1 %vm170_vm3, %v28008_v28 }
 0x5e3   :  { %22536 = vmatmul.mubr.msk.f32.gmra.mrb[42].mxu1 %vm170_vm3, %v28012_v57 }
 0x5e4   :  { %22538 = vmatprep.mubr.msk.f32.mxu1 %vm170_vm3, %v28016_v41 }
 0x5e7   :  { %22539 = vmatmul.mubr.msk.f32.gmra.mrb[44].mxu1 %vm170_vm3, %v28020_v63 }
 0x5e8   :  { %22541 = vmatprep.mubr.msk.f32.mxu1 %vm170_vm3, %v28024_v2 }
 0x5eb   :  { %22542 = vmatmul.mubr.msk.f32.gmra.mrb[46].mxu1 %vm170_vm3, %v28028_v43 }
 0x5ec   :  { %22544 = vmatprep.mubr.msk.f32.mxu1 %vm170_vm3, %v28032_v44 }
 0x5ef   :  { %22545 = vmatmul.mubr.msk.f32.gmra.mrb[48].mxu1 %vm170_vm3, %v28036_v42 }
 0x5f0   :  { %22547 = vmatprep.mubr.msk.f32.mxu1 %vm170_vm3, %v28040_v0 }
 0x5f3   :  { %22548 = vmatmul.mubr.msk.f32.gmra.mrb[50].mxu1 %vm170_vm3, %v28044_v6 }
 0x5f4   :  { %22550 = vmatprep.mubr.msk.f32.mxu1 %vm170_vm3, %v28048_v7 }
 0x5f7   :  { %22551 = vmatmul.mubr.msk.f32.gmra.mrb[52].mxu1 %vm170_vm3, %v28052_v45 }
 0x5f8   :  { %22553 = vmatprep.mubr.msk.f32.mxu1 %vm170_vm3, %v28056_v61 }
 0x5fb   :  { %22554 = vmatmul.mubr.msk.f32.gmra.mrb[54].mxu1 %vm170_vm3, %v28060_v46 }
 0x5fc   :  { %22556 = vmatprep.mubr.msk.f32.mxu1 %vm170_vm3, %v28064_v3 }
 0x5ff   :  { %22557 = vmatmul.mubr.msk.f32.gmra.mrb[56].mxu1 %vm170_vm3, %v28068_v5 }
 0x600   :  { %22559 = vmatprep.mubr.msk.f32.mxu1 %vm170_vm3, %v28072_v8 }
 0x603   :  { %22560 = vmatmul.mubr.msk.f32.gmra.mrb[58].mxu1 %vm170_vm3, %v28076_v4 }
 0x604   :  { %22562 = vmatprep.mubr.msk.f32.mxu1 %vm170_vm3, %v28080_v10 }
 0x607   :  { %22563 = vmatmul.mubr.msk.f32.gmra.mrb[60].mxu1 %vm170_vm3, %v28084_v11 }
 0x608   :  { %22565 = vmatprep.mubr.msk.f32.mxu1 %vm170_vm3, %v28088_v47 }
 0x60b   :  { %22566 = vmatmul.mubr.msk.f32.gmra.mrb[62].mxu1 %vm170_vm3, %v28092_v12 }
 0x60c   :  { %22568 = vmatprep.mubr.msk.f32.mxu1 %vm170_vm3, %v28096_v9 }
 0x60f   :  { %22569 = vmatmul.mubr.msk.f32.gmra.mrb[64].mxu1 %vm170_vm3, %v28100_v13 }
 0x610   :  { %22571 = vmatprep.mubr.msk.f32.mxu1 %vm170_vm3, %v28104_v14 }
 0x613   :  { %22572 = vmatmul.mubr.msk.f32.gmra.mrb[66].mxu1 %vm170_vm3, %v28108_v48 }
 0x614   :  { %22574 = vmatprep.mubr.msk.f32.mxu1 %vm170_vm3, %v28112_v1 }
 0x617   :  { %22575 = vmatmul.mubr.msk.f32.gmra.mrb[68].mxu1 %vm170_vm3, %v28116_v15  ;;  %v28135_v15 = vld [vmem:[#allocation3 + $0x1a] sm:$0xff] }
 0x618   :  { %22577 = vmatprep.mubr.msk.f32.mxu1 %vm170_vm3, %v28120_v16  ;;  %30979 = vst [vmem:[#allocation18_spill] sm:$0xff] %v28135_v15  ;;  %v28253_v16 = vld [vmem:[#allocation3 + $0x172] sm:$0xff] }
 0x619   :  { %31008 = vst [vmem:[#allocation47_spill] sm:$0xff] %v28253_v16 }
 0x61b   :  { %22578 = vmatmul.mubr.msk.f32.gmra.mrb[70].mxu1 %vm170_vm3, %v28124_v59  ;;  %v28141_v59 = vld [vmem:[#allocation3 + $0x22] sm:$0xff] }
 0x61c   :  { %22582 = vmatprep.mubr.msk.f32.mxu1 %vm170_vm3, %v8177_v49  ;;  %30980 = vst [vmem:[#allocation19_spill] sm:$0xff] %v28141_v59  ;;  %v28145_v49 = vld [vmem:[#allocation3 + $0x32] sm:$0xff] }
 0x61d   :  { %30981 = vst [vmem:[#allocation20_spill] sm:$0xff] %v28145_v49 }
 0x61f   :  { %22583 = vmatmul.mubr.msk.f32.vlgmr.msra.gmra.mrb[8].mxu1 %vm170_vm3, %v8178_v58  ;;  %v28149_v58 = vld [vmem:[#allocation3 + $0x3a] sm:$0xff] }
 0x620   :  { %22679 = vmatpush3.msra.mxu1 %v27881_v17  ;;  %22585 = vmatprep.mubr.msk.f32.mxu1 %vm170_vm3, %v28135_v15  ;;  %30982 = vst [vmem:[#allocation21_spill] sm:$0xff] %v28149_v58  ;;  %v28153_v17 = vld [vmem:[#allocation3 + $0x4a] sm:$0xff]  ;;  %v28157_v15 = vld [vmem:[#allocation3 + $0x52] sm:$0xff] }
 0x621   :  { %22776 = vmatprep.subr.mxu1 %v28132_v39  ;;  %30983 = vst [vmem:[#allocation22_spill] sm:$0xff] %v28153_v17  ;;  %30984 = vst [vmem:[#allocation23_spill] sm:$0xff] %v28157_v15 }
 0x623   :  { %22586 = vmatmul.mubr.msk.f32.gmra.mrb[10].mxu1 %vm170_vm3, %v28141_v59  ;;  %v28161_v59 = vld [vmem:[#allocation3 + $0x62] sm:$0xff] }
 0x624   :  { %22588 = vmatprep.mubr.msk.f32.mxu1 %vm170_vm3, %v28145_v49  ;;  %30985 = vst [vmem:[#allocation24_spill] sm:$0xff] %v28161_v59  ;;  %v28165_v49 = vld [vmem:[#allocation3 + $0x6a] sm:$0xff] }
 0x625   :  { %30986 = vst [vmem:[#allocation25_spill] sm:$0xff] %v28165_v49 }
 0x627   :  { %22589 = vmatmul.mubr.msk.f32.gmra.mrb[12].mxu1 %vm170_vm3, %v28149_v58  ;;  %v28169_v58 = vld [vmem:[#allocation3 + $0x7a] sm:$0xff] }
 0x628   :  { %22591 = vmatprep.mubr.msk.f32.mxu1 %vm170_vm3, %v28153_v17  ;;  %30987 = vst [vmem:[#allocation26_spill] sm:$0xff] %v28169_v58  ;;  %v28173_v17 = vld [vmem:[#allocation3 + $0x82] sm:$0xff] }
 0x629   :  { %30988 = vst [vmem:[#allocation27_spill] sm:$0xff] %v28173_v17 }
 0x62b   :  { %22592 = vmatmul.mubr.msk.f32.gmra.mrb[14].mxu1 %vm170_vm3, %v28157_v15  ;;  %v28177_v15 = vld [vmem:[#allocation3 + $0x92] sm:$0xff] }
 0x62c   :  { %22594 = vmatprep.mubr.msk.f32.mxu1 %vm170_vm3, %v28161_v59  ;;  %30989 = vst [vmem:[#allocation28_spill] sm:$0xff] %v28177_v15  ;;  %v28181_v59 = vld [vmem:[#allocation3 + $0x9a] sm:$0xff] }
 0x62d   :  { %30990 = vst [vmem:[#allocation29_spill] sm:$0xff] %v28181_v59 }
 0x62f   :  { %22595 = vmatmul.mubr.msk.f32.gmra.mrb[16].mxu1 %vm170_vm3, %v28165_v49  ;;  %v28185_v49 = vld [vmem:[#allocation3 + $0xaa] sm:$0xff] }
 0x630   :  { %22597 = vmatprep.mubr.msk.f32.mxu1 %vm170_vm3, %v28169_v58  ;;  %30991 = vst [vmem:[#allocation30_spill] sm:$0xff] %v28185_v49  ;;  %v28189_v58 = vld [vmem:[#allocation3 + $0xb2] sm:$0xff] }
 0x631   :  { %30992 = vst [vmem:[#allocation31_spill] sm:$0xff] %v28189_v58 }
 0x633   :  { %22598 = vmatmul.mubr.msk.f32.gmra.mrb[18].mxu1 %vm170_vm3, %v28173_v17  ;;  %v28193_v17 = vld [vmem:[#allocation3 + $0xc2] sm:$0xff] }
 0x634   :  { %22600 = vmatprep.mubr.msk.f32.mxu1 %vm170_vm3, %v28177_v15  ;;  %30993 = vst [vmem:[#allocation32_spill] sm:$0xff] %v28193_v17  ;;  %v28197_v15 = vld [vmem:[#allocation3 + $0xca] sm:$0xff] }
 0x635   :  { %30994 = vst [vmem:[#allocation33_spill] sm:$0xff] %v28197_v15 }
 0x637   :  { %22601 = vmatmul.mubr.msk.f32.gmra.mrb[20].mxu1 %vm170_vm3, %v28181_v59  ;;  %v28201_v59 = vld [vmem:[#allocation3 + $0xda] sm:$0xff] }
 0x638   :  { %22603 = vmatprep.mubr.msk.f32.mxu1 %vm170_vm3, %v28185_v49  ;;  %30995 = vst [vmem:[#allocation34_spill] sm:$0xff] %v28201_v59  ;;  %v28205_v49 = vld [vmem:[#allocation3 + $0xe2] sm:$0xff] }
 0x639   :  { %30996 = vst [vmem:[#allocation35_spill] sm:$0xff] %v28205_v49 }
 0x63b   :  { %22604 = vmatmul.mubr.msk.f32.gmra.mrb[22].mxu1 %vm170_vm3, %v28189_v58  ;;  %v28209_v58 = vld [vmem:[#allocation3 + $0xf2] sm:$0xff] }
 0x63c   :  { %22606 = vmatprep.mubr.msk.f32.mxu1 %vm170_vm3, %v28193_v17  ;;  %30997 = vst [vmem:[#allocation36_spill] sm:$0xff] %v28209_v58  ;;  %v28213_v17 = vld [vmem:[#allocation3 + $0xfa] sm:$0xff] }
 0x63d   :  { %30998 = vst [vmem:[#allocation37_spill] sm:$0xff] %v28213_v17 }
 0x63f   :  { %22607 = vmatmul.mubr.msk.f32.gmra.mrb[24].mxu1 %vm170_vm3, %v28197_v15  ;;  %v28217_v15 = vld [vmem:[#allocation3 + $0x10a] sm:$0xff] }
 0x640   :  { %22609 = vmatprep.mubr.msk.f32.mxu1 %vm170_vm3, %v28201_v59  ;;  %30999 = vst [vmem:[#allocation38_spill] sm:$0xff] %v28217_v15  ;;  %v28221_v59 = vld [vmem:[#allocation3 + $0x112] sm:$0xff] }
 0x641   :  { %31000 = vst [vmem:[#allocation39_spill] sm:$0xff] %v28221_v59 }
 0x643   :  { %22610 = vmatmul.mubr.msk.f32.gmra.mrb[26].mxu1 %vm170_vm3, %v28205_v49  ;;  %v28225_v49 = vld [vmem:[#allocation3 + $0x122] sm:$0xff] }
 0x644   :  { %22612 = vmatprep.mubr.msk.f32.mxu1 %vm170_vm3, %v28209_v58  ;;  %31001 = vst [vmem:[#allocation40_spill] sm:$0xff] %v28225_v49  ;;  %v28229_v58 = vld [vmem:[#allocation3 + $0x12a] sm:$0xff] }
 0x645   :  { %31002 = vst [vmem:[#allocation41_spill] sm:$0xff] %v28229_v58 }
 0x647   :  { %22613 = vmatmul.mubr.msk.f32.gmra.mrb[28].mxu1 %vm170_vm3, %v28213_v17  ;;  %v28233_v17 = vld [vmem:[#allocation3 + $0x13a] sm:$0xff] }
 0x648   :  { %22615 = vmatprep.mubr.msk.f32.mxu1 %vm170_vm3, %v28217_v15  ;;  %31003 = vst [vmem:[#allocation42_spill] sm:$0xff] %v28233_v17  ;;  %v28237_v15 = vld [vmem:[#allocation3 + $0x142] sm:$0xff] }
 0x649   :  { %31004 = vst [vmem:[#allocation43_spill] sm:$0xff] %v28237_v15 }
 0x64b   :  { %22616 = vmatmul.mubr.msk.f32.gmra.mrb[30].mxu1 %vm170_vm3, %v28221_v59  ;;  %v28241_v59 = vld [vmem:[#allocation3 + $0x152] sm:$0xff] }
 0x64c   :  { %22618 = vmatprep.mubr.msk.f32.mxu1 %vm170_vm3, %v28225_v49  ;;  %31005 = vst [vmem:[#allocation44_spill] sm:$0xff] %v28241_v59  ;;  %v28245_v49 = vld [vmem:[#allocation3 + $0x15a] sm:$0xff] }
 0x64d   :  { %31006 = vst [vmem:[#allocation45_spill] sm:$0xff] %v28245_v49 }
 0x64f   :  { %22619 = vmatmul.mubr.msk.f32.gmra.mrb[32].mxu1 %vm170_vm3, %v28229_v58  ;;  %v28249_v58 = vld [vmem:[#allocation3 + $0x16a] sm:$0xff] }
 0x650   :  { %22621 = vmatprep.mubr.msk.f32.mxu1 %vm170_vm3, %v28233_v17  ;;  %31007 = vst [vmem:[#allocation46_spill] sm:$0xff] %v28249_v58  ;;  %v8209_v17 = vld [vmem:[#allocation3 + $0x1b2] sm:$0xff] }
 0x653   :  { %22622 = vmatmul.mubr.msk.f32.gmra.mrb[34].mxu1 %vm170_vm3, %v28237_v15  ;;  %v8210_v15 = vld [vmem:[#allocation3 + $0x1ba] sm:$0xff] }
 0x654   :  { %22624 = vmatprep.mubr.msk.f32.mxu1 %vm170_vm3, %v28241_v59  ;;  %v28259_v59 = vld [vmem:[#allocation3 + $0x1ca] sm:$0xff] }
 0x657   :  { %22625 = vmatmul.mubr.msk.f32.gmra.mrb[36].mxu1 %vm170_vm3, %v28245_v49  ;;  %v28263_v49 = vld [vmem:[#allocation3 + $0x1d2] sm:$0xff] }
 0x658   :  { %22627 = vmatprep.mubr.msk.f32.mxu1 %vm170_vm3, %v28249_v58  ;;  %31009 = vst [vmem:[#allocation48_spill] sm:$0xff] %v28263_v49  ;;  %v28267_v58 = vld [vmem:[#allocation3 + $0x1e2] sm:$0xff] }
 0x659   :  { %31010 = vst [vmem:[#allocation49_spill] sm:$0xff] %v28267_v58 }
 0x65b   :  { %22628 = vmatmul.mubr.msk.f32.gmra.mrb[38].mxu1 %vm170_vm3, %v28253_v16  ;;  %v28271_v16 = vld [vmem:[#allocation3 + $0x1ea] sm:$0xff] }
 0x65c   :  { %22630 = vmatprep.mubr.msk.f32.mxu1 %vm170_vm3, %v8209_v17  ;;  %31011 = vst [vmem:[#allocation50_spill] sm:$0xff] %v28271_v16  ;;  %v28279_v17 = vld [vmem:[#allocation3 + $0x202] sm:$0xff] }
 0x65d   :  { %31013 = vst [vmem:[#allocation52_spill] sm:$0xff] %v28279_v17 }
 0x65f   :  { %22631 = vmatmul.mubr.msk.f32.gmra.mrb[40].mxu1 %vm170_vm3, %v8210_v15  ;;  %v28275_v15 = vld [vmem:[#allocation3 + $0x1fa] sm:$0xff] }
 0x660   :  { %22633 = vmatprep.mubr.msk.f32.mxu1 %vm170_vm3, %v28259_v59  ;;  %31012 = vst [vmem:[#allocation51_spill] sm:$0xff] %v28275_v15 }
 0x663   :  { %22634 = vmatmul.mubr.msk.f32.gmra.mrb[42].mxu1 %vm170_vm3, %v28263_v49  ;;  %v28283_v49 = vld [vmem:[#allocation3 + $0x212] sm:$0xff] }
 0x664   :  { %22636 = vmatprep.mubr.msk.f32.mxu1 %vm170_vm3, %v28267_v58  ;;  %31014 = vst [vmem:[#allocation53_spill] sm:$0xff] %v28283_v49  ;;  %v28287_v58 = vld [vmem:[#allocation3 + $0x21a] sm:$0xff] }
 0x665   :  { %31015 = vst [vmem:[#allocation54_spill] sm:$0xff] %v28287_v58 }
 0x667   :  { %22637 = vmatmul.mubr.msk.f32.gmra.mrb[44].mxu1 %vm170_vm3, %v28271_v16  ;;  %v28291_v16 = vld [vmem:[#allocation3 + $0x22a] sm:$0xff] }
 0x668   :  { %22639 = vmatprep.mubr.msk.f32.mxu1 %vm170_vm3, %v28275_v15  ;;  %31016 = vst [vmem:[#allocation55_spill] sm:$0xff] %v28291_v16  ;;  %v28295_v15 = vld [vmem:[#allocation3 + $0x232] sm:$0xff] }
 0x669   :  { %31017 = vst [vmem:[#allocation56_spill] sm:$0xff] %v28295_v15 }
 0x66b   :  { %22640 = vmatmul.mubr.msk.f32.gmra.mrb[46].mxu1 %vm170_vm3, %v28279_v17  ;;  %v28299_v17 = vld [vmem:[#allocation3 + $0x242] sm:$0xff] }
 0x66c   :  { %22642 = vmatprep.mubr.msk.f32.mxu1 %vm170_vm3, %v28283_v49  ;;  %31018 = vst [vmem:[#allocation57_spill] sm:$0xff] %v28299_v17  ;;  %v28303_v49 = vld [vmem:[#allocation3 + $0x24a] sm:$0xff] }
 0x66d   :  { %31019 = vst [vmem:[#allocation58_spill] sm:$0xff] %v28303_v49 }
 0x66f   :  { %22643 = vmatmul.mubr.msk.f32.gmra.mrb[48].mxu1 %vm170_vm3, %v28287_v58  ;;  %v28307_v58 = vld [vmem:[#allocation3 + $0x25a] sm:$0xff] }
 0x670   :  { %22645 = vmatprep.mubr.msk.f32.mxu1 %vm170_vm3, %v28291_v16  ;;  %31020 = vst [vmem:[#allocation59_spill] sm:$0xff] %v28307_v58  ;;  %v28311_v16 = vld [vmem:[#allocation3 + $0x262] sm:$0xff] }
 0x671   :  { %31021 = vst [vmem:[#allocation60_spill] sm:$0xff] %v28311_v16 }
 0x673   :  { %22646 = vmatmul.mubr.msk.f32.gmra.mrb[50].mxu1 %vm170_vm3, %v28295_v15  ;;  %v28315_v15 = vld [vmem:[#allocation3 + $0x272] sm:$0xff] }
 0x674   :  { %22648 = vmatprep.mubr.msk.f32.mxu1 %vm170_vm3, %v28299_v17  ;;  %31022 = vst [vmem:[#allocation61_spill] sm:$0xff] %v28315_v15  ;;  %v28319_v17 = vld [vmem:[#allocation3 + $0x27a] sm:$0xff] }
 0x675   :  { %31023 = vst [vmem:[#allocation62_spill] sm:$0xff] %v28319_v17 }
 0x677   :  { %22649 = vmatmul.mubr.msk.f32.gmra.mrb[52].mxu1 %vm170_vm3, %v28303_v49  ;;  %v28323_v49 = vld [vmem:[#allocation3 + $0x28a] sm:$0xff] }
 0x678   :  { %22651 = vmatprep.mubr.msk.f32.mxu1 %vm170_vm3, %v28307_v58  ;;  %31024 = vst [vmem:[#allocation63_spill] sm:$0xff] %v28323_v49  ;;  %v28327_v58 = vld [vmem:[#allocation3 + $0x292] sm:$0xff] }
 0x679   :  { %31025 = vst [vmem:[#allocation64_spill] sm:$0xff] %v28327_v58 }
 0x67b   :  { %22652 = vmatmul.mubr.msk.f32.gmra.mrb[54].mxu1 %vm170_vm3, %v28311_v16  ;;  %v28331_v16 = vld [vmem:[#allocation3 + $0x2a2] sm:$0xff] }
 0x67c   :  { %22654 = vmatprep.mubr.msk.f32.mxu1 %vm170_vm3, %v28315_v15  ;;  %31026 = vst [vmem:[#allocation65_spill] sm:$0xff] %v28331_v16  ;;  %v28335_v15 = vld [vmem:[#allocation3 + $0x2aa] sm:$0xff] }
 0x67d   :  { %31027 = vst [vmem:[#allocation66_spill] sm:$0xff] %v28335_v15 }
 0x67f   :  { %22655 = vmatmul.mubr.msk.f32.gmra.mrb[56].mxu1 %vm170_vm3, %v28319_v17  ;;  %v28339_v17 = vld [vmem:[#allocation3 + $0x2ba] sm:$0xff] }
 0x680   :  { %22657 = vmatprep.mubr.msk.f32.mxu1 %vm170_vm3, %v28323_v49  ;;  %31028 = vst [vmem:[#allocation67_spill] sm:$0xff] %v28339_v17  ;;  %v28343_v49 = vld [vmem:[#allocation3 + $0x2c2] sm:$0xff] }
 0x681   :  { %31029 = vst [vmem:[#allocation10_spill] sm:$0xff] %v28343_v49 }
 0x683   :  { %22658 = vmatmul.mubr.msk.f32.gmra.mrb[58].mxu1 %vm170_vm3, %v28327_v58  ;;  %v28347_v58 = vld [vmem:[#allocation3 + $0x2d2] sm:$0xff] }
 0x684   :  { %22660 = vmatprep.mubr.msk.f32.mxu1 %vm170_vm3, %v28331_v16  ;;  %31030 = vst [vmem:[#allocation11_spill] sm:$0xff] %v28347_v58  ;;  %v28351_v16 = vld [vmem:[#allocation3 + $0x2da] sm:$0xff] }
 0x685   :  { %31031 = vst [vmem:[#allocation12_spill] sm:$0xff] %v28351_v16 }
 0x687   :  { %22661 = vmatmul.mubr.msk.f32.gmra.mrb[60].mxu1 %vm170_vm3, %v28335_v15  ;;  %v28355_v15 = vld [vmem:[#allocation3 + $0x2ea] sm:$0xff] }
 0x688   :  { %22663 = vmatprep.mubr.msk.f32.mxu1 %vm170_vm3, %v28339_v17  ;;  %31032 = vst [vmem:[#allocation13_spill] sm:$0xff] %v28355_v15  ;;  %v28359_v17 = vld [vmem:[#allocation3 + $0x2f2] sm:$0xff] }
 0x68b   :  { %22664 = vmatmul.mubr.msk.f32.gmra.mrb[62].mxu1 %vm170_vm3, %v28343_v49  ;;  %v28363_v49 = vld [vmem:[#allocation3 + $0x302] sm:$0xff] }
 0x68c   :  { %22666 = vmatprep.mubr.msk.f32.mxu1 %vm170_vm3, %v28347_v58  ;;  %31033 = vst [vmem:[#allocation68_spill] sm:$0xff] %v28363_v49  ;;  %v28367_v58 = vld [vmem:[#allocation3 + $0x30a] sm:$0xff] }
 0x68f   :  { %22667 = vmatmul.mubr.msk.f32.gmra.mrb[64].mxu1 %vm170_vm3, %v28351_v16  ;;  %v28371_v16 = vld [vmem:[#allocation3 + $0x31a] sm:$0xff] }
 0x690   :  { %22669 = vmatprep.mubr.msk.f32.mxu1 %vm170_vm3, %v28355_v15  ;;  %v28375_v15 = vld [vmem:[#allocation3 + $0x322] sm:$0xff] }
 0x693   :  { %22670 = vmatmul.mubr.msk.f32.gmra.mrb[66].mxu1 %vm170_vm3, %v28359_v17 }
 0x694   :  { %22672 = vmatprep.mubr.msk.f32.mxu1 %vm170_vm3, %v28363_v49  ;;  %v28384_v49 = vld [vmem:[%s30666_s3 + $0x28] sm:$0xff] }
 0x697   :  { %22673 = vmatmul.mubr.msk.f32.gmra.mrb[68].mxu1 %vm170_vm3, %v28367_v58 }
 0x698   :  { %22675 = vmatprep.mubr.msk.f32.mxu1 %vm170_vm3, %v28371_v16 }
 0x69b   :  { %22676 = vmatmul.mubr.msk.f32.gmra.mrb[70].mxu1 %vm170_vm3, %v28375_v15 }
 0x69c   :  { %22680 = vmatprep.mubr.msk.f32.mxu1 %vm170_vm3, %v27884_v18  ;;  %v28450_v18 = vld [vmem:[#allocation3 + $0x188] sm:$0xff] }
 0x69f   :  { %22681 = vmatmul.mubr.msk.f32.vlgmr.msra.gmra.mrb[8].mxu1 %vm170_vm3, %v27890_v19  ;;  %v31034_v19 = vld [vmem:[#allocation15_spill] sm:$0xff] }
 0x6a0   :  { %22777 = vmatpush3.msra.mxu1 %v28132_v39  ;;  %22683 = vmatprep.mubr.msk.f32.mxu1 %vm170_vm3, %v27894_v20  ;;  %v28446_v39 = vld [vmem:[#allocation3 + $0x180] sm:$0xff]  ;;  %v31035_v20 = vld [vmem:[#allocation16_spill] sm:$0xff] }
 0x6a1   :  { %22874 = vmatprep.subr.mxu1 %v28384_v49 }
 0x6a3   :  { %22684 = vmatmul.mubr.msk.f32.gmra.mrb[10].mxu1 %vm170_vm3, %v27898_v21  ;;  %v31036_v21 = vld [vmem:[#allocation17_spill] sm:$0xff] }
 0x6a4   :  { %22686 = vmatprep.mubr.msk.f32.mxu1 %vm170_vm3, %v27902_v60  ;;  %v28514_v60 = vld [vmem:[#allocation3 + $0x330] sm:$0xff] }
 0x6a7   :  { %22687 = vmatmul.mubr.msk.f32.gmra.mrb[12].mxu1 %vm170_vm3, %v27906_v22  ;;  %v28518_v22 = vld [vmem:[#allocation3 + $0x338] sm:$0xff] }
 0x6a8   :  { %22689 = vmatprep.mubr.msk.f32.mxu1 %vm170_vm3, %v27910_v23  ;;  %v9591_v23 = vld [vmem:[#allocation3 + $0x19] sm:$0xff] }
 0x6ab   :  { %22690 = vmatmul.mubr.msk.f32.gmra.mrb[14].mxu1 %vm170_vm3, %v27914_v24  ;;  %v9592_v24 = vld [vmem:[#allocation3 + $0x21] sm:$0xff] }
 0x6ac   :  { %22692 = vmatprep.mubr.msk.f32.mxu1 %vm170_vm3, %v27918_v25  ;;  %v28526_v25 = vld [vmem:[%s30666_s3 + $0x30] sm:$0xff] }
 0x6af   :  { %22693 = vmatmul.mubr.msk.f32.gmra.mrb[16].mxu1 %vm170_vm3, %v27922_v26  ;;  %v28529_v26 = vld [vmem:[#allocation3 + $0x31] sm:$0xff] }
 0x6b0   :  { %22695 = vmatprep.mubr.msk.f32.mxu1 %vm170_vm3, %v27926_v27  ;;  %v28535_v27 = vld [vmem:[#allocation3 + $0x39] sm:$0xff] }
 0x6b3   :  { %22696 = vmatmul.mubr.msk.f32.gmra.mrb[18].mxu1 %vm170_vm3, %v27930_v30  ;;  %v28539_v30 = vld [vmem:[#allocation3 + $0x49] sm:$0xff] }
 0x6b4   :  { %22698 = vmatprep.mubr.msk.f32.mxu1 %vm170_vm3, %v27934_v31  ;;  %v28543_v31 = vld [vmem:[#allocation3 + $0x51] sm:$0xff] }
 0x6b7   :  { %22699 = vmatmul.mubr.msk.f32.gmra.mrb[20].mxu1 %vm170_vm3, %v27938_v32  ;;  %v28547_v32 = vld [vmem:[#allocation3 + $0x61] sm:$0xff] }
 0x6b8   :  { %22701 = vmatprep.mubr.msk.f32.mxu1 %vm170_vm3, %v27942_v33  ;;  %v28551_v33 = vld [vmem:[#allocation3 + $0x69] sm:$0xff] }
 0x6bb   :  { %22702 = vmatmul.mubr.msk.f32.gmra.mrb[22].mxu1 %vm170_vm3, %v27946_v34  ;;  %v28555_v34 = vld [vmem:[#allocation3 + $0x79] sm:$0xff] }
 0x6bc   :  { %22704 = vmatprep.mubr.msk.f32.mxu1 %vm170_vm3, %v27950_v35  ;;  %v28559_v35 = vld [vmem:[#allocation3 + $0x81] sm:$0xff] }
 0x6bf   :  { %22705 = vmatmul.mubr.msk.f32.gmra.mrb[24].mxu1 %vm170_vm3, %v27954_v36  ;;  %v28563_v36 = vld [vmem:[#allocation3 + $0x91] sm:$0xff] }
 0x6c0   :  { %22707 = vmatprep.mubr.msk.f32.mxu1 %vm170_vm3, %v27958_v37  ;;  %v28567_v37 = vld [vmem:[#allocation3 + $0x99] sm:$0xff] }
 0x6c3   :  { %22708 = vmatmul.mubr.msk.f32.gmra.mrb[26].mxu1 %vm170_vm3, %v27962_v38  ;;  %v28571_v38 = vld [vmem:[#allocation3 + $0xa9] sm:$0xff] }
 0x6c4   :  { %22710 = vmatprep.mubr.msk.f32.mxu1 %vm170_vm3, %v27966_v40  ;;  %v28575_v40 = vld [vmem:[#allocation3 + $0xb1] sm:$0xff] }
 0x6c7   :  { %22711 = vmatmul.mubr.msk.f32.gmra.mrb[28].mxu1 %vm170_vm3, %v27970_v50  ;;  %v28579_v50 = vld [vmem:[#allocation3 + $0xc1] sm:$0xff] }
 0x6c8   :  { %22713 = vmatprep.mubr.msk.f32.mxu1 %vm170_vm3, %v27974_v51  ;;  %v28583_v51 = vld [vmem:[#allocation3 + $0xc9] sm:$0xff] }
 0x6cb   :  { %22714 = vmatmul.mubr.msk.f32.gmra.mrb[30].mxu1 %vm170_vm3, %v27978_v52  ;;  %v28587_v52 = vld [vmem:[#allocation3 + $0xd9] sm:$0xff] }
 0x6cc   :  { %22716 = vmatprep.mubr.msk.f32.mxu1 %vm170_vm3, %v27982_v53  ;;  %v28591_v53 = vld [vmem:[#allocation3 + $0xe1] sm:$0xff] }
 0x6cf   :  { %22717 = vmatmul.mubr.msk.f32.gmra.mrb[32].mxu1 %vm170_vm3, %v27986_v54  ;;  %v28595_v54 = vld [vmem:[#allocation3 + $0xf1] sm:$0xff] }
 0x6d0   :  { %22719 = vmatprep.mubr.msk.f32.mxu1 %vm170_vm3, %v27990_v55  ;;  %v28599_v55 = vld [vmem:[#allocation3 + $0xf9] sm:$0xff] }
 0x6d3   :  { %22720 = vmatmul.mubr.msk.f32.gmra.mrb[34].mxu1 %vm170_vm3, %v27994_v56  ;;  %v28603_v56 = vld [vmem:[#allocation3 + $0x109] sm:$0xff] }
 0x6d4   :  { %22722 = vmatprep.mubr.msk.f32.mxu1 %vm170_vm3, %v27998_v29  ;;  %v28607_v29 = vld [vmem:[#allocation3 + $0x111] sm:$0xff] }
 0x6d7   :  { %22723 = vmatmul.mubr.msk.f32.gmra.mrb[36].mxu1 %vm170_vm3, %v28002_v62  ;;  %v28611_v62 = vld [vmem:[#allocation3 + $0x121] sm:$0xff] }
 0x6d8   :  { %22725 = vmatprep.mubr.msk.f32.mxu1 %vm170_vm3, %v28446_v39 }
 0x6db   :  { %22726 = vmatmul.mubr.msk.f32.gmra.mrb[38].mxu1 %vm170_vm3, %v28450_v18 }
 0x6dc   :  { %22728 = vmatprep.mubr.msk.f32.mxu1 %vm170_vm3, %v28008_v28  ;;  %v28615_v28 = vld [vmem:[#allocation3 + $0x129] sm:$0xff] }
 0x6df   :  { %22729 = vmatmul.mubr.msk.f32.gmra.mrb[40].mxu1 %vm170_vm3, %v28012_v57  ;;  %v28619_v57 = vld [vmem:[#allocation3 + $0x139] sm:$0xff] }
 0x6e0   :  { %22731 = vmatprep.mubr.msk.f32.mxu1 %vm170_vm3, %v28016_v41  ;;  %v28623_v41 = vld [vmem:[#allocation3 + $0x141] sm:$0xff] }
 0x6e3   :  { %22732 = vmatmul.mubr.msk.f32.gmra.mrb[42].mxu1 %vm170_vm3, %v28020_v63  ;;  %v28627_v63 = vld [vmem:[#allocation3 + $0x151] sm:$0xff] }
 0x6e4   :  { %22734 = vmatprep.mubr.msk.f32.mxu1 %vm170_vm3, %v28024_v2  ;;  %v28631_v2 = vld [vmem:[#allocation3 + $0x159] sm:$0xff] }
 0x6e7   :  { %22735 = vmatmul.mubr.msk.f32.gmra.mrb[44].mxu1 %vm170_vm3, %v28028_v43  ;;  %v28635_v43 = vld [vmem:[#allocation3 + $0x169] sm:$0xff] }
 0x6e8   :  { %22737 = vmatprep.mubr.msk.f32.mxu1 %vm170_vm3, %v28032_v44  ;;  %v28639_v44 = vld [vmem:[#allocation3 + $0x171] sm:$0xff] }
 0x6eb   :  { %22738 = vmatmul.mubr.msk.f32.gmra.mrb[46].mxu1 %vm170_vm3, %v28036_v42  ;;  %v28643_v42 = vld [vmem:[#allocation3 + $0x181] sm:$0xff] }
 0x6ec   :  { %22740 = vmatprep.mubr.msk.f32.mxu1 %vm170_vm3, %v28040_v0  ;;  %v28647_v0 = vld [vmem:[#allocation3 + $0x189] sm:$0xff] }
 0x6ef   :  { %22741 = vmatmul.mubr.msk.f32.gmra.mrb[48].mxu1 %vm170_vm3, %v28044_v6  ;;  %v9623_v6 = vld [vmem:[#allocation3 + $0x1c9] sm:$0xff] }
 0x6f0   :  { %22743 = vmatprep.mubr.msk.f32.mxu1 %vm170_vm3, %v28048_v7  ;;  %v9624_v7 = vld [vmem:[#allocation3 + $0x1d1] sm:$0xff] }
 0x6f3   :  { %22744 = vmatmul.mubr.msk.f32.gmra.mrb[50].mxu1 %vm170_vm3, %v28052_v45  ;;  %v28653_v45 = vld [vmem:[#allocation3 + $0x1e1] sm:$0xff] }
 0x6f4   :  { %22746 = vmatprep.mubr.msk.f32.mxu1 %vm170_vm3, %v28056_v61  ;;  %v28657_v61 = vld [vmem:[#allocation3 + $0x1e9] sm:$0xff] }
 0x6f7   :  { %22747 = vmatmul.mubr.msk.f32.gmra.mrb[52].mxu1 %vm170_vm3, %v28060_v46  ;;  %v28661_v46 = vld [vmem:[#allocation3 + $0x1f9] sm:$0xff] }
 0x6f8   :  { %22749 = vmatprep.mubr.msk.f32.mxu1 %vm170_vm3, %v28064_v3  ;;  %v28665_v3 = vld [vmem:[#allocation3 + $0x201] sm:$0xff] }
 0x6fb   :  { %22750 = vmatmul.mubr.msk.f32.gmra.mrb[54].mxu1 %vm170_vm3, %v28068_v5  ;;  %v28669_v5 = vld [vmem:[#allocation3 + $0x211] sm:$0xff] }
 0x6fc   :  { %22752 = vmatprep.mubr.msk.f32.mxu1 %vm170_vm3, %v28072_v8  ;;  %v28673_v8 = vld [vmem:[#allocation3 + $0x219] sm:$0xff] }
 0x6ff   :  { %22753 = vmatmul.mubr.msk.f32.gmra.mrb[56].mxu1 %vm170_vm3, %v28076_v4  ;;  %v28677_v4 = vld [vmem:[#allocation3 + $0x229] sm:$0xff] }
 0x700   :  { %22755 = vmatprep.mubr.msk.f32.mxu1 %vm170_vm3, %v28080_v10  ;;  %v28681_v10 = vld [vmem:[#allocation3 + $0x231] sm:$0xff] }
 0x703   :  { %22756 = vmatmul.mubr.msk.f32.gmra.mrb[58].mxu1 %vm170_vm3, %v28084_v11  ;;  %v28685_v11 = vld [vmem:[#allocation3 + $0x241] sm:$0xff] }
 0x704   :  { %22758 = vmatprep.mubr.msk.f32.mxu1 %vm170_vm3, %v28088_v47  ;;  %v28689_v47 = vld [vmem:[#allocation3 + $0x249] sm:$0xff] }
 0x707   :  { %22759 = vmatmul.mubr.msk.f32.gmra.mrb[60].mxu1 %vm170_vm3, %v28092_v12  ;;  %v28693_v12 = vld [vmem:[#allocation3 + $0x259] sm:$0xff] }
 0x708   :  { %22761 = vmatprep.mubr.msk.f32.mxu1 %vm170_vm3, %v28096_v9  ;;  %v28697_v9 = vld [vmem:[#allocation3 + $0x261] sm:$0xff] }
 0x70b   :  { %22762 = vmatmul.mubr.msk.f32.gmra.mrb[62].mxu1 %vm170_vm3, %v28100_v13  ;;  %v28701_v13 = vld [vmem:[#allocation3 + $0x271] sm:$0xff] }
 0x70c   :  { %22764 = vmatprep.mubr.msk.f32.mxu1 %vm170_vm3, %v28104_v14  ;;  %v28705_v14 = vld [vmem:[#allocation3 + $0x279] sm:$0xff] }
 0x70f   :  { %22765 = vmatmul.mubr.msk.f32.gmra.mrb[64].mxu1 %vm170_vm3, %v28108_v48  ;;  %v28709_v48 = vld [vmem:[#allocation3 + $0x289] sm:$0xff] }
 0x710   :  { %22767 = vmatprep.mubr.msk.f32.mxu1 %vm170_vm3, %v28112_v1  ;;  %v28713_v1 = vld [vmem:[#allocation3 + $0x291] sm:$0xff] }
 0x713   :  { %22768 = vmatmul.mubr.msk.f32.gmra.mrb[66].mxu1 %vm170_vm3, %v31034_v19  ;;  %v28721_v19 = vld [vmem:[#allocation3 + $0x2a9] sm:$0xff] }
 0x714   :  { %22770 = vmatprep.mubr.msk.f32.mxu1 %vm170_vm3, %v31035_v20  ;;  %31038 = vst [vmem:[#allocation70_spill] sm:$0xff] %v28721_v19  ;;  %v28725_v20 = vld [vmem:[#allocation3 + $0x2b9] sm:$0xff] }
 0x715   :  { %31039 = vst [vmem:[#allocation71_spill] sm:$0xff] %v28725_v20 }
 0x717   :  { %22771 = vmatmul.mubr.msk.f32.gmra.mrb[68].mxu1 %vm170_vm3, %v31036_v21  ;;  %v28729_v21 = vld [vmem:[#allocation3 + $0x2c1] sm:$0xff] }
 0x718   :  { %22773 = vmatprep.mubr.msk.f32.mxu1 %vm170_vm3, %v28514_v60  ;;  %31040 = vst [vmem:[#allocation72_spill] sm:$0xff] %v28729_v21 }
 0x71b   :  { %22774 = vmatmul.mubr.msk.f32.gmra.mrb[70].mxu1 %vm170_vm3, %v28518_v22 }
 0x71c   :  { %22778 = vmatprep.mubr.msk.f32.mxu1 %vm170_vm3, %v9591_v23  ;;  %v28733_v23 = vld [vmem:[#allocation3 + $0x2d1] sm:$0xff] }
 0x71d   :  { %31041 = vst [vmem:[#allocation73_spill] sm:$0xff] %v28733_v23 }
 0x71f   :  { %22779 = vmatmul.mubr.msk.f32.vlgmr.msra.gmra.mrb[8].mxu1 %vm170_vm3, %v9592_v24  ;;  %v28737_v24 = vld [vmem:[#allocation3 + $0x2d9] sm:$0xff] }
 0x720   :  { %22875 = vmatpush3.msra.mxu1 %v28384_v49  ;;  %22781 = vmatprep.mubr.msk.f32.mxu1 %vm170_vm3, %v28529_v26  ;;  %v28717_v49 = vld [vmem:[#allocation3 + $0x2a1] sm:$0xff]  ;;  %31042 = vst [vmem:[#allocation74_spill] sm:$0xff] %v28737_v24 }
 0x721   :  { %22972 = vmatprep.subr.mxu1 %v28526_v25  ;;  %31037 = vst [vmem:[#allocation69_spill] sm:$0xff] %v28717_v49 }
 0x723   :  { %22782 = vmatmul.mubr.msk.f32.gmra.mrb[10].mxu1 %vm170_vm3, %v28535_v27 }
 0x724   :  { %22784 = vmatprep.mubr.msk.f32.mxu1 %vm170_vm3, %v28539_v30 }
 0x727   :  { %22785 = vmatmul.mubr.msk.f32.gmra.mrb[12].mxu1 %vm170_vm3, %v28543_v31 }
 0x728   :  { %22787 = vmatprep.mubr.msk.f32.mxu1 %vm170_vm3, %v28547_v32 }
 0x72b   :  { %22788 = vmatmul.mubr.msk.f32.gmra.mrb[14].mxu1 %vm170_vm3, %v28551_v33 }
 0x72c   :  { %22790 = vmatprep.mubr.msk.f32.mxu1 %vm170_vm3, %v28555_v34 }
 0x72f   :  { %22791 = vmatmul.mubr.msk.f32.gmra.mrb[16].mxu1 %vm170_vm3, %v28559_v35 }
 0x730   :  { %22793 = vmatprep.mubr.msk.f32.mxu1 %vm170_vm3, %v28563_v36 }
 0x733   :  { %22794 = vmatmul.mubr.msk.f32.gmra.mrb[18].mxu1 %vm170_vm3, %v28567_v37 }
 0x734   :  { %22796 = vmatprep.mubr.msk.f32.mxu1 %vm170_vm3, %v28571_v38 }
 0x737   :  { %22797 = vmatmul.mubr.msk.f32.gmra.mrb[20].mxu1 %vm170_vm3, %v28575_v40 }
 0x738   :  { %22799 = vmatprep.mubr.msk.f32.mxu1 %vm170_vm3, %v28579_v50 }
 0x73b   :  { %22800 = vmatmul.mubr.msk.f32.gmra.mrb[22].mxu1 %vm170_vm3, %v28583_v51 }
 0x73c   :  { %22802 = vmatprep.mubr.msk.f32.mxu1 %vm170_vm3, %v28587_v52 }
 0x73f   :  { %22803 = vmatmul.mubr.msk.f32.gmra.mrb[24].mxu1 %vm170_vm3, %v28591_v53 }
 0x740   :  { %22805 = vmatprep.mubr.msk.f32.mxu1 %vm170_vm3, %v28595_v54 }
 0x743   :  { %22806 = vmatmul.mubr.msk.f32.gmra.mrb[26].mxu1 %vm170_vm3, %v28599_v55 }
 0x744   :  { %22808 = vmatprep.mubr.msk.f32.mxu1 %vm170_vm3, %v28603_v56 }
 0x747   :  { %22809 = vmatmul.mubr.msk.f32.gmra.mrb[28].mxu1 %vm170_vm3, %v28607_v29 }
 0x748   :  { %22811 = vmatprep.mubr.msk.f32.mxu1 %vm170_vm3, %v28611_v62 }
 0x74b   :  { %22812 = vmatmul.mubr.msk.f32.gmra.mrb[30].mxu1 %vm170_vm3, %v28615_v28 }
 0x74c   :  { %22814 = vmatprep.mubr.msk.f32.mxu1 %vm170_vm3, %v28619_v57 }
 0x74f   :  { %22815 = vmatmul.mubr.msk.f32.gmra.mrb[32].mxu1 %vm170_vm3, %v28623_v41 }
 0x750   :  { %22817 = vmatprep.mubr.msk.f32.mxu1 %vm170_vm3, %v28627_v63 }
 0x753   :  { %22818 = vmatmul.mubr.msk.f32.gmra.mrb[34].mxu1 %vm170_vm3, %v28631_v2 }
 0x754   :  { %22820 = vmatprep.mubr.msk.f32.mxu1 %vm170_vm3, %v28635_v43 }
 0x757   :  { %22821 = vmatmul.mubr.msk.f32.gmra.mrb[36].mxu1 %vm170_vm3, %v28639_v44 }
 0x758   :  { %22823 = vmatprep.mubr.msk.f32.mxu1 %vm170_vm3, %v28643_v42 }
 0x75b   :  { %22824 = vmatmul.mubr.msk.f32.gmra.mrb[38].mxu1 %vm170_vm3, %v28647_v0 }
 0x75c   :  { %22826 = vmatprep.mubr.msk.f32.mxu1 %vm170_vm3, %v9623_v6  ;;  %v28741_v6 = vld [vmem:[#allocation3 + $0x2e9] sm:$0xff] }
 0x75d   :  { %31043 = vst [vmem:[#allocation75_spill] sm:$0xff] %v28741_v6 }
 0x75f   :  { %22827 = vmatmul.mubr.msk.f32.gmra.mrb[40].mxu1 %vm170_vm3, %v9624_v7  ;;  %v28745_v7 = vld [vmem:[#allocation3 + $0x2f1] sm:$0xff] }
 0x760   :  { %22829 = vmatprep.mubr.msk.f32.mxu1 %vm170_vm3, %v28653_v45  ;;  %31044 = vst [vmem:[#allocation76_spill] sm:$0xff] %v28745_v7 }
 0x763   :  { %22830 = vmatmul.mubr.msk.f32.gmra.mrb[42].mxu1 %vm170_vm3, %v28657_v61 }
 0x764   :  { %22832 = vmatprep.mubr.msk.f32.mxu1 %vm170_vm3, %v28661_v46 }
 0x767   :  { %22833 = vmatmul.mubr.msk.f32.gmra.mrb[44].mxu1 %vm170_vm3, %v28665_v3 }
 0x768   :  { %22835 = vmatprep.mubr.msk.f32.mxu1 %vm170_vm3, %v28669_v5 }
 0x76b   :  { %22836 = vmatmul.mubr.msk.f32.gmra.mrb[46].mxu1 %vm170_vm3, %v28673_v8 }
 0x76c   :  { %22838 = vmatprep.mubr.msk.f32.mxu1 %vm170_vm3, %v28677_v4 }
 0x76f   :  { %22839 = vmatmul.mubr.msk.f32.gmra.mrb[48].mxu1 %vm170_vm3, %v28681_v10 }
 0x770   :  { %22841 = vmatprep.mubr.msk.f32.mxu1 %vm170_vm3, %v28685_v11 }
 0x773   :  { %22842 = vmatmul.mubr.msk.f32.gmra.mrb[50].mxu1 %vm170_vm3, %v28689_v47 }
 0x774   :  { %22844 = vmatprep.mubr.msk.f32.mxu1 %vm170_vm3, %v28693_v12 }
 0x777   :  { %22845 = vmatmul.mubr.msk.f32.gmra.mrb[52].mxu1 %vm170_vm3, %v28697_v9 }
 0x778   :  { %22847 = vmatprep.mubr.msk.f32.mxu1 %vm170_vm3, %v28701_v13 }
 0x77b   :  { %22848 = vmatmul.mubr.msk.f32.gmra.mrb[54].mxu1 %vm170_vm3, %v28705_v14 }
 0x77c   :  { %22850 = vmatprep.mubr.msk.f32.mxu1 %vm170_vm3, %v28709_v48 }
 0x77f   :  { %22851 = vmatmul.mubr.msk.f32.gmra.mrb[56].mxu1 %vm170_vm3, %v28713_v1 }
 0x780   :  { %22853 = vmatprep.mubr.msk.f32.mxu1 %vm170_vm3, %v28717_v49  ;;  %v31061_v49 = vld [vmem:[#allocation28_spill] sm:$0xff] }
 0x783   :  { %22854 = vmatmul.mubr.msk.f32.gmra.mrb[58].mxu1 %vm170_vm3, %v28721_v19  ;;  %v31057_v19 = vld [vmem:[#allocation24_spill] sm:$0xff] }
 0x784   :  { %22856 = vmatprep.mubr.msk.f32.mxu1 %vm170_vm3, %v28725_v20  ;;  %v31052_v20 = vld [vmem:[#allocation19_spill] sm:$0xff] }
 0x787   :  { %22857 = vmatmul.mubr.msk.f32.gmra.mrb[60].mxu1 %vm170_vm3, %v28729_v21  ;;  %v28749_v21 = vld [vmem:[#allocation3 + $0x301] sm:$0xff] }
 0x788   :  { %22859 = vmatprep.mubr.msk.f32.mxu1 %vm170_vm3, %v28733_v23  ;;  %31045 = vst [vmem:[#allocation77_spill] sm:$0xff] %v28749_v21  ;;  %v28753_v23 = vld [vmem:[#allocation3 + $0x309] sm:$0xff] }
 0x789   :  { %31046 = vst [vmem:[#allocation78_spill] sm:$0xff] %v28753_v23 }
 0x78b   :  { %22860 = vmatmul.mubr.msk.f32.gmra.mrb[62].mxu1 %vm170_vm3, %v28737_v24  ;;  %v28757_v24 = vld [vmem:[#allocation3 + $0x319] sm:$0xff] }
 0x78c   :  { %22862 = vmatprep.mubr.msk.f32.mxu1 %vm170_vm3, %v28741_v6  ;;  %31047 = vst [vmem:[#allocation14_spill] sm:$0xff] %v28757_v24  ;;  %v28761_v6 = vld [vmem:[#allocation3 + $0x321] sm:$0xff] }
 0x78d   :  { %31048 = vst [vmem:[#allocation15_spill] sm:$0xff] %v28761_v6 }
 0x78f   :  { %22863 = vmatmul.mubr.msk.f32.gmra.mrb[64].mxu1 %vm170_vm3, %v28745_v7  ;;  %v28765_v7 = vld [vmem:[#allocation3 + $0x331] sm:$0xff] }
 0x790   :  { %22865 = vmatprep.mubr.msk.f32.mxu1 %vm170_vm3, %v28749_v21  ;;  %31049 = vst [vmem:[#allocation16_spill] sm:$0xff] %v28765_v7  ;;  %v28769_v21 = vld [vmem:[#allocation3 + $0x339] sm:$0xff] }
 0x791   :  { %31050 = vst [vmem:[#allocation17_spill] sm:$0xff] %v28769_v21 }
 0x793   :  { %22866 = vmatmul.mubr.msk.f32.gmra.mrb[66].mxu1 %vm170_vm3, %v28753_v23  ;;  %v31051_v23 = vld [vmem:[#allocation18_spill] sm:$0xff] }
 0x794   :  { %22868 = vmatprep.mubr.msk.f32.mxu1 %vm170_vm3, %v28757_v24  ;;  %v28778_v24 = vld [vmem:[%s30666_s3 + $0x38] sm:$0xff] }
 0x797   :  { %22869 = vmatmul.mubr.msk.f32.gmra.mrb[68].mxu1 %vm170_vm3, %v28761_v6  ;;  %v31053_v6 = vld [vmem:[#allocation20_spill] sm:$0xff] }
 0x798   :  { %22871 = vmatprep.mubr.msk.f32.mxu1 %vm170_vm3, %v28765_v7  ;;  %v31054_v7 = vld [vmem:[#allocation21_spill] sm:$0xff] }
 0x79b   :  { %22872 = vmatmul.mubr.msk.f32.gmra.mrb[70].mxu1 %vm170_vm3, %v28769_v21  ;;  %v31055_v21 = vld [vmem:[#allocation22_spill] sm:$0xff] }
 0x79c   :  { %22876 = vmatprep.mubr.msk.f32.mxu1 %vm170_vm3, %v31051_v23  ;;  %v31056_v23 = vld [vmem:[#allocation23_spill] sm:$0xff] }
 0x79f   :  { %22877 = vmatmul.mubr.msk.f32.vlgmr.msra.gmra.mrb[8].mxu1 %vm170_vm3, %v31052_v20  ;;  %v31058_v20 = vld [vmem:[#allocation25_spill] sm:$0xff] }
 0x7a0   :  { %22973 = vmatpush3.msra.mxu1 %v28526_v25  ;;  %22879 = vmatprep.mubr.msk.f32.mxu1 %vm170_vm3, %v31053_v6  ;;  %v31059_v25 = vld [vmem:[#allocation26_spill] sm:$0xff]  ;;  %v31060_v6 = vld [vmem:[#allocation27_spill] sm:$0xff] }
 0x7a1   :  { %23070 = vmatprep.subr.mxu1 %v28778_v24 }
 0x7a3   :  { %22880 = vmatmul.mubr.msk.f32.gmra.mrb[10].mxu1 %vm170_vm3, %v31054_v7  ;;  %v31062_v7 = vld [vmem:[#allocation29_spill] sm:$0xff] }
 0x7a4   :  { %22882 = vmatprep.mubr.msk.f32.mxu1 %vm170_vm3, %v31055_v21  ;;  %v31063_v21 = vld [vmem:[#allocation30_spill] sm:$0xff] }
 0x7a7   :  { %22883 = vmatmul.mubr.msk.f32.gmra.mrb[12].mxu1 %vm170_vm3, %v31056_v23  ;;  %v31064_v23 = vld [vmem:[#allocation31_spill] sm:$0xff] }
 0x7a8   :  { %22885 = vmatprep.mubr.msk.f32.mxu1 %vm170_vm3, %v31057_v19  ;;  %v31065_v19 = vld [vmem:[#allocation32_spill] sm:$0xff] }
 0x7ab   :  { %22886 = vmatmul.mubr.msk.f32.gmra.mrb[14].mxu1 %vm170_vm3, %v31058_v20  ;;  %v31066_v20 = vld [vmem:[#allocation33_spill] sm:$0xff] }
 0x7ac   :  { %22888 = vmatprep.mubr.msk.f32.mxu1 %vm170_vm3, %v31059_v25  ;;  %v31067_v25 = vld [vmem:[#allocation34_spill] sm:$0xff] }
 0x7af   :  { %22889 = vmatmul.mubr.msk.f32.gmra.mrb[16].mxu1 %vm170_vm3, %v31060_v6  ;;  %v31068_v6 = vld [vmem:[#allocation35_spill] sm:$0xff] }
 0x7b0   :  { %22891 = vmatprep.mubr.msk.f32.mxu1 %vm170_vm3, %v31061_v49  ;;  %v31069_v49 = vld [vmem:[#allocation36_spill] sm:$0xff] }
 0x7b3   :  { %22892 = vmatmul.mubr.msk.f32.gmra.mrb[18].mxu1 %vm170_vm3, %v31062_v7  ;;  %v31070_v7 = vld [vmem:[#allocation37_spill] sm:$0xff] }
 0x7b4   :  { %22894 = vmatprep.mubr.msk.f32.mxu1 %vm170_vm3, %v31063_v21  ;;  %v31071_v21 = vld [vmem:[#allocation38_spill] sm:$0xff] }
 0x7b7   :  { %22895 = vmatmul.mubr.msk.f32.gmra.mrb[20].mxu1 %vm170_vm3, %v31064_v23  ;;  %v31072_v23 = vld [vmem:[#allocation39_spill] sm:$0xff] }
 0x7b8   :  { %22897 = vmatprep.mubr.msk.f32.mxu1 %vm170_vm3, %v31065_v19  ;;  %v31073_v19 = vld [vmem:[#allocation40_spill] sm:$0xff] }
 0x7bb   :  { %22898 = vmatmul.mubr.msk.f32.gmra.mrb[22].mxu1 %vm170_vm3, %v31066_v20  ;;  %v31074_v20 = vld [vmem:[#allocation41_spill] sm:$0xff] }
 0x7bc   :  { %22900 = vmatprep.mubr.msk.f32.mxu1 %vm170_vm3, %v31067_v25  ;;  %v31075_v25 = vld [vmem:[#allocation42_spill] sm:$0xff] }
 0x7bf   :  { %22901 = vmatmul.mubr.msk.f32.gmra.mrb[24].mxu1 %vm170_vm3, %v31068_v6  ;;  %v31076_v6 = vld [vmem:[#allocation43_spill] sm:$0xff] }
 0x7c0   :  { %22903 = vmatprep.mubr.msk.f32.mxu1 %vm170_vm3, %v31069_v49  ;;  %v31077_v49 = vld [vmem:[#allocation44_spill] sm:$0xff] }
 0x7c3   :  { %22904 = vmatmul.mubr.msk.f32.gmra.mrb[26].mxu1 %vm170_vm3, %v31070_v7  ;;  %v31078_v7 = vld [vmem:[#allocation45_spill] sm:$0xff] }
 0x7c4   :  { %22906 = vmatprep.mubr.msk.f32.mxu1 %vm170_vm3, %v31071_v21  ;;  %v31079_v21 = vld [vmem:[#allocation46_spill] sm:$0xff] }
 0x7c7   :  { %22907 = vmatmul.mubr.msk.f32.gmra.mrb[28].mxu1 %vm170_vm3, %v31072_v23  ;;  %v31080_v23 = vld [vmem:[#allocation47_spill] sm:$0xff] }
 0x7c8   :  { %22909 = vmatprep.mubr.msk.f32.mxu1 %vm170_vm3, %v31073_v19  ;;  %v28840_v19 = vld [vmem:[#allocation3 + $0x182] sm:$0xff] }
 0x7cb   :  { %22910 = vmatmul.mubr.msk.f32.gmra.mrb[30].mxu1 %vm170_vm3, %v31074_v20  ;;  %v28844_v20 = vld [vmem:[#allocation3 + $0x18a] sm:$0xff] }
 0x7cc   :  { %22912 = vmatprep.mubr.msk.f32.mxu1 %vm170_vm3, %v31075_v25  ;;  %31081 = vst [vmem:[#allocation18_spill] sm:$0xff] %v28844_v20  ;;  %v31082_v25 = vld [vmem:[#allocation48_spill] sm:$0xff] }
 0x7cf   :  { %22913 = vmatmul.mubr.msk.f32.gmra.mrb[32].mxu1 %vm170_vm3, %v31076_v6  ;;  %v31083_v6 = vld [vmem:[#allocation49_spill] sm:$0xff] }
 0x7d0   :  { %22915 = vmatprep.mubr.msk.f32.mxu1 %vm170_vm3, %v31077_v49  ;;  %v31084_v49 = vld [vmem:[#allocation50_spill] sm:$0xff] }
 0x7d3   :  { %22916 = vmatmul.mubr.msk.f32.gmra.mrb[34].mxu1 %vm170_vm3, %v31078_v7  ;;  %v31085_v7 = vld [vmem:[#allocation51_spill] sm:$0xff] }
 0x7d4   :  { %22918 = vmatprep.mubr.msk.f32.mxu1 %vm170_vm3, %v31079_v21  ;;  %v31086_v21 = vld [vmem:[#allocation52_spill] sm:$0xff] }
 0x7d7   :  { %22919 = vmatmul.mubr.msk.f32.gmra.mrb[36].mxu1 %vm170_vm3, %v31080_v23  ;;  %v31087_v23 = vld [vmem:[#allocation53_spill] sm:$0xff] }
 0x7d8   :  { %22921 = vmatprep.mubr.msk.f32.mxu1 %vm170_vm3, %v28840_v19 }
 0x7db   :  { %22922 = vmatmul.mubr.msk.f32.gmra.mrb[38].mxu1 %vm170_vm3, %v28844_v20  ;;  %v31088_v20 = vld [vmem:[#allocation54_spill] sm:$0xff] }
 0x7dc   :  { %22924 = vmatprep.mubr.msk.f32.mxu1 %vm170_vm3, %v28259_v59  ;;  %v31089_v59 = vld [vmem:[#allocation55_spill] sm:$0xff] }
 0x7df   :  { %22925 = vmatmul.mubr.msk.f32.gmra.mrb[40].mxu1 %vm170_vm3, %v31082_v25  ;;  %v31090_v25 = vld [vmem:[#allocation56_spill] sm:$0xff] }
 0x7e0   :  { %22927 = vmatprep.mubr.msk.f32.mxu1 %vm170_vm3, %v31083_v6  ;;  %v31091_v6 = vld [vmem:[#allocation57_spill] sm:$0xff] }
 0x7e3   :  { %22928 = vmatmul.mubr.msk.f32.gmra.mrb[42].mxu1 %vm170_vm3, %v31084_v49  ;;  %v31092_v49 = vld [vmem:[#allocation58_spill] sm:$0xff] }
 0x7e4   :  { %22930 = vmatprep.mubr.msk.f32.mxu1 %vm170_vm3, %v31085_v7  ;;  %v31093_v7 = vld [vmem:[#allocation59_spill] sm:$0xff] }
 0x7e7   :  { %22931 = vmatmul.mubr.msk.f32.gmra.mrb[44].mxu1 %vm170_vm3, %v31086_v21  ;;  %v31094_v21 = vld [vmem:[#allocation60_spill] sm:$0xff] }
 0x7e8   :  { %22933 = vmatprep.mubr.msk.f32.mxu1 %vm170_vm3, %v31087_v23  ;;  %v31095_v23 = vld [vmem:[#allocation61_spill] sm:$0xff] }
 0x7eb   :  { %22934 = vmatmul.mubr.msk.f32.gmra.mrb[46].mxu1 %vm170_vm3, %v31088_v20  ;;  %v31096_v20 = vld [vmem:[#allocation62_spill] sm:$0xff] }
 0x7ec   :  { %22936 = vmatprep.mubr.msk.f32.mxu1 %vm170_vm3, %v31089_v59  ;;  %v31097_v59 = vld [vmem:[#allocation63_spill] sm:$0xff] }
 0x7ef   :  { %22937 = vmatmul.mubr.msk.f32.gmra.mrb[48].mxu1 %vm170_vm3, %v31090_v25  ;;  %v31098_v25 = vld [vmem:[#allocation64_spill] sm:$0xff] }
 0x7f0   :  { %22939 = vmatprep.mubr.msk.f32.mxu1 %vm170_vm3, %v31091_v6  ;;  %v31099_v6 = vld [vmem:[#allocation65_spill] sm:$0xff] }
 0x7f3   :  { %22940 = vmatmul.mubr.msk.f32.gmra.mrb[50].mxu1 %vm170_vm3, %v31092_v49  ;;  %v31100_v49 = vld [vmem:[#allocation66_spill] sm:$0xff] }
 0x7f4   :  { %22942 = vmatprep.mubr.msk.f32.mxu1 %vm170_vm3, %v31093_v7  ;;  %v31101_v7 = vld [vmem:[#allocation67_spill] sm:$0xff] }
 0x7f7   :  { %22943 = vmatmul.mubr.msk.f32.gmra.mrb[52].mxu1 %vm170_vm3, %v31094_v21  ;;  %v31102_v21 = vld [vmem:[#allocation10_spill] sm:$0xff] }
 0x7f8   :  { %22945 = vmatprep.mubr.msk.f32.mxu1 %vm170_vm3, %v31095_v23  ;;  %v31103_v23 = vld [vmem:[#allocation11_spill] sm:$0xff] }
 0x7fb   :  { %22946 = vmatmul.mubr.msk.f32.gmra.mrb[54].mxu1 %vm170_vm3, %v31096_v20  ;;  %v31104_v20 = vld [vmem:[#allocation12_spill] sm:$0xff] }
 0x7fc   :  { %22948 = vmatprep.mubr.msk.f32.mxu1 %vm170_vm3, %v31097_v59  ;;  %v31105_v59 = vld [vmem:[#allocation13_spill] sm:$0xff] }
 0x7ff   :  { %22949 = vmatmul.mubr.msk.f32.gmra.mrb[56].mxu1 %vm170_vm3, %v31098_v25  ;;  %v31106_v25 = vld [vmem:[#allocation68_spill] sm:$0xff] }
 0x800   :  { %22951 = vmatprep.mubr.msk.f32.mxu1 %vm170_vm3, %v31099_v6  ;;  %v28908_v6 = vld [vmem:[#allocation3 + $0x332] sm:$0xff] }
 0x803   :  { %22952 = vmatmul.mubr.msk.f32.gmra.mrb[58].mxu1 %vm170_vm3, %v31100_v49  ;;  %v28912_v49 = vld [vmem:[#allocation3 + $0x33a] sm:$0xff] }
 0x804   :  { %22954 = vmatprep.mubr.msk.f32.mxu1 %vm170_vm3, %v31101_v7  ;;  %v11009_v7 = vld [vmem:[#allocation3 + $0x50] sm:$0xff] }
 0x807   :  { %22955 = vmatmul.mubr.msk.f32.gmra.mrb[60].mxu1 %vm170_vm3, %v31102_v21  ;;  %v11010_v21 = vld [vmem:[#allocation3 + $0x60] sm:$0xff] }
 0x808   :  { %22957 = vmatprep.mubr.msk.f32.mxu1 %vm170_vm3, %v31103_v23  ;;  %v11011_v23 = vld [vmem:[#allocation3 + $0x68] sm:$0xff] }
 0x80b   :  { %22958 = vmatmul.mubr.msk.f32.gmra.mrb[62].mxu1 %vm170_vm3, %v31104_v20  ;;  %v11012_v20 = vld [vmem:[#allocation3 + $0x78] sm:$0xff] }
 0x80c   :  { %22960 = vmatprep.mubr.msk.f32.mxu1 %vm170_vm3, %v31105_v59  ;;  %v11013_v59 = vld [vmem:[#allocation3 + $0x80] sm:$0xff] }
 0x80f   :  { %22961 = vmatmul.mubr.msk.f32.gmra.mrb[64].mxu1 %vm170_vm3, %v28359_v17  ;;  %v11006_v17 = vld [vmem:[#allocation3 + $0x30] sm:$0xff] }
 0x810   :  { %22963 = vmatprep.mubr.msk.f32.mxu1 %vm170_vm3, %v31106_v25  ;;  %v11015_v25 = vld [vmem:[#allocation3 + $0x98] sm:$0xff] }
 0x813   :  { %22964 = vmatmul.mubr.msk.f32.gmra.mrb[66].mxu1 %vm170_vm3, %v28367_v58  ;;  %v11007_v58 = vld [vmem:[#allocation3 + $0x38] sm:$0xff] }
 0x814   :  { %22966 = vmatprep.mubr.msk.f32.mxu1 %vm170_vm3, %v28371_v16  ;;  %v28920_v16 = vld [vmem:[%s30666_s3 + $0x40] sm:$0xff] }
 0x817   :  { %22967 = vmatmul.mubr.msk.f32.gmra.mrb[68].mxu1 %vm170_vm3, %v28375_v15  ;;  %v11008_v15 = vld [vmem:[#allocation3 + $0x48] sm:$0xff] }
 0x818   :  { %22969 = vmatprep.mubr.msk.f32.mxu1 %vm170_vm3, %v28908_v6 }
 0x81b   :  { %22970 = vmatmul.mubr.msk.f32.gmra.mrb[70].mxu1 %vm170_vm3, %v28912_v49 }
 0x81c   :  { %22974 = vmatprep.mubr.msk.f32.mxu1 %vm170_vm3, %v11006_v17  ;;  %v11016_v17 = vld [vmem:[#allocation3 + $0xa8] sm:$0xff] }
 0x81f   :  { %22975 = vmatmul.mubr.msk.f32.vlgmr.msra.gmra.mrb[8].mxu1 %vm170_vm3, %v11007_v58  ;;  %v11017_v58 = vld [vmem:[#allocation3 + $0xb0] sm:$0xff] }
 0x820   :  { %23071 = vmatpush3.msra.mxu1 %v28778_v24  ;;  %22977 = vmatprep.mubr.msk.f32.mxu1 %vm170_vm3, %v11008_v15  ;;  %v11014_v24 = vld [vmem:[#allocation3 + $0x90] sm:$0xff]  ;;  %v11018_v15 = vld [vmem:[#allocation3 + $0xc0] sm:$0xff] }
 0x821   :  { %23168 = vmatprep.subr.mxu1 %v28920_v16 }
 0x823   :  { %22978 = vmatmul.mubr.msk.f32.gmra.mrb[10].mxu1 %vm170_vm3, %v11009_v7  ;;  %v11019_v7 = vld [vmem:[#allocation3 + $0xc8] sm:$0xff] }
 0x824   :  { %22980 = vmatprep.mubr.msk.f32.mxu1 %vm170_vm3, %v11010_v21  ;;  %v11020_v21 = vld [vmem:[#allocation3 + $0xd8] sm:$0xff] }
 0x827   :  { %22981 = vmatmul.mubr.msk.f32.gmra.mrb[12].mxu1 %vm170_vm3, %v11011_v23  ;;  %v11021_v23 = vld [vmem:[#allocation3 + $0xe0] sm:$0xff] }
 0x828   :  { %22983 = vmatprep.mubr.msk.f32.mxu1 %vm170_vm3, %v11012_v20  ;;  %v11022_v20 = vld [vmem:[#allocation3 + $0xf0] sm:$0xff] }
 0x82b   :  { %22984 = vmatmul.mubr.msk.f32.gmra.mrb[14].mxu1 %vm170_vm3, %v11013_v59  ;;  %v11023_v59 = vld [vmem:[#allocation3 + $0xf8] sm:$0xff] }
 0x82c   :  { %22986 = vmatprep.mubr.msk.f32.mxu1 %vm170_vm3, %v11014_v24  ;;  %v11024_v24 = vld [vmem:[#allocation3 + $0x108] sm:$0xff] }
 0x82f   :  { %22987 = vmatmul.mubr.msk.f32.gmra.mrb[16].mxu1 %vm170_vm3, %v11015_v25  ;;  %v11025_v25 = vld [vmem:[#allocation3 + $0x110] sm:$0xff] }
 0x830   :  { %22989 = vmatprep.mubr.msk.f32.mxu1 %vm170_vm3, %v11016_v17  ;;  %v11026_v17 = vld [vmem:[#allocation3 + $0x120] sm:$0xff] }
 0x833   :  { %22990 = vmatmul.mubr.msk.f32.gmra.mrb[18].mxu1 %vm170_vm3, %v11017_v58  ;;  %v11027_v58 = vld [vmem:[#allocation3 + $0x128] sm:$0xff] }
 0x834   :  { %22992 = vmatprep.mubr.msk.f32.mxu1 %vm170_vm3, %v11018_v15  ;;  %v11028_v15 = vld [vmem:[#allocation3 + $0x138] sm:$0xff] }
 0x837   :  { %22993 = vmatmul.mubr.msk.f32.gmra.mrb[20].mxu1 %vm170_vm3, %v11019_v7  ;;  %v11029_v7 = vld [vmem:[#allocation3 + $0x140] sm:$0xff] }
 0x838   :  { %22995 = vmatprep.mubr.msk.f32.mxu1 %vm170_vm3, %v11020_v21  ;;  %v11030_v21 = vld [vmem:[#allocation3 + $0x150] sm:$0xff] }
 0x83b   :  { %22996 = vmatmul.mubr.msk.f32.gmra.mrb[22].mxu1 %vm170_vm3, %v11021_v23  ;;  %v11031_v23 = vld [vmem:[#allocation3 + $0x158] sm:$0xff] }
 0x83c   :  { %22998 = vmatprep.mubr.msk.f32.mxu1 %vm170_vm3, %v11022_v20  ;;  %v11032_v20 = vld [vmem:[#allocation3 + $0x168] sm:$0xff] }
 0x83f   :  { %22999 = vmatmul.mubr.msk.f32.gmra.mrb[24].mxu1 %vm170_vm3, %v11023_v59  ;;  %v11033_v59 = vld [vmem:[#allocation3 + $0x170] sm:$0xff] }
 0x840   :  { %23001 = vmatprep.mubr.msk.f32.mxu1 %vm170_vm3, %v11024_v24  ;;  %v11036_v24 = vld [vmem:[#allocation3 + $0x198] sm:$0xff] }
 0x843   :  { %23002 = vmatmul.mubr.msk.f32.gmra.mrb[26].mxu1 %vm170_vm3, %v11025_v25  ;;  %v11037_v25 = vld [vmem:[#allocation3 + $0x1a0] sm:$0xff] }
 0x844   :  { %23004 = vmatprep.mubr.msk.f32.mxu1 %vm170_vm3, %v11026_v17  ;;  %v11038_v17 = vld [vmem:[#allocation3 + $0x1e0] sm:$0xff] }
 0x847   :  { %23005 = vmatmul.mubr.msk.f32.gmra.mrb[28].mxu1 %vm170_vm3, %v11027_v58  ;;  %v11039_v58 = vld [vmem:[#allocation3 + $0x1e8] sm:$0xff] }
 0x848   :  { %23007 = vmatprep.mubr.msk.f32.mxu1 %vm170_vm3, %v11028_v15  ;;  %v11040_v15 = vld [vmem:[#allocation3 + $0x1f8] sm:$0xff] }
 0x84b   :  { %23008 = vmatmul.mubr.msk.f32.gmra.mrb[30].mxu1 %vm170_vm3, %v11029_v7  ;;  %v11041_v7 = vld [vmem:[#allocation3 + $0x200] sm:$0xff] }
 0x84c   :  { %23010 = vmatprep.mubr.msk.f32.mxu1 %vm170_vm3, %v11030_v21  ;;  %v11044_v21 = vld [vmem:[#allocation3 + $0x228] sm:$0xff] }
 0x84f   :  { %23011 = vmatmul.mubr.msk.f32.gmra.mrb[32].mxu1 %vm170_vm3, %v11031_v23  ;;  %v11045_v23 = vld [vmem:[#allocation3 + $0x230] sm:$0xff] }
 0x850   :  { %23013 = vmatprep.mubr.msk.f32.mxu1 %vm170_vm3, %v11032_v20  ;;  %v11046_v20 = vld [vmem:[#allocation3 + $0x240] sm:$0xff] }
 0x853   :  { %23014 = vmatmul.mubr.msk.f32.gmra.mrb[34].mxu1 %vm170_vm3, %v11033_v59  ;;  %v11047_v59 = vld [vmem:[#allocation3 + $0x248] sm:$0xff] }
 0x854   :  { %23016 = vmatprep.mubr.msk.f32.mxu1 %vm170_vm3, %v28446_v39  ;;  %v11042_v39 = vld [vmem:[#allocation3 + $0x210] sm:$0xff] }
 0x857   :  { %23017 = vmatmul.mubr.msk.f32.gmra.mrb[36].mxu1 %vm170_vm3, %v28450_v18  ;;  %v11043_v18 = vld [vmem:[#allocation3 + $0x218] sm:$0xff] }
 0x858   :  { %23019 = vmatprep.mubr.msk.f32.mxu1 %vm170_vm3, %v11036_v24  ;;  %v11048_v24 = vld [vmem:[#allocation3 + $0x258] sm:$0xff] }
 0x85b   :  { %23020 = vmatmul.mubr.msk.f32.gmra.mrb[38].mxu1 %vm170_vm3, %v11037_v25  ;;  %v11049_v25 = vld [vmem:[#allocation3 + $0x260] sm:$0xff] }
 0x85c   :  { %23022 = vmatprep.mubr.msk.f32.mxu1 %vm170_vm3, %v11038_v17  ;;  %v11050_v17 = vld [vmem:[#allocation3 + $0x270] sm:$0xff] }
 0x85f   :  { %23023 = vmatmul.mubr.msk.f32.gmra.mrb[40].mxu1 %vm170_vm3, %v11039_v58  ;;  %v11051_v58 = vld [vmem:[#allocation3 + $0x278] sm:$0xff] }
 0x860   :  { %23025 = vmatprep.mubr.msk.f32.mxu1 %vm170_vm3, %v11040_v15  ;;  %v11052_v15 = vld [vmem:[#allocation3 + $0x288] sm:$0xff] }
 0x863   :  { %23026 = vmatmul.mubr.msk.f32.gmra.mrb[42].mxu1 %vm170_vm3, %v11041_v7  ;;  %v11053_v7 = vld [vmem:[#allocation3 + $0x290] sm:$0xff] }
 0x864   :  { %23028 = vmatprep.mubr.msk.f32.mxu1 %vm170_vm3, %v11042_v39  ;;  %v11054_v39 = vld [vmem:[#allocation3 + $0x2a0] sm:$0xff] }
 0x867   :  { %23029 = vmatmul.mubr.msk.f32.gmra.mrb[44].mxu1 %vm170_vm3, %v11043_v18  ;;  %v11055_v18 = vld [vmem:[#allocation3 + $0x2a8] sm:$0xff] }
 0x868   :  { %23031 = vmatprep.mubr.msk.f32.mxu1 %vm170_vm3, %v11044_v21  ;;  %v11056_v21 = vld [vmem:[#allocation3 + $0x2b8] sm:$0xff] }
 0x86b   :  { %23032 = vmatmul.mubr.msk.f32.gmra.mrb[46].mxu1 %vm170_vm3, %v11045_v23  ;;  %v11057_v23 = vld [vmem:[#allocation3 + $0x2c0] sm:$0xff] }
 0x86c   :  { %23034 = vmatprep.mubr.msk.f32.mxu1 %vm170_vm3, %v11046_v20  ;;  %v11058_v20 = vld [vmem:[#allocation3 + $0x2d0] sm:$0xff] }
 0x86f   :  { %23035 = vmatmul.mubr.msk.f32.gmra.mrb[48].mxu1 %vm170_vm3, %v11047_v59  ;;  %v11059_v59 = vld [vmem:[#allocation3 + $0x2d8] sm:$0xff] }
 0x870   :  { %23037 = vmatprep.mubr.msk.f32.mxu1 %vm170_vm3, %v11048_v24  ;;  %v11060_v24 = vld [vmem:[#allocation3 + $0x2e8] sm:$0xff] }
 0x873   :  { %23038 = vmatmul.mubr.msk.f32.gmra.mrb[50].mxu1 %vm170_vm3, %v11049_v25  ;;  %v11061_v25 = vld [vmem:[#allocation3 + $0x2f0] sm:$0xff] }
 0x874   :  { %23040 = vmatprep.mubr.msk.f32.mxu1 %vm170_vm3, %v11050_v17  ;;  %v11062_v17 = vld [vmem:[#allocation3 + $0x300] sm:$0xff] }
 0x877   :  { %23041 = vmatmul.mubr.msk.f32.gmra.mrb[52].mxu1 %vm170_vm3, %v11051_v58  ;;  %v11063_v58 = vld [vmem:[#allocation3 + $0x308] sm:$0xff] }
 0x878   :  { %23043 = vmatprep.mubr.msk.f32.mxu1 %vm170_vm3, %v11052_v15  ;;  %v11064_v15 = vld [vmem:[#allocation3 + $0x318] sm:$0xff] }
 0x87b   :  { %23044 = vmatmul.mubr.msk.f32.gmra.mrb[54].mxu1 %vm170_vm3, %v11053_v7  ;;  %v11065_v7 = vld [vmem:[#allocation3 + $0x320] sm:$0xff] }
 0x87c   :  { %23046 = vmatprep.mubr.msk.f32.mxu1 %vm170_vm3, %v11054_v39  ;;  %v11068_v39 = vld [vmem:[#allocation3 + $0x348] sm:$0xff] }
 0x87f   :  { %23047 = vmatmul.mubr.msk.f32.gmra.mrb[56].mxu1 %vm170_vm3, %v11055_v18  ;;  %v11069_v18 = vld [vmem:[#allocation3 + $0x350] sm:$0xff] }
 0x880   :  { %23049 = vmatprep.mubr.msk.f32.mxu1 %vm170_vm3, %v11056_v21  ;;  %v12450_v21 = vld [vmem:[#allocation3 + $0x19a] sm:$0xff] }
 0x883   :  { %23050 = vmatmul.mubr.msk.f32.gmra.mrb[58].mxu1 %vm170_vm3, %v11057_v23  ;;  %v31121_v23 = vld [vmem:[#allocation18_spill] sm:$0xff] }
 0x884   :  { %23052 = vmatprep.mubr.msk.f32.mxu1 %vm170_vm3, %v11058_v20  ;;  %v12451_v20 = vld [vmem:[#allocation3 + $0x1a2] sm:$0xff] }
 0x887   :  { %23053 = vmatmul.mubr.msk.f32.gmra.mrb[60].mxu1 %vm170_vm3, %v11059_v59  ;;  %v12452_v59 = vld [vmem:[#allocation3 + $0x1e2] sm:$0xff] }
 0x888   :  { %23055 = vmatprep.mubr.msk.f32.mxu1 %vm170_vm3, %v11060_v24  ;;  %v12453_v24 = vld [vmem:[#allocation3 + $0x1ea] sm:$0xff] }
 0x88b   :  { %23056 = vmatmul.mubr.msk.f32.gmra.mrb[62].mxu1 %vm170_vm3, %v11061_v25  ;;  %v12454_v25 = vld [vmem:[#allocation3 + $0x1fa] sm:$0xff] }
 0x88c   :  { %23058 = vmatprep.mubr.msk.f32.mxu1 %vm170_vm3, %v11062_v17  ;;  %v12455_v17 = vld [vmem:[#allocation3 + $0x202] sm:$0xff] }
 0x88f   :  { %23059 = vmatmul.mubr.msk.f32.gmra.mrb[64].mxu1 %vm170_vm3, %v11063_v58  ;;  %v12457_v58 = vld [vmem:[#allocation3 + $0x21a] sm:$0xff] }
 0x890   :  { %23061 = vmatprep.mubr.msk.f32.mxu1 %vm170_vm3, %v11064_v15  ;;  %v12458_v15 = vld [vmem:[#allocation3 + $0x22a] sm:$0xff] }
 0x893   :  { %23062 = vmatmul.mubr.msk.f32.gmra.mrb[66].mxu1 %vm170_vm3, %v11065_v7  ;;  %v12459_v7 = vld [vmem:[#allocation3 + $0x232] sm:$0xff] }
 0x894   :  { %23064 = vmatprep.mubr.msk.f32.mxu1 %vm170_vm3, %v28514_v60  ;;  %v11743_v60 = vld [vmem:[#allocation3 + $0x199] sm:$0xff] }
 0x897   :  { %23065 = vmatmul.mubr.msk.f32.gmra.mrb[68].mxu1 %vm170_vm3, %v28518_v22  ;;  %v11744_v22 = vld [vmem:[#allocation3 + $0x1a1] sm:$0xff] }
 0x898   :  { %23067 = vmatprep.mubr.msk.f32.mxu1 %vm170_vm3, %v11068_v39  ;;  %v12460_v39 = vld [vmem:[#allocation3 + $0x242] sm:$0xff] }
 0x89b   :  { %23068 = vmatmul.mubr.msk.f32.gmra.mrb[70].mxu1 %vm170_vm3, %v11069_v18  ;;  %v12461_v18 = vld [vmem:[#allocation3 + $0x24a] sm:$0xff] }
 0x89c   :  { %23072 = vmatprep.mubr.msk.f32.mxu1 %vm170_vm3, %v28529_v26  ;;  %v31107_v26 = vld [vmem:[#allocation69_spill] sm:$0xff] }
 0x89f   :  { %23073 = vmatmul.mubr.msk.f32.vlgmr.msra.gmra.mrb[8].mxu1 %vm170_vm3, %v28535_v27  ;;  %v31108_v27 = vld [vmem:[#allocation70_spill] sm:$0xff] }
 0x8a0   :  { %23169 = vmatpush3.msra.mxu1 %v28920_v16  ;;  %23075 = vmatprep.mubr.msk.f32.mxu1 %vm170_vm3, %v28539_v30  ;;  %v31109_v30 = vld [vmem:[#allocation71_spill] sm:$0xff]  ;;  %v12447_v16 = vld [vmem:[#allocation3 + $0x172] sm:$0xff] }
 0x8a3   :  { %23076 = vmatmul.mubr.msk.f32.gmra.mrb[10].mxu1 %vm170_vm3, %v28543_v31  ;;  %v31110_v31 = vld [vmem:[#allocation72_spill] sm:$0xff] }
 0x8a4   :  { %23078 = vmatprep.mubr.msk.f32.mxu1 %vm170_vm3, %v28547_v32  ;;  %v31111_v32 = vld [vmem:[#allocation73_spill] sm:$0xff] }
 0x8a7   :  { %23079 = vmatmul.mubr.msk.f32.gmra.mrb[12].mxu1 %vm170_vm3, %v28551_v33  ;;  %v31112_v33 = vld [vmem:[#allocation74_spill] sm:$0xff] }
 0x8a8   :  { %23081 = vmatprep.mubr.msk.f32.mxu1 %vm170_vm3, %v28555_v34  ;;  %v31113_v34 = vld [vmem:[#allocation75_spill] sm:$0xff] }
 0x8ab   :  { %23082 = vmatmul.mubr.msk.f32.gmra.mrb[14].mxu1 %vm170_vm3, %v28559_v35  ;;  %v31114_v35 = vld [vmem:[#allocation76_spill] sm:$0xff] }
 0x8ac   :  { %23084 = vmatprep.mubr.msk.f32.mxu1 %vm170_vm3, %v28563_v36  ;;  %v31115_v36 = vld [vmem:[#allocation77_spill] sm:$0xff] }
 0x8af   :  { %23085 = vmatmul.mubr.msk.f32.gmra.mrb[16].mxu1 %vm170_vm3, %v28567_v37  ;;  %v31116_v37 = vld [vmem:[#allocation78_spill] sm:$0xff] }
 0x8b0   :  { %23087 = vmatprep.mubr.msk.f32.mxu1 %vm170_vm3, %v28571_v38  ;;  %v31117_v38 = vld [vmem:[#allocation14_spill] sm:$0xff] }
 0x8b3   :  { %23088 = vmatmul.mubr.msk.f32.gmra.mrb[18].mxu1 %vm170_vm3, %v28575_v40  ;;  %v31118_v40 = vld [vmem:[#allocation15_spill] sm:$0xff] }
 0x8b4   :  { %23090 = vmatprep.mubr.msk.f32.mxu1 %vm170_vm3, %v28579_v50  ;;  %v31119_v50 = vld [vmem:[#allocation16_spill] sm:$0xff] }
 0x8b7   :  { %23091 = vmatmul.mubr.msk.f32.gmra.mrb[20].mxu1 %vm170_vm3, %v28583_v51  ;;  %v11775_v51 = vld [vmem:[#allocation3 + $0x349] sm:$0xff] }
 0x8b8   :  { %23093 = vmatprep.mubr.msk.f32.mxu1 %vm170_vm3, %v28587_v52  ;;  %v31120_v52 = vld [vmem:[#allocation17_spill] sm:$0xff] }
 0x8bb   :  { %23094 = vmatmul.mubr.msk.f32.gmra.mrb[22].mxu1 %vm170_vm3, %v28591_v53  ;;  %v11776_v53 = vld [vmem:[#allocation3 + $0x351] sm:$0xff] }
 0x8bc   :  { %23096 = vmatprep.mubr.msk.f32.mxu1 %vm170_vm3, %v28595_v54  ;;  %v12420_v54 = vld [vmem:[#allocation3 + $0x32] sm:$0xff] }
 0x8bf   :  { %23097 = vmatmul.mubr.msk.f32.gmra.mrb[24].mxu1 %vm170_vm3, %v28599_v55  ;;  %v19493_v55 = vld [vmem:[%s30668_s5 + $0x10] sm:$0xff] }
 0x8c0   :  { %23099 = vmatprep.mubr.msk.f32.mxu1 %vm170_vm3, %v28603_v56  ;;  %v19494_v56 = vld [vmem:[%s30668_s5 + $0x18] sm:$0xff] }
 0x8c3   :  { %23100 = vmatmul.mubr.msk.f32.gmra.mrb[26].mxu1 %vm170_vm3, %v28607_v29  ;;  %v23841_v29 = vpack.c.bf16 %v19494_v56, %v19493_v55  ;;  %v12479_v55 = vld [vmem:[#allocation3 + $0x322] sm:$0xff]  ;;  %v12482_v56 = vld [vmem:[#allocation3 + $0x34a] sm:$0xff] }
 0x8c4   :  { %23102 = vmatprep.mubr.msk.f32.mxu1 %vm170_vm3, %v28611_v62  ;;  %v12421_v62 = vld [vmem:[#allocation3 + $0x3a] sm:$0xff] }
 0x8c5   :  { %23842 = vmatprep.subr.bf16.mxu0 %v23841_v29 }
 0x8c6   :  { %23844 = vmatpush3.bf16.msra.mxu0 %v23841_v29  ;;  %v12483_v29 = vld [vmem:[#allocation3 + $0x352] sm:$0xff] }
 0x8c7   :  { %23103 = vmatmul.mubr.msk.f32.gmra.mrb[28].mxu1 %vm170_vm3, %v28615_v28  ;;  %v12422_v28 = vld [vmem:[#allocation3 + $0x4a] sm:$0xff] }
 0x8c8   :  { %23105 = vmatprep.mubr.msk.f32.mxu1 %vm170_vm3, %v28619_v57  ;;  %v12423_v57 = vld [vmem:[#allocation3 + $0x52] sm:$0xff] }
 0x8cb   :  { %23106 = vmatmul.mubr.msk.f32.gmra.mrb[30].mxu1 %vm170_vm3, %v28623_v41  ;;  %v12424_v41 = vld [vmem:[#allocation3 + $0x62] sm:$0xff] }
 0x8cc   :  { %23108 = vmatprep.mubr.msk.f32.mxu1 %vm170_vm3, %v28627_v63  ;;  %v12425_v63 = vld [vmem:[#allocation3 + $0x6a] sm:$0xff] }
 0x8cf   :  { %23109 = vmatmul.mubr.msk.f32.gmra.mrb[32].mxu1 %vm170_vm3, %v28631_v2  ;;  %v12426_v2 = vld [vmem:[#allocation3 + $0x7a] sm:$0xff] }
 0x8d0   :  { %23111 = vmatprep.mubr.msk.f32.mxu1 %vm170_vm3, %v28635_v43  ;;  %v12427_v43 = vld [vmem:[#allocation3 + $0x82] sm:$0xff] }
 0x8d3   :  { %23112 = vmatmul.mubr.msk.f32.gmra.mrb[34].mxu1 %vm170_vm3, %v28639_v44  ;;  %v12428_v44 = vld [vmem:[#allocation3 + $0x92] sm:$0xff] }
 0x8d4   :  { %23114 = vmatprep.mubr.msk.f32.mxu1 %vm170_vm3, %v28643_v42  ;;  %v12429_v42 = vld [vmem:[#allocation3 + $0x9a] sm:$0xff] }
 0x8d7   :  { %23115 = vmatmul.mubr.msk.f32.gmra.mrb[36].mxu1 %vm170_vm3, %v28647_v0  ;;  %v12430_v0 = vld [vmem:[#allocation3 + $0xaa] sm:$0xff] }
 0x8d8   :  { %23117 = vmatprep.mubr.msk.f32.mxu1 %vm170_vm3, %v11743_v60  ;;  %v12462_v60 = vld [vmem:[#allocation3 + $0x25a] sm:$0xff] }
 0x8db   :  { %23118 = vmatmul.mubr.msk.f32.gmra.mrb[38].mxu1 %vm170_vm3, %v11744_v22  ;;  %v12463_v22 = vld [vmem:[#allocation3 + $0x262] sm:$0xff] }
 0x8dc   :  { %23120 = vmatprep.mubr.msk.f32.mxu1 %vm170_vm3, %v28653_v45  ;;  %v12431_v45 = vld [vmem:[#allocation3 + $0xb2] sm:$0xff] }
 0x8df   :  { %23121 = vmatmul.mubr.msk.f32.gmra.mrb[40].mxu1 %vm170_vm3, %v28657_v61  ;;  %v12432_v61 = vld [vmem:[#allocation3 + $0xc2] sm:$0xff] }
 0x8e0   :  { %23123 = vmatprep.mubr.msk.f32.mxu1 %vm170_vm3, %v28661_v46  ;;  %v12433_v46 = vld [vmem:[#allocation3 + $0xca] sm:$0xff] }
 0x8e3   :  { %23124 = vmatmul.mubr.msk.f32.gmra.mrb[42].mxu1 %vm170_vm3, %v28665_v3  ;;  %v12434_v3 = vld [vmem:[#allocation3 + $0xda] sm:$0xff] }
 0x8e4   :  { %23126 = vmatprep.mubr.msk.f32.mxu1 %vm170_vm3, %v28669_v5  ;;  %v12435_v5 = vld [vmem:[#allocation3 + $0xe2] sm:$0xff] }
 0x8e7   :  { %23127 = vmatmul.mubr.msk.f32.gmra.mrb[44].mxu1 %vm170_vm3, %v28673_v8  ;;  %v12436_v8 = vld [vmem:[#allocation3 + $0xf2] sm:$0xff] }
 0x8e8   :  { %23129 = vmatprep.mubr.msk.f32.mxu1 %vm170_vm3, %v28677_v4  ;;  %v12437_v4 = vld [vmem:[#allocation3 + $0xfa] sm:$0xff] }
 0x8eb   :  { %23130 = vmatmul.mubr.msk.f32.gmra.mrb[46].mxu1 %vm170_vm3, %v28681_v10  ;;  %v12438_v10 = vld [vmem:[#allocation3 + $0x10a] sm:$0xff] }
 0x8ec   :  { %23132 = vmatprep.mubr.msk.f32.mxu1 %vm170_vm3, %v28685_v11  ;;  %v12439_v11 = vld [vmem:[#allocation3 + $0x112] sm:$0xff] }
 0x8ef   :  { %23133 = vmatmul.mubr.msk.f32.gmra.mrb[48].mxu1 %vm170_vm3, %v28689_v47  ;;  %v12440_v47 = vld [vmem:[#allocation3 + $0x122] sm:$0xff] }
 0x8f0   :  { %23135 = vmatprep.mubr.msk.f32.mxu1 %vm170_vm3, %v28693_v12  ;;  %v12441_v12 = vld [vmem:[#allocation3 + $0x12a] sm:$0xff] }
 0x8f3   :  { %23136 = vmatmul.mubr.msk.f32.gmra.mrb[50].mxu1 %vm170_vm3, %v28697_v9  ;;  %v12442_v9 = vld [vmem:[#allocation3 + $0x13a] sm:$0xff] }
 0x8f4   :  { %23138 = vmatprep.mubr.msk.f32.mxu1 %vm170_vm3, %v28701_v13  ;;  %v12443_v13 = vld [vmem:[#allocation3 + $0x142] sm:$0xff] }
 0x8f7   :  { %23139 = vmatmul.mubr.msk.f32.gmra.mrb[52].mxu1 %vm170_vm3, %v28705_v14  ;;  %v12444_v14 = vld [vmem:[#allocation3 + $0x152] sm:$0xff] }
 0x8f8   :  { %23141 = vmatprep.mubr.msk.f32.mxu1 %vm170_vm3, %v28709_v48  ;;  %v12445_v48 = vld [vmem:[#allocation3 + $0x15a] sm:$0xff] }
 0x8fb   :  { %23142 = vmatmul.mubr.msk.f32.gmra.mrb[54].mxu1 %vm170_vm3, %v28713_v1  ;;  %v12446_v1 = vld [vmem:[#allocation3 + $0x16a] sm:$0xff] }
 0x8fc   :  { %23144 = vmatprep.mubr.msk.f32.mxu1 %vm170_vm3, %v31107_v26  ;;  %v12464_v26 = vld [vmem:[#allocation3 + $0x272] sm:$0xff] }
 0x8ff   :  { %23145 = vmatmul.mubr.msk.f32.gmra.mrb[56].mxu1 %vm170_vm3, %v31108_v27  ;;  %v31122_v27 = vmov 0.0  }
 0x900   :  { %23147 = vmatprep.mubr.msk.f32.mxu1 %vm170_vm3, %v31109_v30  ;;  %284 = vst.msk [vmem:[#allocation4 + $0x10] sm:$0xff] %vm280_vm5, %v31122_v27  ;;  %281 = vst.msk [vmem:[#allocation4] sm:$0xff] %vm280_vm5, %v31122_v27  ;;  %v12465_v30 = vld [vmem:[#allocation3 + $0x27a] sm:$0xff] }
 0x901   :  { %285 = vst.msk [vmem:[#allocation4 + $0x18] sm:$0x3] %vm282_vm6, %v31122_v27  ;;  %283 = vst.msk [vmem:[#allocation4 + $0x8] sm:$0x3] %vm282_vm6, %v31122_v27 }
 0x902   :  { %286 = vst.msk [vmem:[#allocation4 + $0x20] sm:$0xff] %vm280_vm5, %v31122_v27  ;;  %288 = vst.msk [vmem:[#allocation4 + $0x30] sm:$0xff] %vm280_vm5, %v31122_v27 }
 0x903   :  { %23148 = vmatmul.mubr.msk.f32.gmra.mrb[58].mxu1 %vm170_vm3, %v31110_v31  ;;  %287 = vst.msk [vmem:[#allocation4 + $0x28] sm:$0x3] %vm282_vm6, %v31122_v27  ;;  %289 = vst.msk [vmem:[#allocation4 + $0x38] sm:$0x3] %vm282_vm6, %v31122_v27  ;;  %v12466_v31 = vld [vmem:[#allocation3 + $0x28a] sm:$0xff] }
 0x904   :  { %23150 = vmatprep.mubr.msk.f32.mxu1 %vm170_vm3, %v31111_v32  ;;  %290 = vst.msk [vmem:[#allocation4 + $0x40] sm:$0xff] %vm280_vm5, %v31122_v27  ;;  %292 = vst.msk [vmem:[#allocation4 + $0x50] sm:$0xff] %vm280_vm5, %v31122_v27  ;;  %v12467_v32 = vld [vmem:[#allocation3 + $0x292] sm:$0xff] }
 0x905   :  { %291 = vst.msk [vmem:[#allocation4 + $0x48] sm:$0x3] %vm282_vm6, %v31122_v27  ;;  %293 = vst.msk [vmem:[#allocation4 + $0x58] sm:$0x3] %vm282_vm6, %v31122_v27 }
 0x906   :  { %294 = vst.msk [vmem:[#allocation4 + $0x60] sm:$0xff] %vm280_vm5, %v31122_v27  ;;  %296 = vst.msk [vmem:[#allocation4 + $0x70] sm:$0xff] %vm280_vm5, %v31122_v27 }
 0x907   :  { %23151 = vmatmul.mubr.msk.f32.gmra.mrb[60].mxu1 %vm170_vm3, %v31112_v33  ;;  %295 = vst.msk [vmem:[#allocation4 + $0x68] sm:$0x3] %vm282_vm6, %v31122_v27  ;;  %297 = vst.msk [vmem:[#allocation4 + $0x78] sm:$0x3] %vm282_vm6, %v31122_v27  ;;  %v12468_v33 = vld [vmem:[#allocation3 + $0x2a2] sm:$0xff] }
 0x908   :  { %23153 = vmatprep.mubr.msk.f32.mxu1 %vm170_vm3, %v31113_v34  ;;  %298 = vst.msk [vmem:[#allocation4 + $0x80] sm:$0xff] %vm280_vm5, %v31122_v27  ;;  %300 = vst.msk [vmem:[#allocation4 + $0x90] sm:$0xff] %vm280_vm5, %v31122_v27  ;;  %v12469_v34 = vld [vmem:[#allocation3 + $0x2aa] sm:$0xff] }
 0x909   :  { %299 = vst.msk [vmem:[#allocation4 + $0x88] sm:$0x3] %vm282_vm6, %v31122_v27  ;;  %301 = vst.msk [vmem:[#allocation4 + $0x98] sm:$0x3] %vm282_vm6, %v31122_v27 }
 0x90a   :  { %302 = vst.msk [vmem:[#allocation4 + $0xa0] sm:$0xff] %vm280_vm5, %v31122_v27  ;;  %304 = vst.msk [vmem:[#allocation4 + $0xb0] sm:$0xff] %vm280_vm5, %v31122_v27 }
 0x90b   :  { %23154 = vmatmul.mubr.msk.f32.gmra.mrb[62].mxu1 %vm170_vm3, %v31114_v35  ;;  %303 = vst.msk [vmem:[#allocation4 + $0xa8] sm:$0x3] %vm282_vm6, %v31122_v27  ;;  %305 = vst.msk [vmem:[#allocation4 + $0xb8] sm:$0x3] %vm282_vm6, %v31122_v27  ;;  %v12470_v35 = vld [vmem:[#allocation3 + $0x2ba] sm:$0xff] }
 0x90c   :  { %23156 = vmatprep.mubr.msk.f32.mxu1 %vm170_vm3, %v31115_v36  ;;  %306 = vst.msk [vmem:[#allocation4 + $0xc0] sm:$0xff] %vm280_vm5, %v31122_v27  ;;  %308 = vst.msk [vmem:[#allocation4 + $0xd0] sm:$0xff] %vm280_vm5, %v31122_v27  ;;  %v12471_v36 = vld [vmem:[#allocation3 + $0x2c2] sm:$0xff] }
 0x90d   :  { %307 = vst.msk [vmem:[#allocation4 + $0xc8] sm:$0x3] %vm282_vm6, %v31122_v27  ;;  %309 = vst.msk [vmem:[#allocation4 + $0xd8] sm:$0x3] %vm282_vm6, %v31122_v27 }
 0x90e   :  { %310 = vst.msk [vmem:[#allocation4 + $0xe0] sm:$0xff] %vm280_vm5, %v31122_v27  ;;  %312 = vst.msk [vmem:[#allocation4 + $0xf0] sm:$0xff] %vm280_vm5, %v31122_v27 }
 0x90f   :  { %23157 = vmatmul.mubr.msk.f32.gmra.mrb[64].mxu1 %vm170_vm3, %v31116_v37  ;;  %311 = vst.msk [vmem:[#allocation4 + $0xe8] sm:$0x3] %vm282_vm6, %v31122_v27  ;;  %313 = vst.msk [vmem:[#allocation4 + $0xf8] sm:$0x3] %vm282_vm6, %v31122_v27  ;;  %v12472_v37 = vld [vmem:[#allocation3 + $0x2d2] sm:$0xff] }
 0x910   :  { %23159 = vmatprep.mubr.msk.f32.mxu1 %vm170_vm3, %v31117_v38  ;;  %314 = vst.msk [vmem:[#allocation4 + $0x100] sm:$0xff] %vm280_vm5, %v31122_v27  ;;  %316 = vst.msk [vmem:[#allocation4 + $0x110] sm:$0xff] %vm280_vm5, %v31122_v27  ;;  %v12473_v38 = vld [vmem:[#allocation3 + $0x2da] sm:$0xff] }
 0x911   :  { %315 = vst.msk [vmem:[#allocation4 + $0x108] sm:$0x3] %vm282_vm6, %v31122_v27  ;;  %317 = vst.msk [vmem:[#allocation4 + $0x118] sm:$0x3] %vm282_vm6, %v31122_v27 }
 0x912   :  { %318 = vst.msk [vmem:[#allocation4 + $0x120] sm:$0xff] %vm280_vm5, %v31122_v27  ;;  %320 = vst.msk [vmem:[#allocation4 + $0x130] sm:$0xff] %vm280_vm5, %v31122_v27 }
 0x913   :  { %23160 = vmatmul.mubr.msk.f32.gmra.mrb[66].mxu1 %vm170_vm3, %v31118_v40  ;;  %319 = vst.msk [vmem:[#allocation4 + $0x128] sm:$0x3] %vm282_vm6, %v31122_v27  ;;  %321 = vst.msk [vmem:[#allocation4 + $0x138] sm:$0x3] %vm282_vm6, %v31122_v27  ;;  %v12474_v40 = vld [vmem:[#allocation3 + $0x2ea] sm:$0xff] }
 0x914   :  { %23162 = vmatprep.mubr.msk.f32.mxu1 %vm170_vm3, %v31119_v50  ;;  %v12475_v50 = vld [vmem:[#allocation3 + $0x2f2] sm:$0xff]  ;;  %328 = vst.msk [vmem:[#allocation5 + $0x20] sm:$0xff] %vm322_vm11, %v31122_v27  ;;  %323 = vst.msk [vmem:[#allocation5] sm:$0xff] %vm322_vm11, %v31122_v27 }
 0x915   :  { %329 = vst.msk [vmem:[#allocation5 + $0x28] sm:$0x3] %vm324_vm12, %v31122_v27  ;;  %325 = vst.msk [vmem:[#allocation5 + $0x8] sm:$0x3] %vm324_vm12, %v31122_v27 }
 0x916   :  { %326 = vst.msk [vmem:[#allocation5 + $0x10] sm:$0xff] %vm322_vm11, %v31122_v27  ;;  %330 = vst.msk [vmem:[#allocation5 + $0x30] sm:$0xff] %vm322_vm11, %v31122_v27 }
 0x917   :  { %23163 = vmatmul.mubr.msk.f32.gmra.mrb[68].mxu1 %vm170_vm3, %v31120_v52  ;;  %v13509_v52 = vld [vmem:[#allocation4 + $0x1] sm:$0xff]  ;;  %327 = vst.msk [vmem:[#allocation5 + $0x18] sm:$0x3] %vm324_vm12, %v31122_v27  ;;  %331 = vst.msk [vmem:[#allocation5 + $0x38] sm:$0x3] %vm324_vm12, %v31122_v27 }
 0x918   :  { %23165 = vmatprep.mubr.msk.f32.mxu1 %vm170_vm3, %v11775_v51  ;;  %v12476_v51 = vld [vmem:[#allocation3 + $0x302] sm:$0xff]  ;;  %23270 = vmatprep.mubr.msk.f32.mxu0 %vm280_vm5, %v13509_v52  ;;  %332 = vst.msk [vmem:[#allocation5 + $0x40] sm:$0xff] %vm322_vm11, %v31122_v27  ;;  %334 = vst.msk [vmem:[#allocation5 + $0x50] sm:$0xff] %vm322_vm11, %v31122_v27 }
 0x919   :  { %333 = vst.msk [vmem:[#allocation5 + $0x48] sm:$0x3] %vm324_vm12, %v31122_v27  ;;  %335 = vst.msk [vmem:[#allocation5 + $0x58] sm:$0x3] %vm324_vm12, %v31122_v27 }
 0x91a   :  { %336 = vst.msk [vmem:[#allocation5 + $0x60] sm:$0xff] %vm322_vm11, %v31122_v27  ;;  %338 = vst.msk [vmem:[#allocation5 + $0x70] sm:$0xff] %vm322_vm11, %v31122_v27 }
 0x91b   :  { %23166 = vmatmul.mubr.msk.f32.gmra.mrb[70].mxu1 %vm170_vm3, %v11776_v53  ;;  %v12477_v53 = vld [vmem:[#allocation3 + $0x30a] sm:$0xff]  ;;  %337 = vst.msk [vmem:[#allocation5 + $0x68] sm:$0x3] %vm324_vm12, %v31122_v27  ;;  %339 = vst.msk [vmem:[#allocation5 + $0x78] sm:$0x3] %vm324_vm12, %v31122_v27 }
 0x91c   :  { %23170 = vmatprep.mubr.msk.f32.mxu1 %vm170_vm3, %v12420_v54  ;;  %v12478_v54 = vld [vmem:[#allocation3 + $0x31a] sm:$0xff]  ;;  %340 = vst.msk [vmem:[#allocation5 + $0x80] sm:$0xff] %vm322_vm11, %v31122_v27  ;;  %342 = vst.msk [vmem:[#allocation5 + $0x90] sm:$0xff] %vm322_vm11, %v31122_v27 }
 0x91d   :  { %341 = vst.msk [vmem:[#allocation5 + $0x88] sm:$0x3] %vm324_vm12, %v31122_v27  ;;  %343 = vst.msk [vmem:[#allocation5 + $0x98] sm:$0x3] %vm324_vm12, %v31122_v27 }
 0x91e   :  { %344 = vst.msk [vmem:[#allocation5 + $0xa0] sm:$0xff] %vm322_vm11, %v31122_v27  ;;  %346 = vst.msk [vmem:[#allocation5 + $0xb0] sm:$0xff] %vm322_vm11, %v31122_v27 }
 0x91f   :  { %23171 = vmatmul.mubr.msk.f32.vlgmr.msra.gmra.mrb[8].mxu1 %vm170_vm3, %v12421_v62  ;;  %v13507_v62 = vld [vmem:[%s30668_s5] sm:$0xff]  ;;  %345 = vst.msk [vmem:[#allocation5 + $0xa8] sm:$0x3] %vm324_vm12, %v31122_v27  ;;  %347 = vst.msk [vmem:[#allocation5 + $0xb8] sm:$0x3] %vm324_vm12, %v31122_v27 }
 0x920   :  { %23173 = vmatprep.mubr.msk.f32.mxu1 %vm170_vm3, %v12422_v28  ;;  %v13508_v28 = vld [vmem:[%s30668_s5 + $0x8] sm:$0xff]  ;;  %348 = vst.msk [vmem:[#allocation5 + $0xc0] sm:$0xff] %vm322_vm11, %v31122_v27  ;;  %350 = vst.msk [vmem:[#allocation5 + $0xd0] sm:$0xff] %vm322_vm11, %v31122_v27 }
 0x921   :  { %349 = vst.msk [vmem:[#allocation5 + $0xc8] sm:$0x3] %vm324_vm12, %v31122_v27  ;;  %351 = vst.msk [vmem:[#allocation5 + $0xd8] sm:$0x3] %vm324_vm12, %v31122_v27 }
 0x922   :  { %352 = vst.msk [vmem:[#allocation5 + $0xe0] sm:$0xff] %vm322_vm11, %v31122_v27  ;;  %354 = vst.msk [vmem:[#allocation5 + $0xf0] sm:$0xff] %vm322_vm11, %v31122_v27 }
 0x923   :  { %23174 = vmatmul.mubr.msk.f32.gmra.mrb[10].mxu1 %vm170_vm3, %v12423_v57  ;;  %v29277_v57 = vpack.c.bf16 %v13508_v28, %v13507_v62  ;;  %353 = vst.msk [vmem:[#allocation5 + $0xe8] sm:$0x3] %vm324_vm12, %v31122_v27  ;;  %355 = vst.msk [vmem:[#allocation5 + $0xf8] sm:$0x3] %vm324_vm12, %v31122_v27 }
 0x924   :  { %23176 = vmatprep.mubr.msk.f32.mxu1 %vm170_vm3, %v12424_v41  ;;  %356 = vst.msk [vmem:[#allocation5 + $0x100] sm:$0xff] %vm322_vm11, %v31122_v27  ;;  %358 = vst.msk [vmem:[#allocation5 + $0x110] sm:$0xff] %vm322_vm11, %v31122_v27 }
 0x925   :  { %23846 = vmatprep.subr.bf16.mxu0 %v29277_v57  ;;  %357 = vst.msk [vmem:[#allocation5 + $0x108] sm:$0x3] %vm324_vm12, %v31122_v27  ;;  %359 = vst.msk [vmem:[#allocation5 + $0x118] sm:$0x3] %vm324_vm12, %v31122_v27 }
 0x926   :  { %360 = vst.msk [vmem:[#allocation5 + $0x120] sm:$0xff] %vm322_vm11, %v31122_v27  ;;  %362 = vst.msk [vmem:[#allocation5 + $0x130] sm:$0xff] %vm322_vm11, %v31122_v27 }
 0x927   :  { %23177 = vmatmul.mubr.msk.f32.gmra.mrb[12].mxu1 %vm170_vm3, %v12425_v63  ;;  %361 = vst.msk [vmem:[#allocation5 + $0x128] sm:$0x3] %vm324_vm12, %v31122_v27  ;;  %363 = vst.msk [vmem:[#allocation5 + $0x138] sm:$0x3] %vm324_vm12, %v31122_v27 }
 0x928   :  { %23179 = vmatprep.mubr.msk.f32.mxu1 %vm170_vm3, %v12426_v2 }
 0x92b   :  { %23180 = vmatmul.mubr.msk.f32.gmra.mrb[14].mxu1 %vm170_vm3, %v12427_v43 }
 0x92c   :  { %23182 = vmatprep.mubr.msk.f32.mxu1 %vm170_vm3, %v12428_v44 }
 0x92f   :  { %23183 = vmatmul.mubr.msk.f32.gmra.mrb[16].mxu1 %vm170_vm3, %v12429_v42 }
 0x930   :  { %23185 = vmatprep.mubr.msk.f32.mxu1 %vm170_vm3, %v12430_v0 }
 0x933   :  { %23186 = vmatmul.mubr.msk.f32.gmra.mrb[18].mxu1 %vm170_vm3, %v12431_v45 }
 0x934   :  { %23188 = vmatprep.mubr.msk.f32.mxu1 %vm170_vm3, %v12432_v61 }
 0x937   :  { %23189 = vmatmul.mubr.msk.f32.gmra.mrb[20].mxu1 %vm170_vm3, %v12433_v46 }
 0x938   :  { %23191 = vmatprep.mubr.msk.f32.mxu1 %vm170_vm3, %v12434_v3 }
 0x93b   :  { %23192 = vmatmul.mubr.msk.f32.gmra.mrb[22].mxu1 %vm170_vm3, %v12435_v5 }
 0x93c   :  { %23194 = vmatprep.mubr.msk.f32.mxu1 %vm170_vm3, %v12436_v8 }
 0x93f   :  { %23195 = vmatmul.mubr.msk.f32.gmra.mrb[24].mxu1 %vm170_vm3, %v12437_v4 }
 0x940   :  { %23197 = vmatprep.mubr.msk.f32.mxu1 %vm170_vm3, %v12438_v10 }
 0x943   :  { %23198 = vmatmul.mubr.msk.f32.gmra.mrb[26].mxu1 %vm170_vm3, %v12439_v11 }
 0x944   :  { %23200 = vmatprep.mubr.msk.f32.mxu1 %vm170_vm3, %v12440_v47 }
 0x947   :  { %23201 = vmatmul.mubr.msk.f32.gmra.mrb[28].mxu1 %vm170_vm3, %v12441_v12 }
 0x948   :  { %23203 = vmatprep.mubr.msk.f32.mxu1 %vm170_vm3, %v12442_v9 }
 0x94b   :  { %23204 = vmatmul.mubr.msk.f32.gmra.mrb[30].mxu1 %vm170_vm3, %v12443_v13 }
 0x94c   :  { %23206 = vmatprep.mubr.msk.f32.mxu1 %vm170_vm3, %v12444_v14 }
 0x94f   :  { %23207 = vmatmul.mubr.msk.f32.gmra.mrb[32].mxu1 %vm170_vm3, %v12445_v48 }
 0x950   :  { %23209 = vmatprep.mubr.msk.f32.mxu1 %vm170_vm3, %v12446_v1 }
 0x953   :  { %23210 = vmatmul.mubr.msk.f32.gmra.mrb[34].mxu1 %vm170_vm3, %v12447_v16 }
 0x954   :  { %23212 = vmatprep.mubr.msk.f32.mxu1 %vm170_vm3, %v28840_v19  ;;  %v12456_v19 = vld [vmem:[#allocation3 + $0x212] sm:$0xff] }
 0x957   :  { %23213 = vmatmul.mubr.msk.f32.gmra.mrb[36].mxu1 %vm170_vm3, %v31121_v23 }
 0x958   :  { %23215 = vmatprep.mubr.msk.f32.mxu1 %vm170_vm3, %v12450_v21 }
 0x95b   :  { %23216 = vmatmul.mubr.msk.f32.gmra.mrb[38].mxu1 %vm170_vm3, %v12451_v20  ;;  %v19527_v20 = vld [vmem:[%s30668_s5 + $0x20] sm:$0xff] }
 0x95c   :  { %23218 = vmatprep.mubr.msk.f32.mxu1 %vm170_vm3, %v12452_v59  ;;  %v19528_v59 = vld [vmem:[%s30668_s5 + $0x28] sm:$0xff] }
 0x95f   :  { %23219 = vmatmul.mubr.msk.f32.gmra.mrb[40].mxu1 %vm170_vm3, %v12453_v24 }
 0x960   :  { %23221 = vmatprep.mubr.msk.f32.mxu1 %vm170_vm3, %v12454_v25 }
 0x963   :  { %23222 = vmatmul.mubr.msk.f32.gmra.mrb[42].mxu1 %vm170_vm3, %v12455_v17 }
 0x964   :  { %23224 = vmatprep.mubr.msk.f32.mxu1 %vm170_vm3, %v12456_v19 }
 0x967   :  { %23225 = vmatmul.mubr.msk.f32.gmra.mrb[44].mxu1 %vm170_vm3, %v12457_v58  ;;  %v29307_v58 = vpack.c.bf16 %v19528_v59, %v19527_v20 }
 0x968   :  { %23227 = vmatprep.mubr.msk.f32.mxu1 %vm170_vm3, %v12458_v15 }
 0x96b   :  { %23228 = vmatmul.mubr.msk.f32.gmra.mrb[46].mxu1 %vm170_vm3, %v12459_v7 }
 0x96c   :  { %23230 = vmatprep.mubr.msk.f32.mxu1 %vm170_vm3, %v12460_v39 }
 0x96f   :  { %23231 = vmatmul.mubr.msk.f32.gmra.mrb[48].mxu1 %vm170_vm3, %v12461_v18 }
 0x970   :  { %23233 = vmatprep.mubr.msk.f32.mxu1 %vm170_vm3, %v12462_v60 }
 0x973   :  { %23234 = vmatmul.mubr.msk.f32.gmra.mrb[50].mxu1 %vm170_vm3, %v12463_v22 }
 0x974   :  { %23236 = vmatprep.mubr.msk.f32.mxu1 %vm170_vm3, %v12464_v26 }
 0x977   :  { %23237 = vmatmul.mubr.msk.f32.gmra.mrb[52].mxu1 %vm170_vm3, %v12465_v30 }
 0x978   :  { %23239 = vmatprep.mubr.msk.f32.mxu1 %vm170_vm3, %v12466_v31 }
 0x97b   :  { %23240 = vmatmul.mubr.msk.f32.gmra.mrb[54].mxu1 %vm170_vm3, %v12467_v32 }
 0x97c   :  { %23242 = vmatprep.mubr.msk.f32.mxu1 %vm170_vm3, %v12468_v33 }
 0x97f   :  { %23243 = vmatmul.mubr.msk.f32.gmra.mrb[56].mxu1 %vm170_vm3, %v12469_v34 }
 0x980   :  { %23245 = vmatprep.mubr.msk.f32.mxu1 %vm170_vm3, %v12470_v35 }
 0x983   :  { %23246 = vmatmul.mubr.msk.f32.gmra.mrb[58].mxu1 %vm170_vm3, %v12471_v36 }
 0x984   :  { %23248 = vmatprep.mubr.msk.f32.mxu1 %vm170_vm3, %v12472_v37 }
 0x987   :  { %23249 = vmatmul.mubr.msk.f32.gmra.mrb[60].mxu1 %vm170_vm3, %v12473_v38 }
 0x988   :  { %23251 = vmatprep.mubr.msk.f32.mxu1 %vm170_vm3, %v12474_v40 }
 0x98b   :  { %23252 = vmatmul.mubr.msk.f32.gmra.mrb[62].mxu1 %vm170_vm3, %v12475_v50 }
 0x98c   :  { %23254 = vmatprep.mubr.msk.f32.mxu1 %vm170_vm3, %v12476_v51 }
 0x98f   :  { %23255 = vmatmul.mubr.msk.f32.gmra.mrb[64].mxu1 %vm170_vm3, %v12477_v53 }
 0x990   :  { %23257 = vmatprep.mubr.msk.f32.mxu1 %vm170_vm3, %v12478_v54 }
 0x993   :  { %23258 = vmatmul.mubr.msk.f32.gmra.mrb[66].mxu1 %vm170_vm3, %v12479_v55 }
 0x994   :  { %23260 = vmatprep.mubr.msk.f32.mxu1 %vm170_vm3, %v28908_v6 }
 0x997   :  { %23261 = vmatmul.mubr.msk.f32.gmra.mrb[68].mxu1 %vm170_vm3, %v28912_v49  ;;  %v29283_v49 = vld [vmem:[%s30667_s4] ss:$0 sm:$0xff] }
 0x998   :  { %23263 = vmatprep.mubr.msk.f32.mxu1 %vm170_vm3, %v12482_v56 }
 0x99b   :  { %23264 = vmatmul.mubr.msk.f32.gmra.mrb[70].mxu1 %vm170_vm3, %v12483_v29 }
 0x9f2   :  { %v23172_v6 = vpop.f32.mrb[8].mxu1 }
 0x9f3   :  { %v12744_v41 = vpop.f32.mrb[9].mxu1  ;;  %v13135_v2 = vadd.f32 %v23172_v6, %v29283_v49 }
 0x9f4   :  { %v13134_v42 = vadd.f32 %v29283_v49, %v12744_v41 }
 0x9f6   :  { %v23175_v63 = vpop.f32.mrb[10].mxu1 }
 0x9f7   :  { %v13137_v43 = vadd.f32 %v23175_v63, %v29283_v49  ;;  %v12754_v44 = vpop.f32.mrb[11].mxu1 }
 0x9f8   :  { %v13136_v0 = vadd.f32 %v29283_v49, %v12754_v44 }
 0x9f9   :  { %v13199_v45 = vmax.f32 %v13135_v2, %v13137_v43 }
 0x9fa   :  { %v13198_v61 = vmax.f32 %v13134_v42, %v13136_v0  ;;  %v23178_v46 = vpop.f32.mrb[12].mxu1 }
 0x9fb   :  { %v13379_v3 = vrot.slane %v13199_v45, 1  ;;  %v12764_v5 = vpop.f32.mrb[13].mxu1  ;;  %v13139_v47 = vadd.f32 %v23178_v46, %v29283_v49 }
 0x9fc   :  { %v13246_v8 = vrot.slane %v13198_v61, 1  ;;  %v13138_v13 = vadd.f32 %v29283_v49, %v12764_v5 }
 0x9fd   :  { %v13411_v4 = vmax.f32 %v13199_v45, %v13379_v3 }
 0x9fe   :  { %v13278_v10 = vmax.f32 %v13198_v61, %v13246_v8  ;;  %v23181_v11 = vpop.f32.mrb[14].mxu1 }
 0x9ff   :  { %13427 = vst.msk [vmem:[#allocation4 + $0x15] sm:$0x1] %vm13295_vm7, %v13411_v4  ;;  %v13141_v12 = vadd.f32 %v23181_v11, %v29283_v49  ;;  %v12774_v9 = vpop.f32.mrb[15].mxu1 }
 0xa00   :  { %13443 = vst.msk [vmem:[#allocation4 + $0x14] sm:$0x4] %vm13312_vm8, %v13411_v4  ;;  %13313 = vst.msk [vmem:[#allocation4 + $0x10] sm:$0x4] %vm13312_vm8, %v13278_v10  ;;  %v13140_v14 = vadd.f32 %v29283_v49, %v12774_v9 }
 0xa01   :  { %13459 = vst.msk [vmem:[#allocation4 + $0x13] sm:$0x10] %vm13329_vm9, %v13411_v4  ;;  %13330 = vst.msk [vmem:[#allocation4 + $0xf] sm:$0x10] %vm13329_vm9, %v13278_v10  ;;  %v13201_v48 = vmax.f32 %v13139_v47, %v13141_v12 }
 0xa02   :  { %13475 = vst.msk [vmem:[#allocation4 + $0x12] sm:$0x40] %vm13346_vm10, %v13411_v4  ;;  %13347 = vst.msk [vmem:[#allocation4 + $0xe] sm:$0x40] %vm13346_vm10, %v13278_v10  ;;  %v13200_v1 = vmax.f32 %v13138_v13, %v13140_v14  ;;  %v23184_v16 = vpop.f32.mrb[16].mxu1 }
 0xa03   :  { %13296 = vst.msk [vmem:[#allocation4 + $0x11] sm:$0x1] %vm13295_vm7, %v13278_v10  ;;  %v13380_v21 = vrot.slane %v13201_v48, 1  ;;  %v12784_v23 = vpop.f32.mrb[17].mxu1  ;;  %v13143_v15 = vadd.f32 %v23184_v16, %v29283_v49 }
 0xa04   :  { %v13247_v24 = vrot.slane %v13200_v1, 1  ;;  %v13142_v60 = vadd.f32 %v29283_v49, %v12784_v23 }
 0xa05   :  { %v13412_v25 = vmax.f32 %v13201_v48, %v13380_v21 }
 0xa06   :  { %v13279_v17 = vmax.f32 %v13200_v1, %v13247_v24  ;;  %v23187_v19 = vpop.f32.mrb[18].mxu1 }
 0xa07   :  { %13428 = vst.msk [vmem:[#allocation4 + $0x25] sm:$0x1] %vm13295_vm7, %v13412_v25  ;;  %v13145_v7 = vadd.f32 %v23187_v19, %v29283_v49  ;;  %v12794_v39 = vpop.f32.mrb[19].mxu1 }
 0xa08   :  { %13444 = vst.msk [vmem:[#allocation4 + $0x24] sm:$0x4] %vm13312_vm8, %v13412_v25  ;;  %13314 = vst.msk [vmem:[#allocation4 + $0x20] sm:$0x4] %vm13312_vm8, %v13279_v17  ;;  %v13144_v22 = vadd.f32 %v29283_v49, %v12794_v39 }
 0xa09   :  { %13460 = vst.msk [vmem:[#allocation4 + $0x23] sm:$0x10] %vm13329_vm9, %v13412_v25  ;;  %13331 = vst.msk [vmem:[#allocation4 + $0x1f] sm:$0x10] %vm13329_vm9, %v13279_v17  ;;  %v13203_v26 = vmax.f32 %v13143_v15, %v13145_v7 }
 0xa0a   :  { %13476 = vst.msk [vmem:[#allocation4 + $0x22] sm:$0x40] %vm13346_vm10, %v13412_v25  ;;  %v29315_v18 = vld [vmem:[#allocation4 + $0x11] sm:$0xff]  ;;  %13348 = vst.msk [vmem:[#allocation4 + $0x1e] sm:$0x40] %vm13346_vm10, %v13279_v17  ;;  %v13202_v30 = vmax.f32 %v13142_v60, %v13144_v22  ;;  %v23190_v31 = vpop.f32.mrb[20].mxu1 }
 0xa0b   :  { %13297 = vst.msk [vmem:[#allocation4 + $0x21] sm:$0x1] %vm13295_vm7, %v13279_v17  ;;  %23271 = vmatmul.mubr.msk.f32.vlgmr.msra.gmra.mrb[64].mxu0 %vm280_vm5, %v29315_v18  ;;  %v13381_v32 = vrot.slane %v13203_v26, 1  ;;  %v12804_v33 = vpop.f32.mrb[21].mxu1  ;;  %v13147_v38 = vadd.f32 %v23190_v31, %v29283_v49 }
 0xa0c   :  { %23848 = vmatpush3.bf16.msra.mxu0 %v29277_v57  ;;  %v13248_v34 = vrot.slane %v13202_v30, 1  ;;  %v13146_v52 = vadd.f32 %v29283_v49, %v12804_v33 }
 0xa0d   :  { %23850 = vmatprep.subr.bf16.mxu0 %v29307_v58  ;;  %v13413_v35 = vmax.f32 %v13203_v26, %v13381_v32 }
 0xa0e   :  { %v13280_v36 = vmax.f32 %v13202_v30, %v13248_v34  ;;  %v23193_v37 = vpop.f32.mrb[22].mxu1 }
 0xa0f   :  { %13429 = vst.msk [vmem:[#allocation4 + $0x35] sm:$0x1] %vm13295_vm7, %v13413_v35  ;;  %v13149_v40 = vadd.f32 %v23193_v37, %v29283_v49  ;;  %v12814_v50 = vpop.f32.mrb[23].mxu1 }
 0xa10   :  { %13445 = vst.msk [vmem:[#allocation4 + $0x34] sm:$0x4] %vm13312_vm8, %v13413_v35  ;;  %13315 = vst.msk [vmem:[#allocation4 + $0x30] sm:$0x4] %vm13312_vm8, %v13280_v36  ;;  %v13148_v53 = vadd.f32 %v29283_v49, %v12814_v50 }
 0xa11   :  { %13461 = vst.msk [vmem:[#allocation4 + $0x33] sm:$0x10] %vm13329_vm9, %v13413_v35  ;;  %13332 = vst.msk [vmem:[#allocation4 + $0x2f] sm:$0x10] %vm13329_vm9, %v13280_v36  ;;  %v13205_v54 = vmax.f32 %v13147_v38, %v13149_v40 }
 0xa12   :  { %13477 = vst.msk [vmem:[#allocation4 + $0x32] sm:$0x40] %vm13346_vm10, %v13413_v35  ;;  %v29333_v51 = vld [vmem:[#allocation4 + $0x21] sm:$0xff]  ;;  %13349 = vst.msk [vmem:[#allocation4 + $0x2e] sm:$0x40] %vm13346_vm10, %v13280_v36  ;;  %v13204_v55 = vmax.f32 %v13146_v52, %v13148_v53  ;;  %v23196_v56 = vpop.f32.mrb[24].mxu1 }
 0xa13   :  { %13298 = vst.msk [vmem:[#allocation4 + $0x31] sm:$0x1] %vm13295_vm7, %v13280_v36  ;;  %23273 = vmatprep.mubr.msk.f32.mxu0 %vm280_vm5, %v29333_v51  ;;  %v13382_v29 = vrot.slane %v13205_v54, 1  ;;  %v12824_v62 = vpop.f32.mrb[25].mxu1  ;;  %v13151_v63 = vadd.f32 %v23196_v56, %v29283_v49 }
 0xa14   :  { %v13249_v28 = vrot.slane %v13204_v55, 1  ;;  %v13150_v42 = vadd.f32 %v29283_v49, %v12824_v62 }
 0xa15   :  { %v13414_v57 = vmax.f32 %v13205_v54, %v13382_v29 }
 0xa16   :  { %v13281_v6 = vmax.f32 %v13204_v55, %v13249_v28  ;;  %v23199_v41 = vpop.f32.mrb[26].mxu1 }
 0xa17   :  { %13430 = vst.msk [vmem:[#allocation4 + $0x45] sm:$0x1] %vm13295_vm7, %v13414_v57  ;;  %v13153_v2 = vadd.f32 %v23199_v41, %v29283_v49  ;;  %v12834_v43 = vpop.f32.mrb[27].mxu1 }
 0xa18   :  { %13446 = vst.msk [vmem:[#allocation4 + $0x44] sm:$0x4] %vm13312_vm8, %v13414_v57  ;;  %13316 = vst.msk [vmem:[#allocation4 + $0x40] sm:$0x4] %vm13312_vm8, %v13281_v6  ;;  %v13152_v0 = vadd.f32 %v29283_v49, %v12834_v43 }
 0xa19   :  { %13462 = vst.msk [vmem:[#allocation4 + $0x43] sm:$0x10] %vm13329_vm9, %v13414_v57  ;;  %13333 = vst.msk [vmem:[#allocation4 + $0x3f] sm:$0x10] %vm13329_vm9, %v13281_v6  ;;  %v13207_v45 = vmax.f32 %v13151_v63, %v13153_v2  ;;  %v13517_v2 = vld [vmem:[#allocation4 + $0xa1] sm:$0xff] }
 0xa1a   :  { %13478 = vst.msk [vmem:[#allocation4 + $0x42] sm:$0x40] %vm13346_vm10, %v13414_v57  ;;  %v29349_v44 = vld [vmem:[#allocation4 + $0x31] sm:$0xff]  ;;  %13350 = vst.msk [vmem:[#allocation4 + $0x3e] sm:$0x40] %vm13346_vm10, %v13281_v6  ;;  %v13206_v61 = vmax.f32 %v13150_v42, %v13152_v0  ;;  %v23202_v46 = vpop.f32.mrb[28].mxu1 }
 0xa1b   :  { %13299 = vst.msk [vmem:[#allocation4 + $0x41] sm:$0x1] %vm13295_vm7, %v13281_v6  ;;  %23274 = vmatmul.mubr.msk.f32.gmra.mrb[66].mxu0 %vm280_vm5, %v29349_v44  ;;  %v13383_v3 = vrot.slane %v13207_v45, 1  ;;  %v12844_v5 = vpop.f32.mrb[29].mxu1  ;;  %v13155_v47 = vadd.f32 %v23202_v46, %v29283_v49 }
 0xa1c   :  { %v13250_v8 = vrot.slane %v13206_v61, 1  ;;  %v13154_v14 = vadd.f32 %v29283_v49, %v12844_v5 }
 0xa1d   :  { %v13415_v4 = vmax.f32 %v13207_v45, %v13383_v3 }
 0xa1e   :  { %v13282_v10 = vmax.f32 %v13206_v61, %v13250_v8  ;;  %v23205_v11 = vpop.f32.mrb[30].mxu1 }
 0xa1f   :  { %13431 = vst.msk [vmem:[#allocation4 + $0x55] sm:$0x1] %vm13295_vm7, %v13415_v4  ;;  %v13157_v12 = vadd.f32 %v23205_v11, %v29283_v49  ;;  %v12854_v9 = vpop.f32.mrb[31].mxu1 }
 0xa20   :  { %13447 = vst.msk [vmem:[#allocation4 + $0x54] sm:$0x4] %vm13312_vm8, %v13415_v4  ;;  %13317 = vst.msk [vmem:[#allocation4 + $0x50] sm:$0x4] %vm13312_vm8, %v13282_v10  ;;  %v13156_v48 = vadd.f32 %v29283_v49, %v12854_v9 }
 0xa21   :  { %13463 = vst.msk [vmem:[#allocation4 + $0x53] sm:$0x10] %vm13329_vm9, %v13415_v4  ;;  %13334 = vst.msk [vmem:[#allocation4 + $0x4f] sm:$0x10] %vm13329_vm9, %v13282_v10  ;;  %v13209_v1 = vmax.f32 %v13155_v47, %v13157_v12 }
 0xa22   :  { %13479 = vst.msk [vmem:[#allocation4 + $0x52] sm:$0x40] %vm13346_vm10, %v13415_v4  ;;  %v29365_v13 = vld [vmem:[#allocation4 + $0x41] sm:$0xff]  ;;  %13351 = vst.msk [vmem:[#allocation4 + $0x4e] sm:$0x40] %vm13346_vm10, %v13282_v10  ;;  %v13208_v16 = vmax.f32 %v13154_v14, %v13156_v48  ;;  %v23208_v21 = vpop.f32.mrb[32].mxu1 }
 0xa23   :  { %13300 = vst.msk [vmem:[#allocation4 + $0x51] sm:$0x1] %vm13295_vm7, %v13282_v10  ;;  %23276 = vmatprep.mubr.msk.f32.mxu0 %vm280_vm5, %v29365_v13  ;;  %v13384_v23 = vrot.slane %v13209_v1, 1  ;;  %v12864_v20 = vpop.f32.mrb[33].mxu1  ;;  %v13159_v19 = vadd.f32 %v23208_v21, %v29283_v49 }
 0xa24   :  { %v13251_v59 = vrot.slane %v13208_v16, 1  ;;  %v13158_v60 = vadd.f32 %v29283_v49, %v12864_v20 }
 0xa25   :  { %v13416_v24 = vmax.f32 %v13209_v1, %v13384_v23 }
 0xa26   :  { %v13283_v25 = vmax.f32 %v13208_v16, %v13251_v59  ;;  %v23211_v17 = vpop.f32.mrb[34].mxu1 }
 0xa27   :  { %13432 = vst.msk [vmem:[#allocation4 + $0x65] sm:$0x1] %vm13295_vm7, %v13416_v24  ;;  %v13161_v15 = vadd.f32 %v23211_v17, %v29283_v49  ;;  %v12874_v7 = vpop.f32.mrb[35].mxu1 }
 0xa28   :  { %13448 = vst.msk [vmem:[#allocation4 + $0x64] sm:$0x4] %vm13312_vm8, %v13416_v24  ;;  %13318 = vst.msk [vmem:[#allocation4 + $0x60] sm:$0x4] %vm13312_vm8, %v13283_v25  ;;  %v13160_v22 = vadd.f32 %v29283_v49, %v12874_v7 }
 0xa29   :  { %13464 = vst.msk [vmem:[#allocation4 + $0x63] sm:$0x10] %vm13329_vm9, %v13416_v24  ;;  %13335 = vst.msk [vmem:[#allocation4 + $0x5f] sm:$0x10] %vm13329_vm9, %v13283_v25  ;;  %v13211_v26 = vmax.f32 %v13159_v19, %v13161_v15 }
 0xa2a   :  { %13480 = vst.msk [vmem:[#allocation4 + $0x62] sm:$0x40] %vm13346_vm10, %v13416_v24  ;;  %v29381_v39 = vld [vmem:[#allocation4 + $0x51] sm:$0xff]  ;;  %13352 = vst.msk [vmem:[#allocation4 + $0x5e] sm:$0x40] %vm13346_vm10, %v13283_v25  ;;  %v13210_v30 = vmax.f32 %v13158_v60, %v13160_v22  ;;  %v23214_v31 = vpop.f32.mrb[36].mxu1 }
 0xa2b   :  { %13301 = vst.msk [vmem:[#allocation4 + $0x61] sm:$0x1] %vm13295_vm7, %v13283_v25  ;;  %23277 = vmatmul.mubr.msk.f32.gmra.mrb[68].mxu0 %vm280_vm5, %v29381_v39  ;;  %v13385_v32 = vrot.slane %v13211_v26, 1  ;;  %v12884_v33 = vpop.f32.mrb[37].mxu1  ;;  %v13163_v38 = vadd.f32 %v23214_v31, %v29283_v49 }
 0xa2c   :  { %v13252_v34 = vrot.slane %v13210_v30, 1  ;;  %v13162_v53 = vadd.f32 %v29283_v49, %v12884_v33 }
 0xa2d   :  { %v13417_v35 = vmax.f32 %v13211_v26, %v13385_v32 }
 0xa2e   :  { %v13284_v36 = vmax.f32 %v13210_v30, %v13252_v34  ;;  %v23217_v37 = vpop.f32.mrb[38].mxu1 }
 0xa2f   :  { %13433 = vst.msk [vmem:[#allocation4 + $0x75] sm:$0x1] %vm13295_vm7, %v13417_v35  ;;  %v13165_v40 = vadd.f32 %v23217_v37, %v29283_v49  ;;  %v12894_v50 = vpop.f32.mrb[39].mxu1 }
 0xa30   :  { %13449 = vst.msk [vmem:[#allocation4 + $0x74] sm:$0x4] %vm13312_vm8, %v13417_v35  ;;  %13319 = vst.msk [vmem:[#allocation4 + $0x70] sm:$0x4] %vm13312_vm8, %v13284_v36  ;;  %v13164_v54 = vadd.f32 %v29283_v49, %v12894_v50 }
 0xa31   :  { %13465 = vst.msk [vmem:[#allocation4 + $0x73] sm:$0x10] %vm13329_vm9, %v13417_v35  ;;  %13336 = vst.msk [vmem:[#allocation4 + $0x6f] sm:$0x10] %vm13329_vm9, %v13284_v36  ;;  %v13213_v55 = vmax.f32 %v13163_v38, %v13165_v40 }
 0xa32   :  { %13481 = vst.msk [vmem:[#allocation4 + $0x72] sm:$0x40] %vm13346_vm10, %v13417_v35  ;;  %v29397_v52 = vld [vmem:[#allocation4 + $0x61] sm:$0xff]  ;;  %13353 = vst.msk [vmem:[#allocation4 + $0x6e] sm:$0x40] %vm13346_vm10, %v13284_v36  ;;  %v13212_v56 = vmax.f32 %v13162_v53, %v13164_v54  ;;  %v23220_v29 = vpop.f32.mrb[40].mxu1 }
 0xa33   :  { %13302 = vst.msk [vmem:[#allocation4 + $0x71] sm:$0x1] %vm13295_vm7, %v13284_v36  ;;  %23279 = vmatprep.mubr.msk.f32.mxu0 %vm280_vm5, %v29397_v52  ;;  %v13386_v62 = vrot.slane %v13213_v55, 1  ;;  %v12904_v28 = vpop.f32.mrb[41].mxu1  ;;  %v13167_v43 = vadd.f32 %v23220_v29, %v29283_v49 }
 0xa34   :  { %v13253_v57 = vrot.slane %v13212_v56, 1  ;;  %v13166_v61 = vadd.f32 %v29283_v49, %v12904_v28 }
 0xa35   :  { %v13418_v6 = vmax.f32 %v13213_v55, %v13386_v62 }
 0xa36   :  { %v13285_v41 = vmax.f32 %v13212_v56, %v13253_v57  ;;  %v23223_v63 = vpop.f32.mrb[42].mxu1 }
 0xa37   :  { %13434 = vst.msk [vmem:[#allocation4 + $0x85] sm:$0x1] %vm13295_vm7, %v13418_v6  ;;  %v13169_v42 = vadd.f32 %v23223_v63, %v29283_v49  ;;  %v12914_v0 = vpop.f32.mrb[43].mxu1 }
 0xa38   :  { %13450 = vst.msk [vmem:[#allocation4 + $0x84] sm:$0x4] %vm13312_vm8, %v13418_v6  ;;  %13320 = vst.msk [vmem:[#allocation4 + $0x80] sm:$0x4] %vm13312_vm8, %v13285_v41  ;;  %v13168_v46 = vadd.f32 %v29283_v49, %v12914_v0 }
 0xa39   :  { %13466 = vst.msk [vmem:[#allocation4 + $0x83] sm:$0x10] %vm13329_vm9, %v13418_v6  ;;  %13337 = vst.msk [vmem:[#allocation4 + $0x7f] sm:$0x10] %vm13329_vm9, %v13285_v41  ;;  %v13215_v3 = vmax.f32 %v13167_v43, %v13169_v42 }
 0xa3a   :  { %13482 = vst.msk [vmem:[#allocation4 + $0x82] sm:$0x40] %vm13346_vm10, %v13418_v6  ;;  %v29413_v45 = vld [vmem:[#allocation4 + $0x71] sm:$0xff]  ;;  %13354 = vst.msk [vmem:[#allocation4 + $0x7e] sm:$0x40] %vm13346_vm10, %v13285_v41  ;;  %v13214_v5 = vmax.f32 %v13166_v61, %v13168_v46  ;;  %v23226_v8 = vpop.f32.mrb[44].mxu1 }
 0xa3b   :  { %13303 = vst.msk [vmem:[#allocation4 + $0x81] sm:$0x1] %vm13295_vm7, %v13285_v41  ;;  %23280 = vmatmul.mubr.msk.f32.gmra.mrb[70].mxu0 %vm280_vm5, %v29413_v45  ;;  %v13387_v4 = vrot.slane %v13215_v3, 1  ;;  %v12924_v10 = vpop.f32.mrb[45].mxu1  ;;  %v13171_v14 = vadd.f32 %v23226_v8, %v29283_v49 }
 0xa3c   :  { %23282 = vmatprep.mubr.msk.f32.mxu0 %vm280_vm5, %v13517_v2  ;;  %v13254_v11 = vrot.slane %v13214_v5, 1  ;;  %v13170_v16 = vadd.f32 %v29283_v49, %v12924_v10 }
 0xa3d   :  { %v13419_v47 = vmax.f32 %v13215_v3, %v13387_v4 }
 0xa3e   :  { %v13286_v12 = vmax.f32 %v13214_v5, %v13254_v11  ;;  %v23229_v9 = vpop.f32.mrb[46].mxu1 }
 0xa3f   :  { %13435 = vst.msk [vmem:[#allocation4 + $0xb5] sm:$0x1] %vm13295_vm7, %v13419_v47  ;;  %v13173_v48 = vadd.f32 %v23229_v9, %v29283_v49  ;;  %v12934_v1 = vpop.f32.mrb[47].mxu1 }
 0xa40   :  { %13451 = vst.msk [vmem:[#allocation4 + $0xb4] sm:$0x4] %vm13312_vm8, %v13419_v47  ;;  %13321 = vst.msk [vmem:[#allocation4 + $0xb0] sm:$0x4] %vm13312_vm8, %v13286_v12  ;;  %v13172_v21 = vadd.f32 %v29283_v49, %v12934_v1 }
 0xa41   :  { %13467 = vst.msk [vmem:[#allocation4 + $0xb3] sm:$0x10] %vm13329_vm9, %v13419_v47  ;;  %13338 = vst.msk [vmem:[#allocation4 + $0xaf] sm:$0x10] %vm13329_vm9, %v13286_v12  ;;  %v13217_v23 = vmax.f32 %v13171_v14, %v13173_v48 }
 0xa42   :  { %13483 = vst.msk [vmem:[#allocation4 + $0xb2] sm:$0x40] %vm13346_vm10, %v13419_v47  ;;  %13355 = vst.msk [vmem:[#allocation4 + $0xae] sm:$0x40] %vm13346_vm10, %v13286_v12  ;;  %v13216_v20 = vmax.f32 %v13170_v16, %v13172_v21  ;;  %v23232_v59 = vpop.f32.mrb[48].mxu1 }
 0xa43   :  { %13304 = vst.msk [vmem:[#allocation4 + $0xb1] sm:$0x1] %vm13295_vm7, %v13286_v12  ;;  %v13388_v24 = vrot.slane %v13217_v23, 1  ;;  %v12944_v25 = vpop.f32.mrb[49].mxu1  ;;  %v13175_v60 = vadd.f32 %v23232_v59, %v29283_v49 }
 0xa44   :  { %v13255_v17 = vrot.slane %v13216_v20, 1  ;;  %v13174_v31 = vadd.f32 %v29283_v49, %v12944_v25 }
 0xa45   :  { %v13420_v19 = vmax.f32 %v13217_v23, %v13388_v24 }
 0xa46   :  { %v13287_v15 = vmax.f32 %v13216_v20, %v13255_v17  ;;  %v23235_v7 = vpop.f32.mrb[50].mxu1 }
 0xa47   :  { %13436 = vst.msk [vmem:[#allocation4 + $0xc5] sm:$0x1] %vm13295_vm7, %v13420_v19  ;;  %v13177_v22 = vadd.f32 %v23235_v7, %v29283_v49  ;;  %v12954_v26 = vpop.f32.mrb[51].mxu1 }
 0xa48   :  { %13452 = vst.msk [vmem:[#allocation4 + $0xc4] sm:$0x4] %vm13312_vm8, %v13420_v19  ;;  %13322 = vst.msk [vmem:[#allocation4 + $0xc0] sm:$0x4] %vm13312_vm8, %v13287_v15  ;;  %v13176_v32 = vadd.f32 %v29283_v49, %v12954_v26 }
 0xa49   :  { %13468 = vst.msk [vmem:[#allocation4 + $0xc3] sm:$0x10] %vm13329_vm9, %v13420_v19  ;;  %13339 = vst.msk [vmem:[#allocation4 + $0xbf] sm:$0x10] %vm13329_vm9, %v13287_v15  ;;  %v13219_v33 = vmax.f32 %v13175_v60, %v13177_v22 }
 0xa4a   :  { %13484 = vst.msk [vmem:[#allocation4 + $0xc2] sm:$0x40] %vm13346_vm10, %v13420_v19  ;;  %v29442_v30 = vld [vmem:[#allocation4 + $0xb1] sm:$0xff]  ;;  %13356 = vst.msk [vmem:[#allocation4 + $0xbe] sm:$0x40] %vm13346_vm10, %v13287_v15  ;;  %v13218_v34 = vmax.f32 %v13174_v31, %v13176_v32  ;;  %v23238_v35 = vpop.f32.mrb[52].mxu1 }
 0xa4b   :  { %13305 = vst.msk [vmem:[#allocation4 + $0xc1] sm:$0x1] %vm13295_vm7, %v13287_v15  ;;  %23283 = vmatmul.mubr.msk.f32.gmra.mrb[72].mxu0 %vm280_vm5, %v29442_v30  ;;  %v13389_v36 = vrot.slane %v13219_v33, 1  ;;  %v12964_v37 = vpop.f32.mrb[53].mxu1  ;;  %v13179_v54 = vadd.f32 %v23238_v35, %v29283_v49 }
 0xa4c   :  { %v13256_v38 = vrot.slane %v13218_v34, 1  ;;  %v13178_v62 = vadd.f32 %v29283_v49, %v12964_v37 }
 0xa4d   :  { %v13421_v40 = vmax.f32 %v13219_v33, %v13389_v36 }
 0xa4e   :  { %v13288_v50 = vmax.f32 %v13218_v34, %v13256_v38  ;;  %v23241_v53 = vpop.f32.mrb[54].mxu1 }
 0xa4f   :  { %13437 = vst.msk [vmem:[#allocation4 + $0xd5] sm:$0x1] %vm13295_vm7, %v13421_v40  ;;  %v13181_v55 = vadd.f32 %v23241_v53, %v29283_v49  ;;  %v12974_v56 = vpop.f32.mrb[55].mxu1 }
 0xa50   :  { %13453 = vst.msk [vmem:[#allocation4 + $0xd4] sm:$0x4] %vm13312_vm8, %v13421_v40  ;;  %13323 = vst.msk [vmem:[#allocation4 + $0xd0] sm:$0x4] %vm13312_vm8, %v13288_v50  ;;  %v13180_v28 = vadd.f32 %v29283_v49, %v12974_v56 }
 0xa51   :  { %13469 = vst.msk [vmem:[#allocation4 + $0xd3] sm:$0x10] %vm13329_vm9, %v13421_v40  ;;  %13340 = vst.msk [vmem:[#allocation4 + $0xcf] sm:$0x10] %vm13329_vm9, %v13288_v50  ;;  %v13221_v57 = vmax.f32 %v13179_v54, %v13181_v55 }
 0xa52   :  { %13485 = vst.msk [vmem:[#allocation4 + $0xd2] sm:$0x40] %vm13346_vm10, %v13421_v40  ;;  %v29458_v29 = vld [vmem:[#allocation4 + $0xc1] sm:$0xff]  ;;  %13357 = vst.msk [vmem:[#allocation4 + $0xce] sm:$0x40] %vm13346_vm10, %v13288_v50  ;;  %v13220_v6 = vmax.f32 %v13178_v62, %v13180_v28  ;;  %v23244_v41 = vpop.f32.mrb[56].mxu1 }
 0xa53   :  { %13306 = vst.msk [vmem:[#allocation4 + $0xd1] sm:$0x1] %vm13295_vm7, %v13288_v50  ;;  %23285 = vmatprep.mubr.msk.f32.mxu0 %vm280_vm5, %v29458_v29  ;;  %v13390_v63 = vrot.slane %v13221_v57, 1  ;;  %v12984_v2 = vpop.f32.mrb[57].mxu1  ;;  %v13183_v46 = vadd.f32 %v23244_v41, %v29283_v49 }
 0xa54   :  { %v13257_v43 = vrot.slane %v13220_v6, 1  ;;  %v13182_v4 = vadd.f32 %v29283_v49, %v12984_v2 }
 0xa55   :  { %v13422_v42 = vmax.f32 %v13221_v57, %v13390_v63 }
 0xa56   :  { %v13289_v0 = vmax.f32 %v13220_v6, %v13257_v43  ;;  %v23247_v61 = vpop.f32.mrb[58].mxu1 }
 0xa57   :  { %13438 = vst.msk [vmem:[#allocation4 + $0xe5] sm:$0x1] %vm13295_vm7, %v13422_v42  ;;  %v13185_v3 = vadd.f32 %v23247_v61, %v29283_v49  ;;  %v12994_v5 = vpop.f32.mrb[59].mxu1 }
 0xa58   :  { %13454 = vst.msk [vmem:[#allocation4 + $0xe4] sm:$0x4] %vm13312_vm8, %v13422_v42  ;;  %13324 = vst.msk [vmem:[#allocation4 + $0xe0] sm:$0x4] %vm13312_vm8, %v13289_v0  ;;  %v13184_v10 = vadd.f32 %v29283_v49, %v12994_v5 }
 0xa59   :  { %13470 = vst.msk [vmem:[#allocation4 + $0xe3] sm:$0x10] %vm13329_vm9, %v13422_v42  ;;  %13341 = vst.msk [vmem:[#allocation4 + $0xdf] sm:$0x10] %vm13329_vm9, %v13289_v0  ;;  %v13223_v11 = vmax.f32 %v13183_v46, %v13185_v3 }
 0xa5a   :  { %13486 = vst.msk [vmem:[#allocation4 + $0xe2] sm:$0x40] %vm13346_vm10, %v13422_v42  ;;  %v29474_v8 = vld [vmem:[#allocation4 + $0xd1] sm:$0xff]  ;;  %13358 = vst.msk [vmem:[#allocation4 + $0xde] sm:$0x40] %vm13346_vm10, %v13289_v0  ;;  %v13222_v47 = vmax.f32 %v13182_v4, %v13184_v10  ;;  %v23250_v12 = vpop.f32.mrb[60].mxu1 }
 0xa5b   :  { %13307 = vst.msk [vmem:[#allocation4 + $0xe1] sm:$0x1] %vm13295_vm7, %v13289_v0  ;;  %23286 = vmatmul.mubr.msk.f32.gmra.mrb[74].mxu0 %vm280_vm5, %v29474_v8  ;;  %v13391_v9 = vrot.slane %v13223_v11, 1  ;;  %v13004_v14 = vpop.f32.mrb[61].mxu1  ;;  %v13187_v23 = vadd.f32 %v23250_v12, %v29283_v49  ;;  %v19546_v12 = vld [vmem:[%s30668_s5 + $0x38] sm:$0xff] }
 0xa5c   :  { %v13258_v48 = vrot.slane %v13222_v47, 1  ;;  %v13186_v25 = vadd.f32 %v29283_v49, %v13004_v14  ;;  %v29551_v14 = vld [vmem:[#allocation4 + $0x10] sm:$0xff] }
 0xa5d   :  { %v13423_v1 = vmax.f32 %v13223_v11, %v13391_v9  ;;  %v13491_v11 = vld [vmem:[#allocation4] sm:$0xff] }
 0xa5e   :  { %v13290_v16 = vmax.f32 %v13222_v47, %v13258_v48  ;;  %v23253_v21 = vpop.f32.mrb[62].mxu1  ;;  %v29555_v48 = vld [vmem:[#allocation4 + $0x20] sm:$0xff] }
 0xa5f   :  { %13439 = vst.msk [vmem:[#allocation4 + $0xf5] sm:$0x1] %vm13295_vm7, %v13423_v1  ;;  %v13189_v20 = vadd.f32 %v23253_v21, %v29283_v49  ;;  %v13014_v59 = vpop.f32.mrb[63].mxu1  ;;  %v29568_v21 = vld [vmem:[#allocation4 + $0x50] sm:$0xff] }
 0xa60   :  { %13455 = vst.msk [vmem:[#allocation4 + $0xf4] sm:$0x4] %vm13312_vm8, %v13423_v1  ;;  %13325 = vst.msk [vmem:[#allocation4 + $0xf0] sm:$0x4] %vm13312_vm8, %v13290_v16  ;;  %v13188_v17 = vadd.f32 %v29283_v49, %v13014_v59  ;;  %v29581_v59 = vld [vmem:[#allocation4 + $0xb0] sm:$0xff] }
 0xa61   :  { %13471 = vst.msk [vmem:[#allocation4 + $0xf3] sm:$0x10] %vm13329_vm9, %v13423_v1  ;;  %13342 = vst.msk [vmem:[#allocation4 + $0xef] sm:$0x10] %vm13329_vm9, %v13290_v16  ;;  %v13225_v19 = vmax.f32 %v13187_v23, %v13189_v20  ;;  %v13499_v23 = vld [vmem:[#allocation4 + $0xa0] sm:$0xff]  ;;  %v29576_v20 = vld [vmem:[#allocation4 + $0x70] sm:$0xff] }
 0xa62   :  { %13487 = vst.msk [vmem:[#allocation4 + $0xf2] sm:$0x40] %vm13346_vm10, %v13423_v1  ;;  %v29490_v24 = vld [vmem:[#allocation4 + $0xe1] sm:$0xff]  ;;  %13359 = vst.msk [vmem:[#allocation4 + $0xee] sm:$0x40] %vm13346_vm10, %v13290_v16  ;;  %v13224_v15 = vmax.f32 %v13186_v25, %v13188_v17  ;;  %v23256_v7 = vpop.f32.mrb[64].mxu1 }
 0xa63   :  { %13308 = vst.msk [vmem:[#allocation4 + $0xf1] sm:$0x1] %vm13295_vm7, %v13290_v16  ;;  %23288 = vmatprep.mubr.msk.f32.mxu0 %vm280_vm5, %v29490_v24  ;;  %v13392_v60 = vrot.slane %v13225_v19, 1  ;;  %v13024_v22 = vpop.f32.mrb[65].mxu1  ;;  %v13191_v34 = vadd.f32 %v23256_v7, %v29283_v49  ;;  %v29560_v1 = vld [vmem:[#allocation4 + $0x30] sm:$0xff]  ;;  %v29564_v16 = vld [vmem:[#allocation4 + $0x40] sm:$0xff] }
 0xa64   :  { %v13259_v26 = vrot.slane %v13224_v15, 1  ;;  %v13190_v38 = vadd.f32 %v29283_v49, %v13024_v22  ;;  %v29585_v25 = vld [vmem:[#allocation4 + $0xc0] sm:$0xff]  ;;  %v29589_v17 = vld [vmem:[#allocation4 + $0xd0] sm:$0xff] }
 0xa65   :  { %v13424_v31 = vmax.f32 %v13225_v19, %v13392_v60  ;;  %v29593_v19 = vld [vmem:[#allocation4 + $0xe0] sm:$0xff] }
 0xa66   :  { %v13291_v32 = vmax.f32 %v13224_v15, %v13259_v26  ;;  %v23259_v33 = vpop.f32.mrb[66].mxu1  ;;  %v13914_v60 = vld [vmem:[#allocation4 + $0x2] sm:$0xff] }
 0xa67   :  { %13440 = vst.msk [vmem:[#allocation4 + $0x105] sm:$0x1] %vm13295_vm7, %v13424_v31  ;;  %v13193_v35 = vadd.f32 %v23259_v33, %v29283_v49  ;;  %v13034_v36 = vpop.f32.mrb[67].mxu1  ;;  %v19563_v26 = vld [vmem:[%s30668_s5 + $0x40] sm:$0xff]  ;;  %v29616_v33 = vld [vmem:[#allocation4 + $0x12] sm:$0xff] }
 0xa68   :  { %13456 = vst.msk [vmem:[#allocation4 + $0x104] sm:$0x4] %vm13312_vm8, %v13424_v31  ;;  %13326 = vst.msk [vmem:[#allocation4 + $0x100] sm:$0x4] %vm13312_vm8, %v13291_v32  ;;  %v13192_v40 = vadd.f32 %v29283_v49, %v13034_v36  ;;  %v29628_v36 = vld [vmem:[#allocation4 + $0x42] sm:$0xff] }
 0xa69   :  { %13472 = vst.msk [vmem:[#allocation4 + $0x103] sm:$0x10] %vm13329_vm9, %v13424_v31  ;;  %13343 = vst.msk [vmem:[#allocation4 + $0xff] sm:$0x10] %vm13329_vm9, %v13291_v32  ;;  %v13227_v50 = vmax.f32 %v13191_v34, %v13193_v35  ;;  %v29620_v34 = vld [vmem:[#allocation4 + $0x22] sm:$0xff]  ;;  %v29624_v35 = vld [vmem:[#allocation4 + $0x32] sm:$0xff] }
 0xa6a   :  { %13488 = vst.msk [vmem:[#allocation4 + $0x102] sm:$0x40] %vm13346_vm10, %v13424_v31  ;;  %v29506_v37 = vld [vmem:[#allocation4 + $0xf1] sm:$0xff]  ;;  %13360 = vst.msk [vmem:[#allocation4 + $0xfe] sm:$0x40] %vm13346_vm10, %v13291_v32  ;;  %v13226_v53 = vmax.f32 %v13190_v38, %v13192_v40  ;;  %v23262_v54 = vpop.f32.mrb[68].mxu1 }
 0xa6b   :  { %13309 = vst.msk [vmem:[#allocation4 + $0x101] sm:$0x1] %vm13295_vm7, %v13291_v32  ;;  %23289 = vmatmul.mubr.msk.f32.gmra.mrb[76].mxu0 %vm280_vm5, %v29506_v37  ;;  %v13393_v55 = vrot.slane %v13227_v50, 1  ;;  %v13044_v56 = vpop.f32.mrb[69].mxu1  ;;  %v13195_v41 = vadd.f32 %v23262_v54, %v29283_v49  ;;  %v29597_v15 = vld [vmem:[#allocation4 + $0xf0] sm:$0xff]  ;;  %v19564_v31 = vld [vmem:[%s30668_s5 + $0x48] sm:$0xff] }
 0xa6c   :  { %v13260_v62 = vrot.slane %v13226_v53, 1  ;;  %v13194_v42 = vadd.f32 %v29283_v49, %v13044_v56  ;;  %v23857_v32 = vpack.c.bf16 %v19564_v31, %v19563_v26  ;;  %v29632_v38 = vld [vmem:[#allocation4 + $0x52] sm:$0xff]  ;;  %v29636_v40 = vld [vmem:[#allocation4 + $0x62] sm:$0xff] }
 0xa6d   :  { %v13425_v28 = vmax.f32 %v13227_v50, %v13393_v55  ;;  %v13922_v50 = vld [vmem:[#allocation4 + $0xa2] sm:$0xff]  ;;  %v29645_v54 = vld [vmem:[#allocation4 + $0xb2] sm:$0xff] }
 0xa6e   :  { %v13292_v57 = vmax.f32 %v13226_v53, %v13260_v62  ;;  %v23265_v6 = vpop.f32.mrb[70].mxu1  ;;  %v29640_v53 = vld [vmem:[#allocation4 + $0x72] sm:$0xff]  ;;  %v29649_v55 = vld [vmem:[#allocation4 + $0xc2] sm:$0xff] }
 0xa6f   :  { %13441 = vst.msk [vmem:[#allocation4 + $0x115] sm:$0x1] %vm13295_vm7, %v13425_v28  ;;  %v13197_v63 = vadd.f32 %v23265_v6, %v29283_v49  ;;  %v13054_v2 = vpop.f32.mrb[71].mxu1  ;;  %v29653_v56 = vld [vmem:[#allocation4 + $0xd2] sm:$0xff]  ;;  %v29657_v62 = vld [vmem:[#allocation4 + $0xe2] sm:$0xff] }
 0xa70   :  { %13457 = vst.msk [vmem:[#allocation4 + $0x114] sm:$0x4] %vm13312_vm8, %v13425_v28  ;;  %13327 = vst.msk [vmem:[#allocation4 + $0x110] sm:$0x4] %vm13312_vm8, %v13292_v57  ;;  %v13196_v0 = vadd.f32 %v29283_v49, %v13054_v2  ;;  %v19545_v49 = vld [vmem:[%s30668_s5 + $0x30] sm:$0xff]  ;;  %v19636_v26 = vld [vmem:[%s30668_s5 + $0x88] sm:$0xff] }
 0xa71   :  { %13473 = vst.msk [vmem:[#allocation4 + $0x113] sm:$0x10] %vm13329_vm9, %v13425_v28  ;;  %13344 = vst.msk [vmem:[#allocation4 + $0x10f] sm:$0x10] %vm13329_vm9, %v13292_v57  ;;  %v13229_v61 = vmax.f32 %v13195_v41, %v13197_v63  ;;  %v23853_v9 = vpack.c.bf16 %v19546_v12, %v19545_v49  ;;  %v19581_v41 = vld [vmem:[%s30668_s5 + $0x50] sm:$0xff]  ;;  %v19582_v63 = vld [vmem:[%s30668_s5 + $0x58] sm:$0xff] }
 0xa72   :  { %13489 = vst.msk [vmem:[#allocation4 + $0x112] sm:$0x40] %vm13346_vm10, %v13425_v28  ;;  %v29522_v43 = vld [vmem:[#allocation4 + $0x101] sm:$0xff]  ;;  %13361 = vst.msk [vmem:[#allocation4 + $0x10e] sm:$0x40] %vm13346_vm10, %v13292_v57  ;;  %v13228_v46 = vmax.f32 %v13194_v42, %v13196_v0  ;;  %v29661_v28 = vld [vmem:[#allocation4 + $0xf2] sm:$0xff]  ;;  %v23861_v2 = vpack.c.bf16 %v19582_v63, %v19581_v41 }
 0xa73   :  { %13310 = vst.msk [vmem:[#allocation4 + $0x111] sm:$0x1] %vm13295_vm7, %v13292_v57  ;;  %23291 = vmatprep.mubr.msk.f32.mxu0 %vm280_vm5, %v29522_v43  ;;  %v13394_v3 = vrot.slane %v13229_v61, 1  ;;  %v29601_v7 = vld [vmem:[#allocation4 + $0x100] sm:$0xff]  ;;  %v19657_v12 = vld [vmem:[%s30670_s7 + $0x38] sm:$0xff] }
 0xa74   :  { %v13261_v5 = vrot.slane %v13228_v46, 1  ;;  %v29665_v57 = vld [vmem:[#allocation4 + $0x102] sm:$0xff] }
 0xa75   :  { %v13426_v4 = vmax.f32 %v13229_v61, %v13394_v3  ;;  %v29693_v42 = vld [vmem:[#allocation4 + $0x80] sm:$0xff] }
 0xa76   :  { %v13293_v10 = vmax.f32 %v13228_v46, %v13261_v5  ;;  %v19599_v61 = vld [vmem:[%s30668_s5 + $0x60] sm:$0xff]  ;;  %v19600_v46 = vld [vmem:[%s30668_s5 + $0x68] sm:$0xff]  ;;  %v19618_v5 = vld [vmem:[%s30668_s5 + $0x78] sm:$0xff] }
 0xa77   :  { %13442 = vst.msk [vmem:[#allocation4 + $0x125] sm:$0x1] %vm13295_vm7, %v13426_v4  ;;  %v29723_v3 = vpack.c.bf16 %v19600_v46, %v19599_v61 }
 0xa78   :  { %13458 = vst.msk [vmem:[#allocation4 + $0x124] sm:$0x4] %vm13312_vm8, %v13426_v4  ;;  %13328 = vst.msk [vmem:[#allocation4 + $0x120] sm:$0x4] %vm13312_vm8, %v13293_v10 }
 0xa79   :  { %13474 = vst.msk [vmem:[#allocation4 + $0x123] sm:$0x10] %vm13329_vm9, %v13426_v4  ;;  %13345 = vst.msk [vmem:[#allocation4 + $0x11f] sm:$0x10] %vm13329_vm9, %v13293_v10  ;;  %v29669_v6 = vld [vmem:[#allocation4 + $0x112] sm:$0xff] }
 0xa7a   :  { %13490 = vst.msk [vmem:[#allocation4 + $0x122] sm:$0x40] %vm13346_vm10, %v13426_v4  ;;  %v29536_v47 = vld [vmem:[#allocation4 + $0x111] sm:$0xff]  ;;  %13362 = vst.msk [vmem:[#allocation4 + $0x11e] sm:$0x40] %vm13346_vm10, %v13293_v10  ;;  %v19654_v4 = vld [vmem:[%s30670_s7 + $0x20] sm:$0xff] }
 0xa7b   :  { %13311 = vst.msk [vmem:[#allocation4 + $0x121] sm:$0x1] %vm13295_vm7, %v13293_v10  ;;  %23292 = vmatmul.mubr.msk.f32.gmra.mrb[78].mxu0 %vm280_vm5, %v29536_v47  ;;  %v29605_v22 = vld [vmem:[#allocation4 + $0x110] sm:$0xff]  ;;  %v19655_v10 = vld [vmem:[%s30670_s7 + $0x28] sm:$0xff] }
 0xa7c   :  { %23298 = vmatprep.mubr.msk.f32.mxu0 %vm280_vm5, %v13491_v11  ;;  %v19656_v11 = vld [vmem:[%s30670_s7 + $0x30] sm:$0xff]  ;;  %v23877_v49 = vpack.c.bf16 %v19655_v10, %v19654_v4 }
 0xa7e   :  { %23878 = vmatprep.subr.bf16.mxu1 %v23877_v49 }
 0xa7f   :  { %23299 = vmatmul.mubr.msk.f32.vlgmr.msra.gmra.mrb[64].mxu0 %vm280_vm5, %v29551_v14  ;;  %23880 = vmatpush3.bf16.msra.mxu1 %v23877_v49 }
 0xa80   :  { %23852 = vmatpush3.bf16.msra.mxu0 %v29307_v58  ;;  %23301 = vmatprep.mubr.msk.f32.mxu0 %vm280_vm5, %v29555_v48  ;;  %v29572_v58 = vld [vmem:[#allocation4 + $0x60] sm:$0xff] }
 0xa81   :  { %23854 = vmatprep.subr.bf16.mxu0 %v23853_v9 }
 0xa82   :  { %v29711_v0 = vld [vmem:[#allocation4 + $0x120] sm:$0xff] }
 0xa83   :  { %23302 = vmatmul.mubr.msk.f32.gmra.mrb[66].mxu0 %vm280_vm5, %v29560_v1 }
 0xa84   :  { %23304 = vmatprep.mubr.msk.f32.mxu0 %vm280_vm5, %v29564_v16 }
 0xa87   :  { %23305 = vmatmul.mubr.msk.f32.gmra.mrb[68].mxu0 %vm280_vm5, %v29568_v21 }
 0xa88   :  { %23307 = vmatprep.mubr.msk.f32.mxu0 %vm280_vm5, %v29572_v58 }
 0xa8b   :  { %23308 = vmatmul.mubr.msk.f32.gmra.mrb[70].mxu0 %vm280_vm5, %v29576_v20 }
 0xa8c   :  { %23310 = vmatprep.mubr.msk.f32.mxu0 %vm280_vm5, %v13499_v23  ;;  %v14605_v23 = vld [vmem:[#allocation4 + $0x82] sm:$0xff] }
 0xa8f   :  { %23311 = vmatmul.mubr.msk.f32.gmra.mrb[72].mxu0 %vm280_vm5, %v29581_v59 }
 0xa90   :  { %23313 = vmatprep.mubr.msk.f32.mxu0 %vm280_vm5, %v29585_v25 }
 0xa93   :  { %23314 = vmatmul.mubr.msk.f32.gmra.mrb[74].mxu0 %vm280_vm5, %v29589_v17 }
 0xa94   :  { %23316 = vmatprep.mubr.msk.f32.mxu0 %vm280_vm5, %v29593_v19 }
 0xa97   :  { %23317 = vmatmul.mubr.msk.f32.gmra.mrb[76].mxu0 %vm280_vm5, %v29597_v15 }
 0xa98   :  { %23319 = vmatprep.mubr.msk.f32.mxu0 %vm280_vm5, %v29601_v7 }
 0xa9b   :  { %23320 = vmatmul.mubr.msk.f32.gmra.mrb[78].mxu0 %vm280_vm5, %v29605_v22 }
 0xa9c   :  { %23326 = vmatprep.mubr.msk.f32.mxu0 %vm280_vm5, %v13914_v60  ;;  %v19635_v60 = vld [vmem:[%s30668_s5 + $0x80] sm:$0xff] }
 0xa9d   :  { %v23873_v31 = vpack.c.bf16 %v19636_v26, %v19635_v60 }
 0xa9f   :  { %23327 = vmatmul.mubr.msk.f32.vlgmr.msra.gmra.mrb[64].mxu0 %vm280_vm5, %v29616_v33 }
 0xaa0   :  { %23856 = vmatpush3.bf16.msra.mxu0 %v23853_v9  ;;  %23329 = vmatprep.mubr.msk.f32.mxu0 %vm280_vm5, %v29620_v34 }
 0xaa1   :  { %23858 = vmatprep.subr.bf16.mxu0 %v23857_v32 }
 0xaa3   :  { %23330 = vmatmul.mubr.msk.f32.gmra.mrb[66].mxu0 %vm280_vm5, %v29624_v35 }
 0xaa4   :  { %23332 = vmatprep.mubr.msk.f32.mxu0 %vm280_vm5, %v29628_v36 }
 0xaa7   :  { %23333 = vmatmul.mubr.msk.f32.gmra.mrb[68].mxu0 %vm280_vm5, %v29632_v38 }
 0xaa8   :  { %23335 = vmatprep.mubr.msk.f32.mxu0 %vm280_vm5, %v29636_v40 }
 0xaab   :  { %23336 = vmatmul.mubr.msk.f32.gmra.mrb[70].mxu0 %vm280_vm5, %v29640_v53 }
 0xaac   :  { %23338 = vmatprep.mubr.msk.f32.mxu0 %vm280_vm5, %v13922_v50 }
 0xaaf   :  { %23339 = vmatmul.mubr.msk.f32.gmra.mrb[72].mxu0 %vm280_vm5, %v29645_v54 }
 0xab0   :  { %23341 = vmatprep.mubr.msk.f32.mxu0 %vm280_vm5, %v29649_v55 }
 0xab3   :  { %23342 = vmatmul.mubr.msk.f32.gmra.mrb[74].mxu0 %vm280_vm5, %v29653_v56 }
 0xab4   :  { %23344 = vmatprep.mubr.msk.f32.mxu0 %vm280_vm5, %v29657_v62 }
 0xab7   :  { %23345 = vmatmul.mubr.msk.f32.gmra.mrb[76].mxu0 %vm280_vm5, %v29661_v28 }
 0xab8   :  { %23347 = vmatprep.mubr.msk.f32.mxu0 %vm280_vm5, %v29665_v57 }
 0xabb   :  { %23348 = vmatmul.mubr.msk.f32.gmra.mrb[78].mxu0 %vm280_vm5, %v29669_v6 }
 0xabc   :  { %23354 = vmatprep.mubr.msk.f32.mxu0 %vm280_vm5, %v29551_v14  ;;  %v23881_v14 = vpack.c.bf16 %v19657_v12, %v19656_v11 }
 0xabe   :  { %23882 = vmatprep.subr.bf16.mxu1 %v23881_v14 }
 0xabf   :  { %23355 = vmatmul.mubr.msk.f32.vlgmr.msra.gmra.mrb[64].mxu0 %vm280_vm5, %v29555_v48  ;;  %23884 = vmatpush3.bf16.msra.mxu1 %v23881_v14 }
 0xac0   :  { %23860 = vmatpush3.bf16.msra.mxu0 %v23857_v32  ;;  %23357 = vmatprep.mubr.msk.f32.mxu0 %vm280_vm5, %v29560_v1 }
 0xac1   :  { %23862 = vmatprep.subr.bf16.mxu0 %v23861_v2 }
 0xac3   :  { %23358 = vmatmul.mubr.msk.f32.gmra.mrb[66].mxu0 %vm280_vm5, %v29564_v16 }
 0xac4   :  { %23360 = vmatprep.mubr.msk.f32.mxu0 %vm280_vm5, %v29568_v21 }
 0xac7   :  { %23361 = vmatmul.mubr.msk.f32.gmra.mrb[68].mxu0 %vm280_vm5, %v29572_v58 }
 0xac8   :  { %23363 = vmatprep.mubr.msk.f32.mxu0 %vm280_vm5, %v29576_v20 }
 0xacb   :  { %23364 = vmatmul.mubr.msk.f32.gmra.mrb[70].mxu0 %vm280_vm5, %v29693_v42 }
 0xacc   :  { %23366 = vmatprep.mubr.msk.f32.mxu0 %vm280_vm5, %v29581_v59  ;;  %v14613_v59 = vld [vmem:[#allocation4 + $0x122] sm:$0xff] }
 0xacf   :  { %23367 = vmatmul.mubr.msk.f32.gmra.mrb[72].mxu0 %vm280_vm5, %v29585_v25 }
 0xad0   :  { %23369 = vmatprep.mubr.msk.f32.mxu0 %vm280_vm5, %v29589_v17 }
 0xad3   :  { %23370 = vmatmul.mubr.msk.f32.gmra.mrb[74].mxu0 %vm280_vm5, %v29593_v19 }
 0xad4   :  { %23372 = vmatprep.mubr.msk.f32.mxu0 %vm280_vm5, %v29597_v15 }
 0xad7   :  { %23373 = vmatmul.mubr.msk.f32.gmra.mrb[76].mxu0 %vm280_vm5, %v29601_v7 }
 0xad8   :  { %23375 = vmatprep.mubr.msk.f32.mxu0 %vm280_vm5, %v29605_v22 }
 0xadb   :  { %23376 = vmatmul.mubr.msk.f32.gmra.mrb[78].mxu0 %vm280_vm5, %v29711_v0 }
 0xadc   :  { %23382 = vmatprep.mubr.msk.f32.mxu0 %vm280_vm5, %v29315_v18  ;;  %v29738_v18 = vld [vmem:[#allocation4 + $0x81] sm:$0xff] }
 0xadf   :  { %23383 = vmatmul.mubr.msk.f32.vlgmr.msra.gmra.mrb[64].mxu0 %vm280_vm5, %v29333_v51  ;;  %v29756_v51 = vld [vmem:[#allocation4 + $0x121] sm:$0xff] }
 0xae0   :  { %23864 = vmatpush3.bf16.msra.mxu0 %v23861_v2  ;;  %23385 = vmatprep.mubr.msk.f32.mxu0 %vm280_vm5, %v29349_v44 }
 0xae1   :  { %23866 = vmatprep.subr.bf16.mxu0 %v29723_v3 }
 0xae3   :  { %23386 = vmatmul.mubr.msk.f32.gmra.mrb[66].mxu0 %vm280_vm5, %v29365_v13 }
 0xae4   :  { %23388 = vmatprep.mubr.msk.f32.mxu0 %vm280_vm5, %v29381_v39 }
 0xae7   :  { %23389 = vmatmul.mubr.msk.f32.gmra.mrb[68].mxu0 %vm280_vm5, %v29397_v52 }
 0xae8   :  { %23391 = vmatprep.mubr.msk.f32.mxu0 %vm280_vm5, %v29413_v45 }
 0xaeb   :  { %23392 = vmatmul.mubr.msk.f32.gmra.mrb[70].mxu0 %vm280_vm5, %v29738_v18 }
 0xaec   :  { %23394 = vmatprep.mubr.msk.f32.mxu0 %vm280_vm5, %v29442_v30  ;;  %v19617_v30 = vld [vmem:[%s30668_s5 + $0x70] sm:$0xff] }
 0xaed   :  { %v23869_v9 = vpack.c.bf16 %v19618_v5, %v19617_v30 }
 0xaef   :  { %23395 = vmatmul.mubr.msk.f32.gmra.mrb[72].mxu0 %vm280_vm5, %v29458_v29 }
 0xaf0   :  { %23397 = vmatprep.mubr.msk.f32.mxu0 %vm280_vm5, %v29474_v8 }
 0xaf3   :  { %23398 = vmatmul.mubr.msk.f32.gmra.mrb[74].mxu0 %vm280_vm5, %v29490_v24 }
 0xaf4   :  { %23400 = vmatprep.mubr.msk.f32.mxu0 %vm280_vm5, %v29506_v37 }
 0xaf7   :  { %23401 = vmatmul.mubr.msk.f32.gmra.mrb[76].mxu0 %vm280_vm5, %v29522_v43 }
 0xaf8   :  { %23403 = vmatprep.mubr.msk.f32.mxu0 %vm280_vm5, %v29536_v47 }
 0xafb   :  { %23404 = vmatmul.mubr.msk.f32.gmra.mrb[78].mxu0 %vm280_vm5, %v29756_v51 }
 0xafc   :  { %23410 = vmatprep.mubr.msk.f32.mxu0 %vm280_vm5, %v29616_v33 }
 0xaff   :  { %23411 = vmatmul.mubr.msk.f32.vlgmr.msra.gmra.mrb[64].mxu0 %vm280_vm5, %v29620_v34 }
 0xb00   :  { %23868 = vmatpush3.bf16.msra.mxu0 %v29723_v3  ;;  %23413 = vmatprep.mubr.msk.f32.mxu0 %vm280_vm5, %v29624_v35 }
 0xb01   :  { %23870 = vmatprep.subr.bf16.mxu0 %v23869_v9 }
 0xb03   :  { %23414 = vmatmul.mubr.msk.f32.gmra.mrb[66].mxu0 %vm280_vm5, %v29628_v36 }
 0xb04   :  { %23416 = vmatprep.mubr.msk.f32.mxu0 %vm280_vm5, %v29632_v38 }
 0xb07   :  { %23417 = vmatmul.mubr.msk.f32.gmra.mrb[68].mxu0 %vm280_vm5, %v29636_v40 }
 0xb08   :  { %23419 = vmatprep.mubr.msk.f32.mxu0 %vm280_vm5, %v29640_v53 }
 0xb0b   :  { %23420 = vmatmul.mubr.msk.f32.gmra.mrb[70].mxu0 %vm280_vm5, %v14605_v23 }
 0xb0c   :  { %23422 = vmatprep.mubr.msk.f32.mxu0 %vm280_vm5, %v29645_v54 }
 0xb0f   :  { %23423 = vmatmul.mubr.msk.f32.gmra.mrb[72].mxu0 %vm280_vm5, %v29649_v55 }
 0xb10   :  { %23425 = vmatprep.mubr.msk.f32.mxu0 %vm280_vm5, %v29653_v56 }
 0xb13   :  { %23426 = vmatmul.mubr.msk.f32.gmra.mrb[74].mxu0 %vm280_vm5, %v29657_v62 }
 0xb14   :  { %23428 = vmatprep.mubr.msk.f32.mxu0 %vm280_vm5, %v29661_v28 }
 0xb17   :  { %23429 = vmatmul.mubr.msk.f32.gmra.mrb[76].mxu0 %vm280_vm5, %v29665_v57 }
 0xb18   :  { %23431 = vmatprep.mubr.msk.f32.mxu0 %vm280_vm5, %v29669_v6 }
 0xb1b   :  { %23432 = vmatmul.mubr.msk.f32.gmra.mrb[78].mxu0 %vm280_vm5, %v14613_v59 }
 0xb1c   :  { %23438 = vmatprep.mubr.msk.f32.mxu0 %vm280_vm5, %v29555_v48  ;;  %v14834_v48 = vld [vmem:[#allocation4 + $0x90] sm:$0xff] }
 0xb1f   :  { %23439 = vmatmul.mubr.msk.f32.vlgmr.msra.gmra.mrb[64].mxu0 %vm280_vm5, %v29560_v1  ;;  %v14842_v1 = vld [vmem:[#allocation4 + $0x130] sm:$0xff] }
 0xb20   :  { %23872 = vmatpush3.bf16.msra.mxu0 %v23869_v9  ;;  %23441 = vmatprep.mubr.msk.f32.mxu0 %vm280_vm5, %v29564_v16  ;;  %v15055_v16 = vld [vmem:[#allocation4 + $0x21] sm:$0xff] }
 0xb21   :  { %23874 = vmatprep.subr.bf16.mxu0 %v23873_v31 }
 0xb23   :  { %23442 = vmatmul.mubr.msk.f32.gmra.mrb[66].mxu0 %vm280_vm5, %v29568_v21  ;;  %v15062_v21 = vld [vmem:[#allocation4 + $0x91] sm:$0xff] }
 0xb24   :  { %23444 = vmatprep.mubr.msk.f32.mxu0 %vm280_vm5, %v29572_v58 }
 0xb27   :  { %23445 = vmatmul.mubr.msk.f32.gmra.mrb[68].mxu0 %vm280_vm5, %v29576_v20 }
 0xb28   :  { %23447 = vmatprep.mubr.msk.f32.mxu0 %vm280_vm5, %v29693_v42 }
 0xb2b   :  { %23448 = vmatmul.mubr.msk.f32.gmra.mrb[70].mxu0 %vm280_vm5, %v14834_v48 }
 0xb2c   :  { %23450 = vmatprep.mubr.msk.f32.mxu0 %vm280_vm5, %v29585_v25 }
 0xb2f   :  { %23451 = vmatmul.mubr.msk.f32.gmra.mrb[72].mxu0 %vm280_vm5, %v29589_v17 }
 0xb30   :  { %23453 = vmatprep.mubr.msk.f32.mxu0 %vm280_vm5, %v29593_v19 }
 0xb33   :  { %23454 = vmatmul.mubr.msk.f32.gmra.mrb[74].mxu0 %vm280_vm5, %v29597_v15  ;;  %v15569_v15 = vld [vmem:[%s30670_s7 + $0x10] sm:$0xff] }
 0xb34   :  { %23456 = vmatprep.mubr.msk.f32.mxu0 %vm280_vm5, %v29601_v7  ;;  %v15570_v7 = vld [vmem:[%s30670_s7 + $0x18] sm:$0xff] }
 0xb37   :  { %23457 = vmatmul.mubr.msk.f32.gmra.mrb[76].mxu0 %vm280_vm5, %v29605_v22 }
 0xb38   :  { %23459 = vmatprep.mubr.msk.f32.mxu0 %vm280_vm5, %v29711_v0 }
 0xb3b   :  { %23460 = vmatmul.mubr.msk.f32.gmra.mrb[78].mxu0 %vm280_vm5, %v14842_v1  ;;  %v15551_v1 = vld [vmem:[#allocation5] sm:$0xff] }
 0xb3c   :  { %23466 = vmatprep.mubr.msk.f32.mxu0 %vm280_vm5, %v15055_v16 }
 0xb3f   :  { %23467 = vmatmul.mubr.msk.f32.vlgmr.msra.gmra.mrb[64].mxu0 %vm280_vm5, %v29349_v44  ;;  %v15070_v44 = vld [vmem:[#allocation4 + $0x131] sm:$0xff] }
 0xb40   :  { %23876 = vmatpush3.bf16.msra.mxu0 %v23873_v31  ;;  %23469 = vmatprep.mubr.msk.f32.mxu0 %vm280_vm5, %v29365_v13  ;;  %v15290_v13 = vld [vmem:[#allocation4 + $0x92] sm:$0xff] }
 0xb43   :  { %23470 = vmatmul.mubr.msk.f32.gmra.mrb[66].mxu0 %vm280_vm5, %v29381_v39  ;;  %v15298_v39 = vld [vmem:[#allocation4 + $0x132] sm:$0xff] }
 0xb44   :  { %23472 = vmatprep.mubr.msk.f32.mxu0 %vm280_vm5, %v29397_v52  ;;  %v15571_v52 = vld [vmem:[#allocation5 + $0x1] sm:$0xff] }
 0xb45   :  { %23526 = vmatprep.mubr.msk.f32.mxu1 %vm322_vm11, %v15571_v52  ;;  %v19710_v52 = vld [vmem:[%s30670_s7 + $0x60] sm:$0xff] }
 0xb47   :  { %23473 = vmatmul.mubr.msk.f32.gmra.mrb[68].mxu0 %vm280_vm5, %v29413_v45  ;;  %v15567_v45 = vld [vmem:[%s30670_s7] sm:$0xff] }
 0xb48   :  { %23475 = vmatprep.mubr.msk.f32.mxu0 %vm280_vm5, %v29738_v18 }
 0xb4b   :  { %23476 = vmatmul.mubr.msk.f32.gmra.mrb[70].mxu0 %vm280_vm5, %v15062_v21  ;;  %v19692_v21 = vld [vmem:[%s30670_s7 + $0x50] sm:$0xff] }
 0xb4c   :  { %23478 = vmatprep.mubr.msk.f32.mxu0 %vm280_vm5, %v29458_v29  ;;  %v15568_v29 = vld [vmem:[%s30670_s7 + $0x8] sm:$0xff] }
 0xb4f   :  { %23479 = vmatmul.mubr.msk.f32.gmra.mrb[72].mxu0 %vm280_vm5, %v29474_v8  ;;  %v23885_v8 = vpack.c.bf16 %v15568_v29, %v15567_v45  ;;  %v19711_v45 = vld [vmem:[%s30670_s7 + $0x68] sm:$0xff] }
 0xb50   :  { %23481 = vmatprep.mubr.msk.f32.mxu0 %vm280_vm5, %v29490_v24  ;;  %v29992_v24 = vld [vmem:[%s30669_s6] ss:$0 sm:$0xff] }
 0xb51   :  { %23886 = vmatprep.subr.bf16.mxu1 %v23885_v8 }
 0xb53   :  { %23482 = vmatmul.mubr.msk.f32.gmra.mrb[74].mxu0 %vm280_vm5, %v29506_v37 }
 0xb54   :  { %23484 = vmatprep.mubr.msk.f32.mxu0 %vm280_vm5, %v29522_v43 }
 0xb57   :  { %23485 = vmatmul.mubr.msk.f32.gmra.mrb[76].mxu0 %vm280_vm5, %v29536_v47 }
 0xb58   :  { %23487 = vmatprep.mubr.msk.f32.mxu0 %vm280_vm5, %v29756_v51  ;;  %v15579_v51 = vld [vmem:[#allocation5 + $0xa1] sm:$0xff] }
 0xb5b   :  { %23488 = vmatmul.mubr.msk.f32.gmra.mrb[78].mxu0 %vm280_vm5, %v15070_v44  ;;  %v19693_v44 = vld [vmem:[%s30670_s7 + $0x58] sm:$0xff] }
 0xb5c   :  { %23494 = vmatprep.mubr.msk.f32.mxu0 %vm280_vm5, %v29620_v34 }
 0xb5f   :  { %23495 = vmatmul.mubr.msk.f32.vlgmr.msra.gmra.mrb[64].mxu0 %vm280_vm5, %v29624_v35  ;;  %v23889_v35 = vpack.c.bf16 %v15570_v7, %v15569_v15 }
 0xb60   :  { %23497 = vmatprep.mubr.msk.f32.mxu0 %vm280_vm5, %v29628_v36 }
 0xb63   :  { %23498 = vmatmul.mubr.msk.f32.gmra.mrb[66].mxu0 %vm280_vm5, %v29632_v38  ;;  %v19690_v38 = vld [vmem:[%s30670_s7 + $0x40] sm:$0xff] }
 0xb64   :  { %23500 = vmatprep.mubr.msk.f32.mxu0 %vm280_vm5, %v29636_v40  ;;  %v19691_v40 = vld [vmem:[%s30670_s7 + $0x48] sm:$0xff] }
 0xb67   :  { %23501 = vmatmul.mubr.msk.f32.gmra.mrb[68].mxu0 %vm280_vm5, %v29640_v53 }
 0xb68   :  { %23503 = vmatprep.mubr.msk.f32.mxu0 %vm280_vm5, %v14605_v23 }
 0xb6b   :  { %23504 = vmatmul.mubr.msk.f32.gmra.mrb[70].mxu0 %vm280_vm5, %v15290_v13  ;;  %v23897_v13 = vpack.c.bf16 %v19693_v44, %v19692_v21 }
 0xb6c   :  { %23506 = vmatprep.mubr.msk.f32.mxu0 %vm280_vm5, %v29649_v55 }
 0xb6f   :  { %23507 = vmatmul.mubr.msk.f32.gmra.mrb[72].mxu0 %vm280_vm5, %v29653_v56 }
 0xb70   :  { %23509 = vmatprep.mubr.msk.f32.mxu0 %vm280_vm5, %v29657_v62  ;;  %v30028_v62 = vpack.c.bf16 %v19691_v40, %v19690_v38 }
 0xb73   :  { %23510 = vmatmul.mubr.msk.f32.gmra.mrb[74].mxu0 %vm280_vm5, %v29661_v28 }
 0xb74   :  { %23512 = vmatprep.mubr.msk.f32.mxu0 %vm280_vm5, %v29665_v57 }
 0xb77   :  { %23513 = vmatmul.mubr.msk.f32.gmra.mrb[76].mxu0 %vm280_vm5, %v29669_v6 }
 0xb78   :  { %23515 = vmatprep.mubr.msk.f32.mxu0 %vm280_vm5, %v14613_v59 }
 0xb7b   :  { %23516 = vmatmul.mubr.msk.f32.gmra.mrb[78].mxu0 %vm280_vm5, %v15298_v39 }
 0xc32   :  { %v23496_v37 = vpop.f32.mrb[64].mxu0 }
 0xc33   :  { %v15519_v43 = vadd.f32 %v23496_v37, %v29992_v24  ;;  %v15416_v47 = vpop.f32.mrb[65].mxu0 }
 0xc34   :  { %v15518_v58 = vadd.f32 %v29992_v24, %v15416_v47 }
 0xc35   :  { %15536 = vst.msk [vmem:[#allocation5 + $0x21] sm:$0xff] %vm322_vm11, %v15519_v43 }
 0xc36   :  { %15535 = vst.msk [vmem:[#allocation5 + $0x11] sm:$0xff] %vm322_vm11, %v15518_v58  ;;  %v23499_v20 = vpop.f32.mrb[66].mxu0  ;;  %v15559_v58 = vld [vmem:[#allocation5 + $0xa0] sm:$0xff] }
 0xc37   :  { %v15521_v25 = vadd.f32 %v23499_v20, %v29992_v24  ;;  %v15426_v17 = vpop.f32.mrb[67].mxu0 }
 0xc38   :  { %v15520_v19 = vadd.f32 %v29992_v24, %v15426_v17 }
 0xc39   :  { %15538 = vst.msk [vmem:[#allocation5 + $0x41] sm:$0xff] %vm322_vm11, %v15521_v25 }
 0xc3a   :  { %15537 = vst.msk [vmem:[#allocation5 + $0x31] sm:$0xff] %vm322_vm11, %v15520_v19  ;;  %v23502_v22 = vpop.f32.mrb[68].mxu0 }
 0xc3b   :  { %v15523_v32 = vadd.f32 %v23502_v22, %v29992_v24  ;;  %v15436_v33 = vpop.f32.mrb[69].mxu0 }
 0xc3c   :  { %v15522_v34 = vadd.f32 %v29992_v24, %v15436_v33  ;;  %v30022_v53 = vld [vmem:[#allocation5 + $0x21] sm:$0xff] }
 0xc3d   :  { %15540 = vst.msk [vmem:[#allocation5 + $0x61] sm:$0xff] %vm322_vm11, %v15523_v32  ;;  %v30011_v36 = vld [vmem:[#allocation5 + $0x11] sm:$0xff]  ;;  %v30115_v29 = vld [vmem:[#allocation5 + $0x20] sm:$0xff] }
 0xc3e   :  { %15539 = vst.msk [vmem:[#allocation5 + $0x51] sm:$0xff] %vm322_vm11, %v15522_v34  ;;  %v23505_v50 = vpop.f32.mrb[70].mxu0  ;;  %23527 = vmatmul.mubr.msk.f32.vlgmr.msra.gmra.mrb[72].mxu1 %vm322_vm11, %v30011_v36  ;;  %v30105_v39 = vld [vmem:[#allocation5 + $0x10] sm:$0xff]  ;;  %v15978_v32 = vld [vmem:[#allocation5 + $0x2] sm:$0xff] }
 0xc3f   :  { %v15525_v54 = vadd.f32 %v23505_v50, %v29992_v24  ;;  %23888 = vmatpush3.bf16.msra.mxu1 %v23885_v8  ;;  %v15446_v55 = vpop.f32.mrb[71].mxu0  ;;  %23529 = vmatprep.mubr.msk.f32.mxu1 %vm322_vm11, %v30022_v53  ;;  %v23901_v8 = vpack.c.bf16 %v19711_v45, %v19710_v52  ;;  %v19712_v34 = vld [vmem:[%s30670_s7 + $0x70] sm:$0xff]  ;;  %v19730_v50 = vld [vmem:[%s30670_s7 + $0x80] sm:$0xff] }
 0xc40   :  { %v15524_v56 = vadd.f32 %v29992_v24, %v15446_v55  ;;  %23890 = vmatprep.subr.bf16.mxu1 %v23889_v35  ;;  %v30036_v6 = vld [vmem:[#allocation5 + $0x41] sm:$0xff]  ;;  %v30176_v40 = vld [vmem:[#allocation5 + $0x12] sm:$0xff] }
 0xc41   :  { %15542 = vst.msk [vmem:[#allocation5 + $0x81] sm:$0xff] %vm322_vm11, %v15525_v54  ;;  %v30031_v28 = vld [vmem:[#allocation5 + $0x31] sm:$0xff]  ;;  %v30124_v37 = vld [vmem:[#allocation5 + $0x40] sm:$0xff]  ;;  %v19731_v54 = vld [vmem:[%s30670_s7 + $0x88] sm:$0xff] }
 0xc42   :  { %15541 = vst.msk [vmem:[#allocation5 + $0x71] sm:$0xff] %vm322_vm11, %v15524_v56  ;;  %v23508_v57 = vpop.f32.mrb[72].mxu0  ;;  %23530 = vmatmul.mubr.msk.f32.gmra.mrb[74].mxu1 %vm322_vm11, %v30031_v28  ;;  %v30186_v55 = vld [vmem:[#allocation5 + $0x22] sm:$0xff]  ;;  %v23909_v56 = vpack.c.bf16 %v19731_v54, %v19730_v50 }
 0xc43   :  { %v15527_v41 = vadd.f32 %v23508_v57, %v29992_v24  ;;  %v15456_v63 = vpop.f32.mrb[73].mxu0  ;;  %23532 = vmatprep.mubr.msk.f32.mxu1 %vm322_vm11, %v30036_v6  ;;  %23892 = vmatpush3.bf16.msra.mxu1 %v23889_v35  ;;  %v19713_v35 = vld [vmem:[%s30670_s7 + $0x78] sm:$0xff]  ;;  %v30194_v57 = vld [vmem:[#allocation5 + $0x42] sm:$0xff] }
 0xc44   :  { %v15526_v2 = vadd.f32 %v29992_v24, %v15456_v63  ;;  %23894 = vmatprep.subr.bf16.mxu1 %v30028_v62  ;;  %v30049_v61 = vld [vmem:[#allocation5 + $0x61] sm:$0xff]  ;;  %v23905_v38 = vpack.c.bf16 %v19713_v35, %v19712_v34 }
 0xc45   :  { %15544 = vst.msk [vmem:[#allocation5 + $0xc1] sm:$0xff] %vm322_vm11, %v15527_v41  ;;  %v30044_v42 = vld [vmem:[#allocation5 + $0x51] sm:$0xff]  ;;  %v30132_v47 = vld [vmem:[#allocation5 + $0x60] sm:$0xff] }
 0xc46   :  { %15543 = vst.msk [vmem:[#allocation5 + $0xb1] sm:$0xff] %vm322_vm11, %v15526_v2  ;;  %v23511_v0 = vpop.f32.mrb[74].mxu0  ;;  %23533 = vmatmul.mubr.msk.f32.gmra.mrb[76].mxu1 %vm322_vm11, %v30044_v42  ;;  %v30128_v43 = vld [vmem:[#allocation5 + $0x50] sm:$0xff]  ;;  %v30202_v63 = vld [vmem:[#allocation5 + $0x62] sm:$0xff] }
 0xc47   :  { %v15529_v46 = vadd.f32 %v23511_v0, %v29992_v24  ;;  %v15466_v3 = vpop.f32.mrb[75].mxu0  ;;  %23535 = vmatprep.mubr.msk.f32.mxu1 %vm322_vm11, %v30049_v61  ;;  %v30198_v41 = vld [vmem:[#allocation5 + $0x52] sm:$0xff]  ;;  %v15986_v2 = vld [vmem:[#allocation5 + $0xa2] sm:$0xff] }
 0xc48   :  { %v15528_v18 = vadd.f32 %v29992_v24, %v15466_v3  ;;  %v30265_v21 = vld [vmem:[#allocation5 + $0x80] sm:$0xff] }
 0xc49   :  { %15546 = vst.msk [vmem:[#allocation5 + $0xe1] sm:$0xff] %vm322_vm11, %v15529_v46  ;;  %v30056_v30 = vld [vmem:[#allocation5 + $0x71] sm:$0xff]  ;;  %v19770_v45 = vld [vmem:[%s30670_s7 + $0xc0] sm:$0xff] }
 0xc4a   :  { %15545 = vst.msk [vmem:[#allocation5 + $0xd1] sm:$0xff] %vm322_vm11, %v15528_v18  ;;  %v23514_v5 = vpop.f32.mrb[76].mxu0  ;;  %23536 = vmatmul.mubr.msk.f32.gmra.mrb[78].mxu1 %vm322_vm11, %v30056_v30  ;;  %v30136_v20 = vld [vmem:[#allocation5 + $0x70] sm:$0xff]  ;;  %v19790_v35 = vld [vmem:[%s30670_s7 + $0xe0] sm:$0xff] }
 0xc4b   :  { %v15531_v4 = vadd.f32 %v23514_v5, %v29992_v24  ;;  %v15476_v10 = vpop.f32.mrb[77].mxu0  ;;  %23538 = vmatprep.mubr.msk.f32.mxu1 %vm322_vm11, %v15579_v51  ;;  %v30206_v0 = vld [vmem:[#allocation5 + $0x72] sm:$0xff] }
 0xc4c   :  { %v15530_v11 = vadd.f32 %v29992_v24, %v15476_v10  ;;  %v30070_v9 = vld [vmem:[#allocation5 + $0xc1] sm:$0xff] }
 0xc4d   :  { %15548 = vst.msk [vmem:[#allocation5 + $0x101] sm:$0xff] %vm322_vm11, %v15531_v4  ;;  %v30065_v49 = vld [vmem:[#allocation5 + $0xb1] sm:$0xff]  ;;  %v30145_v17 = vld [vmem:[#allocation5 + $0xc0] sm:$0xff] }
 0xc4e   :  { %15547 = vst.msk [vmem:[#allocation5 + $0xf1] sm:$0xff] %vm322_vm11, %v15530_v11  ;;  %v23517_v12 = vpop.f32.mrb[78].mxu0  ;;  %23539 = vmatmul.mubr.msk.f32.gmra.mrb[80].mxu1 %vm322_vm11, %v30065_v49  ;;  %v30141_v25 = vld [vmem:[#allocation5 + $0xb0] sm:$0xff]  ;;  %v30215_v3 = vld [vmem:[#allocation5 + $0xc2] sm:$0xff] }
 0xc4f   :  { %v15533_v14 = vadd.f32 %v23517_v12, %v29992_v24  ;;  %v15486_v23 = vpop.f32.mrb[79].mxu0  ;;  %23541 = vmatprep.mubr.msk.f32.mxu1 %vm322_vm11, %v30070_v9  ;;  %v30211_v46 = vld [vmem:[#allocation5 + $0xb2] sm:$0xff] }
 0xc50   :  { %v15532_v59 = vadd.f32 %v29992_v24, %v15486_v23  ;;  %v30082_v26 = vld [vmem:[#allocation5 + $0xe1] sm:$0xff]  ;;  %v30120_v24 = vld [vmem:[#allocation5 + $0x30] sm:$0xff]  ;;  %v19733_v12 = vld [vmem:[%s30670_s7 + $0x98] sm:$0xff] }
 0xc51   :  { %15550 = vst.msk [vmem:[#allocation5 + $0x121] sm:$0xff] %vm322_vm11, %v15533_v14  ;;  %v30077_v60 = vld [vmem:[#allocation5 + $0xd1] sm:$0xff]  ;;  %v30153_v15 = vld [vmem:[#allocation5 + $0xe0] sm:$0xff] }
 0xc52   :  { %15549 = vst.msk [vmem:[#allocation5 + $0x111] sm:$0xff] %vm322_vm11, %v15532_v59  ;;  %23542 = vmatmul.mubr.msk.f32.gmra.mrb[82].mxu1 %vm322_vm11, %v30077_v60  ;;  %v30149_v19 = vld [vmem:[#allocation5 + $0xd0] sm:$0xff]  ;;  %v30223_v51 = vld [vmem:[#allocation5 + $0xe2] sm:$0xff] }
 0xc53   :  { %23544 = vmatprep.mubr.msk.f32.mxu1 %vm322_vm11, %v30082_v26  ;;  %v30219_v18 = vld [vmem:[#allocation5 + $0xd2] sm:$0xff]  ;;  %v19750_v23 = vld [vmem:[%s30670_s7 + $0xa0] sm:$0xff]  ;;  %v19751_v59 = vld [vmem:[%s30670_s7 + $0xa8] sm:$0xff] }
 0xc54   :  { %v30090_v48 = vld [vmem:[#allocation5 + $0x101] sm:$0xff]  ;;  %v19732_v11 = vld [vmem:[%s30670_s7 + $0x90] sm:$0xff] }
 0xc55   :  { %v30086_v31 = vld [vmem:[#allocation5 + $0xf1] sm:$0xff]  ;;  %v30161_v22 = vld [vmem:[#allocation5 + $0x100] sm:$0xff]  ;;  %v23913_v14 = vpack.c.bf16 %v19733_v12, %v19732_v11  ;;  %v19811_v12 = vld [vmem:[%s30670_s7 + $0x108] sm:$0xff] }
 0xc56   :  { %23545 = vmatmul.mubr.msk.f32.gmra.mrb[84].mxu1 %vm322_vm11, %v30086_v31  ;;  %v30157_v7 = vld [vmem:[#allocation5 + $0xf0] sm:$0xff]  ;;  %v30231_v4 = vld [vmem:[#allocation5 + $0x102] sm:$0xff] }
 0xc57   :  { %23547 = vmatprep.mubr.msk.f32.mxu1 %vm322_vm11, %v30090_v48  ;;  %v30227_v5 = vld [vmem:[#allocation5 + $0xf2] sm:$0xff]  ;;  %v19810_v11 = vld [vmem:[%s30670_s7 + $0x100] sm:$0xff] }
 0xc58   :  { %v30283_v44 = vld [vmem:[#allocation5 + $0x120] sm:$0xff] }
 0xc59   :  { %v30094_v16 = vld [vmem:[#allocation5 + $0x111] sm:$0xff]  ;;  %v30379_v54 = vld [vmem:[#allocation5 + $0x122] sm:$0xff] }
 0xc5a   :  { %23548 = vmatmul.mubr.msk.f32.gmra.mrb[86].mxu1 %vm322_vm11, %v30094_v16  ;;  %v30165_v33 = vld [vmem:[#allocation5 + $0x110] sm:$0xff] }
 0xc5b   :  { %23558 = vmatprep.mubr.msk.f32.mxu1 %vm322_vm11, %v15551_v1  ;;  %v30235_v10 = vld [vmem:[#allocation5 + $0x112] sm:$0xff]  ;;  %v23917_v1 = vpack.c.bf16 %v19751_v59, %v19750_v23 }
 0xc5c   :  { %v17792_v23 = vld [vmem:[#allocation7 + $0x118] sm:$0xff]  ;;  %v17779_v59 = vld [vmem:[#allocation7 + $0xb0] sm:$0xff] }
 0xc5e   :  { %23559 = vmatmul.mubr.msk.f32.vlgmr.msra.gmra.mrb[72].mxu1 %vm322_vm11, %v30105_v39 }
 0xc5f   :  { %23896 = vmatpush3.bf16.msra.mxu1 %v30028_v62  ;;  %23561 = vmatprep.mubr.msk.f32.mxu1 %vm322_vm11, %v30115_v29  ;;  %v30190_v62 = vld [vmem:[#allocation5 + $0x32] sm:$0xff] }
 0xc60   :  { %23898 = vmatprep.subr.bf16.mxu1 %v23897_v13 }
 0xc62   :  { %23562 = vmatmul.mubr.msk.f32.gmra.mrb[74].mxu1 %vm322_vm11, %v30120_v24 }
 0xc63   :  { %23564 = vmatprep.mubr.msk.f32.mxu1 %vm322_vm11, %v30124_v37  ;;  %23900 = vmatpush3.bf16.msra.mxu1 %v23897_v13  ;;  %v19752_v13 = vld [vmem:[%s30670_s7 + $0xb0] sm:$0xff] }
 0xc64   :  { %23902 = vmatprep.subr.bf16.mxu1 %v23901_v8 }
 0xc66   :  { %23565 = vmatmul.mubr.msk.f32.gmra.mrb[76].mxu1 %vm322_vm11, %v30128_v43 }
 0xc67   :  { %23567 = vmatprep.mubr.msk.f32.mxu1 %vm322_vm11, %v30132_v47 }
 0xc6a   :  { %23568 = vmatmul.mubr.msk.f32.gmra.mrb[78].mxu1 %vm322_vm11, %v30136_v20 }
 0xc6b   :  { %23570 = vmatprep.mubr.msk.f32.mxu1 %vm322_vm11, %v15559_v58 }
 0xc6e   :  { %23571 = vmatmul.mubr.msk.f32.gmra.mrb[80].mxu1 %vm322_vm11, %v30141_v25 }
 0xc6f   :  { %23573 = vmatprep.mubr.msk.f32.mxu1 %vm322_vm11, %v30145_v17 }
 0xc72   :  { %23574 = vmatmul.mubr.msk.f32.gmra.mrb[82].mxu1 %vm322_vm11, %v30149_v19 }
 0xc73   :  { %23576 = vmatprep.mubr.msk.f32.mxu1 %vm322_vm11, %v30153_v15 }
 0xc76   :  { %23577 = vmatmul.mubr.msk.f32.gmra.mrb[84].mxu1 %vm322_vm11, %v30157_v7 }
 0xc77   :  { %23579 = vmatprep.mubr.msk.f32.mxu1 %vm322_vm11, %v30161_v22 }
 0xc7a   :  { %23580 = vmatmul.mubr.msk.f32.gmra.mrb[86].mxu1 %vm322_vm11, %v30165_v33 }
 0xc7b   :  { %23590 = vmatprep.mubr.msk.f32.mxu1 %vm322_vm11, %v15978_v32  ;;  %v19773_v32 = vld [vmem:[%s30670_s7 + $0xd8] sm:$0xff] }
 0xc7e   :  { %23591 = vmatmul.mubr.msk.f32.vlgmr.msra.gmra.mrb[72].mxu1 %vm322_vm11, %v30176_v40 }
 0xc7f   :  { %23904 = vmatpush3.bf16.msra.mxu1 %v23901_v8  ;;  %23593 = vmatprep.mubr.msk.f32.mxu1 %vm322_vm11, %v30186_v55  ;;  %v19771_v8 = vld [vmem:[%s30670_s7 + $0xc8] sm:$0xff] }
 0xc80   :  { %23906 = vmatprep.subr.bf16.mxu1 %v23905_v38  ;;  %v23925_v58 = vpack.c.bf16 %v19771_v8, %v19770_v45  ;;  %v17763_v45 = vld [vmem:[#allocation7 + $0x30] sm:$0xff]  ;;  %v17793_v8 = vld [vmem:[#allocation7 + $0x120] sm:$0xff] }
 0xc82   :  { %23594 = vmatmul.mubr.msk.f32.gmra.mrb[74].mxu1 %vm322_vm11, %v30190_v62 }
 0xc83   :  { %23596 = vmatprep.mubr.msk.f32.mxu1 %vm322_vm11, %v30194_v57  ;;  %23908 = vmatpush3.bf16.msra.mxu1 %v23905_v38  ;;  %v19791_v38 = vld [vmem:[%s30670_s7 + $0xe8] sm:$0xff] }
 0xc84   :  { %23910 = vmatprep.subr.bf16.mxu1 %v23909_v56  ;;  %v23933_v50 = vpack.c.bf16 %v19791_v38, %v19790_v35  ;;  %v17811_v35 = vld [vmem:[#allocation7 + $0x1b0] sm:$0xff]  ;;  %v17812_v38 = vld [vmem:[#allocation7 + $0x1b8] sm:$0xff] }
 0xc86   :  { %23597 = vmatmul.mubr.msk.f32.gmra.mrb[76].mxu1 %vm322_vm11, %v30198_v41 }
 0xc87   :  { %23599 = vmatprep.mubr.msk.f32.mxu1 %vm322_vm11, %v30202_v63 }
 0xc8a   :  { %23600 = vmatmul.mubr.msk.f32.gmra.mrb[78].mxu1 %vm322_vm11, %v30206_v0 }
 0xc8b   :  { %23602 = vmatprep.mubr.msk.f32.mxu1 %vm322_vm11, %v15986_v2  ;;  %v19793_v2 = vld [vmem:[%s30670_s7 + $0xf8] sm:$0xff] }
 0xc8e   :  { %23603 = vmatmul.mubr.msk.f32.gmra.mrb[80].mxu1 %vm322_vm11, %v30211_v46 }
 0xc8f   :  { %23605 = vmatprep.mubr.msk.f32.mxu1 %vm322_vm11, %v30215_v3 }
 0xc92   :  { %23606 = vmatmul.mubr.msk.f32.gmra.mrb[82].mxu1 %vm322_vm11, %v30219_v18 }
 0xc93   :  { %23608 = vmatprep.mubr.msk.f32.mxu1 %vm322_vm11, %v30223_v51 }
 0xc96   :  { %23609 = vmatmul.mubr.msk.f32.gmra.mrb[84].mxu1 %vm322_vm11, %v30227_v5 }
 0xc97   :  { %23611 = vmatprep.mubr.msk.f32.mxu1 %vm322_vm11, %v30231_v4 }
 0xc9a   :  { %23612 = vmatmul.mubr.msk.f32.gmra.mrb[86].mxu1 %vm322_vm11, %v30235_v10 }
 0xc9b   :  { %23622 = vmatprep.mubr.msk.f32.mxu1 %vm322_vm11, %v30105_v39  ;;  %v19753_v39 = vld [vmem:[%s30670_s7 + $0xb8] sm:$0xff] }
 0xc9c   :  { %v23921_v52 = vpack.c.bf16 %v19753_v39, %v19752_v13  ;;  %v17810_v13 = vld [vmem:[#allocation7 + $0x1a8] sm:$0xff] }
 0xc9e   :  { %23623 = vmatmul.mubr.msk.f32.vlgmr.msra.gmra.mrb[72].mxu1 %vm322_vm11, %v30115_v29 }
 0xc9f   :  { %23912 = vmatpush3.bf16.msra.mxu1 %v23909_v56  ;;  %23625 = vmatprep.mubr.msk.f32.mxu1 %vm322_vm11, %v30120_v24  ;;  %v19792_v56 = vld [vmem:[%s30670_s7 + $0xf0] sm:$0xff] }
 0xca0   :  { %23914 = vmatprep.subr.bf16.mxu1 %v23913_v14 }
 0xca2   :  { %23626 = vmatmul.mubr.msk.f32.gmra.mrb[74].mxu1 %vm322_vm11, %v30124_v37 }
 0xca3   :  { %23628 = vmatprep.mubr.msk.f32.mxu1 %vm322_vm11, %v30128_v43  ;;  %23916 = vmatpush3.bf16.msra.mxu1 %v23913_v14  ;;  %v23941_v14 = vpack.c.bf16 %v19811_v12, %v19810_v11  ;;  %v17765_v11 = vld [vmem:[#allocation7 + $0x40] sm:$0xff]  ;;  %v17766_v12 = vld [vmem:[#allocation7 + $0x48] sm:$0xff] }
 0xca4   :  { %23918 = vmatprep.subr.bf16.mxu1 %v23917_v1 }
 0xca6   :  { %23629 = vmatmul.mubr.msk.f32.gmra.mrb[76].mxu1 %vm322_vm11, %v30132_v47 }
 0xca7   :  { %23631 = vmatprep.mubr.msk.f32.mxu1 %vm322_vm11, %v30136_v20 }
 0xcaa   :  { %23632 = vmatmul.mubr.msk.f32.gmra.mrb[78].mxu1 %vm322_vm11, %v30265_v21 }
 0xcab   :  { %23634 = vmatprep.mubr.msk.f32.mxu1 %vm322_vm11, %v30141_v25  ;;  %v30331_v25 = vld [vmem:[#allocation5 + $0x121] sm:$0xff] }
 0xcae   :  { %23635 = vmatmul.mubr.msk.f32.gmra.mrb[80].mxu1 %vm322_vm11, %v30145_v17 }
 0xcaf   :  { %23637 = vmatprep.mubr.msk.f32.mxu1 %vm322_vm11, %v30149_v19 }
 0xcb2   :  { %23638 = vmatmul.mubr.msk.f32.gmra.mrb[82].mxu1 %vm322_vm11, %v30153_v15 }
 0xcb3   :  { %23640 = vmatprep.mubr.msk.f32.mxu1 %vm322_vm11, %v30157_v7 }
 0xcb6   :  { %23641 = vmatmul.mubr.msk.f32.gmra.mrb[84].mxu1 %vm322_vm11, %v30161_v22 }
 0xcb7   :  { %23643 = vmatprep.mubr.msk.f32.mxu1 %vm322_vm11, %v30165_v33 }
 0xcba   :  { %23644 = vmatmul.mubr.msk.f32.gmra.mrb[86].mxu1 %vm322_vm11, %v30283_v44 }
 0xcbb   :  { %23654 = vmatprep.mubr.msk.f32.mxu1 %vm322_vm11, %v30011_v36  ;;  %v30313_v36 = vld [vmem:[#allocation5 + $0x81] sm:$0xff] }
 0xcbe   :  { %23655 = vmatmul.mubr.msk.f32.vlgmr.msra.gmra.mrb[72].mxu1 %vm322_vm11, %v30022_v53 }
 0xcbf   :  { %23920 = vmatpush3.bf16.msra.mxu1 %v23917_v1  ;;  %23657 = vmatprep.mubr.msk.f32.mxu1 %vm322_vm11, %v30031_v28 }
 0xcc0   :  { %23922 = vmatprep.subr.bf16.mxu1 %v23921_v52 }
 0xcc2   :  { %23658 = vmatmul.mubr.msk.f32.gmra.mrb[74].mxu1 %vm322_vm11, %v30036_v6 }
 0xcc3   :  { %23660 = vmatprep.mubr.msk.f32.mxu1 %vm322_vm11, %v30044_v42  ;;  %23924 = vmatpush3.bf16.msra.mxu1 %v23921_v52 }
 0xcc4   :  { %23926 = vmatprep.subr.bf16.mxu1 %v23925_v58 }
 0xcc6   :  { %23661 = vmatmul.mubr.msk.f32.gmra.mrb[76].mxu1 %vm322_vm11, %v30049_v61 }
 0xcc7   :  { %23663 = vmatprep.mubr.msk.f32.mxu1 %vm322_vm11, %v30056_v30 }
 0xcca   :  { %23664 = vmatmul.mubr.msk.f32.gmra.mrb[78].mxu1 %vm322_vm11, %v30313_v36 }
 0xccb   :  { %23666 = vmatprep.mubr.msk.f32.mxu1 %vm322_vm11, %v30065_v49  ;;  %v19772_v49 = vld [vmem:[%s30670_s7 + $0xd0] sm:$0xff] }
 0xccc   :  { %v23929_v34 = vpack.c.bf16 %v19773_v32, %v19772_v49  ;;  %v17781_v49 = vld [vmem:[#allocation7 + $0xc0] sm:$0xff] }
 0xcce   :  { %23667 = vmatmul.mubr.msk.f32.gmra.mrb[80].mxu1 %vm322_vm11, %v30070_v9 }
 0xccf   :  { %23669 = vmatprep.mubr.msk.f32.mxu1 %vm322_vm11, %v30077_v60 }
 0xcd2   :  { %23670 = vmatmul.mubr.msk.f32.gmra.mrb[82].mxu1 %vm322_vm11, %v30082_v26 }
 0xcd3   :  { %23672 = vmatprep.mubr.msk.f32.mxu1 %vm322_vm11, %v30086_v31 }
 0xcd6   :  { %23673 = vmatmul.mubr.msk.f32.gmra.mrb[84].mxu1 %vm322_vm11, %v30090_v48 }
 0xcd7   :  { %23675 = vmatprep.mubr.msk.f32.mxu1 %vm322_vm11, %v30094_v16 }
 0xcda   :  { %23676 = vmatmul.mubr.msk.f32.gmra.mrb[86].mxu1 %vm322_vm11, %v30331_v25 }
 0xcdb   :  { %23686 = vmatprep.mubr.msk.f32.mxu1 %vm322_vm11, %v30176_v40  ;;  %v30361_v40 = vld [vmem:[#allocation5 + $0x82] sm:$0xff] }
 0xcde   :  { %23687 = vmatmul.mubr.msk.f32.vlgmr.msra.gmra.mrb[72].mxu1 %vm322_vm11, %v30186_v55 }
 0xcdf   :  { %23928 = vmatpush3.bf16.msra.mxu1 %v23925_v58  ;;  %23689 = vmatprep.mubr.msk.f32.mxu1 %vm322_vm11, %v30190_v62 }
 0xce0   :  { %23930 = vmatprep.subr.bf16.mxu1 %v23929_v34 }
 0xce2   :  { %23690 = vmatmul.mubr.msk.f32.gmra.mrb[74].mxu1 %vm322_vm11, %v30194_v57 }
 0xce3   :  { %23692 = vmatprep.mubr.msk.f32.mxu1 %vm322_vm11, %v30198_v41  ;;  %23932 = vmatpush3.bf16.msra.mxu1 %v23929_v34  ;;  %v17782_v34 = vld [vmem:[#allocation7 + $0xc8] sm:$0xff] }
 0xce4   :  { %23934 = vmatprep.subr.bf16.mxu1 %v23933_v50 }
 0xce6   :  { %23693 = vmatmul.mubr.msk.f32.gmra.mrb[76].mxu1 %vm322_vm11, %v30202_v63 }
 0xce7   :  { %23695 = vmatprep.mubr.msk.f32.mxu1 %vm322_vm11, %v30206_v0 }
 0xcea   :  { %23696 = vmatmul.mubr.msk.f32.gmra.mrb[78].mxu1 %vm322_vm11, %v30361_v40 }
 0xceb   :  { %23698 = vmatprep.mubr.msk.f32.mxu1 %vm322_vm11, %v30211_v46  ;;  %v23937_v46 = vpack.c.bf16 %v19793_v2, %v19792_v56  ;;  %v17813_v2 = vld [vmem:[#allocation7 + $0x1c0] sm:$0xff] }
 0xcee   :  { %23699 = vmatmul.mubr.msk.f32.gmra.mrb[80].mxu1 %vm322_vm11, %v30215_v3 }
 0xcef   :  { %23701 = vmatprep.mubr.msk.f32.mxu1 %vm322_vm11, %v30219_v18 }
 0xcf2   :  { %23702 = vmatmul.mubr.msk.f32.gmra.mrb[82].mxu1 %vm322_vm11, %v30223_v51 }
 0xcf3   :  { %23704 = vmatprep.mubr.msk.f32.mxu1 %vm322_vm11, %v30227_v5 }
 0xcf6   :  { %23705 = vmatmul.mubr.msk.f32.gmra.mrb[84].mxu1 %vm322_vm11, %v30231_v4 }
 0xcf7   :  { %23707 = vmatprep.mubr.msk.f32.mxu1 %vm322_vm11, %v30235_v10 }
 0xcfa   :  { %23708 = vmatmul.mubr.msk.f32.gmra.mrb[86].mxu1 %vm322_vm11, %v30379_v54 }
 0xcfb   :  { %23718 = vmatprep.mubr.msk.f32.mxu1 %vm322_vm11, %v30115_v29  ;;  %v16906_v29 = vld [vmem:[#allocation5 + $0x90] sm:$0xff] }
 0xcfe   :  { %23719 = vmatmul.mubr.msk.f32.vlgmr.msra.gmra.mrb[72].mxu1 %vm322_vm11, %v30120_v24  ;;  %v16914_v24 = vld [vmem:[#allocation5 + $0x130] sm:$0xff] }
 0xcff   :  { %23936 = vmatpush3.bf16.msra.mxu1 %v23933_v50  ;;  %23721 = vmatprep.mubr.msk.f32.mxu1 %vm322_vm11, %v30124_v37  ;;  %v19812_v37 = vld [vmem:[%s30670_s7 + $0x110] sm:$0xff]  ;;  %v23993_v50 = vpack.c.bf16 %v17812_v38, %v17811_v35  ;;  %v17800_v38 = vld [vmem:[#allocation7 + $0x158] sm:$0xff] }
 0xd00   :  { %23938 = vmatprep.subr.bf16.mxu1 %v23937_v46  ;;  %v17799_v35 = vld [vmem:[#allocation7 + $0x150] sm:$0xff] }
 0xd02   :  { %23722 = vmatmul.mubr.msk.f32.gmra.mrb[74].mxu1 %vm322_vm11, %v30128_v43  ;;  %v19813_v43 = vld [vmem:[%s30670_s7 + $0x118] sm:$0xff] }
 0xd03   :  { %23724 = vmatprep.mubr.msk.f32.mxu1 %vm322_vm11, %v30132_v47  ;;  %23940 = vmatpush3.bf16.msra.mxu1 %v23937_v46  ;;  %v23945_v47 = vpack.c.bf16 %v19813_v43, %v19812_v37  ;;  %v23965_v46 = vpack.c.bf16 %v17782_v34, %v17781_v49  ;;  %v17784_v37 = vld [vmem:[#allocation7 + $0xd8] sm:$0xff]  ;;  %v17770_v49 = vld [vmem:[#allocation7 + $0x68] sm:$0xff] }
 0xd04   :  { %23942 = vmatprep.subr.bf16.mxu1 %v23941_v14 }
 0xd06   :  { %23725 = vmatmul.mubr.msk.f32.gmra.mrb[76].mxu1 %vm322_vm11, %v30136_v20 }
 0xd07   :  { %23727 = vmatprep.mubr.msk.f32.mxu1 %vm322_vm11, %v30265_v21  ;;  %v17780_v21 = vld [vmem:[#allocation7 + $0xb8] sm:$0xff] }
 0xd08   :  { %v23961_v58 = vpack.c.bf16 %v17780_v21, %v17779_v59 }
 0xd0a   :  { %23728 = vmatmul.mubr.msk.f32.gmra.mrb[78].mxu1 %vm322_vm11, %v16906_v29 }
 0xd0b   :  { %23730 = vmatprep.mubr.msk.f32.mxu1 %vm322_vm11, %v30145_v17  ;;  %v17805_v17 = vld [vmem:[#allocation7 + $0x180] sm:$0xff] }
 0xd0e   :  { %23731 = vmatmul.mubr.msk.f32.gmra.mrb[80].mxu1 %vm322_vm11, %v30149_v19  ;;  %v17806_v19 = vld [vmem:[#allocation7 + $0x188] sm:$0xff] }
 0xd0f   :  { %23733 = vmatprep.mubr.msk.f32.mxu1 %vm322_vm11, %v30153_v15  ;;  %v17759_v15 = vld [vmem:[#allocation7 + $0x10] sm:$0xff] }
 0xd12   :  { %23734 = vmatmul.mubr.msk.f32.gmra.mrb[82].mxu1 %vm322_vm11, %v30157_v7  ;;  %v23981_v7 = vpack.c.bf16 %v17806_v19, %v17805_v17 }
 0xd13   :  { %23736 = vmatprep.mubr.msk.f32.mxu1 %vm322_vm11, %v30161_v22  ;;  %v17760_v22 = vld [vmem:[#allocation7 + $0x18] sm:$0xff] }
 0xd16   :  { %23737 = vmatmul.mubr.msk.f32.gmra.mrb[84].mxu1 %vm322_vm11, %v30165_v33  ;;  %v17789_v33 = vld [vmem:[#allocation7 + $0x100] sm:$0xff] }
 0xd17   :  { %23739 = vmatprep.mubr.msk.f32.mxu1 %vm322_vm11, %v30283_v44  ;;  %v17809_v44 = vld [vmem:[#allocation7 + $0x1a0] sm:$0xff] }
 0xd18   :  { %v23989_v52 = vpack.c.bf16 %v17810_v13, %v17809_v44  ;;  %v17785_v44 = vld [vmem:[#allocation7 + $0xe0] sm:$0xff]  ;;  %v17786_v13 = vld [vmem:[#allocation7 + $0xe8] sm:$0xff] }
 0xd1a   :  { %23740 = vmatmul.mubr.msk.f32.gmra.mrb[86].mxu1 %vm322_vm11, %v16914_v24  ;;  %v17783_v24 = vld [vmem:[#allocation7 + $0xd0] sm:$0xff] }
 0xd1b   :  { %23750 = vmatprep.mubr.msk.f32.mxu1 %vm322_vm11, %v30022_v53  ;;  %v17136_v53 = vld [vmem:[#allocation5 + $0x91] sm:$0xff] }
 0xd1e   :  { %23751 = vmatmul.mubr.msk.f32.vlgmr.msra.gmra.mrb[72].mxu1 %vm322_vm11, %v30031_v28  ;;  %v17144_v28 = vld [vmem:[#allocation5 + $0x131] sm:$0xff] }
 0xd1f   :  { %23944 = vmatpush3.bf16.msra.mxu1 %v23941_v14  ;;  %23753 = vmatprep.mubr.msk.f32.mxu1 %vm322_vm11, %v30036_v6  ;;  %v17366_v6 = vld [vmem:[#allocation5 + $0x92] sm:$0xff]  ;;  %v17814_v14 = vld [vmem:[#allocation7 + $0x1c8] sm:$0xff] }
 0xd20   :  { %23946 = vmatprep.subr.bf16.mxu1 %v23945_v47  ;;  %v23997_v43 = vpack.c.bf16 %v17814_v14, %v17813_v2  ;;  %v17788_v14 = vld [vmem:[#allocation7 + $0xf8] sm:$0xff] }
 0xd22   :  { %23754 = vmatmul.mubr.msk.f32.gmra.mrb[74].mxu1 %vm322_vm11, %v30044_v42  ;;  %v17374_v42 = vld [vmem:[#allocation5 + $0x132] sm:$0xff] }
 0xd23   :  { %23756 = vmatprep.mubr.msk.f32.mxu1 %vm322_vm11, %v30049_v61  ;;  %23948 = vmatpush3.bf16.msra.mxu1 %v23945_v47  ;;  %v17773_v61 = vld [vmem:[#allocation7 + $0x80] sm:$0xff] }
 0xd24   :  { %23982 = vmatprep.subr.bf16.mxu1 %v23981_v7  ;;  %v17797_v47 = vld [vmem:[#allocation7 + $0x140] sm:$0xff] }
 0xd26   :  { %23757 = vmatmul.mubr.msk.f32.gmra.mrb[76].mxu1 %vm322_vm11, %v30056_v30  ;;  %v17774_v30 = vld [vmem:[#allocation7 + $0x88] sm:$0xff] }
 0xd27   :  { %23759 = vmatprep.mubr.msk.f32.mxu1 %vm322_vm11, %v30313_v36  ;;  %v17764_v36 = vld [vmem:[#allocation7 + $0x38] sm:$0xff] }
 0xd28   :  { %v23963_v56 = vpack.c.bf16 %v17764_v36, %v17763_v45  ;;  %v17816_v36 = vld [vmem:[#allocation7 + $0x1d8] sm:$0xff] }
 0xd2a   :  { %23760 = vmatmul.mubr.msk.f32.gmra.mrb[78].mxu1 %vm322_vm11, %v17136_v53  ;;  %v17798_v53 = vld [vmem:[#allocation7 + $0x148] sm:$0xff] }
 0xd2b   :  { %23762 = vmatprep.mubr.msk.f32.mxu1 %vm322_vm11, %v30070_v9  ;;  %v17757_v9 = vld [vmem:[#allocation7] sm:$0xff] }
 0xd2e   :  { %23763 = vmatmul.mubr.msk.f32.gmra.mrb[80].mxu1 %vm322_vm11, %v30077_v60  ;;  %v23949_v60 = vpack.c.bf16 %v17774_v30, %v17773_v61  ;;  %v17768_v61 = vld [vmem:[#allocation7 + $0x58] sm:$0xff]  ;;  %v23999_v30 = vpack.c.bf16 %v17798_v53, %v17797_v47  ;;  %v17818_v53 = vld [vmem:[#allocation7 + $0x1e8] sm:$0xff] }
 0xd2f   :  { %23765 = vmatprep.mubr.msk.f32.mxu1 %vm322_vm11, %v30082_v26  ;;  %v17758_v26 = vld [vmem:[#allocation7 + $0x8] sm:$0xff] }
 0xd30   :  { %23950 = vmatprep.subr.bf16.mxu0 %v23949_v60  ;;  %v30494_v60 = vld [vmem:[%s30671_s8] ss:$0 sm:$0xff]  ;;  %s25458_s8 = smov 64  }
 0xd32   :  { %23766 = vmatmul.mubr.msk.f32.gmra.mrb[82].mxu1 %vm322_vm11, %v30086_v31  ;;  %v17775_v31 = vld [vmem:[#allocation7 + $0x90] sm:$0xff] }
 0xd33   :  { %23768 = vmatprep.mubr.msk.f32.mxu1 %vm322_vm11, %v30090_v48  ;;  %v17776_v48 = vld [vmem:[#allocation7 + $0x98] sm:$0xff] }
 0xd34   :  { %v23953_v20 = vpack.c.bf16 %v17776_v48, %v17775_v31 }
 0xd36   :  { %23769 = vmatmul.mubr.msk.f32.gmra.mrb[84].mxu1 %vm322_vm11, %v30094_v16  ;;  %v23951_v16 = vpack.c.bf16 %v17758_v26, %v17757_v9 }
 0xd37   :  { %23771 = vmatprep.mubr.msk.f32.mxu1 %vm322_vm11, %v30331_v25  ;;  %v17794_v25 = vld [vmem:[#allocation7 + $0x128] sm:$0xff] }
 0xd38   :  { %23952 = vmatpush3.bf16.msra.mxu0 %v23951_v16  ;;  %v23991_v32 = vpack.c.bf16 %v17794_v25, %v17793_v8  ;;  %v17769_v25 = vld [vmem:[#allocation7 + $0x60] sm:$0xff] }
 0xd39   :  { %23954 = vmatprep.subr.bf16.mxu0 %v23953_v20 }
 0xd3a   :  { %23772 = vmatmul.mubr.msk.f32.gmra.mrb[86].mxu1 %vm322_vm11, %v17144_v28  ;;  %v23967_v28 = vpack.c.bf16 %v17766_v12, %v17765_v11  ;;  %v17787_v12 = vld [vmem:[#allocation7 + $0xf0] sm:$0xff] }
 0xd3b   :  { %23782 = vmatprep.mubr.msk.f32.mxu1 %vm322_vm11, %v30186_v55  ;;  %v17790_v55 = vld [vmem:[#allocation7 + $0x108] sm:$0xff]  ;;  %v23977_v47 = vpack.c.bf16 %v17788_v14, %v17787_v12 }
 0xd3e   :  { %23783 = vmatmul.mubr.msk.f32.vlgmr.msra.gmra.mrb[72].mxu1 %vm322_vm11, %v30190_v62  ;;  %v23955_v62 = vpack.c.bf16 %v17760_v22, %v17759_v15 }
 0xd3f   :  { %23785 = vmatprep.mubr.msk.f32.mxu1 %vm322_vm11, %v30194_v57  ;;  %v23983_v57 = vpack.c.bf16 %v17790_v55, %v17789_v33 }
 0xd40   :  { %23956 = vmatpush3.bf16.msra.mxu0 %v23955_v62 }
 0xd41   :  { %23984 = vmatpush3.bf16.msra.mxu1 %v23983_v57 }
 0xd42   :  { %23786 = vmatmul.mubr.msk.f32.gmra.mrb[74].mxu1 %vm322_vm11, %v30198_v41  ;;  %v17777_v41 = vld [vmem:[#allocation7 + $0xa0] sm:$0xff] }
 0xd43   :  { %23788 = vmatprep.mubr.msk.f32.mxu1 %vm322_vm11, %v30202_v63  ;;  %v17778_v63 = vld [vmem:[#allocation7 + $0xa8] sm:$0xff] }
 0xd46   :  { %23789 = vmatmul.mubr.msk.f32.gmra.mrb[76].mxu1 %vm322_vm11, %v30206_v0  ;;  %v17807_v0 = vld [vmem:[#allocation7 + $0x190] sm:$0xff] }
 0xd47   :  { %23791 = vmatprep.mubr.msk.f32.mxu1 %vm322_vm11, %v30361_v40  ;;  %v17795_v40 = vld [vmem:[#allocation7 + $0x130] sm:$0xff] }
 0xd4a   :  { %23792 = vmatmul.mubr.msk.f32.gmra.mrb[78].mxu1 %vm322_vm11, %v17366_v6  ;;  %v23969_v6 = vpack.c.bf16 %v17784_v37, %v17783_v24 }
 0xd4b   :  { %23794 = vmatprep.mubr.msk.f32.mxu1 %vm322_vm11, %v30215_v3  ;;  %v23957_v3 = vpack.c.bf16 %v17778_v63, %v17777_v41 }
 0xd4d   :  { %23958 = vmatprep.subr.bf16.mxu0 %v23957_v3 }
 0xd4e   :  { %23795 = vmatmul.mubr.msk.f32.gmra.mrb[80].mxu1 %vm322_vm11, %v30219_v18  ;;  %v17808_v18 = vld [vmem:[#allocation7 + $0x198] sm:$0xff] }
 0xd4f   :  { %23797 = vmatprep.mubr.msk.f32.mxu1 %vm322_vm11, %v30223_v51  ;;  %v17761_v51 = vld [vmem:[#allocation7 + $0x20] sm:$0xff] }
 0xd52   :  { %23798 = vmatmul.mubr.msk.f32.gmra.mrb[82].mxu1 %vm322_vm11, %v30227_v5  ;;  %v17762_v5 = vld [vmem:[#allocation7 + $0x28] sm:$0xff] }
 0xd53   :  { %23800 = vmatprep.mubr.msk.f32.mxu1 %vm322_vm11, %v30231_v4  ;;  %v23985_v4 = vpack.c.bf16 %v17808_v18, %v17807_v0  ;;  %v23959_v39 = vpack.c.bf16 %v17762_v5, %v17761_v51 }
 0xd55   :  { %23986 = vmatprep.subr.bf16.mxu1 %v23985_v4  ;;  %23960 = vmatpush3.bf16.msra.mxu0 %v23959_v39  ;;  %v17815_v39 = vld [vmem:[#allocation7 + $0x1d0] sm:$0xff] }
 0xd56   :  { %23801 = vmatmul.mubr.msk.f32.gmra.mrb[84].mxu1 %vm322_vm11, %v30235_v10  ;;  %v17791_v10 = vld [vmem:[#allocation7 + $0x110] sm:$0xff]  ;;  %23962 = vmatprep.subr.bf16.mxu0 %v23961_v58  ;;  %v23973_v58 = vpack.c.bf16 %v17786_v13, %v17785_v44 }
 0xd57   :  { %23803 = vmatprep.mubr.msk.f32.mxu1 %vm322_vm11, %v30379_v54  ;;  %v23987_v1 = vpack.c.bf16 %v17792_v23, %v17791_v10  ;;  %v17796_v54 = vld [vmem:[#allocation7 + $0x138] sm:$0xff] }
 0xd58   :  { %v23995_v29 = vpack.c.bf16 %v17796_v54, %v17795_v40  ;;  %v24001_v40 = vpack.c.bf16 %v17816_v36, %v17815_v39  ;;  %v23975_v54 = vpack.c.bf16 %v17770_v49, %v17769_v25  ;;  %v17869_v25 = vld [vmem:[#allocation7 + $0x380] sm:$0xff]  ;;  %v17870_v49 = vld [vmem:[#allocation7 + $0x388] sm:$0xff] }
 0xd59   :  { %23988 = vmatpush3.bf16.msra.mxu1 %v23987_v1  ;;  %23964 = vmatpush3.bf16.msra.mxu0 %v23963_v56  ;;  %v24003_v56 = vpack.c.bf16 %v17800_v38, %v17799_v35 }
 0xd5a   :  { %23804 = vmatmul.mubr.msk.f32.gmra.mrb[86].mxu1 %vm322_vm11, %v17374_v42  ;;  %23990 = vmatprep.subr.bf16.mxu1 %v23989_v52  ;;  %v17767_v42 = vld [vmem:[#allocation7 + $0x50] sm:$0xff] }
 0xd5b   :  { %23966 = vmatprep.subr.bf16.mxu0 %v23965_v46  ;;  %v23971_v9 = vpack.c.bf16 %v17768_v61, %v17767_v42 }
 0xd5d   :  { %23992 = vmatpush3.bf16.msra.mxu1 %v23991_v32  ;;  %23968 = vmatpush3.bf16.msra.mxu0 %v23967_v28  ;;  %v17771_v28 = vld [vmem:[#allocation7 + $0x70] sm:$0xff] }
 0xd5e   :  { %23994 = vmatprep.subr.bf16.mxu1 %v23993_v50  ;;  %23970 = vmatprep.subr.bf16.mxu0 %v23969_v6  ;;  %v17772_v6 = vld [vmem:[#allocation7 + $0x78] sm:$0xff] }
 0xd61   :  { %23996 = vmatpush3.bf16.msra.mxu1 %v23995_v29  ;;  %23972 = vmatpush3.bf16.msra.mxu0 %v23971_v9  ;;  %v17817_v29 = vld [vmem:[#allocation7 + $0x1e0] sm:$0xff] }
 0xd62   :  { %23998 = vmatprep.subr.bf16.mxu1 %v23997_v43  ;;  %23974 = vmatprep.subr.bf16.mxu0 %v23973_v58 }
 0xd65   :  { %24000 = vmatpush3.bf16.msra.mxu1 %v23999_v30  ;;  %23976 = vmatpush3.bf16.msra.mxu0 %v23975_v54 }
 0xd66   :  { %24002 = vmatprep.subr.bf16.mxu1 %v24001_v40  ;;  %23978 = vmatprep.subr.bf16.mxu0 %v23977_v47  ;;  %v24045_v40 = vpack.c.bf16 %v17870_v49, %v17869_v25  ;;  %v17872_v25 = vld [vmem:[#allocation7 + $0x398] sm:$0xff] }
 0xd69   :  { %24004 = vmatpush3.bf16.msra.mxu1 %v24003_v56 }
 0xe11   :  { %v23784_v26 = vpop.f32.mrb[72].mxu1 }
 0xe12   :  { %v17597_v31 = vadd.f32 %v23784_v26, %v30494_v60  ;;  %v17494_v48 = vpop.f32.mrb[73].mxu1  ;;  %v17801_v26 = vld [vmem:[#allocation7 + $0x160] sm:$0xff] }
 0xe13   :  { %v17596_v16 = vadd.f32 %v30494_v60, %v17494_v48 }
 0xe15   :  { %v17612_v20 = vmax.f32 %v17596_v16, %v17597_v31  ;;  %v23787_v17 = vpop.f32.mrb[74].mxu1  ;;  %v17802_v31 = vld [vmem:[#allocation7 + $0x168] sm:$0xff]  ;;  %v24005_v16 = vpack.c.bf16 %v17818_v53, %v17817_v29 }
 0xe16   :  { %v17599_v19 = vadd.f32 %v23787_v17, %v30494_v60  ;;  %v17504_v15 = vpop.f32.mrb[75].mxu1  ;;  %v24007_v17 = vpack.c.bf16 %v17802_v31, %v17801_v26  ;;  %v17821_v26 = vld [vmem:[#allocation7 + $0x200] sm:$0xff]  ;;  %v17822_v31 = vld [vmem:[#allocation7 + $0x208] sm:$0xff] }
 0xe17   :  { %v17598_v7 = vadd.f32 %v30494_v60, %v17504_v15  ;;  %v17628_v59 = vrot.slane %v17612_v20, 1  ;;  %24006 = vmatprep.subr.bf16.mxu1 %v24005_v16 }
 0xe18   :  { %24008 = vmatpush3.bf16.msra.mxu1 %v24007_v17 }
 0xe19   :  { %v17613_v22 = vmax.f32 %v17598_v7, %v17599_v19  ;;  %v23790_v33 = vpop.f32.mrb[76].mxu1  ;;  %v30512_v50 = vmax.f32 %v17612_v20, %v17628_v59  ;;  %v23979_v20 = vpack.c.bf16 %v17772_v6, %v17771_v28 }
 0xe1a   :  { %v17601_v55 = vadd.f32 %v23790_v33, %v30494_v60  ;;  %v17514_v62 = vpop.f32.mrb[77].mxu1 }
 0xe1b   :  { %v17600_v57 = vadd.f32 %v30494_v60, %v17514_v62  ;;  %v17629_v52 = vrot.slane %v17613_v22, 1  ;;  %v17708_v48 = vrot.slane %v30512_v50, 6  ;;  %v17660_v33 = vrot.slane %v30512_v50, 2  ;;  %v17820_v62 = vld [vmem:[#allocation7 + $0x1f8] sm:$0xff]  ;;  %23980 = vmatpush3.bf16.msra.mxu0 %v23979_v20 }
 0xe1c   :  { %v17692_v17 = vrot.slane %v30512_v50, 4 }
 0xe1d   :  { %v30502_v41 = vmax.f32 %v17600_v57, %v17601_v55  ;;  %v23793_v63 = vpop.f32.mrb[78].mxu1  ;;  %v30516_v24 = vmax.f32 %v17613_v22, %v17629_v52  ;;  %v17819_v55 = vld [vmem:[#allocation7 + $0x1f0] sm:$0xff]  ;;  %v17837_v57 = vld [vmem:[#allocation7 + $0x280] sm:$0xff] }
 0xe1e   :  { %v17603_v0 = vadd.f32 %v23793_v63, %v30494_v60  ;;  %v17524_v3 = vpop.f32.mrb[79].mxu1 }
 0xe1f   :  { %v17602_v18 = vadd.f32 %v30494_v60, %v17524_v3  ;;  %v17630_v63 = vrot.slane %v30502_v41, 1  ;;  %v17709_v39 = vrot.slane %v30516_v24, 6 }
 0xe21   :  { %v30506_v51 = vmax.f32 %v17602_v18, %v17603_v0  ;;  %v23796_v5 = vpop.f32.mrb[80].mxu1  ;;  %v17661_v18 = vrot.slane %v30516_v24, 2 }
 0xe22   :  { %v17605_v4 = vadd.f32 %v23796_v5, %v30494_v60  ;;  %v17534_v10 = vpop.f32.mrb[81].mxu1  ;;  %v24009_v5 = vpack.c.bf16 %v17820_v62, %v17819_v55  ;;  %v17839_v55 = vld [vmem:[#allocation7 + $0x290] sm:$0xff]  ;;  %v17840_v62 = vld [vmem:[#allocation7 + $0x298] sm:$0xff] }
 0xe23   :  { %v17604_v23 = vadd.f32 %v30494_v60, %v17534_v10  ;;  %v17803_v10 = vld [vmem:[#allocation7 + $0x170] sm:$0xff]  ;;  %v17631_v13 = vrot.slane %v30506_v51, 1 }
 0xe24   :  { %24010 = vmatprep.subr.bf16.mxu1 %v24009_v5 }
 0xe25   :  { %v17616_v1 = vmax.f32 %v17604_v23, %v17605_v4  ;;  %v23799_v21 = vpop.f32.mrb[82].mxu1  ;;  %v17838_v4 = vld [vmem:[#allocation7 + $0x288] sm:$0xff]  ;;  %v17804_v23 = vld [vmem:[#allocation7 + $0x178] sm:$0xff]  ;;  %v30545_v54 = vmax.f32 %v30506_v51, %v17631_v13  ;;  %v24017_v13 = vpack.c.bf16 %v17840_v62, %v17839_v55 }
 0xe26   :  { %v17607_v45 = vadd.f32 %v23799_v21, %v30494_v60  ;;  %v17544_v8 = vpop.f32.mrb[83].mxu1  ;;  %v24013_v52 = vpack.c.bf16 %v17838_v4, %v17837_v57  ;;  %v17823_v4 = vld [vmem:[#allocation7 + $0x210] sm:$0xff] }
 0xe27   :  { %v17632_v32 = vrot.slane %v17616_v1, 1  ;;  %v17606_v34 = vadd.f32 %v30494_v60, %v17544_v8  ;;  %v17711_v47 = vrot.slane %v30545_v54, 6 }
 0xe28   :  { %24014 = vmatprep.subr.bf16.mxu0 %v24013_v52  ;;  %v17841_v52 = vld [vmem:[#allocation7 + $0x2a0] sm:$0xff] }
 0xe29   :  { %v30514_v2 = vmax.f32 %v17616_v1, %v17632_v32  ;;  %v17617_v46 = vmax.f32 %v17606_v34, %v17607_v45  ;;  %v23802_v11 = vpop.f32.mrb[84].mxu1  ;;  %v24011_v45 = vpack.c.bf16 %v17804_v23, %v17803_v10  ;;  %v30538_v32 = vmax.f32 %v30502_v41, %v17630_v63  ;;  %v17824_v10 = vld [vmem:[#allocation7 + $0x218] sm:$0xff]  ;;  %v17853_v23 = vld [vmem:[#allocation7 + $0x300] sm:$0xff] }
 0xe2a   :  { %v17609_v37 = vadd.f32 %v23802_v11, %v30494_v60  ;;  %v17554_v43 = vpop.f32.mrb[85].mxu1 }
 0xe2b   :  { %v17633_v42 = vrot.slane %v17617_v46, 1  ;;  %v17608_v61 = vadd.f32 %v30494_v60, %v17554_v43  ;;  %v17664_v30 = vrot.slane %v30514_v2, 2  ;;  %v17712_v9 = vrot.slane %v30514_v2, 6  ;;  %24012 = vmatpush3.bf16.msra.mxu1 %v24011_v45  ;;  %v17842_v45 = vld [vmem:[#allocation7 + $0x2a8] sm:$0xff] }
 0xe2c   :  { %24046 = vmatprep.subr.bf16.mxu1 %v24045_v40  ;;  %v17710_v41 = vrot.slane %v30538_v32, 6  ;;  %v17662_v14 = vrot.slane %v30538_v32, 2  ;;  %v17663_v43 = vrot.slane %v30545_v54, 2  ;;  %v17696_v6 = vrot.slane %v30514_v2, 4 }
 0xe2d   :  { %v30523_v19 = vmax.f32 %v17617_v46, %v17633_v42  ;;  %v17618_v15 = vmax.f32 %v17608_v61, %v17609_v37  ;;  %v23805_v7 = vpop.f32.mrb[86].mxu1  ;;  %v25390_v22 = vpack.i.bf16 %v17664_v30, %v17712_v9  ;;  %v25405_v46 = vpack.i.bf16 %v17661_v18, %v17709_v39  ;;  %v17854_v39 = vld [vmem:[#allocation7 + $0x308] sm:$0xff] }
 0xe2e   :  { %v17611_v0 = vadd.f32 %v23805_v7, %v30494_v60  ;;  %v17564_v3 = vpop.f32.mrb[87].mxu1  ;;  %v25425_v53 = vpack.i.bf16 %v17663_v43, %v17711_v47 }
 0xe2f   :  { %v17634_v59 = vrot.slane %v17618_v15, 1  ;;  %v17610_v1 = vadd.f32 %v30494_v60, %v17564_v3  ;;  %25391 = vrot.lane.b32.xlu0 %v25390_v22, %s25458_s8  ;;  %v17713_v21 = vrot.slane %v30523_v19, 6  ;;  %v17665_v44 = vrot.slane %v30523_v19, 2 }
 0xe30   :  { %v17697_v16 = vrot.slane %v30523_v19, 4 }
 0xe31   :  { %v30535_v8 = vmax.f32 %v17618_v15, %v17634_v59  ;;  %v17619_v58 = vmax.f32 %v17610_v1, %v17611_v0  ;;  %v25395_v36 = vpack.i.bf16 %v17713_v21, %v17708_v48  ;;  %v25400_v60 = vpack.i.bf16 %v17665_v44, %v17660_v33 }
 0xe33   :  { %v17635_v34 = vrot.slane %v17619_v58, 1  ;;  %25396 = vrot.lane.b32.xlu0 %v25395_v36, %s25458_s8  ;;  %25401 = vrot.lane.b32.xlu1 %v25400_v60, %s25458_s8  ;;  %v17666_v35 = vrot.slane %v30535_v8, 2  ;;  %v17714_v38 = vrot.slane %v30535_v8, 6  ;;  %v17693_v36 = vrot.slane %v30516_v24, 4  ;;  %v17871_v60 = vld [vmem:[#allocation7 + $0x390] sm:$0xff] }
 0xe34   :  { %v24049_v47 = vpack.c.bf16 %v17872_v25, %v17871_v60  ;;  %v17848_v60 = vld [vmem:[#allocation7 + $0x2d8] sm:$0xff]  ;;  %v17877_v25 = vld [vmem:[#allocation7 + $0x3c0] sm:$0xff] }
 0xe35   :  { %v30547_v56 = vmax.f32 %v17619_v58, %v17635_v34  ;;  %v25410_v11 = vpack.i.bf16 %v17666_v35, %v17714_v38  ;;  %v17698_v34 = vrot.slane %v30535_v8, 4  ;;  %v24019_v38 = vpack.c.bf16 %v17824_v10, %v17823_v4  ;;  %v17875_v4 = vld [vmem:[#allocation7 + $0x3b0] sm:$0xff]  ;;  %v17876_v10 = vld [vmem:[#allocation7 + $0x3b8] sm:$0xff] }
 0xe37   :  { %25406 = vrot.lane.b32.xlu1 %v25405_v46, %s25458_s8  ;;  %25411 = vrot.lane.b32.xlu0 %v25410_v11, %s25458_s8  ;;  %v17715_v12 = vrot.slane %v30547_v56, 6  ;;  %v17667_v29 = vrot.slane %v30547_v56, 2  ;;  %v24047_v11 = vpack.c.bf16 %v17854_v39, %v17853_v23  ;;  %v17830_v39 = vld [vmem:[#allocation7 + $0x248] sm:$0xff] }
 0xe39   :  { %v25415_v37 = vpack.i.bf16 %v17715_v12, %v17710_v41  ;;  %v25420_v51 = vpack.i.bf16 %v17667_v29, %v17662_v14  ;;  %v24021_v41 = vpack.c.bf16 %v17842_v45, %v17841_v52  ;;  %v17825_v12 = vld [vmem:[#allocation7 + $0x220] sm:$0xff]  ;;  %v17826_v14 = vld [vmem:[#allocation7 + $0x228] sm:$0xff] }
 0xe3b   :  { %25416 = vrot.lane.b32.xlu1 %v25415_v37, %s25458_s8  ;;  %25421 = vrot.lane.b32.xlu0 %v25420_v51, %s25458_s8 }
 0xe3f   :  { %25426 = vrot.lane.b32.xlu1 %v25425_v53, %s25458_s8  ;;  %v17855_v53 = vld [vmem:[#allocation7 + $0x310] sm:$0xff] }
 0xea1   :  { %v25392_v28 = vpop.permute.xlu0 %25391 }
 0xea2   :  { %v25394_v42 = vunpack.i.h.bf16 %v25392_v28  ;;  %v25393_v61 = vunpack.i.l.bf16 %v25392_v28  ;;  %v17856_v28 = vld [vmem:[#allocation7 + $0x318] sm:$0xff] }
 0xea4   :  { %v17745_v30 = vsel %vm17740_vm13, %v30514_v2, %v25394_v42  ;;  %v17753_v9 = vsel %vm17740_vm13, %v17696_v6, %v25393_v61  ;;  %v24015_v2 = vpack.c.bf16 %v17822_v31, %v17821_v26  ;;  %v17843_v6 = vld [vmem:[#allocation7 + $0x2b0] sm:$0xff]  ;;  %v17699_v61 = vrot.slane %v30547_v56, 4  ;;  %v17874_v26 = vld [vmem:[#allocation7 + $0x3a8] sm:$0xff] }
 0xea5   :  { %v25397_v48 = vpop.permute.xlu0 %25396  ;;  %v25402_v20 = vpop.permute.xlu1 %25401  ;;  %v17908_v57 = vrot.slane %v17745_v30, 7  ;;  %v17911_v63 = vrot.slane %v17753_v9, 7  ;;  %v17844_v30 = vld [vmem:[#allocation7 + $0x2b8] sm:$0xff]  ;;  %v17873_v9 = vld [vmem:[#allocation7 + $0x3a0] sm:$0xff]  ;;  %v17694_v31 = vrot.slane %v30538_v32, 4 }
 0xea6   :  { %v25399_v15 = vunpack.i.h.bf16 %v25397_v48  ;;  %v25398_v7 = vunpack.i.l.bf16 %v25397_v48  ;;  %v25404_v22 = vunpack.i.h.bf16 %v25402_v20  ;;  %v25403_v33 = vunpack.i.l.bf16 %v25402_v20 }
 0xea7   :  { %v24023_v20 = vpack.c.bf16 %v17826_v14, %v17825_v12  ;;  %v24025_v55 = vpack.c.bf16 %v17844_v30, %v17843_v6  ;;  %v24053_v62 = vpack.c.bf16 %v17874_v26, %v17873_v9  ;;  %v17862_v12 = vld [vmem:[#allocation7 + $0x348] sm:$0xff]  ;;  %v17849_v14 = vld [vmem:[#allocation7 + $0x2e0] sm:$0xff]  ;;  %v17851_v30 = vld [vmem:[#allocation7 + $0x2f0] sm:$0xff] }
 0xea8   :  { %v17754_v0 = vsel %vm17740_vm13, %v17697_v16, %v25399_v15  ;;  %v17746_v3 = vsel %vm17740_vm13, %v30523_v19, %v25404_v22  ;;  %v17741_v18 = vsel %vm17740_vm13, %v30512_v50, %v25403_v33  ;;  %v17749_v5 = vsel %vm17740_vm13, %v17692_v17, %v25398_v7  ;;  %v17827_v15 = vld [vmem:[#allocation7 + $0x230] sm:$0xff]  ;;  %v17828_v7 = vld [vmem:[#allocation7 + $0x238] sm:$0xff]  ;;  %v17881_v26 = vld [vmem:[#allocation7 + $0x3e0] sm:$0xff] }
 0xea9   :  { %v25407_v59 = vpop.permute.xlu1 %25406  ;;  %v30572_v1 = vpop.permute.xlu0 %25411  ;;  %v17912_v21 = vsel %vm17909_vm14, %v17911_v63, %v17749_v5  ;;  %v17910_v44 = vsel %vm17909_vm14, %v17908_v57, %v17741_v18  ;;  %v17913_v49 = vrot.slane %v17746_v3, 7  ;;  %v17915_v35 = vrot.slane %v17754_v0, 7  ;;  %v17857_v57 = vld [vmem:[#allocation7 + $0x320] sm:$0xff]  ;;  %v17858_v63 = vld [vmem:[#allocation7 + $0x328] sm:$0xff]  ;;  %v17852_v9 = vld [vmem:[#allocation7 + $0x2f8] sm:$0xff] }
 0xeaa   :  { %v25409_v19 = vunpack.i.h.bf16 %v25407_v59  ;;  %v25408_v58 = vunpack.i.l.bf16 %v25407_v59  ;;  %v25413_v50 = vunpack.i.l.bf16 %v30572_v1  ;;  %17997 = vmatprep.mubr.f32.mxu0 %v17912_v21  ;;  %v24051_v17 = vpack.c.bf16 %v17856_v28, %v17855_v53  ;;  %v17846_v5 = vld [vmem:[#allocation7 + $0x2c8] sm:$0xff]  ;;  %v17833_v53 = vld [vmem:[#allocation7 + $0x260] sm:$0xff] }
 0xeab   :  { %17998 = vmatmul.mubr.f32.vlgmr.msra.gmra.mrb[80].mxu0 %v17910_v44  ;;  %v17695_v18 = vrot.slane %v30545_v54, 4  ;;  %v24027_v21 = vpack.c.bf16 %v17828_v7, %v17827_v15  ;;  %v24055_v44 = vpack.c.bf16 %v17858_v63, %v17857_v57  ;;  %v17834_v28 = vld [vmem:[#allocation7 + $0x268] sm:$0xff]  ;;  %v25414_v15 = vunpack.i.h.bf16 %v30572_v1  ;;  %v17883_v63 = vld [vmem:[#allocation7 + $0x3f0] sm:$0xff] }
 0xeac   :  { %v17742_v40 = vsel %vm17740_vm13, %v30516_v24, %v25409_v19  ;;  %24016 = vmatpush3.bf16.msra.mxu0 %v24015_v2  ;;  %v17750_v46 = vsel %vm17740_vm13, %v17693_v36, %v25408_v58  ;;  %v17755_v29 = vsel %vm17740_vm13, %v17698_v34, %v25413_v50  ;;  %v17845_v2 = vld [vmem:[#allocation7 + $0x2c0] sm:$0xff]  ;;  %v24057_v19 = vpack.c.bf16 %v17876_v10, %v17875_v4  ;;  %v17859_v58 = vld [vmem:[#allocation7 + $0x330] sm:$0xff]  ;;  %v17860_v50 = vld [vmem:[#allocation7 + $0x338] sm:$0xff] }
 0xead   :  { %v25417_v37 = vpop.permute.xlu1 %25416  ;;  %v17916_v51 = vsel %vm17909_vm14, %v17915_v35, %v17750_v46  ;;  %24018 = vmatprep.subr.bf16.mxu0 %v24017_v13  ;;  %v17914_v43 = vsel %vm17909_vm14, %v17913_v49, %v17742_v40  ;;  %v17919_v16 = vrot.slane %v17755_v29, 7  ;;  %v17829_v13 = vld [vmem:[#allocation7 + $0x240] sm:$0xff]  ;;  %v24029_v45 = vpack.c.bf16 %v17846_v5, %v17845_v2  ;;  %v17847_v36 = vld [vmem:[#allocation7 + $0x2d0] sm:$0xff]  ;;  %v17878_v49 = vld [vmem:[#allocation7 + $0x3c8] sm:$0xff] }
 0xeae   :  { %v25419_v24 = vunpack.i.h.bf16 %v25417_v37  ;;  %v25418_v42 = vunpack.i.l.bf16 %v25417_v37  ;;  %18067 = vmatprep.mubr.f32.mxu1 %v17916_v51  ;;  %v24031_v34 = vpack.c.bf16 %v17830_v39, %v17829_v13  ;;  %v24059_v35 = vpack.c.bf16 %v17860_v50, %v17859_v58  ;;  %v17832_v40 = vld [vmem:[#allocation7 + $0x258] sm:$0xff]  ;;  %v17850_v29 = vld [vmem:[#allocation7 + $0x2e8] sm:$0xff]  ;;  %v17879_v37 = vld [vmem:[#allocation7 + $0x3d0] sm:$0xff] }
 0xeaf   :  { %18068 = vmatmul.mubr.f32.vlgmr.msra.gmra.mrb[88].mxu1 %v17914_v43  ;;  %v24033_v46 = vpack.c.bf16 %v17848_v60, %v17847_v36  ;;  %v17880_v51 = vld [vmem:[#allocation7 + $0x3d8] sm:$0xff]  ;;  %v24037_v6 = vpack.c.bf16 %v17850_v29, %v17849_v14  ;;  %v24041_v7 = vpack.c.bf16 %v17852_v9, %v17851_v30  ;;  %v17866_v57 = vld [vmem:[#allocation7 + $0x368] sm:$0xff]  ;;  %v17747_v5 = vsel %vm17740_vm13, %v30535_v8, %v25414_v15  ;;  %v17867_v10 = vld [vmem:[#allocation7 + $0x370] sm:$0xff] }
 0xeb0   :  { %v17756_v48 = vsel %vm17740_vm13, %v17699_v61, %v25419_v24  ;;  %24020 = vmatpush3.bf16.msra.mxu0 %v24019_v38  ;;  %24048 = vmatpush3.bf16.msra.mxu1 %v24047_v11  ;;  %v17751_v33 = vsel %vm17740_vm13, %v17694_v31, %v25418_v42  ;;  %v17831_v38 = vld [vmem:[#allocation7 + $0x250] sm:$0xff]  ;;  %v24061_v11 = vpack.c.bf16 %v17878_v49, %v17877_v25  ;;  %v17864_v61 = vld [vmem:[#allocation7 + $0x358] sm:$0xff]  ;;  %v17882_v31 = vld [vmem:[#allocation7 + $0x3e8] sm:$0xff]  ;;  %v25459_v58 = vmov 0.0|0.0  }
 0xeb1   :  { %v30588_v22 = vpop.permute.xlu1 %25426  ;;  %24022 = vmatprep.subr.bf16.mxu0 %v24021_v41  ;;  %24050 = vmatprep.subr.bf16.mxu1 %v24049_v47  ;;  %v17920_v3 = vsel %vm17909_vm14, %v17919_v16, %v17751_v33  ;;  %v17923_v23 = vrot.slane %v17756_v48, 7  ;;  %v17861_v41 = vld [vmem:[#allocation7 + $0x340] sm:$0xff]  ;;  %v24035_v43 = vpack.c.bf16 %v17832_v40, %v17831_v38  ;;  %v24065_v24 = vpack.c.bf16 %v17880_v51, %v17879_v37  ;;  %v17863_v42 = vld [vmem:[#allocation7 + $0x350] sm:$0xff]  ;;  %v25422_v48 = vpop.permute.xlu0 %25421  ;;  %v17884_v2 = vld [vmem:[#allocation7 + $0x3f8] sm:$0xff] }
 0xeb2   :  { %v25428_v0 = vunpack.i.l.bf16 %v30588_v22  ;;  %18137 = vmatprep.mubr.f32.mxu0 %v17920_v3  ;;  %v24063_v47 = vpack.c.bf16 %v17862_v12, %v17861_v41  ;;  %v24039_v16 = vpack.c.bf16 %v17834_v28, %v17833_v53  ;;  %v24069_v33 = vpack.c.bf16 %v17882_v31, %v17881_v26  ;;  %v18217_v50 = vld [vmem:[%s30674_s11 + $0x18] sm:$0xff]  ;;  %v18218_v60 = vld [vmem:[%s30674_s11 + $0x20] sm:$0xff]  ;;  %v18219_v25 = vld [vmem:[%s30674_s11 + $0x28] sm:$0xff] }
 0xeb3   :  { %v25424_v4 = vunpack.i.h.bf16 %v25422_v48  ;;  %v24073_v1 = vpack.c.bf16 %v17884_v2, %v17883_v63  ;;  %v24084_v49 = vpack.c.bf16 %v18219_v25, %v18218_v60  ;;  %v18222_v40 = vld [vmem:[%s30674_s11 + $0x40] sm:$0xff]  ;;  %v18224_v41 = vld [vmem:[%s30674_s11 + $0x50] sm:$0xff]  ;;  %v18225_v12 = vld [vmem:[%s30674_s11 + $0x58] sm:$0xff] }
 0xeb4   :  { %24024 = vmatpush3.bf16.msra.mxu0 %v24023_v20  ;;  %24052 = vmatpush3.bf16.msra.mxu1 %v24051_v17  ;;  %v17752_v59 = vsel %vm17740_vm13, %v17695_v18, %v25428_v0  ;;  %v24067_v20 = vpack.c.bf16 %v17864_v61, %v17863_v42  ;;  %v17835_v17 = vld [vmem:[#allocation7 + $0x270] sm:$0xff]  ;;  %v25423_v0 = vunpack.i.l.bf16 %v25422_v48  ;;  %v24093_v14 = vpack.c.bf16 %v18225_v12, %v18224_v41  ;;  %v18226_v29 = vld [vmem:[%s30674_s11 + $0x60] sm:$0xff]  ;;  %v18227_v37 = vld [vmem:[%s30674_s11 + $0x68] sm:$0xff] }
 0xeb5   :  { %24026 = vmatprep.subr.bf16.mxu0 %v24025_v55  ;;  %24054 = vmatprep.subr.bf16.mxu1 %v24053_v62  ;;  %v17924_v52 = vsel %vm17909_vm14, %v17923_v23, %v17752_v59  ;;  %v17836_v55 = vld [vmem:[#allocation7 + $0x278] sm:$0xff]  ;;  %v17865_v62 = vld [vmem:[#allocation7 + $0x360] sm:$0xff]  ;;  %v17748_v39 = vsel %vm17740_vm13, %v30547_v56, %v25424_v4  ;;  %v24096_v51 = vpack.c.bf16 %v18227_v37, %v18226_v29 }
 0xeb6   :  { %18207 = vmatprep.mubr.f32.mxu1 %v17924_v52  ;;  %v24043_v3 = vpack.c.bf16 %v17836_v55, %v17835_v17  ;;  %v24071_v18 = vpack.c.bf16 %v17866_v57, %v17865_v62  ;;  %v17868_v23 = vld [vmem:[#allocation7 + $0x378] sm:$0xff]  ;;  %v17743_v59 = vsel %vm17740_vm13, %v30538_v32, %v25423_v0  ;;  %v18215_v56 = vld [vmem:[%s30674_s11 + $0x8] sm:$0xff] }
 0xeb7   :  { %v24075_v13 = vpack.c.bf16 %v17868_v23, %v17867_v10  ;;  %v19831_v42 = vld [vmem:[%s30673_s10] ss:$0 sm:$0xff] }
 0xeb8   :  { %24028 = vmatpush3.bf16.msra.mxu0 %v24027_v21  ;;  %24056 = vmatpush3.bf16.msra.mxu1 %v24055_v44  ;;  %v25429_v21 = vunpack.i.h.bf16 %v30588_v22  ;;  %v17917_v44 = vrot.slane %v17747_v5, 7  ;;  %v18214_v22 = vld [vmem:[%s30674_s11] sm:$0xff] }
 0xeb9   :  { %24030 = vmatprep.subr.bf16.mxu0 %v24029_v45  ;;  %24058 = vmatprep.subr.bf16.mxu1 %v24057_v19  ;;  %v17921_v45 = vrot.slane %v17748_v39, 7  ;;  %v18216_v19 = vld [vmem:[%s30674_s11 + $0x10] sm:$0xff]  ;;  %v19832_v62 = vld [vmem:[#allocation6] ss:$0 sm:$0xff] }
 0xeba   :  { %v17918_v8 = vsel %vm17909_vm14, %v17917_v44, %v17743_v59  ;;  %v17744_v52 = vsel %vm17740_vm13, %v30545_v54, %v25429_v21  ;;  %v24078_v54 = vpack.c.bf16 %v18215_v56, %v18214_v22  ;;  %v24081_v36 = vpack.c.bf16 %v18217_v50, %v18216_v19 }
 0xebb   :  { %v17922_v32 = vsel %vm17909_vm14, %v17921_v45, %v17744_v52 }
 0xebc   :  { %24032 = vmatpush3.bf16.msra.mxu0 %v24031_v34  ;;  %24060 = vmatpush3.bf16.msra.mxu1 %v24059_v35  ;;  %v18220_v34 = vld [vmem:[%s30674_s11 + $0x30] sm:$0xff]  ;;  %v18221_v35 = vld [vmem:[%s30674_s11 + $0x38] sm:$0xff] }
 0xebd   :  { %24034 = vmatprep.subr.bf16.mxu0 %v24033_v46  ;;  %24062 = vmatprep.subr.bf16.mxu1 %v24061_v11  ;;  %v24087_v38 = vpack.c.bf16 %v18221_v35, %v18220_v34  ;;  %v18223_v46 = vld [vmem:[%s30674_s11 + $0x48] sm:$0xff] }
 0xebe   :  { %v24090_v11 = vpack.c.bf16 %v18223_v46, %v18222_v40 }
 0xec0   :  { %24036 = vmatpush3.bf16.msra.mxu0 %v24035_v43  ;;  %24064 = vmatpush3.bf16.msra.mxu1 %v24063_v47  ;;  %v18228_v43 = vld [vmem:[%s30674_s11 + $0x70] sm:$0xff]  ;;  %v18229_v47 = vld [vmem:[%s30674_s11 + $0x78] sm:$0xff] }
 0xec1   :  { %24038 = vmatprep.subr.bf16.mxu0 %v24037_v6  ;;  %24066 = vmatprep.subr.bf16.mxu1 %v24065_v24  ;;  %v24099_v53 = vpack.c.bf16 %v18229_v47, %v18228_v43 }
 0xec4   :  { %24040 = vmatpush3.bf16.msra.mxu0 %v24039_v16  ;;  %24068 = vmatpush3.bf16.msra.mxu1 %v24067_v20 }
 0xec5   :  { %24042 = vmatprep.subr.bf16.mxu0 %v24041_v7  ;;  %24070 = vmatprep.subr.bf16.mxu1 %v24069_v33 }
 0xec8   :  { %24044 = vmatpush3.bf16.msra.mxu0 %v24043_v3  ;;  %24072 = vmatpush3.bf16.msra.mxu1 %v24071_v18 }
 0xec9   :  { %24074 = vmatprep.subr.bf16.mxu1 %v24073_v1  ;;  %24077 = vmatprep.subr.bf16.mxu0 %v25459_v58 }
 0xecb   :  { %18138 = vmatmul.mubr.f32.vlgmr.msra.gmra.mrb[82].mxu0 %v17918_v8 }
 0xecc   :  { %24076 = vmatpush3.bf16.msra.mxu1 %v24075_v13  ;;  %24079 = vmatpush3.bf16.msra.mxu0 %v24078_v54 }
 0xecd   :  { %24080 = vmatprep.subr.bf16.mxu0 %v25459_v58  ;;  %23838 = vmatprep.mubr.msk.f32.mxu0 %vm25460_vm15, %v31122_v27 }
 0xecf   :  { %18208 = vmatmul.mubr.f32.vlgmr.msra.gmra.mrb[90].mxu1 %v17922_v32 }
 0xed0   :  { %24082 = vmatpush3.bf16.msra.mxu0 %v24081_v36 }
 0xed1   :  { %24083 = vmatprep.subr.bf16.mxu0 %v25459_v58 }
 0xed4   :  { %24085 = vmatpush3.bf16.msra.mxu0 %v24084_v49 }
 0xed5   :  { %24086 = vmatprep.subr.bf16.mxu0 %v25459_v58 }
 0xed8   :  { %24088 = vmatpush3.bf16.msra.mxu0 %v24087_v38 }
 0xed9   :  { %24089 = vmatprep.subr.bf16.mxu0 %v25459_v58 }
 0xedc   :  { %24091 = vmatpush3.bf16.msra.mxu0 %v24090_v11 }
 0xedd   :  { %24092 = vmatprep.subr.bf16.mxu0 %v25459_v58 }
 0xee0   :  { %24094 = vmatpush3.bf16.msra.mxu0 %v24093_v14 }
 0xee1   :  { %24095 = vmatprep.subr.bf16.mxu0 %v25459_v58 }
 0xee4   :  { %24097 = vmatpush3.bf16.msra.mxu0 %v24096_v51 }
 0xee5   :  { %24098 = vmatprep.subr.bf16.mxu0 %v25459_v58 }
 0xee8   :  { %24100 = vmatpush3.bf16.msra.mxu0 %v24099_v53 }
 0xf7e   :  { %v21377_v28 = vpop.f32.mrb[80].mxu0 }
 0xf7f   :  { %v21378_v6 = vpop.f32.mrb[81].mxu0 }
 0xf80   :  { %v21379_v24 = vadd.f32 %v21378_v6, %v21377_v28 }
 0xf82   :  { %v21412_v61 = vpop.f32.mrb[88].mxu1  ;;  %v18000_v9 = vadd.f32 %v21379_v24, %v19831_v42 }
 0xf83   :  { %v21413_v30 = vpop.f32.mrb[89].mxu1 }
 0xf84   :  { %v21414_v26 = vadd.f32 %v21413_v30, %v21412_v61 }
 0xf86   :  { %v18070_v31 = vadd.f32 %v21414_v26, %v18000_v9 }
 0xf9e   :  { %v21447_v48 = vpop.f32.mrb[82].mxu0 }
 0xf9f   :  { %v21448_v16 = vpop.f32.mrb[83].mxu0 }
 0xfa0   :  { %v21449_v20 = vadd.f32 %v21448_v16, %v21447_v48 }
 0xfa2   :  { %v18140_v17 = vadd.f32 %v21449_v20, %v18070_v31  ;;  %v21482_v15 = vpop.f32.mrb[90].mxu1 }
 0xfa3   :  { %v21483_v7 = vpop.f32.mrb[91].mxu1 }
 0xfa4   :  { %v21484_v27 = vadd.f32 %v21483_v7, %v21482_v15 }
 0xfa6   :  { %v18210_v33 = vadd.f32 %v21484_v27, %v18140_v17 }
 0xfa8   :  { %v18213_v55 = vmax.f32 %v18210_v33, 0.0 }
 0xfaa   :  { %23839 = vmatmul.mubr.f32.vlgmr.msra.gmra.mrb[84].mxu0 %v18213_v55 }
0x107d   :  { %v18303_v57 = vpop.f32.mrb[84].mxu0 }
0x107e   :  { %v18304_v63 = vadd.f32 %v19832_v62, %v18303_v57  ;;  %v23840_v2 = vpop.f32.mrb[85].mxu0 }
0x1080   :  { %18308 = vst.msk [vmem:[%s30676_s13] sm:$0x3] %vm18307_vm0, %v18304_v63 }
0x1081   :  { %18313 = vsyncpa [#allocation8], 1 }

</bundles_post_ra>
